<compile_context>
chip_gen: v5e
topology: v5e:2x2
jax: 0.10.0
libtpu: 0.0.40
codegen_flags: <defaults>
</compile_context>

<pallas_src>
import functools

import jax
import jax.numpy as jnp
from jax import lax
from jax.experimental import pallas as pl
from jax.experimental.pallas import tpu as pltpu

EPS = 1e-5  # RevNorm eps


# ----------------------------------------------------------------------------
# Small helpers used inside the kernel.
# ----------------------------------------------------------------------------
def _shift_from_lower(a, k):
    """result[:, p] = a[:, p - k] (zero-filled for p < k)."""
    n = a.shape[1]
    zero = jnp.zeros((a.shape[0], k), a.dtype)
    return jnp.concatenate([zero, a[:, :n - k]], axis=1)


def _shift_from_upper(a, k):
    """result[:, p] = a[:, p + k] (zero-filled for p >= n - k)."""
    n = a.shape[1]
    zero = jnp.zeros((a.shape[0], k), a.dtype)
    return jnp.concatenate([a[:, k:], zero], axis=1)


def _mod(x, m):
    """x % m; uses a bit-mask when m is a power of two (cheap VPU path)."""
    if (m & (m - 1)) == 0:
        return jnp.bitwise_and(x, m - 1)
    return x % m


# ----------------------------------------------------------------------------
# Pallas kernel: whole batch in one step, layout (C, B*H*W) — channels on
# sublanes, pixels on lanes (lane-dense: B*H*W is a multiple of 128).
# ----------------------------------------------------------------------------
def _lstm_kernel(B, H, W, C,
                 h0_ref, x_ref, c0_ref,          # (C, N) f32 each
                 dww_ref, dwb_ref,                # depthwise 3x3: (C, 9), (C, 1)
                 w1t_ref, b1t_ref,                # fused 1x1 conv: (4C, 2C), (4C, 1)
                 rnw_ref, rnb_ref,                # RevNorm affine: (C, 1), (C, 1)
                 h1_ref, c1_ref):                 # outputs (C, N)
    HW = H * W
    N = B * HW
    inv_n = 1.0 / float(HW)

    h0 = h0_ref[...]                                   # (C, N)
    rnw = rnw_ref[...]                                 # (C, 1)
    rnb = rnb_ref[...]                                 # (C, 1)

    # ---- RevNorm 'norm' statistics, per (batch, channel) --------------------
    # Per-batch pixel ranges are 128-lane-aligned static slices; the norm and
    # denorm are folded into one multiply-add each (scale/shift rows).
    nscale_p, nshift_p, dscale_p, dshift_p = [], [], [], []
    for b in range(B):
        hb = h0[:, b * HW:(b + 1) * HW]                # (C, HW)
        m = jnp.sum(hb, axis=1, keepdims=True) * inv_n             # (C, 1)
        e2 = jnp.sum(hb * hb, axis=1, keepdims=True) * inv_n
        var = jnp.maximum(e2 - m * m, 0.0)             # clamp: cancellation guard
        istd = lax.rsqrt(var + EPS)                    # EUP rsqrt
        std = (var + EPS) * istd                       # sqrt(var + eps)
        nsc = rnw * istd
        nsh = rnb - m * nsc
        dsc = std / (rnw + EPS * EPS)                  # exact (reviewer request)
        dsh = m - rnb * dsc
        nscale_p.append(jnp.broadcast_to(nsc, (C, HW)))
        nshift_p.append(jnp.broadcast_to(nsh, (C, HW)))
        dscale_p.append(jnp.broadcast_to(dsc, (C, HW)))
        dshift_p.append(jnp.broadcast_to(dsh, (C, HW)))
    nscale = jnp.concatenate(nscale_p, axis=1)         # (C, N)
    nshift = jnp.concatenate(nshift_p, axis=1)
    dscale = jnp.concatenate(dscale_p, axis=1)
    dshift = jnp.concatenate(dshift_p, axis=1)

    hn = h0 * nscale + nshift                          # normalized hidden (C, N)

    # ---- depthwise 3x3 conv (padding=1, groups == C) -------------------------
    # Pixel index p = b*HW + h*W + w lives on the lane axis, so W+-1 shifts are
    # 1-lane shifts and H+-1 shifts are W-lane shifts.  Shifts are zero-filled
    # slice+concat (equivalent to roll + edge mask, single materialized operand,
    # no direction ambiguity); image-edge masks come from one small iota row.
    p = lax.broadcasted_iota(jnp.int32, (1, N), 1)
    wpos = _mod(p, W)
    hpix = _mod(p, HW)
    has_l = wpos > 0                 # (h, w-1) exists
    has_r = wpos < W - 1             # (h, w+1) exists
    has_u = hpix >= W                # (h-1, w) exists
    has_d = hpix < HW - W            # (h+1, w) exists

    hm = jnp.where(has_l, _shift_from_lower(hn, 1), 0.0)   # hn at (h, w-1)
    hp = jnp.where(has_r, _shift_from_upper(hn, 1), 0.0)   # hn at (h, w+1)

    dww = dww_ref[...]                                      # (C, 9), k = ky*3 + kx

    def tap(k):
        return dww[:, k:k + 1]                              # (C, 1) per-channel tap

    v_top = hm * tap(0) + hn * tap(1) + hp * tap(2)         # kernel row ky = 0
    v_mid = hm * tap(3) + hn * tap(4) + hp * tap(5)         # kernel row ky = 1
    v_bot = hm * tap(6) + hn * tap(7) + hp * tap(8)         # kernel row ky = 2

    conv = v_mid + dwb_ref[...]
    conv = conv + jnp.where(has_u, _shift_from_lower(v_top, W), 0.0)   # from h-1
    conv = conv + jnp.where(has_d, _shift_from_upper(v_bot, W), 0.0)   # from h+1

    # ---- fused 1x1 conv: one (4C, 2C) @ (2C, N) MXU matmul for all 4 gates ---
    rhs = jnp.concatenate([x_ref[...], conv], axis=0)       # (2C, N)
    mix = jnp.dot(w1t_ref[...], rhs,
                  preferred_element_type=jnp.float32,
                  precision=jax.lax.Precision.HIGHEST) + b1t_ref[...]   # (4C, N)

    # Gate rows: [cell | forget | input | output].  The x2 for
    # tanh(z) = 2*sigmoid(2z) - 1 is pre-folded into w1/b1 rows [0, C).
    act = jax.nn.sigmoid(mix)                               # lane-dense EUP pass
    cell_in = act[:C] * 2.0 - 1.0                           # tanh(cell pre-act)
    f_g = act[C:2 * C]
    i_g = act[2 * C:3 * C]
    o_g = act[3 * C:]

    # ---- LSTM cell update (cell_update_dropout p=0.0 -> identity) ------------
    c1 = f_g * c0_ref[...] + i_g * cell_in                  # (C, N)
    h1 = o_g * jnp.tanh(c1)

    # ---- RevNorm 'denorm' folded into one multiply-add; lane-dense stores ----
    h1_ref[...] = h1 * dscale + dshift
    c1_ref[...] = c1


# ----------------------------------------------------------------------------
# Wrapper: NCHW in / NCHW out (PyTorch convention); kernel works in (C, B*H*W).
# ----------------------------------------------------------------------------
def dws_conv_lstm2d_forward(x, hc_previous, params):
    if hc_previous is None:
        hc_previous = (x, x)   # matches the PyTorch module: hidden = cell = x
    h0, c0 = hc_previous
    B, C, H, W = x.shape
    HW = H * W
    N = B * HW
    # TODO(synk): torchvision F.resize of (h0, c0) to (H, W) is not implemented;
    # h0/c0 are assumed to already share x's spatial size (resize == identity).

    # NOTE (review): in a recurrent rollout the (h, c) state should be carried
    # between time steps in this (C, B*H*W) kernel layout and only converted at
    # the model boundary, so the NCHW transposes below are paid once, not per step.
    def to_cp(t):  # NCHW -> (C, B*H*W) f32
        return jnp.transpose(t.reshape(B, C, HW), (1, 0, 2)).reshape(C, N).astype(jnp.float32)

    h0_t, x_t, c0_t = to_cp(h0), to_cp(x), to_cp(c0)

    # Parameter prep (free, XLA-side): per-channel vectors as (C, 1) columns and
    # the 2x cell-gate fold into w1 / b1 so the kernel needs no activation masks.
    gsc = jnp.concatenate([jnp.full((1, C), 2.0, jnp.float32),
                           jnp.ones((1, 3 * C), jnp.float32)], axis=1)      # (1, 4C)
    w1t = jnp.transpose(params["w1"].astype(jnp.float32) * gsc)             # (4C, 2C)
    b1t = (params["b1"].astype(jnp.float32) * gsc).reshape(4 * C, 1)        # (4C, 1)
    dwwT = jnp.transpose(params["dw_w"].astype(jnp.float32))                # (C, 9)
    dwbT = params["dw_b"].astype(jnp.float32).reshape(C, 1)                 # (C, 1)
    rnwT = params["rn_w"].astype(jnp.float32).reshape(C, 1)
    rnbT = params["rn_b"].astype(jnp.float32).reshape(C, 1)

    args = (h0_t, x_t, c0_t, dwwT, dwbT, w1t, b1t, rnwT, rnbT)
    full = lambda a: pl.BlockSpec(a.shape, lambda i: (0, 0))

    kernel = functools.partial(_lstm_kernel, B, H, W, C)
    # Single grid step over the whole batch (review: collapse the grid on the
    # single-TensorCore chips; total VMEM footprint here is only a few MiB, far
    # below the v7x 64 MiB / 32 MiB-scoped budget — re-derive if H, W, C grow).
    h1_t, c1_t = pl.pallas_call(
        kernel,
        out_shape=(jax.ShapeDtypeStruct((C, N), jnp.float32),
                   jax.ShapeDtypeStruct((C, N), jnp.float32)),
        grid=(1,),
        in_specs=[full(a) for a in args],
        out_specs=(pl.BlockSpec((C, N), lambda i: (0, 0)),
                   pl.BlockSpec((C, N), lambda i: (0, 0))),
        compiler_params=pltpu.CompilerParams(
            dimension_semantics=("arbitrary",),
            vmem_limit_bytes=32 * 1024 * 1024),   # safe on v5e/v6e/v7x
    )(*args)

    def from_cp(t):  # (C, B*H*W) -> NCHW
        return jnp.transpose(t.reshape(C, B, HW), (1, 0, 2)).reshape(B, C, H, W)

    return from_cp(h1_t), from_cp(c1_t)


# ----------------------------------------------------------------------------
# Deterministic parameter init (shapes follow DWSConvLSTM2d.__init__).
# ----------------------------------------------------------------------------
def init_params(key, dim):
    C = dim
    k0, k1, k2, k3 = jax.random.split(key, 4)
    # depthwise conv: torch weight (C,1,3,3), bias (C,) -> stored (9, C), (1, C)
    dw_w = (jax.random.normal(k0, (3, 3, C), jnp.float32) * 0.1).reshape(9, C)
    dw_b = jax.random.normal(k1, (1, C), jnp.float32) * 0.1
    # 1x1 conv: torch weight (4C, 2C, 1, 1), bias (4C,) -> stored fused (2C, 4C), (1, 4C)
    w1 = jax.random.normal(k2, (2 * C, 4 * C), jnp.float32) / jnp.sqrt(2.0 * C)
    b1 = jax.random.normal(k3, (1, 4 * C), jnp.float32) * 0.1
    return dict(
        dw_w=dw_w, dw_b=dw_b, w1=w1, b1=b1,
        rn_w=jnp.ones((1, C), jnp.float32),    # RevNorm affine_weight
        rn_b=jnp.zeros((1, C), jnp.float32))   # RevNorm affine_bias


# ----------------------------------------------------------------------------
# Pure-JAX f32 reference (ground truth for the kernel sanity check).
# ----------------------------------------------------------------------------
def reference_forward(x, h0, c0, p):
    B, C, H, W = x.shape
    t = lambda a: jnp.transpose(a, (0, 2, 3, 1)).astype(jnp.float32)
    xn, hn, cn = t(x), t(h0), t(c0)
    mean = jnp.mean(hn, axis=(1, 2), keepdims=True)
    var = jnp.mean((hn - mean) ** 2, axis=(1, 2), keepdims=True)
    std = jnp.sqrt(var + EPS)
    hN = (hn - mean) / std * p["rn_w"][0] + p["rn_b"][0]
    dw = p["dw_w"].reshape(3, 3, 1, C)
    hc = jax.lax.conv_general_dilated(
        hN, dw, window_strides=(1, 1), padding="SAME",
        dimension_numbers=("NHWC", "HWIO", "NHWC"),
        feature_group_count=C) + p["dw_b"][0]
    xh = jnp.concatenate([xn, hc], axis=-1)
    mix = jnp.einsum("bhwc,cd->bhwd", xh, p["w1"],
                     precision=jax.lax.Precision.HIGHEST) + p["b1"][0]
    cell_in = jnp.tanh(mix[..., :C])
    gates = jax.nn.sigmoid(mix[..., C:])
    f, i, o = gates[..., :C], gates[..., C:2 * C], gates[..., 2 * C:3 * C]
    c1 = f * cn + i * cell_in
    h1 = o * jnp.tanh(c1)
    h1 = (h1 - p["rn_b"][0]) / (p["rn_w"][0] + EPS * EPS) * std + mean
    b = lambda a: jnp.transpose(a, (0, 3, 1, 2))
    return b(h1), b(c1)


if __name__ == "__main__":
    key = jax.random.PRNGKey(0)
    kx_, kh, kc, kp = jax.random.split(key, 4)
    B, C, H, W = 2, 32, 16, 16                       # dim=32 (small synthetic size)
    x = jax.random.normal(kx_, (B, C, H, W), jnp.float32)
    h0 = jax.random.normal(kh, (B, C, H, W), jnp.float32)
    c0 = jax.random.normal(kc, (B, C, H, W), jnp.float32)
    params = init_params(kp, C)

    h1, c1 = dws_conv_lstm2d_forward(x, (h0, c0), params)
    jax.block_until_ready((h1, c1))

    h1r, c1r = reference_forward(x, h0, c0, params)
    assert h1.shape == (B, C, H, W) and c1.shape == (B, C, H, W)
    err_h = float(jnp.max(jnp.abs(h1 - h1r)))
    err_c = float(jnp.max(jnp.abs(c1 - c1r)))
    # f32 matmul operands in the kernel (review correctness note); tolerance
    # leaves headroom for MXU multi-pass rounding vs the HIGHEST-precision ref.
    assert jnp.allclose(h1, h1r, atol=2e-2, rtol=2e-2), err_h
    assert jnp.allclose(c1, c1r, atol=2e-2, rtol=2e-2), err_c
    print("KERNEL_OK")
</pallas_src>

<mosaic_0001>
module attributes {stable_mosaic.version = 11 : i64} {
  func.func @_lstm_kernel(%arg0: i32, %arg1: memref<32x512xf32, #tpu.memory_space<vmem>>, %arg2: memref<32x512xf32, #tpu.memory_space<vmem>>, %arg3: memref<32x512xf32, #tpu.memory_space<vmem>>, %arg4: memref<32x9xf32, #tpu.memory_space<vmem>>, %arg5: memref<32x1xf32, #tpu.memory_space<vmem>>, %arg6: memref<128x64xf32, #tpu.memory_space<vmem>>, %arg7: memref<128x1xf32, #tpu.memory_space<vmem>>, %arg8: memref<32x1xf32, #tpu.memory_space<vmem>>, %arg9: memref<32x1xf32, #tpu.memory_space<vmem>>, %arg10: memref<32x512xf32, #tpu.memory_space<vmem>>, %arg11: memref<32x512xf32, #tpu.memory_space<vmem>>) attributes {dimension_semantics = [#tpu.dimension_semantics<arbitrary>], iteration_bounds = array<i64: 1>, scalar_prefetch = 0 : i64, scratch_operands = 0 : i64, tpu.core_type = #tpu.core_type<tc>, window_params = [{pipeline_mode = #tpu.pipeline_mode<synchronous>, transform_indices = @transform_0, window_bounds = array<i64: 32, 512>}, {pipeline_mode = #tpu.pipeline_mode<synchronous>, transform_indices = @transform_1, window_bounds = array<i64: 32, 512>}, {pipeline_mode = #tpu.pipeline_mode<synchronous>, transform_indices = @transform_2, window_bounds = array<i64: 32, 512>}, {pipeline_mode = #tpu.pipeline_mode<synchronous>, transform_indices = @transform_3, window_bounds = array<i64: 32, 9>}, {pipeline_mode = #tpu.pipeline_mode<synchronous>, transform_indices = @transform_4, window_bounds = array<i64: 32, 1>}, {pipeline_mode = #tpu.pipeline_mode<synchronous>, transform_indices = @transform_5, window_bounds = array<i64: 128, 64>}, {pipeline_mode = #tpu.pipeline_mode<synchronous>, transform_indices = @transform_6, window_bounds = array<i64: 128, 1>}, {pipeline_mode = #tpu.pipeline_mode<synchronous>, transform_indices = @transform_7, window_bounds = array<i64: 32, 1>}, {pipeline_mode = #tpu.pipeline_mode<synchronous>, transform_indices = @transform_8, window_bounds = array<i64: 32, 1>}, {pipeline_mode = #tpu.pipeline_mode<synchronous>, transform_indices = @transform_9, window_bounds = array<i64: 32, 512>}, {pipeline_mode = #tpu.pipeline_mode<synchronous>, transform_indices = @transform_10, window_bounds = array<i64: 32, 512>}]} {
    %c0 = arith.constant 0 : index
    %c0_0 = arith.constant 0 : index
    %0 = vector.load %arg1[%c0, %c0_0] : memref<32x512xf32, #tpu.memory_space<vmem>>, vector<32x512xf32>
    %c0_1 = arith.constant 0 : index
    %c0_2 = arith.constant 0 : index
    %1 = vector.load %arg8[%c0_1, %c0_2] : memref<32x1xf32, #tpu.memory_space<vmem>>, vector<32x1xf32>
    %c0_3 = arith.constant 0 : index
    %c0_4 = arith.constant 0 : index
    %2 = vector.load %arg9[%c0_3, %c0_4] : memref<32x1xf32, #tpu.memory_space<vmem>>, vector<32x1xf32>
    %3 = vector.extract_strided_slice %0 {offsets = [0, 0], sizes = [32, 256], strides = [1, 1]} : vector<32x512xf32> to vector<32x256xf32>
    %cst = arith.constant dense<0.000000e+00> : vector<32xf32>
    %4 = vector.multi_reduction <add>, %3, %cst [1] : vector<32x256xf32> to vector<32xf32>
    %5 = vector.shape_cast %4 : vector<32xf32> to vector<32x1xf32>
    %cst_5 = arith.constant 3.906250e-03 : f32
    %6 = vector.broadcast %cst_5 : f32 to vector<32x1xf32>
    %7 = arith.mulf %5, %6 : vector<32x1xf32>
    %8 = arith.mulf %3, %3 : vector<32x256xf32>
    %cst_6 = arith.constant dense<0.000000e+00> : vector<32xf32>
    %9 = vector.multi_reduction <add>, %8, %cst_6 [1] : vector<32x256xf32> to vector<32xf32>
    %10 = vector.shape_cast %9 : vector<32xf32> to vector<32x1xf32>
    %cst_7 = arith.constant 3.906250e-03 : f32
    %11 = vector.broadcast %cst_7 : f32 to vector<32x1xf32>
    %12 = arith.mulf %10, %11 : vector<32x1xf32>
    %13 = arith.mulf %7, %7 : vector<32x1xf32>
    %14 = arith.subf %12, %13 : vector<32x1xf32>
    %cst_8 = arith.constant 0.000000e+00 : f32
    %15 = vector.broadcast %cst_8 : f32 to vector<32x1xf32>
    %16 = arith.maximumf %14, %15 : vector<32x1xf32>
    %cst_9 = arith.constant 9.99999974E-6 : f32
    %17 = vector.broadcast %cst_9 : f32 to vector<32x1xf32>
    %18 = arith.addf %16, %17 : vector<32x1xf32>
    %19 = math.rsqrt %18 : vector<32x1xf32>
    %cst_10 = arith.constant 9.99999974E-6 : f32
    %20 = vector.broadcast %cst_10 : f32 to vector<32x1xf32>
    %21 = arith.addf %16, %20 : vector<32x1xf32>
    %22 = arith.mulf %21, %19 : vector<32x1xf32>
    %23 = arith.mulf %1, %19 : vector<32x1xf32>
    %24 = arith.mulf %7, %23 : vector<32x1xf32>
    %25 = arith.subf %2, %24 : vector<32x1xf32>
    %cst_11 = arith.constant 1.000000e-10 : f32
    %26 = vector.broadcast %cst_11 : f32 to vector<32x1xf32>
    %27 = arith.addf %1, %26 : vector<32x1xf32>
    %28 = arith.divf %22, %27 : vector<32x1xf32>
    %29 = arith.mulf %2, %28 : vector<32x1xf32>
    %30 = arith.subf %7, %29 : vector<32x1xf32>
    %31 = vector.shape_cast %23 : vector<32x1xf32> to vector<32x1xf32>
    %32 = vector.broadcast %31 : vector<32x1xf32> to vector<32x256xf32>
    %33 = vector.shape_cast %25 : vector<32x1xf32> to vector<32x1xf32>
    %34 = vector.broadcast %33 : vector<32x1xf32> to vector<32x256xf32>
    %35 = vector.shape_cast %28 : vector<32x1xf32> to vector<32x1xf32>
    %36 = vector.broadcast %35 : vector<32x1xf32> to vector<32x256xf32>
    %37 = vector.shape_cast %30 : vector<32x1xf32> to vector<32x1xf32>
    %38 = vector.broadcast %37 : vector<32x1xf32> to vector<32x256xf32>
    %39 = vector.extract_strided_slice %0 {offsets = [0, 256], sizes = [32, 256], strides = [1, 1]} : vector<32x512xf32> to vector<32x256xf32>
    %cst_12 = arith.constant dense<0.000000e+00> : vector<32xf32>
    %40 = vector.multi_reduction <add>, %39, %cst_12 [1] : vector<32x256xf32> to vector<32xf32>
    %41 = vector.shape_cast %40 : vector<32xf32> to vector<32x1xf32>
    %cst_13 = arith.constant 3.906250e-03 : f32
    %42 = vector.broadcast %cst_13 : f32 to vector<32x1xf32>
    %43 = arith.mulf %41, %42 : vector<32x1xf32>
    %44 = arith.mulf %39, %39 : vector<32x256xf32>
    %cst_14 = arith.constant dense<0.000000e+00> : vector<32xf32>
    %45 = vector.multi_reduction <add>, %44, %cst_14 [1] : vector<32x256xf32> to vector<32xf32>
    %46 = vector.shape_cast %45 : vector<32xf32> to vector<32x1xf32>
    %cst_15 = arith.constant 3.906250e-03 : f32
    %47 = vector.broadcast %cst_15 : f32 to vector<32x1xf32>
    %48 = arith.mulf %46, %47 : vector<32x1xf32>
    %49 = arith.mulf %43, %43 : vector<32x1xf32>
    %50 = arith.subf %48, %49 : vector<32x1xf32>
    %cst_16 = arith.constant 0.000000e+00 : f32
    %51 = vector.broadcast %cst_16 : f32 to vector<32x1xf32>
    %52 = arith.maximumf %50, %51 : vector<32x1xf32>
    %cst_17 = arith.constant 9.99999974E-6 : f32
    %53 = vector.broadcast %cst_17 : f32 to vector<32x1xf32>
    %54 = arith.addf %52, %53 : vector<32x1xf32>
    %55 = math.rsqrt %54 : vector<32x1xf32>
    %cst_18 = arith.constant 9.99999974E-6 : f32
    %56 = vector.broadcast %cst_18 : f32 to vector<32x1xf32>
    %57 = arith.addf %52, %56 : vector<32x1xf32>
    %58 = arith.mulf %57, %55 : vector<32x1xf32>
    %59 = arith.mulf %1, %55 : vector<32x1xf32>
    %60 = arith.mulf %43, %59 : vector<32x1xf32>
    %61 = arith.subf %2, %60 : vector<32x1xf32>
    %cst_19 = arith.constant 1.000000e-10 : f32
    %62 = vector.broadcast %cst_19 : f32 to vector<32x1xf32>
    %63 = arith.addf %1, %62 : vector<32x1xf32>
    %64 = arith.divf %58, %63 : vector<32x1xf32>
    %65 = arith.mulf %2, %64 : vector<32x1xf32>
    %66 = arith.subf %43, %65 : vector<32x1xf32>
    %67 = vector.shape_cast %59 : vector<32x1xf32> to vector<32x1xf32>
    %68 = vector.broadcast %67 : vector<32x1xf32> to vector<32x256xf32>
    %69 = vector.shape_cast %61 : vector<32x1xf32> to vector<32x1xf32>
    %70 = vector.broadcast %69 : vector<32x1xf32> to vector<32x256xf32>
    %71 = vector.shape_cast %64 : vector<32x1xf32> to vector<32x1xf32>
    %72 = vector.broadcast %71 : vector<32x1xf32> to vector<32x256xf32>
    %73 = vector.shape_cast %66 : vector<32x1xf32> to vector<32x1xf32>
    %74 = vector.broadcast %73 : vector<32x1xf32> to vector<32x256xf32>
    %75 = tpu.concatenate %32, %68 in 1 : vector<32x256xf32>, vector<32x256xf32> -> vector<32x512xf32>
    %76 = tpu.concatenate %34, %70 in 1 : vector<32x256xf32>, vector<32x256xf32> -> vector<32x512xf32>
    %77 = tpu.concatenate %36, %72 in 1 : vector<32x256xf32>, vector<32x256xf32> -> vector<32x512xf32>
    %78 = tpu.concatenate %38, %74 in 1 : vector<32x256xf32>, vector<32x256xf32> -> vector<32x512xf32>
    %79 = arith.mulf %0, %75 : vector<32x512xf32>
    %80 = arith.addf %79, %76 : vector<32x512xf32>
    %81 = tpu.iota {dimensions = array<i32: 1>} : vector<1x512xi32>
    %c15_i32 = arith.constant 15 : i32
    %82 = vector.broadcast %c15_i32 : i32 to vector<1x512xi32>
    %83 = arith.andi %81, %82 : vector<1x512xi32>
    %c255_i32 = arith.constant 255 : i32
    %84 = vector.broadcast %c255_i32 : i32 to vector<1x512xi32>
    %85 = arith.andi %81, %84 : vector<1x512xi32>
    %c0_i32 = arith.constant 0 : i32
    %86 = vector.broadcast %c0_i32 : i32 to vector<1x512xi32>
    %87 = arith.cmpi sgt, %83, %86 : vector<1x512xi32>
    %c15_i32_20 = arith.constant 15 : i32
    %88 = vector.broadcast %c15_i32_20 : i32 to vector<1x512xi32>
    %89 = arith.cmpi slt, %83, %88 : vector<1x512xi32>
    %c16_i32 = arith.constant 16 : i32
    %90 = vector.broadcast %c16_i32 : i32 to vector<1x512xi32>
    %91 = arith.cmpi sge, %85, %90 : vector<1x512xi32>
    %c240_i32 = arith.constant 240 : i32
    %92 = vector.broadcast %c240_i32 : i32 to vector<1x512xi32>
    %93 = arith.cmpi slt, %85, %92 : vector<1x512xi32>
    %cst_21 = arith.constant 0.000000e+00 : f32
    %94 = vector.broadcast %cst_21 : f32 to vector<32x1xf32>
    %95 = vector.extract_strided_slice %80 {offsets = [0, 0], sizes = [32, 511], strides = [1, 1]} : vector<32x512xf32> to vector<32x511xf32>
    %96 = tpu.concatenate %94, %95 in 1 : vector<32x1xf32>, vector<32x511xf32> -> vector<32x512xf32>
    %cst_22 = arith.constant 0.000000e+00 : f32
    %97 = vector.shape_cast %87 : vector<1x512xi1> to vector<1x512xi1>
    %98 = vector.broadcast %97 : vector<1x512xi1> to vector<32x512xi1>
    %99 = vector.broadcast %cst_22 : f32 to vector<32x512xf32>
    %100 = arith.select %98, %96, %99 : vector<32x512xi1>, vector<32x512xf32>
    %cst_23 = arith.constant 0.000000e+00 : f32
    %101 = vector.broadcast %cst_23 : f32 to vector<32x1xf32>
    %102 = vector.extract_strided_slice %80 {offsets = [0, 1], sizes = [32, 511], strides = [1, 1]} : vector<32x512xf32> to vector<32x511xf32>
    %103 = tpu.concatenate %102, %101 in 1 : vector<32x511xf32>, vector<32x1xf32> -> vector<32x512xf32>
    %cst_24 = arith.constant 0.000000e+00 : f32
    %104 = vector.shape_cast %89 : vector<1x512xi1> to vector<1x512xi1>
    %105 = vector.broadcast %104 : vector<1x512xi1> to vector<32x512xi1>
    %106 = vector.broadcast %cst_24 : f32 to vector<32x512xf32>
    %107 = arith.select %105, %103, %106 : vector<32x512xi1>, vector<32x512xf32>
    %c0_25 = arith.constant 0 : index
    %c0_26 = arith.constant 0 : index
    %108 = vector.load %arg4[%c0_25, %c0_26] : memref<32x9xf32, #tpu.memory_space<vmem>>, vector<32x9xf32>
    %109 = vector.extract_strided_slice %108 {offsets = [0, 0], sizes = [32, 1], strides = [1, 1]} : vector<32x9xf32> to vector<32x1xf32>
    %110 = vector.broadcast %109 : vector<32x1xf32> to vector<32x512xf32>
    %111 = arith.mulf %100, %110 : vector<32x512xf32>
    %112 = vector.extract_strided_slice %108 {offsets = [0, 1], sizes = [32, 1], strides = [1, 1]} : vector<32x9xf32> to vector<32x1xf32>
    %113 = vector.broadcast %112 : vector<32x1xf32> to vector<32x512xf32>
    %114 = arith.mulf %80, %113 : vector<32x512xf32>
    %115 = arith.addf %111, %114 : vector<32x512xf32>
    %116 = vector.extract_strided_slice %108 {offsets = [0, 2], sizes = [32, 1], strides = [1, 1]} : vector<32x9xf32> to vector<32x1xf32>
    %117 = vector.broadcast %116 : vector<32x1xf32> to vector<32x512xf32>
    %118 = arith.mulf %107, %117 : vector<32x512xf32>
    %119 = arith.addf %115, %118 : vector<32x512xf32>
    %120 = vector.extract_strided_slice %108 {offsets = [0, 3], sizes = [32, 1], strides = [1, 1]} : vector<32x9xf32> to vector<32x1xf32>
    %121 = vector.broadcast %120 : vector<32x1xf32> to vector<32x512xf32>
    %122 = arith.mulf %100, %121 : vector<32x512xf32>
    %123 = vector.extract_strided_slice %108 {offsets = [0, 4], sizes = [32, 1], strides = [1, 1]} : vector<32x9xf32> to vector<32x1xf32>
    %124 = vector.broadcast %123 : vector<32x1xf32> to vector<32x512xf32>
    %125 = arith.mulf %80, %124 : vector<32x512xf32>
    %126 = arith.addf %122, %125 : vector<32x512xf32>
    %127 = vector.extract_strided_slice %108 {offsets = [0, 5], sizes = [32, 1], strides = [1, 1]} : vector<32x9xf32> to vector<32x1xf32>
    %128 = vector.broadcast %127 : vector<32x1xf32> to vector<32x512xf32>
    %129 = arith.mulf %107, %128 : vector<32x512xf32>
    %130 = arith.addf %126, %129 : vector<32x512xf32>
    %131 = vector.extract_strided_slice %108 {offsets = [0, 6], sizes = [32, 1], strides = [1, 1]} : vector<32x9xf32> to vector<32x1xf32>
    %132 = vector.broadcast %131 : vector<32x1xf32> to vector<32x512xf32>
    %133 = arith.mulf %100, %132 : vector<32x512xf32>
    %134 = vector.extract_strided_slice %108 {offsets = [0, 7], sizes = [32, 1], strides = [1, 1]} : vector<32x9xf32> to vector<32x1xf32>
    %135 = vector.broadcast %134 : vector<32x1xf32> to vector<32x512xf32>
    %136 = arith.mulf %80, %135 : vector<32x512xf32>
    %137 = arith.addf %133, %136 : vector<32x512xf32>
    %138 = vector.extract_strided_slice %108 {offsets = [0, 8], sizes = [32, 1], strides = [1, 1]} : vector<32x9xf32> to vector<32x1xf32>
    %139 = vector.broadcast %138 : vector<32x1xf32> to vector<32x512xf32>
    %140 = arith.mulf %107, %139 : vector<32x512xf32>
    %141 = arith.addf %137, %140 : vector<32x512xf32>
    %c0_27 = arith.constant 0 : index
    %c0_28 = arith.constant 0 : index
    %142 = vector.load %arg5[%c0_27, %c0_28] : memref<32x1xf32, #tpu.memory_space<vmem>>, vector<32x1xf32>
    %143 = vector.broadcast %142 : vector<32x1xf32> to vector<32x512xf32>
    %144 = arith.addf %130, %143 : vector<32x512xf32>
    %cst_29 = arith.constant 0.000000e+00 : f32
    %145 = vector.broadcast %cst_29 : f32 to vector<32x16xf32>
    %146 = vector.extract_strided_slice %119 {offsets = [0, 0], sizes = [32, 496], strides = [1, 1]} : vector<32x512xf32> to vector<32x496xf32>
    %147 = tpu.concatenate %145, %146 in 1 : vector<32x16xf32>, vector<32x496xf32> -> vector<32x512xf32>
    %cst_30 = arith.constant 0.000000e+00 : f32
    %148 = vector.shape_cast %91 : vector<1x512xi1> to vector<1x512xi1>
    %149 = vector.broadcast %148 : vector<1x512xi1> to vector<32x512xi1>
    %150 = vector.broadcast %cst_30 : f32 to vector<32x512xf32>
    %151 = arith.select %149, %147, %150 : vector<32x512xi1>, vector<32x512xf32>
    %152 = arith.addf %144, %151 : vector<32x512xf32>
    %cst_31 = arith.constant 0.000000e+00 : f32
    %153 = vector.broadcast %cst_31 : f32 to vector<32x16xf32>
    %154 = vector.extract_strided_slice %141 {offsets = [0, 16], sizes = [32, 496], strides = [1, 1]} : vector<32x512xf32> to vector<32x496xf32>
    %155 = tpu.concatenate %154, %153 in 1 : vector<32x496xf32>, vector<32x16xf32> -> vector<32x512xf32>
    %cst_32 = arith.constant 0.000000e+00 : f32
    %156 = vector.shape_cast %93 : vector<1x512xi1> to vector<1x512xi1>
    %157 = vector.broadcast %156 : vector<1x512xi1> to vector<32x512xi1>
    %158 = vector.broadcast %cst_32 : f32 to vector<32x512xf32>
    %159 = arith.select %157, %155, %158 : vector<32x512xi1>, vector<32x512xf32>
    %160 = arith.addf %152, %159 : vector<32x512xf32>
    %c0_33 = arith.constant 0 : index
    %c0_34 = arith.constant 0 : index
    %161 = vector.load %arg2[%c0_33, %c0_34] : memref<32x512xf32, #tpu.memory_space<vmem>>, vector<32x512xf32>
    %162 = tpu.concatenate %161, %160 in 0 : vector<32x512xf32>, vector<32x512xf32> -> vector<64x512xf32>
    %c0_35 = arith.constant 0 : index
    %c0_36 = arith.constant 0 : index
    %163 = vector.load %arg6[%c0_35, %c0_36] : memref<128x64xf32, #tpu.memory_space<vmem>>, vector<128x64xf32>
    %cst_37 = arith.constant dense<0.000000e+00> : vector<128x512xf32>
    %164 = tpu.matmul %163, %162, %cst_37 {dimension_numbers = #tpu.dot_dimension_numbers<[1], [0], [0], [1], [0, 0, 1, 1], [], []>, precision = #tpu.contract_precision<fp32>} : vector<128x64xf32>, vector<64x512xf32>, vector<128x512xf32> -> vector<128x512xf32>
    %c0_38 = arith.constant 0 : index
    %c0_39 = arith.constant 0 : index
    %165 = vector.load %arg7[%c0_38, %c0_39] : memref<128x1xf32, #tpu.memory_space<vmem>>, vector<128x1xf32>
    %166 = vector.broadcast %165 : vector<128x1xf32> to vector<128x512xf32>
    %167 = arith.addf %164, %166 : vector<128x512xf32>
    %168 = arith.negf %167 : vector<128x512xf32>
    %169 = math.exp %168 : vector<128x512xf32>
    %cst_40 = arith.constant 1.000000e+00 : f32
    %170 = vector.broadcast %cst_40 : f32 to vector<128x512xf32>
    %171 = arith.addf %170, %169 : vector<128x512xf32>
    %172 = arith.divf %170, %171 : vector<128x512xf32>
    %173 = vector.extract_strided_slice %172 {offsets = [0, 0], sizes = [32, 512], strides = [1, 1]} : vector<128x512xf32> to vector<32x512xf32>
    %cst_41 = arith.constant 2.000000e+00 : f32
    %174 = vector.broadcast %cst_41 : f32 to vector<32x512xf32>
    %175 = arith.mulf %173, %174 : vector<32x512xf32>
    %cst_42 = arith.constant 1.000000e+00 : f32
    %176 = vector.broadcast %cst_42 : f32 to vector<32x512xf32>
    %177 = arith.subf %175, %176 : vector<32x512xf32>
    %178 = vector.extract_strided_slice %172 {offsets = [32, 0], sizes = [32, 512], strides = [1, 1]} : vector<128x512xf32> to vector<32x512xf32>
    %179 = vector.extract_strided_slice %172 {offsets = [64, 0], sizes = [32, 512], strides = [1, 1]} : vector<128x512xf32> to vector<32x512xf32>
    %180 = vector.extract_strided_slice %172 {offsets = [96, 0], sizes = [32, 512], strides = [1, 1]} : vector<128x512xf32> to vector<32x512xf32>
    %c0_43 = arith.constant 0 : index
    %c0_44 = arith.constant 0 : index
    %181 = vector.load %arg3[%c0_43, %c0_44] : memref<32x512xf32, #tpu.memory_space<vmem>>, vector<32x512xf32>
    %182 = arith.mulf %178, %181 : vector<32x512xf32>
    %183 = arith.mulf %179, %177 : vector<32x512xf32>
    %184 = arith.addf %182, %183 : vector<32x512xf32>
    %185 = math.tanh %184 : vector<32x512xf32>
    %186 = arith.mulf %180, %185 : vector<32x512xf32>
    %187 = arith.mulf %186, %77 : vector<32x512xf32>
    %188 = arith.addf %187, %78 : vector<32x512xf32>
    %c0_45 = arith.constant 0 : index
    %c0_46 = arith.constant 0 : index
    %189 = vector.load %arg10[%c0_45, %c0_46] : memref<32x512xf32, #tpu.memory_space<vmem>>, vector<32x512xf32>
    tpu.vector_store %arg10[%c0_45, %c0_46], %188 {strides = array<i32>} : memref<32x512xf32, #tpu.memory_space<vmem>>, vector<32x512xf32>,
    %c0_47 = arith.constant 0 : index
    %c0_48 = arith.constant 0 : index
    %190 = vector.load %arg11[%c0_47, %c0_48] : memref<32x512xf32, #tpu.memory_space<vmem>>, vector<32x512xf32>
    tpu.vector_store %arg11[%c0_47, %c0_48], %184 {strides = array<i32>} : memref<32x512xf32, #tpu.memory_space<vmem>>, vector<32x512xf32>,
    return
  }
  func.func @transform_0(%arg0: i32) -> (i32, i32) {
    %c0_i32 = arith.constant 0 : i32
    %c0_i32_0 = arith.constant 0 : i32
    %c0_i32_1 = arith.constant 0 : i32
    return %c0_i32, %c0_i32_0 : i32, i32
  }
  func.func @transform_1(%arg0: i32) -> (i32, i32) {
    %c0_i32 = arith.constant 0 : i32
    %c0_i32_0 = arith.constant 0 : i32
    %c0_i32_1 = arith.constant 0 : i32
    return %c0_i32, %c0_i32_0 : i32, i32
  }
  func.func @transform_2(%arg0: i32) -> (i32, i32) {
    %c0_i32 = arith.constant 0 : i32
    %c0_i32_0 = arith.constant 0 : i32
    %c0_i32_1 = arith.constant 0 : i32
    return %c0_i32, %c0_i32_0 : i32, i32
  }
  func.func @transform_3(%arg0: i32) -> (i32, i32) {
    %c0_i32 = arith.constant 0 : i32
    %c0_i32_0 = arith.constant 0 : i32
    %c0_i32_1 = arith.constant 0 : i32
    return %c0_i32, %c0_i32_0 : i32, i32
  }
  func.func @transform_4(%arg0: i32) -> (i32, i32) {
    %c0_i32 = arith.constant 0 : i32
    %c0_i32_0 = arith.constant 0 : i32
    %c0_i32_1 = arith.constant 0 : i32
    return %c0_i32, %c0_i32_0 : i32, i32
  }
  func.func @transform_5(%arg0: i32) -> (i32, i32) {
    %c0_i32 = arith.constant 0 : i32
    %c0_i32_0 = arith.constant 0 : i32
    %c0_i32_1 = arith.constant 0 : i32
    return %c0_i32, %c0_i32_0 : i32, i32
  }
  func.func @transform_6(%arg0: i32) -> (i32, i32) {
    %c0_i32 = arith.constant 0 : i32
    %c0_i32_0 = arith.constant 0 : i32
    %c0_i32_1 = arith.constant 0 : i32
    return %c0_i32, %c0_i32_0 : i32, i32
  }
  func.func @transform_7(%arg0: i32) -> (i32, i32) {
    %c0_i32 = arith.constant 0 : i32
    %c0_i32_0 = arith.constant 0 : i32
    %c0_i32_1 = arith.constant 0 : i32
    return %c0_i32, %c0_i32_0 : i32, i32
  }
  func.func @transform_8(%arg0: i32) -> (i32, i32) {
    %c0_i32 = arith.constant 0 : i32
    %c0_i32_0 = arith.constant 0 : i32
    %c0_i32_1 = arith.constant 0 : i32
    return %c0_i32, %c0_i32_0 : i32, i32
  }
  func.func @transform_9(%arg0: i32) -> (i32, i32) {
    %c0_i32 = arith.constant 0 : i32
    %c0_i32_0 = arith.constant 0 : i32
    %c0_i32_1 = arith.constant 0 : i32
    return %c0_i32, %c0_i32_0 : i32, i32
  }
  func.func @transform_10(%arg0: i32) -> (i32, i32) {
    %c0_i32 = arith.constant 0 : i32
    %c0_i32_0 = arith.constant 0 : i32
    %c0_i32_1 = arith.constant 0 : i32
    return %c0_i32, %c0_i32_0 : i32, i32
  }
}

</mosaic_0001>

<bundles_post_ra>
// kernel: tpu_custom_call.1
= control target key start
LH: loop header
LB: loop body
LE: loop exit
PB: predicated region body
PF: predicated region fallthrough
CT: control target
= control target key end

     0   :  { %16 = vsyncpa [#allocation3], 0  ;;  %s11459_s0 = inlined_call_operand.vmem [shape: f32[32,512], index: 0, kind: input, shape index: {}]   ;;  %s11460_s1 = inlined_call_operand.vmem [shape: f32[32,512], index: 1, kind: input, shape index: {}]   ;;  %s11461_s2 = inlined_call_operand.vmem [shape: f32[32,512], index: 2, kind: input, shape index: {}]   ;;  %s11462_s3 = inlined_call_operand.vmem [shape: f32[32,9], index: 3, kind: input, shape index: {}]   ;;  %s11463_s4 = inlined_call_operand.vmem [shape: f32[32,1], index: 4, kind: input, shape index: {}]   ;;  %s11464_s5 = inlined_call_operand.vmem [shape: f32[128,64], index: 5, kind: input, shape index: {}]   ;;  %s11465_s6 = inlined_call_operand.vmem [shape: f32[128,1], index: 6, kind: input, shape index: {}]   ;;  %s11466_s7 = inlined_call_operand.vmem [shape: f32[32,1], index: 7, kind: input, shape index: {}]   ;;  %s11467_s8 = inlined_call_operand.vmem [shape: f32[32,1], index: 8, kind: input, shape index: {}]   ;;  %s11468_s9 = inlined_call_operand.hbm [shape: f32[32,512], index: 9, kind: output, shape index: {0}]   ;;  %s11469_s10 = inlined_call_operand.hbm [shape: f32[32,512], index: 10, kind: output, shape index: {1}]  }
   0x1   :  { %v6453_v0 = vld [vmem:[%s11459_s0 + $0x60] sm:$0xff]  ;;  %v6458_v1 = vld [vmem:[%s11459_s0 + $0x68] sm:$0xff] }
   0x2   :  { %v6463_v2 = vld [vmem:[%s11459_s0 + $0x40] sm:$0xff]  ;;  %v69_v3 = vadd.f32 %v6458_v1, %v6453_v0  ;;  %v82_v4 = vmul.f32 %v6453_v0, %v6453_v0  ;;  %v83_v5 = vmul.f32 %v6458_v1, %v6458_v1  ;;  %v6474_v6 = vld [vmem:[%s11459_s0 + $0x48] sm:$0xff] }
   0x3   :  { %v80_v7 = vmul.f32 %v6463_v2, %v6463_v2  ;;  %v81_v8 = vmul.f32 %v6474_v6, %v6474_v6 }
   0x4   :  { %70 = vadd.xlane.f32.xlu0 %v69_v3  ;;  %v93_v9 = vadd.f32 %v83_v5, %v82_v4 }
   0x5   :  { %v90_v10 = vadd.f32 %v81_v8, %v80_v7 }
   0x6   :  { %17 = vsyncpa [#allocation5], 0  ;;  %94 = vadd.xlane.f32.xlu1 %v93_v9  ;;  %v6483_v11 = vld [vmem:[%s11459_s0 + $0x20] sm:$0xff]  ;;  %v6488_v12 = vld [vmem:[%s11459_s0 + $0x28] sm:$0xff]  ;;  %v66_v13 = vadd.f32 %v6474_v6, %v6463_v2  ;;  %v11470_v20 = vmov 0   ;;  %v11478_v50 = vmov 1  }
   0x7   :  { %91 = vadd.xlane.f32.xlu2 %v90_v10  ;;  %v6495_v14 = vld [vmem:[%s11459_s0 + $0x70] sm:$0xff]  ;;  %v6500_v15 = vld [vmem:[%s11459_s0 + $0x78] sm:$0xff]  ;;  %v63_v16 = vadd.f32 %v6488_v12, %v6483_v11  ;;  %v6509_v18 = vld [vmem:[%s11459_s0] sm:$0xff]  ;;  %5983 = vset.pattern.permute.xlu1 %v11470_v20  ;;  %v78_v21 = vmul.f32 %v6483_v11, %v6483_v11  ;;  %v79_v22 = vmul.f32 %v6488_v12, %v6488_v12  ;;  %v11476_v52 = vmov 2   ;;  %s6388_s27 = smov 1   ;;  %s6389_s14 = smov 16  }
   0x8   :  { %11825 = vst [vmem:[#allocation8_spill] sm:$0xff] %v6495_v14  ;;  %v333_v17 = vadd.f32 %v6500_v15, %v6495_v14  ;;  %v6514_v19 = vld [vmem:[%s11459_s0 + $0x8] sm:$0xff]  ;;  %v6526_v24 = vld [vmem:[%s11459_s0 + $0x50] sm:$0xff]  ;;  %v6531_v25 = vld [vmem:[%s11459_s0 + $0x58] sm:$0xff]  ;;  %v346_v28 = vmul.f32 %v6495_v14, %v6495_v14  ;;  %v347_v29 = vmul.f32 %v6500_v15, %v6500_v15  ;;  %v76_v30 = vmul.f32 %v6509_v18, %v6509_v18  ;;  %s6394_s19 = smov [#allocation2]   ;;  %s5856_s22 = sshll.u32 %s11468_s9, 4  ;;  %s5857_s22 = int_to_ptr.hbm [resolvable:$true] %s5856_s22 }
   0x9   :  { %11826 = vst [vmem:[#allocation9_spill] sm:$0xff] %v6509_v18  ;;  %v60_v23 = vadd.f32 %v6514_v19, %v6509_v18  ;;  %v87_v26 = vadd.f32 %v79_v22, %v78_v21  ;;  %v330_v27 = vadd.f32 %v6531_v25, %v6526_v24  ;;  %v77_v31 = vmul.f32 %v6514_v19, %v6514_v19  ;;  %v42_v33 = vld [vmem:[%s11459_s0 + $0x30] sm:$0xff]  ;;  %v6549_v34 = vld [vmem:[%s11459_s0 + $0x38] sm:$0xff]  ;;  %v6605_v55 = vld [vmem:[%s11462_s3 + $0x8] sm:$0xff]  ;;  %s5854_s20 = sshll.u32 %s6394_s19, 4  ;;  %s5855_s20 = int_to_ptr.vmem [resolvable:$true] %s5854_s20 }
   0xa   :  { %11827 = vst [vmem:[#allocation10_spill] sm:$0xff] %v6514_v19  ;;  %v357_v32 = vadd.f32 %v347_v29, %v346_v28  ;;  %v327_v36 = vadd.f32 %v6549_v34, %v42_v33  ;;  %v344_v37 = vmul.f32 %v6526_v24, %v6526_v24  ;;  %v345_v38 = vmul.f32 %v6531_v25, %v6531_v25  ;;  %v6561_v41 = vld [vmem:[%s11459_s0 + $0x10] sm:$0xff]  ;;  %v6566_v42 = vld [vmem:[%s11459_s0 + $0x18] sm:$0xff]  ;;  %v6624_v60 = vld [vmem:[%s11466_s7 + $0x8] sm:$0xff] }
   0xb   :  { %11828 = vst [vmem:[#allocation11_spill] sm:$0xff] %v6526_v24  ;;  %v84_v35 = vadd.f32 %v77_v31, %v76_v30  ;;  %v342_v39 = vmul.f32 %v42_v33, %v42_v33  ;;  %v343_v40 = vmul.f32 %v6549_v34, %v6549_v34  ;;  %v324_v44 = vadd.f32 %v6566_v42, %v6561_v41  ;;  %v6577_v49 = vld [vmem:[%s11462_s3 + $0x18] sm:$0xff]  ;;  %v6584_v51 = vld [vmem:[%s11462_s3 + $0x10] sm:$0xff] }
   0xc   :  { %67 = vadd.xlane.f32.xlu0 %v66_v13  ;;  %v354_v43 = vadd.f32 %v345_v38, %v344_v37  ;;  %v340_v46 = vmul.f32 %v6561_v41, %v6561_v41  ;;  %v341_v47 = vmul.f32 %v6566_v42, %v6566_v42  ;;  %5986 = vset.pattern.permute.xlu2 %v11478_v50  ;;  %v11474_v53 = vmov 7   ;;  %v6599_v54 = vld [vmem:[%s11466_s7 + $0x10] sm:$0xff]  ;;  %v6613_v57 = vld [vmem:[%s11466_s7 + $0x18] sm:$0xff] }
   0xd   :  { %v351_v45 = vadd.f32 %v343_v40, %v342_v39  ;;  %5984 = vset.pattern.permute.xlu0 %v11478_v50  ;;  %v174_v56 = vadd.f32 1e-10, %v6599_v54  ;;  %v11472_v58 = vmov 8   ;;  %v6618_v59 = vadd.f32 1e-10, %v6613_v57 }
   0xe   :  { %64 = vadd.xlane.f32.xlu1 %v63_v16  ;;  %v348_v48 = vadd.f32 %v341_v47, %v340_v46  ;;  %v6632_v63 = vadd.f32 1e-10, %v6624_v60 }
   0xf   :  { %334 = vadd.xlane.f32.xlu2 %v333_v17  ;;  %6013 = vrcp.f32 %v174_v56  ;;  %vm211_vm0 = vweird.f32 %v174_v56  ;;  %v217_v37 = vand.u32 2147483648, %v174_v56  ;;  %vm226_vm3 = vweird.f32 %v6618_v59 }
  0x10   :  { %6015 = vrcp.f32 %v6618_v59  ;;  %vm196_vm7 = vweird.f32 %v6632_v63 }
  0x11   :  { %6017 = vrcp.f32 %v6632_v63 }
  0x14   :  { %61 = vadd.xlane.f32.xlu0 %v60_v23 }
  0x15   :  { %v6628_v61 = vpop.eup %6013 }
  0x16   :  { %88 = vadd.xlane.f32.xlu1 %v87_v26  ;;  %v6636_v5 = vpop.eup %6015  ;;  %v207_v10 = vmul.f32 %v6628_v61, %v174_v56  ;;  %vm212_vm1 = vweird.f32 %v6628_v61 }
  0x17   :  { %331 = vadd.xlane.f32.xlu2 %v330_v27  ;;  %v222_v16 = vmul.f32 %v6636_v5, %v6618_v59  ;;  %v6649_v28 = vpop.eup %6017  ;;  %vm6670_vm2 = vmor %vm211_vm0, %vm212_vm1  ;;  %vm227_vm4 = vweird.f32 %v6636_v5 }
  0x18   :  { %v208_v21 = vsub.f32 1.0, %v207_v10  ;;  %v192_v39 = vmul.f32 %v6649_v28, %v6632_v63  ;;  %vm6696_vm6 = vmor %vm226_vm3, %vm227_vm4  ;;  %vm197_vm8 = vweird.f32 %v6649_v28 }
  0x19   :  { %v223_v30 = vsub.f32 1.0, %v222_v16  ;;  %v232_v16 = vand.u32 2147483648, %v6618_v59  ;;  %vm6734_vm12 = vmor %vm196_vm7, %vm197_vm8 }
  0x1a   :  { %v209_v31 = vmul.f32 %v6628_v61, %v208_v21 }
  0x1c   :  { %358 = vadd.xlane.f32.xlu0 %v357_v32 }
  0x1e   :  { %85 = vadd.xlane.f32.xlu1 %v84_v35  ;;  %v6658_v35 = vld [vmem:[%s11466_s7] sm:$0xff]  ;;  %s6391_s7 = smov [#allocation4]  }
  0x1f   :  { %328 = vadd.xlane.f32.xlu2 %v327_v36  ;;  %v215_v36 = vand.u32 2147483647, %v174_v56  ;;  %v6664_v40 = vadd.f32 1e-10, %v6658_v35 }
  0x21   :  { %vm6676_vm5 = vcmp.eq.f32.partialorder %v215_v36, 8.507059e+37  ;;  %vm181_vm3 = vweird.f32 %v6664_v40 }
  0x24   :  { %355 = vadd.xlane.f32.xlu0 %v354_v43  ;;  %v224_v43 = vmul.f32 %v6636_v5, %v223_v30 }
  0x26   :  { %325 = vadd.xlane.f32.xlu1 %v324_v44  ;;  %v210_v44 = vadd.f32 %v6628_v61, %v209_v31  ;;  %v230_v31 = vand.u32 2147483647, %v6618_v59 }
  0x27   :  { %352 = vadd.xlane.f32.xlu2 %v351_v45 }
  0x28   :  { %vm6718_vm11 = vcmp.eq.f32.partialorder %v230_v31, 8.507059e+37 }
  0x2c   :  { %349 = vadd.xlane.f32.xlu0 %v348_v48 }
  0x3f   :  { %804 = vperm.xlu1 %5983, %v6577_v49   ;;  %832 = vperm.xlu2 %5986, %v6584_v51  }
  0x40   :  { %836 = vperm.xlu0 %5984, %v6577_v49  }
  0x47   :  { %5987 = vset.pattern.permute.xlu1 %v11476_v52  ;;  %5988 = vset.pattern.permute.xlu2 %v11474_v53 }
  0x48   :  { %884 = vperm.xlu1 %5987, %v6577_v49   ;;  %5985 = vset.pattern.permute.xlu0 %v11470_v20 }
  0x49   :  { %1092 = vperm.xlu2 %5988, %v6577_v49   ;;  %799 = vperm.xlu0 %5985, %v6584_v51  }
  0x50   :  { %880 = vperm.xlu1 %5987, %v6584_v51  }
  0x51   :  { %5989 = vset.pattern.permute.xlu2 %v11478_v50  ;;  %794 = vperm.xlu0 %5985, %v6605_v55  }
  0x52   :  { %828 = vperm.xlu2 %5989, %v6605_v55  }
  0x58   :  { %5991 = vset.pattern.permute.xlu1 %v11472_v58 }
  0x59   :  { %1140 = vperm.xlu1 %5991, %v6577_v49  }
  0x5a   :  { %5990 = vset.pattern.permute.xlu2 %v11474_v53 }
  0x5b   :  { %1088 = vperm.xlu2 %5990, %v6584_v51  }
  0x61   :  { %5992 = vset.pattern.permute.xlu1 %v11470_v20 }
  0x63   :  { %5993 = vset.pattern.permute.xlu2 %v11470_v20 }
  0x77   :  { %v71_v62 = vpop.xlane.xlu0 %70 }
  0x78   :  { %v6634_v3 = vmul.f32 0.00390625, %v71_v62 }
  0x79   :  { %v95_v4 = vpop.xlane.xlu1 %94 }
  0x7a   :  { %11829 = vst [vmem:[#allocation12_spill] sm:$0xff] %v6634_v3  ;;  %v103_v7 = vmul.f32 %v6634_v3, %v6634_v3  ;;  %v99_v8 = vmul.f32 0.00390625, %v95_v4  ;;  %v92_v9 = vpop.xlane.xlu2 %91  ;;  %v218_v4 = vor.u32 1.1754944e-38, %v217_v37 }
  0x7b   :  { %v98_v26 = vmul.f32 0.00390625, %v92_v9 }
  0x7c   :  { %v107_v13 = vsub.f32 %v99_v8, %v103_v7  ;;  %v193_v8 = vsub.f32 1.0, %v192_v39 }
  0x7e   :  { %v111_v17 = vmax.f32 %v107_v13, 0.0  ;;  %v225_v13 = vadd.f32 %v6636_v5, %v224_v43  ;;  %v194_v36 = vmul.f32 %v6649_v28, %v193_v8  ;;  %v233_v43 = vor.u32 1.1754944e-38, %v232_v16 }
  0x7f   :  { %v68_v22 = vpop.xlane.xlu0 %67 }
  0x80   :  { %v6645_v23 = vadd.f32 1e-05, %v111_v17  ;;  %v6647_v27 = vmul.f32 0.00390625, %v68_v22  ;;  %v214_v17 = vsel %vm6670_vm2, %v6628_v61, %v210_v44  ;;  %v229_v39 = vsel %vm6696_vm6, %v6636_v5, %v225_v13 }
  0x81   :  { %v65_v29 = vpop.xlane.xlu1 %64  ;;  %v6706_v37 = vsel %vm6676_vm5, %v218_v4, %v214_v17 }
  0x82   :  { %11830 = vst [vmem:[#allocation13_spill] sm:$0xff] %v6647_v27  ;;  %6019 = vrsqrt.f32 %v6645_v23  ;;  %v102_v32 = vmul.f32 %v6647_v27, %v6647_v27  ;;  %v335_v33 = vpop.xlane.xlu2 %334  ;;  %v6668_v46 = vmul.f32 0.00390625, %v65_v29  ;;  %vm152_vm9 = vweird.f32 %v6645_v23 }
  0x83   :  { %6021 = vrcp.f32 %v6664_v40 }
  0x84   :  { %v106_v38 = vsub.f32 %v98_v26, %v102_v32  ;;  %11831 = vst [vmem:[#allocation14_spill] sm:$0xff] %v6668_v46  ;;  %v101_v22 = vmul.f32 %v6668_v46, %v6668_v46  ;;  %v6701_v32 = vmul.f32 0.00390625, %v335_v33 }
  0x86   :  { %v110_v45 = vmax.f32 %v106_v38, 0.0  ;;  %11838 = vst [vmem:[#allocation15_spill] sm:$0xff] %v6701_v32 }
  0x87   :  { %v62_v48 = vpop.xlane.xlu0 %61 }
  0x88   :  { %v6020_v56 = vpop.eup %6019  ;;  %v6680_v7 = vadd.f32 1e-05, %v110_v45  ;;  %v6711_v44 = vmul.f32 0.00390625, %v62_v48  ;;  %v367_v48 = vmul.f32 %v6701_v32, %v6701_v32 }
  0x89   :  { %v147_v9 = vmul.f32 %v6020_v56, %v6645_v23  ;;  %v89_v10 = vpop.xlane.xlu1 %88  ;;  %v6715_v59 = vpop.eup %6021  ;;  %vm153_vm10 = vweird.f32 %v6020_v56 }
  0x8a   :  { %6023 = vrsqrt.f32 %v6680_v7  ;;  %v332_v21 = vpop.xlane.xlu2 %331  ;;  %v97_v26 = vmul.f32 0.00390625, %v89_v10  ;;  %11839 = vst [vmem:[#allocation16_spill] sm:$0xff] %v6711_v44  ;;  %v100_v29 = vmul.f32 %v6711_v44, %v6711_v44  ;;  %vm154_vm13 = vmor %vm152_vm9, %vm153_vm10  ;;  %vm142_vm0 = vweird.f32 %v6680_v7 }
  0x8b   :  { %v148_v30 = vmul.f32 %v6020_v56, %v147_v9  ;;  %v6727_v9 = vadd.f32 %v6649_v28, %v194_v36  ;;  %vm182_vm4 = vweird.f32 %v6715_v59 }
  0x8c   :  { %v105_v61 = vsub.f32 %v97_v26, %v101_v22  ;;  %v200_v22 = vand.u32 2147483647, %v6632_v63  ;;  %v202_v26 = vand.u32 2147483648, %v6632_v63  ;;  %vm6830_vm6 = vmor %vm181_vm3, %vm182_vm4 }
  0x8d   :  { %v149_v38 = vmul.f32 0.5, %v148_v30 }
  0x8e   :  { %v109_v45 = vmax.f32 %v105_v61, 0.0  ;;  %vm6772_vm15 = vcmp.eq.f32.partialorder %v200_v22, 8.507059e+37 }
  0x8f   :  { %v359_v33 = vpop.xlane.xlu0 %358  ;;  %v150_v47 = vsub.f32 1.5, %v149_v38  ;;  %v6746_v38 = vmul.f32 0.00390625, %v332_v21  ;;  %v6765_v21 = vsel %vm6718_vm11, %v233_v43, %v229_v39 }
  0x90   :  { %v6024_v5 = vpop.eup %6023  ;;  %v6722_v4 = vadd.f32 1e-05, %v109_v45  ;;  %v363_v8 = vmul.f32 0.00390625, %v359_v33  ;;  %v177_v33 = vmul.f32 %v6715_v59, %v6664_v40 }
  0x91   :  { %v137_v10 = vmul.f32 %v6024_v5, %v6680_v7  ;;  %v86_v13 = vpop.xlane.xlu1 %85  ;;  %v151_v16 = vmul.f32 %v6020_v56, %v150_v47  ;;  %11844 = vst [vmem:[#allocation17_spill] sm:$0xff] %v6746_v38  ;;  %vm143_vm14 = vweird.f32 %v6024_v5 }
  0x92   :  { %6025 = vrsqrt.f32 %v6722_v4  ;;  %v371_v30 = vsub.f32 %v363_v8, %v367_v48  ;;  %v329_v31 = vpop.xlane.xlu2 %328  ;;  %v96_v61 = vmul.f32 0.00390625, %v86_v13  ;;  %v6757_v13 = vld [vmem:[%s11467_s8 + $0x18] sm:$0xff]  ;;  %v178_v62 = vsub.f32 1.0, %v177_v33  ;;  %vm144_vm1 = vmor %vm142_vm0, %vm143_vm14 }
  0x93   :  { %v138_v36 = vmul.f32 %v6024_v5, %v137_v10  ;;  %v155_v45 = vsel %vm154_vm13, %v6020_v56, %v151_v16  ;;  %v6752_v8 = vmul.f32 0.00390625, %v329_v31  ;;  %v366_v31 = vmul.f32 %v6746_v38, %v6746_v38 }
  0x94   :  { %v375_v63 = vmax.f32 %v371_v30, 0.0  ;;  %v104_v47 = vsub.f32 %v96_v61, %v100_v29  ;;  %v159_v20 = vmul.f32 %v155_v45, %v6645_v23  ;;  %v163_v58 = vmul.f32 %v155_v45, %v6613_v57 }
  0x95   :  { %v139_v48 = vmul.f32 0.5, %v138_v36  ;;  %11845 = vst [vmem:[#allocation18_spill] sm:$0xff] %v6752_v8  ;;  %v203_v29 = vor.u32 1.1754944e-38, %v202_v26  ;;  %v365_v22 = vmul.f32 %v6752_v8, %v6752_v8  ;;  %vm132_vm2 = vweird.f32 %v6722_v4 }
  0x96   :  { %v6767_v23 = vadd.f32 1e-05, %v375_v63  ;;  %v108_v10 = vmax.f32 %v104_v47, 0.0  ;;  %261 = vperm.xlu1 %5992, %v163_v58   ;;  %v167_v16 = vmul.f32 %v163_v58, %v6634_v3 }
  0x97   :  { %v140_v30 = vsub.f32 1.5, %v139_v48  ;;  %v356_v61 = vpop.xlane.xlu0 %355 }
  0x98   :  { %v6026_v39 = vpop.eup %6025  ;;  %6027 = vrsqrt.f32 %v6767_v23  ;;  %v6777_v43 = vadd.f32 1e-05, %v108_v10  ;;  %v362_v45 = vmul.f32 0.00390625, %v356_v61  ;;  %v171_v58 = vsub.f32 %v6757_v13, %v167_v16 }
  0x99   :  { %v141_v26 = vmul.f32 %v6024_v5, %v140_v30  ;;  %v127_v63 = vmul.f32 %v6026_v39, %v6722_v4  ;;  %v326_v47 = vpop.xlane.xlu1 %325  ;;  %v6789_v16 = vmul.f32 %v6765_v21, %v159_v20  ;;  %vm133_vm5 = vweird.f32 %v6026_v39 }
  0x9a   :  { %6029 = vrsqrt.f32 %v6777_v43  ;;  %v370_v33 = vsub.f32 %v362_v45, %v366_v31  ;;  %v353_v48 = vpop.xlane.xlu2 %352  ;;  %281 = vperm.xlu0 %5985, %v171_v58   ;;  %v6786_v10 = vmul.f32 0.00390625, %v326_v47  ;;  %v179_v31 = vmul.f32 %v6715_v59, %v178_v62  ;;  %v6800_v45 = vld [vmem:[%s11467_s8 + $0x10] sm:$0xff]  ;;  %vm134_vm7 = vmor %vm132_vm2, %vm133_vm5 }
  0x9b   :  { %11849 = vst [vmem:[#allocation20_spill] sm:$0xff] %v6789_v16  ;;  %v145_v30 = vsel %vm144_vm1, %v6024_v5, %v141_v26  ;;  %v361_v61 = vmul.f32 0.00390625, %v353_v48  ;;  %v128_v53 = vmul.f32 %v6026_v39, %v127_v63  ;;  %v6814_v63 = vmul.f32 %v6789_v16, %v6757_v13 }
  0x9c   :  { %11848 = vst [vmem:[#allocation19_spill] sm:$0xff] %v6786_v10  ;;  %v158_v52 = vmul.f32 %v145_v30, %v6680_v7  ;;  %v374_v50 = vmax.f32 %v370_v33, 0.0  ;;  %v6794_v56 = vmul.f32 %v145_v30, %v6599_v54  ;;  %v364_v62 = vmul.f32 %v6786_v10, %v6786_v10 }
  0x9d   :  { %v369_v20 = vsub.f32 %v361_v61, %v365_v22  ;;  %v129_v58 = vmul.f32 0.5, %v128_v53  ;;  %11851 = vst [vmem:[#allocation22_spill] sm:$0xff] %v6814_v63  ;;  %v180_v30 = vadd.f32 %v6715_v59, %v179_v31  ;;  %v11855_v31 = vsel %vm6734_vm12, %v6649_v28, %v6727_v9 }
  0x9e   :  { %v6028_v5 = vpop.eup %6027  ;;  %v6805_v7 = vmul.f32 %v6706_v37, %v158_v52  ;;  %v6807_v26 = vadd.f32 1e-05, %v374_v50  ;;  %256 = vperm.xlu2 %5993, %v6794_v56   ;;  %vm416_vm11 = vweird.f32 %v6767_v23  ;;  %vm122_vm12 = vweird.f32 %v6777_v43 }
  0x9f   :  { %v411_v53 = vmul.f32 %v6028_v5, %v6767_v23  ;;  %v373_v22 = vmax.f32 %v369_v20, 0.0  ;;  %v350_v47 = vpop.xlane.xlu0 %349  ;;  %v130_v33 = vsub.f32 1.5, %v129_v58  ;;  %v187_v58 = vand.u32 2147483648, %v6664_v40 }
  0xa0   :  { %11850 = vst [vmem:[#allocation21_spill] sm:$0xff] %v6805_v7  ;;  %v6030_v48 = vpop.eup %6029  ;;  %v6819_v50 = vmul.f32 %v6805_v7, %v6800_v45  ;;  %6031 = vrsqrt.f32 %v6807_v26  ;;  %v360_v52 = vmul.f32 0.00390625, %v350_v47  ;;  %v185_v47 = vand.u32 2147483647, %v6664_v40 }
  0xa1   :  { %v117_v61 = vmul.f32 %v6030_v48, %v6777_v43  ;;  %v6824_v16 = vadd.f32 1e-05, %v373_v22  ;;  %v131_v24 = vmul.f32 %v6026_v39, %v130_v33  ;;  %v6846_v22 = vsel %vm6772_vm15, %v203_v29, %v11855_v31 }
  0xa2   :  { %11852 = vst [vmem:[#allocation23_spill] sm:$0xff] %v6819_v50  ;;  %v368_v7 = vsub.f32 %v360_v52, %v364_v62  ;;  %v412_v33 = vmul.f32 %v6028_v5, %v411_v53  ;;  %v184_v28 = vsel %vm6830_vm6, %v6715_v59, %v180_v30  ;;  %v188_v9 = vor.u32 1.1754944e-38, %v187_v58 }
  0xa3   :  { %6033 = vrsqrt.f32 %v6824_v16  ;;  %v135_v14 = vsel %vm134_vm7, %v6026_v39, %v131_v24  ;;  %v118_v19 = vmul.f32 %v6030_v48, %v117_v61  ;;  %vm417_vm8 = vweird.f32 %v6028_v5 }
  0xa4   :  { %v372_v62 = vmax.f32 %v368_v7, 0.0  ;;  %v6851_v52 = vmul.f32 %v135_v14, %v6624_v60  ;;  %v157_v17 = vmul.f32 %v135_v14, %v6722_v4  ;;  %v413_v50 = vmul.f32 0.5, %v412_v33  ;;  %v6868_v14 = vld [vmem:[%s11467_s8 + $0x8] sm:$0xff]  ;;  %vm418_vm13 = vmor %vm416_vm11, %vm417_vm8 }
  0xa5   :  { %v119_v18 = vmul.f32 0.5, %v118_v19  ;;  %vm123_vm9 = vweird.f32 %v6030_v48  ;;  %vm186_vm10 = vcmp.eq.f32.partialorder %v185_v47, 8.507059e+37  ;;  %vm406_vm0 = vweird.f32 %v6807_v26 }
  0xa6   :  { %v6032_v24 = vpop.eup %6031  ;;  %v6859_v36 = vadd.f32 1e-05, %v372_v62  ;;  %251 = vperm.xlu2 %5993, %v6851_v52   ;;  %v6863_v40 = vmul.f32 %v6846_v22, %v157_v17  ;;  %v414_v39 = vsub.f32 1.5, %v413_v50  ;;  %vm124_vm14 = vmor %vm122_vm12, %vm123_vm9  ;;  %v189_v20 = vsel %vm186_vm10, %v188_v9, %v184_v28 }
  0xa7   :  { %v401_v19 = vmul.f32 %v6032_v24, %v6807_v26  ;;  %v120_v59 = vsub.f32 1.5, %v119_v18  ;;  %vm407_vm15 = vweird.f32 %v6032_v24  ;;  %vm396_vm3 = vweird.f32 %v6824_v16 }
  0xa8   :  { %11856 = vst [vmem:[#allocation24_spill] sm:$0xff] %v6863_v40  ;;  %6035 = vrsqrt.f32 %v6859_v36  ;;  %v415_v4 = vmul.f32 %v6028_v5, %v414_v39  ;;  %v6876_v30 = vmul.f32 %v6863_v40, %v6868_v14  ;;  %vm408_vm1 = vmor %vm406_vm0, %vm407_vm15  ;;  %vm386_vm4 = vweird.f32 %v6859_v36 }
  0xa9   :  { %v6034_v7 = vpop.eup %6033  ;;  %v121_v53 = vmul.f32 %v6030_v48, %v120_v59  ;;  %v402_v50 = vmul.f32 %v6032_v24, %v401_v19  ;;  %v11882_v19 = vmov 0   ;;  %vm637_vm8 = vcmask 7168  }
  0xaa   :  { %11857 = vst [vmem:[#allocation25_spill] sm:$0xff] %v6876_v30  ;;  %v391_v61 = vmul.f32 %v6034_v7, %v6824_v16  ;;  %v419_v18 = vsel %vm418_vm13, %v6028_v5, %v415_v4  ;;  %vm397_vm2 = vweird.f32 %v6034_v7  ;;  %vm726_vm10 = vcmask 1039360  }
  0xab   :  { %v125_v58 = vsel %vm124_vm14, %v6030_v48, %v121_v53  ;;  %v427_v47 = vmul.f32 %v419_v18, %v6613_v57  ;;  %v423_v31 = vmul.f32 %v419_v18, %v6767_v23  ;;  %v403_v33 = vmul.f32 0.5, %v402_v50  ;;  %v6891_v57 = vld [vmem:[%s11467_s8] sm:$0xff]  ;;  %vm398_vm6 = vmor %vm396_vm3, %vm397_vm2 }
  0xac   :  { %v6882_v62 = vmul.f32 %v125_v58, %v6658_v35  ;;  %v156_v17 = vmul.f32 %v125_v58, %v6777_v43  ;;  %v392_v39 = vmul.f32 %v6034_v7, %v391_v61  ;;  %vm1263_vm14 = vcmask 130048  }
  0xad   :  { %v431_v59 = vmul.f32 %v427_v47, %v6701_v32  ;;  %v404_v29 = vsub.f32 1.5, %v403_v33  ;;  %v6894_v23 = vmul.f32 %v423_v31, %v6765_v21  ;;  %vm1384_vm0 = vcmask 916480  }
  0xae   :  { %v6036_v5 = vpop.eup %6035  ;;  %246 = vperm.xlu1 %5992, %v6882_v62   ;;  %465 = vperm.xlu2 %5993, %v427_v47   ;;  %v393_v43 = vmul.f32 0.5, %v392_v39  ;;  %v6897_v48 = vmul.f32 %v189_v20, %v156_v17  ;;  %vm1585_vm3 = vcmask 523264  }
  0xaf   :  { %11858 = vst [vmem:[#allocation26_spill] sm:$0xff] %v6894_v23  ;;  %v381_v28 = vmul.f32 %v6036_v5, %v6859_v36  ;;  %v435_v9 = vsub.f32 %v6757_v13, %v431_v59  ;;  %v405_v4 = vmul.f32 %v6032_v24, %v404_v29  ;;  %v6908_v50 = vmul.f32 %v6894_v23, %v6757_v13 }
  0xb0   :  { %11859 = vst [vmem:[#allocation27_spill] sm:$0xff] %v6897_v48  ;;  %v394_v53 = vsub.f32 1.5, %v393_v43  ;;  %v6904_v21 = vmul.f32 %v6897_v48, %v6891_v57  ;;  %vm387_vm5 = vweird.f32 %v6036_v5 }
  0xb1   :  { %11861 = vst [vmem:[#allocation29_spill] sm:$0xff] %v6908_v50  ;;  %485 = vperm.xlu0 %5985, %v435_v9   ;;  %v409_v61 = vsel %vm408_vm1, %v6032_v24, %v405_v4  ;;  %v382_v18 = vmul.f32 %v6036_v5, %v381_v28  ;;  %vm388_vm7 = vmor %vm386_vm4, %vm387_vm5 }
  0xb2   :  { %11860 = vst [vmem:[#allocation28_spill] sm:$0xff] %v6904_v21  ;;  %v426_v29 = vmul.f32 %v409_v61, %v6599_v54  ;;  %v422_v58 = vmul.f32 %v409_v61, %v6807_v26  ;;  %v395_v47 = vmul.f32 %v6034_v7, %v394_v53 }
  0xb3   :  { %v383_v33 = vmul.f32 0.5, %v382_v18 }
  0xb4   :  { %v6919_v24 = vmul.f32 %v422_v58, %v6706_v37  ;;  %v430_v17 = vmul.f32 %v426_v29, %v6746_v38  ;;  %v399_v54 = vsel %vm398_vm6, %v6034_v7, %v395_v47  ;;  %v165_v58 = vmul.f32 %v6851_v52, %v6668_v46 }
  0xb5   :  { %v384_v39 = vsub.f32 1.5, %v383_v33  ;;  %v421_v26 = vmul.f32 %v399_v54, %v6824_v16  ;;  %v164_v52 = vmul.f32 %v6882_v62, %v6711_v44  ;;  %v6963_v33 = vld [vmem:[%s11462_s3] sm:$0xff]  ;;  %v11869_v62 = vmov 1   ;;  %s6387_s3 = smov 127  }
  0xb6   :  { %11862 = vst [vmem:[#allocation30_spill] sm:$0xff] %v6919_v24  ;;  %460 = vperm.xlu1 %5992, %v426_v29   ;;  %v434_v59 = vsub.f32 %v6800_v45, %v430_v17  ;;  %v6926_v43 = vmul.f32 %v6919_v24, %v6800_v45 }
  0xb7   :  { %v385_v28 = vmul.f32 %v6036_v5, %v384_v39  ;;  %v6929_v9 = vmul.f32 %v421_v26, %v6846_v22  ;;  %v425_v22 = vmul.f32 %v399_v54, %v6624_v60  ;;  %v168_v17 = vsub.f32 %v6891_v57, %v164_v52  ;;  %v6969_v39 = vpop.permute.xlu2 %832 }
  0xb8   :  { %11863 = vst [vmem:[#allocation31_spill] sm:$0xff] %v6926_v43  ;;  %v11870_v26 = vmov 2  }
  0xb9   :  { %11864 = vst [vmem:[#allocation32_spill] sm:$0xff] %v6929_v9  ;;  %480 = vperm.xlu0 %5985, %v434_v59   ;;  %v389_v7 = vsel %vm388_vm7, %v6036_v5, %v385_v28  ;;  %v6935_v16 = vmul.f32 %v6929_v9, %v6868_v14  ;;  %v11873_v59 = vmov 8   ;;  %v6983_v28 = vpop.permute.xlu1 %804  ;;  %v11897_v9 = vld [vmem:[#allocation10_spill] sm:$0xff] }
  0xba   :  { %v424_v4 = vmul.f32 %v389_v7, %v6658_v35  ;;  %v420_v53 = vmul.f32 %v389_v7, %v6859_v36  ;;  %v166_v36 = vmul.f32 %v6794_v56, %v6647_v27  ;;  %v429_v56 = vmul.f32 %v425_v22, %v6752_v8  ;;  %11868 = vst [vmem:[#allocation36_spill] sm:$0xff] %v6969_v39 }
  0xbb   :  { %11865 = vst [vmem:[#allocation33_spill] sm:$0xff] %v6935_v16 }
  0xbc   :  { %450 = vperm.xlu2 %5993, %v424_v4   ;;  %v428_v18 = vmul.f32 %v424_v4, %v6786_v10  ;;  %v6943_v29 = vmul.f32 %v420_v53, %v189_v20  ;;  %v169_v20 = vsub.f32 %v6868_v14, %v165_v58  ;;  %v170_v47 = vsub.f32 %v6800_v45, %v166_v36  ;;  %v6994_v53 = vpop.permute.xlu0 %836 }
  0xbd   :  { %v433_v54 = vsub.f32 %v6868_v14, %v429_v56  ;;  %v6383_v45 = vmov 6   ;;  %v11872_v14 = vmov 7   ;;  %11874 = vst [vmem:[#allocation38_spill] sm:$0xff] %v6983_v28  ;;  %v11487_v36 = vmov 3  }
  0xbe   :  { %11866 = vst [vmem:[#allocation34_spill] sm:$0xff] %v6943_v29  ;;  %455 = vperm.xlu1 %5992, %v425_v22   ;;  %v432_v5 = vsub.f32 %v6891_v57, %v428_v18  ;;  %v6950_v35 = vmul.f32 %v6943_v29, %v6891_v57  ;;  %v6384_v18 = vmov 4  }
  0xbf   :  { %v6977_v57 = vpop.permute.xlu2 %1092  ;;  %11876 = vst [vmem:[#allocation40_spill] sm:$0xff] %v6994_v53 }
  0xc0   :  { %11867 = vst [vmem:[#allocation35_spill] sm:$0xff] %v6950_v35 }
  0xc1   :  { %470 = vperm.xlu0 %5985, %v432_v5   ;;  %11871 = vst [vmem:[#allocation37_spill] sm:$0xff] %v6977_v57  ;;  %v6991_v4 = vpop.permute.xlu1 %884 }
  0xc2   :  { %11875 = vst [vmem:[#allocation39_spill] sm:$0xff] %v6991_v4 }
  0xc4   :  { %271 = vperm.xlu2 %5993, %v169_v20   ;;  %v7005_v58 = vpop.permute.xlu0 %799 }
  0xc5   :  { %11879 = vst [vmem:[#allocation43_spill] sm:$0xff] %v7005_v58 }
  0xc6   :  { %276 = vperm.xlu1 %5992, %v170_v47   ;;  %v11486_v47 = vmov 5  }
  0xc7   :  { %v6987_v7 = vpop.permute.xlu2 %828 }
  0xc9   :  { %789 = vperm.xlu0 %5985, %v6963_v33   ;;  %v7003_v5 = vpop.permute.xlu1 %880 }
  0xca   :  { %11878 = vst [vmem:[#allocation42_spill] sm:$0xff] %v7003_v5 }
  0xcc   :  { %266 = vperm.xlu2 %5993, %v168_v17   ;;  %v7014_v56 = vpop.permute.xlu0 %794 }
  0xcd   :  { %11880 = vst [vmem:[#allocation44_spill] sm:$0xff] %v7014_v56 }
  0xce   :  { %475 = vperm.xlu1 %5992, %v433_v54  }
  0xcf   :  { %v6997_v22 = vpop.permute.xlu2 %1088 }
  0xd0   :  { %11877 = vst [vmem:[#allocation41_spill] sm:$0xff] %v6997_v22 }
  0xd1   :  { %5994 = vset.pattern.permute.xlu0 %v6383_v45  ;;  %v7011_v52 = vpop.permute.xlu1 %1140 }
  0xd2   :  { %1060 = vperm.xlu0 %5994, %v6577_v49  }
  0xd4   :  { %5995 = vset.pattern.permute.xlu2 %v11869_v62 }
  0xd5   :  { %824 = vperm.xlu2 %5995, %v6963_v33  }
  0xd6   :  { %5996 = vset.pattern.permute.xlu1 %v11870_v26 }
  0xd7   :  { %876 = vperm.xlu1 %5996, %v6605_v55  }
  0xda   :  { %1056 = vperm.xlu0 %5994, %v6584_v51  }
  0xdd   :  { %5997 = vset.pattern.permute.xlu2 %v11872_v14 }
  0xde   :  { %1084 = vperm.xlu2 %5997, %v6605_v55  }
  0xdf   :  { %5998 = vset.pattern.permute.xlu1 %v11873_v59 }
  0xe0   :  { %1136 = vperm.xlu1 %5998, %v6584_v51  }
  0xe2   :  { %1052 = vperm.xlu0 %5994, %v6605_v55  }
  0xe6   :  { %5999 = vset.pattern.permute.xlu2 %v11870_v26 }
  0xe7   :  { %872 = vperm.xlu2 %5999, %v6963_v33  }
  0xe8   :  { %1132 = vperm.xlu1 %5998, %v6605_v55  }
  0xea   :  { %1048 = vperm.xlu0 %5994, %v6963_v33  }
  0xef   :  { %6000 = vset.pattern.permute.xlu2 %v11872_v14 }
  0xf0   :  { %6003 = vset.pattern.permute.xlu1 %v6384_v18  ;;  %1080 = vperm.xlu2 %6000, %v6963_v33  }
  0xf1   :  { %964 = vperm.xlu1 %6003, %v6577_v49  }
  0xf2   :  { %6001 = vset.pattern.permute.xlu0 %v11873_v59 }
  0xf3   :  { %1128 = vperm.xlu0 %6001, %v6963_v33  }
  0xf8   :  { %6002 = vset.pattern.permute.xlu2 %v11487_v36  ;;  %v257_v20 = vpop.permute.xlu2 %256 }
  0xf9   :  { %960 = vperm.xlu1 %6003, %v6584_v51   ;;  %932 = vperm.xlu2 %6002, %v6577_v49   ;;  %v536_v50 = vmul.f32 %v257_v20, %v6463_v2 }
  0xfb   :  { %6004 = vset.pattern.permute.xlu0 %v11486_v47 }
 0x100   :  { %v7016_v17 = vpop.permute.xlu2 %251 }
 0x101   :  { %928 = vperm.xlu2 %6002, %v6584_v51   ;;  %v533_v35 = vmul.f32 %v7016_v17, %v6488_v12 }
 0x108   :  { %v262_v54 = vpop.permute.xlu1 %261  ;;  %v7021_v14 = vpop.permute.xlu2 %465 }
 0x109   :  { %v540_v45 = vmul.f32 %v262_v54, %v6453_v0  ;;  %v541_v61 = vmul.f32 %v262_v54, %v6458_v1 }
 0x10c   :  { %v282_v62 = vpop.permute.xlu0 %281 }
 0x10d   :  { %v7019_v26 = vadd.f32 %v540_v45, %v282_v62  ;;  %v543_v45 = vmul.f32 %v7021_v14, %v6500_v15  ;;  %v7042_v37 = vadd.f32 %v541_v61, %v282_v62 }
 0x10f   :  { %718 = vrot.lane.b32.xlu0 %v7019_v26, %s6387_s3  ;;  %629 = vrot.lane.b32.xlu2 %v7019_v26, %s6388_s27 }
 0x116   :  { %v451_v59 = vpop.permute.xlu2 %450 }
 0x117   :  { %1012 = vperm.xlu0 %6004, %v6577_v49   ;;  %924 = vperm.xlu2 %6002, %v6605_v55   ;;  %v530_v54 = vmul.f32 %v451_v59, %v6561_v41  ;;  %v531_v61 = vmul.f32 %v451_v59, %v6566_v42  ;;  %v1177_v42 = vld [vmem:[%s11463_s4 + $0x10] sm:$0xff] }
 0x11e   :  { %v272_v13 = vpop.permute.xlu2 %271 }
 0x11f   :  { %6007 = vset.pattern.permute.xlu0 %v6384_v18  ;;  %6005 = vset.pattern.permute.xlu2 %v11486_v47  ;;  %v7113_v10 = vadd.f32 %v533_v35, %v272_v13 }
 0x120   :  { %v7030_v0 = vpop.permute.xlu1 %246  ;;  %952 = vperm.xlu0 %6007, %v6963_v33   ;;  %1008 = vperm.xlu2 %6005, %v6584_v51  }
 0x121   :  { %v529_v43 = vmul.f32 %v7030_v0, %v11897_v9 }
 0x123   :  { %v7036_v60 = vpop.permute.xlu0 %485 }
 0x124   :  { %v7040_v49 = vadd.f32 %v543_v45, %v7036_v60 }
 0x126   :  { %11881 = vst [vmem:[#allocation45_spill] sm:$0xff] %v7040_v49  ;;  %v267_v18 = vpop.permute.xlu2 %266 }
 0x127   :  { %v7144_v24 = vadd.f32 %v529_v43, %v267_v18 }
 0x128   :  { %v7044_v31 = vpop.permute.xlu1 %460  ;;  %720 = vrot.lane.b32.xlu2 %v7042_v37, %s6387_s3  ;;  %6010 = vset.pattern.permute.xlu0 %v11882_v19 }
 0x129   :  { %v539_v15 = vmul.f32 %v7044_v31, %v6531_v25  ;;  %1191 = vperm.xlu0 %6010, %v1177_v42  }
 0x12b   :  { %v7051_v51 = vpop.permute.xlu0 %480 }
 0x12c   :  { %v7054_v1 = vadd.f32 %v539_v15, %v7051_v51 }
 0x12e   :  { %11883 = vst [vmem:[#allocation46_spill] sm:$0xff] %v7054_v1 }
 0x12f   :  { %v7062_v45 = vpop.permute.xlu2 %824 }
 0x130   :  { %v7058_v62 = vpop.permute.xlu1 %455  ;;  %631 = vrot.lane.b32.xlu2 %v7042_v37, %s6388_s27  ;;  %11884 = vst [vmem:[#allocation47_spill] sm:$0xff] %v7062_v45 }
 0x131   :  { %v535_v2 = vmul.f32 %v7058_v62, %v6549_v34 }
 0x133   :  { %v471_v47 = vpop.permute.xlu0 %470 }
 0x134   :  { %v7064_v36 = vadd.f32 %v530_v54, %v471_v47  ;;  %v7066_v25 = vadd.f32 %v531_v61, %v471_v47  ;;  %v537_v47 = vmul.f32 %v257_v20, %v6474_v6  ;;  %v532_v6 = vmul.f32 %v7016_v17, %v6483_v11 }
 0x135   :  { %v11889_v20 = vmov 3  }
 0x136   :  { %11885 = vst [vmem:[#allocation48_spill] sm:$0xff] %v7064_v36  ;;  %v7099_v34 = vadd.f32 %v532_v6, %v272_v13  ;;  %v560_v13 = vlaneseq }
 0x137   :  { %11886 = vst [vmem:[#allocation49_spill] sm:$0xff] %v7066_v25 }
 0x138   :  { %v277_v15 = vpop.permute.xlu1 %276  ;;  %v7071_v41 = vpop.permute.xlu2 %1084  ;;  %v7140_v38 = vand.u32 127, %v560_v13 }
 0x139   :  { %v7069_v32 = vadd.f32 %v536_v50, %v277_v15  ;;  %v7085_v59 = vadd.f32 %v537_v47, %v277_v15  ;;  %v1100_v48 = vmul.f32 %v7071_v41, %v7113_v10 }
 0x13a   :  { %11898 = vst [vmem:[#allocation10_spill] sm:$0xff] %v7140_v38  ;;  %v565_v63 = vand.u32 15, %v7140_v38 }
 0x13b   :  { %621 = vrot.lane.b32.xlu1 %v7069_v32, %s6388_s27  ;;  %710 = vrot.lane.b32.xlu2 %v7069_v32, %s6387_s3  ;;  %v7095_v42 = vpop.permute.xlu0 %789 }
 0x13c   :  { %11888 = vst [vmem:[#allocation51_spill] sm:$0xff] %v7095_v42  ;;  %vm7156_vm9 = vcmp.gt.s32.totalorder %v565_v63, 0  ;;  %vm7190_vm11 = vcmp.lt.s32.totalorder %v565_v63, 15 }
 0x140   :  { %v7083_v50 = vpop.permute.xlu1 %475 }
 0x141   :  { %v7088_v54 = vadd.f32 %v535_v2, %v7083_v50  ;;  %v7090_v61 = vpop.permute.xlu2 %872 }
 0x143   :  { %11887 = vst [vmem:[#allocation50_spill] sm:$0xff] %v7088_v54  ;;  %956 = vperm.xlu1 %6003, %v6605_v55   ;;  %623 = vrot.lane.b32.xlu2 %v7085_v59, %s6388_s27 }
 0x144   :  { %v7109_v2 = vpop.permute.xlu0 %1060 }
 0x145   :  { %11890 = vst [vmem:[#allocation52_spill] sm:$0xff] %v7109_v2 }
 0x149   :  { %v7102_v15 = vpop.permute.xlu1 %876 }
 0x14a   :  { %v7107_v47 = vpop.permute.xlu2 %1080 }
 0x14b   :  { %6006 = vset.pattern.permute.xlu1 %v11889_v20  ;;  %702 = vrot.lane.b32.xlu2 %v7099_v34, %s6387_s3  ;;  %v11893_v20 = vld [vmem:[#allocation9_spill] sm:$0xff] }
 0x14c   :  { %920 = vperm.xlu1 %6006, %v6963_v33   ;;  %v528_v16 = vmul.f32 %v7030_v0, %v11893_v20  ;;  %v7126_v8 = vpop.permute.xlu0 %1056  ;;  %v11899_v20 = vld [vmem:[#allocation8_spill] sm:$0xff] }
 0x14d   :  { %11894 = vst [vmem:[#allocation9_spill] sm:$0xff] %v7126_v8 }
 0x14e   :  { %v7128_v12 = vadd.f32 %v528_v16, %v267_v18  ;;  %v542_v16 = vmul.f32 %v7021_v14, %v11899_v20 }
 0x150   :  { %v7147_v27 = vadd.f32 %v542_v16, %v7036_v60 }
 0x152   :  { %v7119_v11 = vpop.permute.xlu1 %1136  ;;  %11900 = vst [vmem:[#allocation8_spill] sm:$0xff] %v7147_v27 }
 0x153   :  { %615 = vrot.lane.b32.xlu2 %v7113_v10, %s6388_s27  ;;  %11891 = vst [vmem:[#allocation53_spill] sm:$0xff] %v7119_v11  ;;  %v7121_v6 = vpop.permute.xlu2 %932 }
 0x154   :  { %613 = vrot.lane.b32.xlu1 %v7099_v34, %s6388_s27  ;;  %11892 = vst [vmem:[#allocation54_spill] sm:$0xff] %v7121_v6  ;;  %v7149_v23 = vpop.permute.xlu0 %1052 }
 0x155   :  { %6008 = vset.pattern.permute.xlu1 %v11882_v19  ;;  %11901 = vst [vmem:[#allocation57_spill] sm:$0xff] %v7149_v23 }
 0x15a   :  { %v7134_v35 = vpop.permute.xlu1 %1132 }
 0x15b   :  { %694 = vrot.lane.b32.xlu2 %v7128_v12, %s6387_s3  ;;  %11895 = vst [vmem:[#allocation55_spill] sm:$0xff] %v7134_v35  ;;  %v7136_v17 = vpop.permute.xlu2 %928 }
 0x15c   :  { %712 = vrot.lane.b32.xlu1 %v7085_v59, %s6387_s3  ;;  %11896 = vst [vmem:[#allocation56_spill] sm:$0xff] %v7136_v17  ;;  %v7171_v20 = vpop.permute.xlu0 %1048 }
 0x163   :  { %607 = vrot.lane.b32.xlu2 %v7144_v24, %s6388_s27  ;;  %v7160_v43 = vpop.permute.xlu1 %964 }
 0x164   :  { %722 = vrot.lane.b32.xlu1 %v7147_v27, %s6387_s3  ;;  %11904 = vst [vmem:[#allocation58_spill] sm:$0xff] %v7160_v43  ;;  %v979_v18 = vmul.f32 %v7160_v43, %v7019_v26 }
 0x165   :  { %v7180_v21 = vpop.permute.xlu0 %1128 }
 0x169   :  { %v630_v14 = vpop.permute.xlu2 %629 }
 0x16a   :  { %v669_v60 = vsel %vm637_vm8, 0.0, %v630_v14 }
 0x16b   :  { %v690_v0 = vsel %vm7156_vm9, %v669_v60, 0.0  ;;  %1004 = vperm.xlu2 %6005, %v6605_v55   ;;  %v11906_v60 = vld [vmem:[#allocation11_spill] sm:$0xff] }
 0x16c   :  { %v947_v13 = vmul.f32 %v7121_v6, %v690_v0  ;;  %605 = vrot.lane.b32.xlu1 %v7128_v12, %s6388_s27  ;;  %v538_v29 = vmul.f32 %v7044_v31, %v11906_v60  ;;  %11907 = vst [vmem:[#allocation11_spill] sm:$0xff] %v7180_v21  ;;  %v7195_v31 = vadd.s32 128, %v7140_v38  ;;  %v1175_v38 = vld [vmem:[%s11463_s4] sm:$0xff] }
 0x16d   :  { %1181 = vperm.xlu0 %6010, %v1175_v38  }
 0x16e   :  { %v995_v16 = vadd.f32 %v979_v18, %v947_v13  ;;  %v7185_v55 = vadd.f32 %v538_v29, %v7051_v51  ;;  %v819_v18 = vmul.f32 %v6983_v28, %v690_v0  ;;  %11912 = vst [vmem:[#allocation62_spill] sm:$0xff] %v7195_v31  ;;  %v851_v51 = vmul.f32 %v6994_v53, %v7019_v26 }
 0x16f   :  { %v11513_v40 = vand.u32 15, %v7195_v31 }
 0x170   :  { %11909 = vst [vmem:[#allocation61_spill] sm:$0xff] %v7185_v55  ;;  %v867_v63 = vadd.f32 %v851_v51, %v819_v18 }
 0x171   :  { %v7173_v3 = vpop.permute.xlu2 %924  ;;  %vm7221_vm12 = vcmp.gt.s32.totalorder %v11513_v40, 0 }
 0x172   :  { %11905 = vst [vmem:[#allocation59_spill] sm:$0xff] %v7173_v3 }
 0x173   :  { %6012 = vset.pattern.permute.xlu2 %v11882_v19 }
 0x174   :  { %704 = vrot.lane.b32.xlu1 %v7113_v10, %s6387_s3 }
 0x17a   :  { %v7182_v44 = vpop.permute.xlu2 %1008 }
 0x17b   :  { %11908 = vst [vmem:[#allocation60_spill] sm:$0xff] %v7182_v44 }
 0x17c   :  { %714 = vrot.lane.b32.xlu1 %v7185_v55, %s6387_s3 }
 0x181   :  { %v719_v13 = vpop.permute.xlu0 %718 }
 0x182   :  { %v7197_v60 = vpop.permute.xlu2 %720 }
 0x183   :  { %v736_v29 = vsel %vm726_vm10, %v719_v13, %v7197_v60  ;;  %v6325_v13 = vld [vmem:[%s11459_s0 + $0x30] sm:$0xff] }
 0x184   :  { %v779_v30 = vsel %vm7190_vm11, %v736_v29, 0.0  ;;  %696 = vrot.lane.b32.xlu1 %v7144_v24, %s6387_s3  ;;  %v534_v29 = vmul.f32 %v6325_v13, %v7058_v62  ;;  %v980_v13 = vmul.f32 %v7160_v43, %v7042_v37 }
 0x185   :  { %v899_v46 = vmul.f32 %v6991_v4, %v779_v30 }
 0x186   :  { %v7229_v51 = vadd.f32 %v534_v29, %v7083_v50  ;;  %v7252_v29 = vpop.permute.xlu1 %960 }
 0x187   :  { %v915_v25 = vadd.f32 %v899_v46, %v867_v63  ;;  %11919 = vst [vmem:[#allocation67_spill] sm:$0xff] %v7252_v29 }
 0x188   :  { %11917 = vst [vmem:[#allocation65_spill] sm:$0xff] %v7229_v51 }
 0x189   :  { %1255 = vrot.lane.b32.xlu2 %v915_v25, %s6389_s14  ;;  %v7217_v54 = vpop.permute.xlu0 %1012 }
 0x18a   :  { %11913 = vst [vmem:[#allocation63_spill] sm:$0xff] %v7217_v54  ;;  %v1027_v46 = vmul.f32 %v7217_v54, %v779_v30  ;;  %v7226_v38 = vpop.permute.xlu2 %631 }
 0x18b   :  { %11916 = vst [vmem:[#allocation64_spill] sm:$0xff] %v7226_v38  ;;  %v647_v62 = vsel %vm637_vm8, %v630_v14, %v7226_v38  ;;  %v1178_v14 = vld [vmem:[%s11463_s4 + $0x18] sm:$0xff]  ;;  %v975_v38 = vmul.f32 %v7252_v29, %v7069_v32 }
 0x18c   :  { %v7235_v25 = vsel %vm7221_vm12, %v647_v62, 0.0  ;;  %v7237_v63 = vadd.f32 %v1027_v46, %v995_v16  ;;  %706 = vrot.lane.b32.xlu1 %v7229_v51, %s6387_s3  ;;  %v11920_v46 = vmov 5  }
 0x18d   :  { %v948_v40 = vmul.f32 %v7121_v6, %v7235_v25 }
 0x18e   :  { %11918 = vst [vmem:[#allocation66_spill] sm:$0xff] %v7237_v63 }
 0x18f   :  { %v7245_v50 = vadd.f32 %v980_v13, %v948_v40  ;;  %v1176_v40 = vld [vmem:[%s11463_s4 + $0x8] sm:$0xff]  ;;  %s6390_s4 = smov 112  }
 0x194   :  { %698 = vrot.lane.b32.xlu1 %v7064_v36, %s6387_s3 }
 0x195   :  { %v711_v16 = vpop.permute.xlu2 %710 }
 0x19c   :  { %1196 = vperm.xlu1 %6008, %v1178_v14   ;;  %v1075_v14 = vmul.f32 %v7109_v2, %v690_v0  ;;  %v1155_v0 = vmul.f32 %v7011_v52, %v779_v30 }
 0x19d   :  { %v7259_v62 = vpop.permute.xlu2 %623 }
 0x19e   :  { %11921 = vst [vmem:[#allocation68_spill] sm:$0xff] %v7259_v62 }
 0x1a4   :  { %6009 = vset.pattern.permute.xlu1 %v11920_v46 }
 0x1a5   :  { %1000 = vperm.xlu1 %6009, %v6963_v33  }
 0x1ad   :  { %v622_v13 = vpop.permute.xlu1 %621  ;;  %6011 = vset.pattern.permute.xlu1 %v11882_v19 }
 0x1ae   :  { %v644_v6 = vsel %vm637_vm8, %v622_v13, %v7259_v62  ;;  %v668_v43 = vsel %vm637_vm8, 0.0, %v622_v13  ;;  %1186 = vperm.xlu1 %6011, %v1176_v40   ;;  %v976_v62 = vmul.f32 %v7252_v29, %v7085_v59  ;;  %v7287_v29 = vpop.permute.xlu2 %702 }
 0x1af   :  { %v686_v46 = vsel %vm7156_vm9, %v668_v43, 0.0  ;;  %v7270_v33 = vsel %vm7221_vm12, %v644_v6, 0.0  ;;  %v1107_v43 = vmul.f32 %v6977_v57, %v7019_v26 }
 0x1b0   :  { %v943_v13 = vmul.f32 %v7136_v17, %v686_v46  ;;  %v944_v19 = vmul.f32 %v7136_v17, %v7270_v33 }
 0x1b1   :  { %v1123_v40 = vadd.f32 %v1107_v43, %v1075_v14 }
 0x1b2   :  { %v991_v63 = vadd.f32 %v975_v38, %v943_v13  ;;  %v7282_v6 = vadd.f32 %v976_v62, %v944_v19 }
 0x1b3   :  { %v1171_v1 = vadd.f32 %v1155_v0, %v1123_v40 }
 0x1b5   :  { %v7284_v36 = vpop.permute.xlu1 %956 }
 0x1b6   :  { %11922 = vst [vmem:[#allocation69_spill] sm:$0xff] %v7284_v36  ;;  %1376 = vrot.lane.b32.xlu1 %v1171_v1, %s6390_s4  ;;  %v7291_v17 = vpop.permute.xlu2 %615  ;;  %v971_v1 = vmul.f32 %v7284_v36, %v7099_v34  ;;  %v972_v13 = vmul.f32 %v7284_v36, %v7113_v10 }
 0x1b7   :  { %11923 = vst [vmem:[#allocation70_spill] sm:$0xff] %v7291_v17 }
 0x1be   :  { %v7289_v49 = vpop.permute.xlu1 %920 }
 0x1c6   :  { %v614_v30 = vpop.permute.xlu1 %613 }
 0x1c7   :  { %v641_v26 = vsel %vm637_vm8, %v614_v30, %v7291_v17  ;;  %v667_v38 = vsel %vm637_vm8, 0.0, %v614_v30  ;;  %v815_v30 = vmul.f32 %v7005_v58, %v686_v46  ;;  %v847_v17 = vmul.f32 %v6969_v39, %v7069_v32 }
 0x1c8   :  { %v7298_v62 = vsel %vm7156_vm9, %v667_v38, 0.0  ;;  %v7302_v14 = vsel %vm7221_vm12, %v641_v26, 0.0 }
 0x1c9   :  { %v939_v19 = vmul.f32 %v7173_v3, %v7298_v62  ;;  %v940_v0 = vmul.f32 %v7173_v3, %v7302_v14  ;;  %v863_v27 = vadd.f32 %v847_v17, %v815_v30  ;;  %v811_v18 = vmul.f32 %v7014_v56, %v7298_v62 }
 0x1cb   :  { %v987_v43 = vadd.f32 %v971_v1, %v939_v19  ;;  %v7312_v40 = vadd.f32 %v972_v13, %v940_v0  ;;  %v1076_v13 = vmul.f32 %v7109_v2, %v7235_v25  ;;  %v7326_v19 = vpop.permute.xlu2 %694  ;;  %v11924_v0 = vand.u32 15, %v7195_v31 }
 0x1cd   :  { %vm7333_vm13 = vcmp.lt.s32.totalorder %v11924_v0, 15 }
 0x1ce   :  { %v713_v38 = vpop.permute.xlu1 %712 }
 0x1cf   :  { %v733_v26 = vsel %vm726_vm10, %v711_v16, %v713_v38  ;;  %v820_v16 = vmul.f32 %v6983_v28, %v7235_v25 }
 0x1d0   :  { %v775_v36 = vsel %vm7190_vm11, %v733_v26, 0.0 }
 0x1d1   :  { %v895_v51 = vmul.f32 %v7003_v5, %v775_v36  ;;  %v1023_v55 = vmul.f32 %v7182_v44, %v775_v36 }
 0x1d3   :  { %v7322_v3 = vadd.f32 %v1023_v55, %v991_v63  ;;  %v911_v1 = vadd.f32 %v895_v51, %v863_v27  ;;  %v1108_v27 = vmul.f32 %v6977_v57, %v7042_v37  ;;  %v852_v51 = vmul.f32 %v6994_v53, %v7042_v37 }
 0x1d4   :  { %v1071_v37 = vmul.f32 %v7126_v8, %v686_v46 }
 0x1d5   :  { %1247 = vrot.lane.b32.xlu2 %v911_v1, %s6389_s14  ;;  %v1124_v63 = vadd.f32 %v1108_v27, %v1076_v13  ;;  %v868_v31 = vadd.f32 %v852_v51, %v820_v16  ;;  %v7360_v13 = vpop.permute.xlu2 %607 }
 0x1d6   :  { %v7337_v17 = vpop.permute.xlu1 %722  ;;  %11928 = vst [vmem:[#allocation72_spill] sm:$0xff] %v7360_v13 }
 0x1d7   :  { %v737_v55 = vsel %vm726_vm10, %v7197_v60, %v7337_v17  ;;  %v7356_v60 = vpop.permute.xlu0 %952 }
 0x1d8   :  { %v780_v25 = vsel %vm7333_vm13, %v737_v55, 0.0  ;;  %v1151_v55 = vmul.f32 %v7119_v11, %v775_v36  ;;  %v968_v46 = vmul.f32 %v7356_v60, %v7144_v24 }
 0x1d9   :  { %v900_v30 = vmul.f32 %v6991_v4, %v780_v25  ;;  %v1028_v1 = vmul.f32 %v7217_v54, %v780_v25  ;;  %v1156_v0 = vmul.f32 %v7011_v52, %v780_v25  ;;  %v840_v25 = vmul.f32 %v7062_v45, %v7144_v24 }
 0x1db   :  { %v1172_v2 = vadd.f32 %v1156_v0, %v1124_v63  ;;  %v7351_v28 = vadd.f32 %v900_v30, %v868_v31  ;;  %v7354_v57 = vadd.f32 %v1028_v1, %v7245_v50  ;;  %v1103_v31 = vmul.f32 %v6997_v22, %v7069_v32 }
 0x1dd   :  { %11927 = vst [vmem:[#allocation71_spill] sm:$0xff] %v7354_v57  ;;  %1378 = vrot.lane.b32.xlu2 %v1172_v2, %s6390_s4  ;;  %v1119_v36 = vadd.f32 %v1103_v31, %v1071_v37  ;;  %v843_v37 = vmul.f32 %v6987_v7, %v7099_v34  ;;  %v1104_v57 = vmul.f32 %v6997_v22, %v7085_v59 }
 0x1de   :  { %v606_v27 = vpop.permute.xlu1 %605 }
 0x1df   :  { %v638_v16 = vsel %vm637_vm8, %v606_v27, %v7360_v13  ;;  %v1167_v32 = vadd.f32 %v1151_v55, %v1119_v36  ;;  %v839_v13 = vmul.f32 %v7062_v45, %v7128_v12 }
 0x1e0   :  { %v7369_v50 = vsel %vm7221_vm12, %v638_v16, 0.0  ;;  %v7390_v16 = vpop.permute.xlu2 %1004 }
 0x1e1   :  { %v808_v2 = vmul.f32 %v7095_v42, %v7369_v50  ;;  %v936_v51 = vmul.f32 %v7289_v49, %v7369_v50  ;;  %11929 = vst [vmem:[#allocation73_spill] sm:$0xff] %v7390_v16 }
 0x1e3   :  { %v7379_v63 = vadd.f32 %v968_v46, %v936_v51  ;;  %v7381_v30 = vadd.f32 %v840_v25, %v808_v2  ;;  %v859_v2 = vadd.f32 %v843_v37, %v811_v18  ;;  %v1072_v25 = vmul.f32 %v7126_v8, %v7270_v33 }
 0x1e5   :  { %1368 = vrot.lane.b32.xlu2 %v1167_v32, %s6390_s4  ;;  %v666_v32 = vsel %vm637_vm8, 0.0, %v606_v27 }
 0x1e6   :  { %v705_v1 = vpop.permute.xlu1 %704  ;;  %v678_v27 = vsel %vm7156_vm9, %v666_v32, 0.0 }
 0x1e7   :  { %v730_v0 = vsel %vm726_vm10, %v7287_v29, %v705_v1  ;;  %v935_v26 = vmul.f32 %v7289_v49, %v678_v27 }
 0x1e8   :  { %v771_v31 = vsel %vm7190_vm11, %v730_v0, 0.0 }
 0x1e9   :  { %v891_v55 = vmul.f32 %v7102_v15, %v771_v31  ;;  %v1019_v46 = vmul.f32 %v7390_v16, %v771_v31  ;;  %v1147_v9 = vmul.f32 %v7134_v35, %v771_v31  ;;  %v1063_v31 = vmul.f32 %v7171_v20, %v678_v27 }
 0x1eb   :  { %v7396_v51 = vadd.f32 %v1019_v46, %v987_v43  ;;  %v907_v36 = vadd.f32 %v891_v55, %v859_v2  ;;  %v1120_v55 = vadd.f32 %v1104_v57, %v1072_v25  ;;  %v1067_v2 = vmul.f32 %v7149_v23, %v7298_v62 }
 0x1ec   :  { %v1099_v57 = vmul.f32 %v7071_v41, %v7099_v34  ;;  %v1068_v34 = vmul.f32 %v7149_v23, %v7302_v14 }
 0x1ed   :  { %1239 = vrot.lane.b32.xlu0 %v907_v36, %s6389_s14  ;;  %v807_v36 = vmul.f32 %v7095_v42, %v678_v27 }
 0x1ee   :  { %v7401_v29 = vpop.permute.xlu1 %714  ;;  %v1115_v32 = vadd.f32 %v1099_v57, %v1067_v2  ;;  %v1095_v2 = vmul.f32 %v7107_v47, %v7128_v12 }
 0x1ef   :  { %v734_v0 = vsel %vm726_vm10, %v713_v38, %v7401_v29 }
 0x1f0   :  { %v7410_v43 = vsel %vm7333_vm13, %v734_v0, 0.0 }
 0x1f1   :  { %v1024_v18 = vmul.f32 %v7182_v44, %v7410_v43  ;;  %v1152_v37 = vmul.f32 %v7119_v11, %v7410_v43 }
 0x1f3   :  { %v1168_v46 = vadd.f32 %v1152_v37, %v1120_v55  ;;  %v7419_v38 = vadd.f32 %v1024_v18, %v7282_v6  ;;  %v855_v18 = vadd.f32 %v839_v13, %v807_v36  ;;  %v1163_v37 = vadd.f32 %v1147_v9, %v1115_v32 }
 0x1f4   :  { %v844_v13 = vmul.f32 %v6987_v7, %v7113_v10  ;;  %v1116_v9 = vadd.f32 %v1100_v48, %v1068_v34  ;;  %v1111_v10 = vadd.f32 %v1095_v2, %v1063_v31  ;;  %v1096_v34 = vmul.f32 %v7107_v47, %v7144_v24  ;;  %v11933_v24 = vld [vmem:[#allocation61_spill] sm:$0xff] }
 0x1f5   :  { %11930 = vst [vmem:[#allocation74_spill] sm:$0xff] %v7419_v38  ;;  %1370 = vrot.lane.b32.xlu1 %v1168_v46, %s6390_s4  ;;  %v812_v46 = vmul.f32 %v7014_v56, %v7302_v14 }
 0x1f6   :  { %v697_v0 = vpop.permute.xlu1 %696 }
 0x1f7   :  { %v727_v6 = vsel %vm726_vm10, %v7326_v19, %v697_v0 }
 0x1f8   :  { %v767_v25 = vsel %vm7190_vm11, %v727_v6, 0.0  ;;  %v860_v6 = vadd.f32 %v844_v13, %v812_v46 }
 0x1f9   :  { %v887_v62 = vmul.f32 %v7090_v61, %v767_v25  ;;  %v1143_v36 = vmul.f32 %v7180_v21, %v767_v25 }
 0x1fb   :  { %v903_v55 = vadd.f32 %v887_v62, %v855_v18 }
 0x1fd   :  { %1360 = vrot.lane.b32.xlu1 %v1163_v37, %s6390_s4  ;;  %1231 = vrot.lane.b32.xlu2 %v903_v55, %s6389_s14  ;;  %v1159_v55 = vadd.f32 %v1143_v36, %v1111_v10 }
 0x1fe   :  { %v7444_v19 = vpop.permute.xlu1 %706 }
 0x1ff   :  { %v731_v14 = vsel %vm726_vm10, %v705_v1, %v7444_v19  ;;  %v1064_v1 = vmul.f32 %v7171_v20, %v7369_v50 }
 0x200   :  { %v772_v57 = vsel %vm7333_vm13, %v731_v14, 0.0  ;;  %v11932_v14 = vld [vmem:[#allocation8_spill] sm:$0xff] }
 0x201   :  { %v892_v62 = vmul.f32 %v7102_v15, %v772_v57  ;;  %v1020_v32 = vmul.f32 %v7390_v16, %v772_v57  ;;  %v1148_v18 = vmul.f32 %v7134_v35, %v772_v57  ;;  %v1112_v50 = vadd.f32 %v1096_v34, %v1064_v1  ;;  %v11935_v57 = vld [vmem:[#allocation65_spill] sm:$0xff] }
 0x202   :  { %v816_v1 = vmul.f32 %v7005_v58, %v7270_v33  ;;  %v11941_v34 = vld [vmem:[#allocation49_spill] sm:$0xff]  ;;  %v11982_v58 = vld [vmem:[#allocation54_spill] sm:$0xff] }
 0x203   :  { %v1164_v37 = vadd.f32 %v1148_v18, %v1116_v9  ;;  %v7458_v38 = vadd.f32 %v892_v62, %v860_v6  ;;  %v7461_v42 = vadd.f32 %v1020_v32, %v7312_v40  ;;  %v11936_v9 = vld [vmem:[#allocation45_spill] sm:$0xff]  ;;  %v11937_v6 = vld [vmem:[#allocation46_spill] sm:$0xff] }
 0x205   :  { %11931 = vst [vmem:[#allocation75_spill] sm:$0xff] %v7461_v42  ;;  %1362 = vrot.lane.b32.xlu0 %v1164_v37, %s6390_s4  ;;  %1352 = vrot.lane.b32.xlu2 %v1159_v55, %s6390_s4  ;;  %v11939_v55 = vld [vmem:[#allocation50_spill] sm:$0xff] }
 0x206   :  { %v7467_v46 = vpop.permute.xlu1 %698 }
 0x207   :  { %v728_v31 = vsel %vm726_vm10, %v697_v0, %v7467_v46 }
 0x208   :  { %v768_v48 = vsel %vm7333_vm13, %v728_v31, 0.0  ;;  %v848_v31 = vmul.f32 %v6969_v39, %v7085_v59 }
 0x209   :  { %v888_v40 = vmul.f32 %v7090_v61, %v768_v48  ;;  %v1144_v13 = vmul.f32 %v7180_v21, %v768_v48 }
 0x20b   :  { %v1160_v2 = vadd.f32 %v1144_v13, %v1112_v50  ;;  %v7478_v36 = vadd.f32 %v888_v40, %v7381_v30  ;;  %v967_v30 = vmul.f32 %v7356_v60, %v7128_v12  ;;  %v11940_v12 = vld [vmem:[#allocation48_spill] sm:$0xff]  ;;  %v7519_v40 = vpop.permute.xlu2 %1255  ;;  %v11945_v50 = vld [vmem:[#allocation10_spill] sm:$0xff] }
 0x20c   :  { %11942 = vst [vmem:[#allocation48_spill] sm:$0xff] %v7519_v40  ;;  %v1295_v59 = vsel %vm1263_vm14, 0.0, %v7519_v40 }
 0x20d   :  { %633 = vrot.lane.b32.xlu0 %v11932_v14, %s6388_s27  ;;  %1354 = vrot.lane.b32.xlu1 %v1160_v2, %s6390_s4  ;;  %v983_v32 = vadd.f32 %v967_v30, %v935_v26  ;;  %v569_v2 = vand.u32 255, %v11945_v50  ;;  %v11948_v26 = vld [vmem:[#allocation66_spill] sm:$0xff] }
 0x20e   :  { %625 = vrot.lane.b32.xlu2 %v11933_v24, %s6388_s27  ;;  %v7485_v0 = vpop.permute.xlu1 %1196 }
 0x20f   :  { %11934 = vst [vmem:[#allocation8_spill] sm:$0xff] %v7485_v0  ;;  %vm7527_vm15 = vcmp.ge.s32.totalorder %v569_v2, 16 }
 0x210   :  { %v1316_v30 = vsel %vm7527_vm15, %v1295_v59, 0.0 }
 0x215   :  { %617 = vrot.lane.b32.xlu0 %v11935_v57, %s6388_s27  ;;  %724 = vrot.lane.b32.xlu1 %v11936_v9, %s6387_s3  ;;  %v11987_v9 = vld [vmem:[#allocation38_spill] sm:$0xff] }
 0x216   :  { %716 = vrot.lane.b32.xlu2 %v11937_v6, %s6387_s3 }
 0x217   :  { %v7496_v62 = vpop.permute.xlu1 %1000 }
 0x218   :  { %v1015_v18 = vmul.f32 %v7496_v62, %v767_v25  ;;  %v1016_v10 = vmul.f32 %v7496_v62, %v768_v48  ;;  %v896_v25 = vmul.f32 %v7003_v5, %v7410_v43  ;;  %v1105_v5 = vmul.f32 %v6997_v22, %v11933_v24 }
 0x21a   :  { %v7500_v27 = vadd.f32 %v1015_v18, %v983_v32  ;;  %v7503_v37 = vadd.f32 %v1016_v10, %v7379_v63  ;;  %v864_v63 = vadd.f32 %v848_v31, %v816_v1 }
 0x21c   :  { %11938 = vst [vmem:[#allocation65_spill] sm:$0xff] %v7503_v37  ;;  %v912_v48 = vadd.f32 %v896_v25, %v864_v63 }
 0x21d   :  { %708 = vrot.lane.b32.xlu0 %v11939_v55, %s6387_s3  ;;  %609 = vrot.lane.b32.xlu1 %v11940_v12, %s6388_s27 }
 0x21e   :  { %700 = vrot.lane.b32.xlu2 %v11941_v34, %s6387_s3 }
 0x220   :  { %v7522_v13 = vpop.permute.xlu1 %1186 }
 0x221   :  { %11943 = vst [vmem:[#allocation76_spill] sm:$0xff] %v7522_v13 }
 0x225   :  { %1257 = vrot.lane.b32.xlu1 %v7351_v28, %s6389_s14  ;;  %v1211_v28 = vadd.f32 %v7485_v0, %v11948_v26 }
 0x226   :  { %1249 = vrot.lane.b32.xlu2 %v912_v48, %s6389_s14 }
 0x227   :  { %v1332_v10 = vadd.f32 %v1316_v30, %v1211_v28  ;;  %v7555_v30 = vpop.permute.xlu0 %1191 }
 0x228   :  { %v1377_v32 = vpop.permute.xlu1 %1376  ;;  %11951 = vst [vmem:[#allocation79_spill] sm:$0xff] %v7555_v30 }
 0x22f   :  { %v7524_v33 = vpop.permute.xlu2 %1247 }
 0x230   :  { %11944 = vst [vmem:[#allocation77_spill] sm:$0xff] %v7524_v33 }
 0x237   :  { %v7537_v18 = vpop.permute.xlu2 %1378 }
 0x238   :  { %11949 = vst [vmem:[#allocation66_spill] sm:$0xff] %v7537_v18  ;;  %v1394_v1 = vsel %vm1384_vm0, %v1377_v32, %v7537_v18 }
 0x239   :  { %v1453_v25 = vadd.f32 %v1394_v1, %v1332_v10  ;;  %v1294_v10 = vsel %vm1263_vm14, 0.0, %v7524_v33  ;;  %v7562_v1 = vadd.s32 256, %v11945_v50 }
 0x23b   :  { %v7541_v31 = vand.u32 4294901760, %v1453_v25  ;;  %11952 = vst [vmem:[#allocation80_spill] sm:$0xff] %v7562_v1 }
 0x23d   :  { %1643 = vmatpush.msra.mxu0 %v7541_v31  ;;  %2030 = vmatpush.msra.mxu3 %v7541_v31  ;;  %v7546_v63 = vsub.f32 %v1453_v25, %v7541_v31  ;;  %v1312_v25 = vsel %vm7527_vm15, %v1294_v10, 0.0  ;;  %v11958_v10 = vld [vmem:[#allocation68_spill] sm:$0xff] }
 0x23f   :  { %1918 = vmatpush.msra.mxu2 %v7546_v63  ;;  %v11549_v48 = vand.u32 4294901760, %v7546_v63  ;;  %v1369_v26 = vpop.permute.xlu2 %1368 }
 0x241   :  { %v1798_v2 = vsub.f32 %v7546_v63, %v11549_v48  ;;  %v7569_v48 = vpop.permute.xlu0 %1181 }
 0x242   :  { %11953 = vst [vmem:[#allocation81_spill] sm:$0xff] %v7569_v48 }
 0x243   :  { %v1799_v59 = vand.u32 4294901760, %v1798_v2  ;;  %v1207_v2 = vadd.f32 %v7555_v30, %v7322_v3 }
 0x245   :  { %1800 = vmatpush.msra.mxu1 %v1799_v59  ;;  %v567_v59 = vand.u32 15, %v7562_v1  ;;  %v1328_v37 = vadd.f32 %v1312_v25, %v1207_v2 }
 0x247   :  { %vm7577_vm1 = vcmp.gt.s32.totalorder %v567_v59, 0  ;;  %vm7599_vm2 = vcmp.lt.s32.totalorder %v567_v59, 15 }
 0x257   :  { %v7553_v28 = vpop.permute.xlu2 %1231 }
 0x258   :  { %11950 = vst [vmem:[#allocation78_spill] sm:$0xff] %v7553_v28 }
 0x25f   :  { %v7557_v32 = vpop.permute.xlu2 %1352 }
 0x267   :  { %v7571_v42 = vpop.permute.xlu1 %1370 }
 0x268   :  { %11954 = vst [vmem:[#allocation82_spill] sm:$0xff] %v7571_v42  ;;  %v1391_v18 = vsel %vm1384_vm0, %v1369_v26, %v7571_v42  ;;  %v7575_v40 = vpop.permute.xlu2 %625  ;;  %v11962_v26 = vld [vmem:[#allocation56_spill] sm:$0xff] }
 0x269   :  { %11955 = vst [vmem:[#allocation83_spill] sm:$0xff] %v7575_v40  ;;  %v1449_v0 = vadd.f32 %v1391_v18, %v1328_v37  ;;  %v645_v3 = vsel %vm637_vm8, %v11958_v10, %v7575_v40  ;;  %v7595_v18 = vpop.permute.xlu0 %1239 }
 0x26a   :  { %v7588_v25 = vsel %vm7577_vm1, %v645_v3, 0.0  ;;  %11961 = vst [vmem:[#allocation85_spill] sm:$0xff] %v7595_v18  ;;  %v1293_v42 = vsel %vm1263_vm14, 0.0, %v7595_v18 }
 0x26b   :  { %v7584_v1 = vand.u32 4294901760, %v1449_v0  ;;  %11960 = vst [vmem:[#allocation84_spill] sm:$0xff] %v7588_v25  ;;  %v945_v2 = vmul.f32 %v11962_v26, %v7588_v25  ;;  %v1073_v40 = vmul.f32 %v7126_v8, %v7588_v25  ;;  %v11966_v26 = vld [vmem:[#allocation67_spill] sm:$0xff] }
 0x26c   :  { %v977_v59 = vmul.f32 %v11966_v26, %v11933_v24 }
 0x26d   :  { %11959 = vst [vmem:[#allocation68_spill] sm:$0xff] %v7584_v1  ;;  %1645 = vmatpush.msra.mxu0 %v7584_v1  ;;  %2032 = vmatpush.msra.mxu3 %v7584_v1  ;;  %v7593_v37 = vsub.f32 %v1449_v0, %v7584_v1  ;;  %v1473_v0 = vld [vmem:[%s11464_s5] sm:$0xff]  ;;  %v1121_v55 = vadd.f32 %v1105_v5, %v1073_v40 }
 0x26e   :  { %v993_v34 = vadd.f32 %v977_v59, %v945_v2  ;;  %v1587_v18 = vsel %vm1585_vm3, %v1473_v0, 0  ;;  %v1203_v2 = vadd.f32 %v7522_v13, %v7396_v51  ;;  %v1465_v5 = vld [vmem:[%s11460_s1 + $0x40] sm:$0xff]  ;;  %v1292_v51 = vsel %vm1263_vm14, 0.0, %v7553_v28 }
 0x26f   :  { %1921 = vmatpush.msra.mxu2 %v7593_v37  ;;  %v11967_v50 = vand.u32 4294901760, %v7593_v37  ;;  %v7642_v0 = vand.u32 4294901760, %v1587_v18 }
 0x270   :  { %v7607_v30 = vpop.permute.xlu2 %716 }
 0x271   :  { %11965 = vst [vmem:[#allocation86_spill] sm:$0xff] %v7607_v30  ;;  %v735_v3 = vsel %vm726_vm10, %v7401_v29, %v7607_v30  ;;  %v1804_v8 = vsub.f32 %v7593_v37, %v11967_v50  ;;  %v1308_v29 = vsel %vm7527_vm15, %v1293_v42, 0.0  ;;  %v1361_v42 = vpop.permute.xlu1 %1360  ;;  %v7660_v40 = vsub.f32 %v1587_v18, %v7642_v0 }
 0x272   :  { %v7624_v39 = vsel %vm7599_vm2, %v735_v3, 0.0  ;;  %v1469_v3 = vld [vmem:[%s11460_s1 + $0x60] sm:$0xff]  ;;  %11970 = vst [vmem:[#allocation89_spill] sm:$0xff] %v7642_v0  ;;  %v1324_v22 = vadd.f32 %v1308_v29, %v1203_v2  ;;  %v1304_v29 = vsel %vm7527_vm15, %v1292_v51, 0.0  ;;  %v1199_v2 = vadd.f32 %v7569_v48, %v7500_v27 }
 0x273   :  { %11968 = vst [vmem:[#allocation87_spill] sm:$0xff] %v7624_v39  ;;  %v1025_v26 = vmul.f32 %v7182_v44, %v7624_v39  ;;  %v1153_v30 = vmul.f32 %v7119_v11, %v7624_v39  ;;  %v1805_v50 = vand.u32 4294901760, %v1804_v8  ;;  %v7646_v11 = vand.u32 4294901760, %v1469_v3 }
 0x274   :  { %11973 = vst [vmem:[#allocation92_spill] sm:$0xff] %v7660_v40  ;;  %v1320_v51 = vadd.f32 %v1304_v29, %v1199_v2 }
 0x275   :  { %v7640_v59 = vadd.f32 %v1025_v26, %v993_v34  ;;  %1806 = vmatpush.msra.mxu1 %v1805_v50  ;;  %v1169_v44 = vadd.f32 %v1153_v30, %v1121_v55  ;;  %11972 = vst [vmem:[#allocation91_spill] sm:$0xff] %v7646_v11  ;;  %v1461_v34 = vld [vmem:[%s11460_s1 + $0x20] sm:$0xff]  ;;  %v7662_v30 = vand.u32 4294901760, %v1465_v5  ;;  %v7668_v26 = vsub.f32 %v1469_v3, %v7646_v11 }
 0x276   :  { %v7677_v18 = vand.u32 4294901760, %v1461_v34 }
 0x277   :  { %11969 = vst [vmem:[#allocation88_spill] sm:$0xff] %v7640_v59  ;;  %v7644_v24 = vpop.permute.xlu0 %1362  ;;  %1372 = vrot.lane.b32.xlu1 %v1169_v44, %s6390_s4  ;;  %v1457_v44 = vld [vmem:[%s11460_s1] sm:$0xff]  ;;  %v7698_v48 = vsub.f32 %v1465_v5, %v7662_v30 }
 0x278   :  { %11971 = vst [vmem:[#allocation90_spill] sm:$0xff] %v7644_v24  ;;  %v1388_v8 = vsel %vm1384_vm0, %v1361_v42, %v7644_v24  ;;  %v7686_v42 = vand.u32 4294901760, %v1457_v44  ;;  %v7711_v27 = vsub.f32 %v1461_v34, %v7677_v18 }
 0x279   :  { %v1445_v55 = vadd.f32 %v1388_v8, %v1324_v22  ;;  %v1474_v22 = vld [vmem:[%s11464_s5 + $0x8] sm:$0xff]  ;;  %v7689_v8 = vand.u32 4294901760, %v7660_v40 }
 0x27a   :  { %v1590_v43 = vsel %vm1585_vm3, %v1474_v22, 0  ;;  %v11978_v22 = vld [vmem:[#allocation64_spill] sm:$0xff]  ;;  %v7725_v34 = vsub.f32 %v1457_v44, %v7686_v42  ;;  %v853_v44 = vmul.f32 %v6994_v53, %v11932_v14 }
 0x27b   :  { %v7675_v50 = vand.u32 4294901760, %v1445_v55  ;;  %11975 = vst [vmem:[#allocation94_spill] sm:$0xff] %v7689_v8  ;;  %v7717_v39 = vand.u32 4294901760, %v1590_v43 }
 0x27d   :  { %11974 = vst [vmem:[#allocation93_spill] sm:$0xff] %v7675_v50  ;;  %1647 = vmatpush.msra.mxu0 %v7675_v50  ;;  %2034 = vmatpush.msra.mxu3 %v7675_v50  ;;  %v7684_v3 = vsub.f32 %v1445_v55, %v7675_v50  ;;  %v11994_v50 = vand.u32 4294901760, %v7711_v27 }
 0x27e   :  { %11980 = vst [vmem:[#allocation64_spill] sm:$0xff] %v7717_v39 }
 0x27f   :  { %v7692_v59 = vpop.permute.xlu1 %1354  ;;  %v7694_v28 = vpop.permute.xlu0 %633  ;;  %1233 = vrot.lane.b32.xlu1 %v7478_v36, %s6389_s14  ;;  %1924 = vmatpush.msra.mxu2 %v7684_v3  ;;  %v11586_v2 = vand.u32 4294901760, %v7684_v3  ;;  %v11979_v36 = vld [vmem:[#allocation37_spill] sm:$0xff] }
 0x280   :  { %11976 = vst [vmem:[#allocation95_spill] sm:$0xff] %v7692_v59  ;;  %v1385_v55 = vsel %vm1384_vm0, %v7557_v32, %v7692_v59  ;;  %v648_v29 = vsel %vm637_vm8, %v11978_v22, %v7694_v28  ;;  %v1109_v13 = vmul.f32 %v11979_v36, %v11932_v14  ;;  %v11981_v32 = vld [vmem:[#allocation58_spill] sm:$0xff]  ;;  %v1661_v22 = vsub.f32 %v7660_v40, %v7689_v8  ;;  %v11999_v40 = vld [vmem:[#allocation59_spill] sm:$0xff] }
 0x281   :  { %11977 = vst [vmem:[#allocation96_spill] sm:$0xff] %v7694_v28  ;;  %v1441_v5 = vadd.f32 %v1385_v55, %v1320_v51  ;;  %v692_v24 = vsel %vm7577_vm1, %v648_v29, 0.0  ;;  %v981_v59 = vmul.f32 %v11981_v32, %v11932_v14  ;;  %v1475_v51 = vld [vmem:[%s11464_s5 + $0x10] sm:$0xff]  ;;  %v1810_v29 = vsub.f32 %v7684_v3, %v11586_v2  ;;  %v11986_v14 = vld [vmem:[#allocation69_spill] sm:$0xff] }
 0x282   :  { %v949_v25 = vmul.f32 %v11982_v58, %v692_v24  ;;  %v11984_v32 = vand.u32 4294901760, %v7668_v26  ;;  %v7746_v8 = vmul.f32 %v7062_v45, %v11940_v12  ;;  %v7754_v28 = vsub.f32 %v1590_v43, %v7717_v39 }
 0x283   :  { %v7730_v55 = vand.u32 4294901760, %v1441_v5  ;;  %v1811_v2 = vand.u32 4294901760, %v1810_v29  ;;  %v821_v53 = vmul.f32 %v11987_v9, %v692_v24  ;;  %v7760_v45 = vand.u32 4294901760, %v1661_v22  ;;  %v11989_v29 = vld [vmem:[#allocation52_spill] sm:$0xff]  ;;  %v7776_v9 = vpop.permute.xlu2 %700 }
 0x284   :  { %v7738_v58 = vsub.f32 %v7668_v26, %v11984_v32  ;;  %v997_v36 = vadd.f32 %v981_v59, %v949_v25  ;;  %11985 = vst [vmem:[#allocation98_spill] sm:$0xff] %v7754_v28  ;;  %v1593_v25 = vsel %vm1585_vm3, %v1475_v51, 0  ;;  %v973_v59 = vmul.f32 %v11986_v14, %v11935_v57 }
 0x285   :  { %11983 = vst [vmem:[#allocation97_spill] sm:$0xff] %v7730_v55  ;;  %1649 = vmatpush.msra.mxu0 %v7730_v55  ;;  %2036 = vmatpush.msra.mxu3 %v7730_v55  ;;  %v7751_v32 = vsub.f32 %v1441_v5, %v7730_v55  ;;  %v1077_v21 = vmul.f32 %v11989_v29, %v692_v24  ;;  %v11992_v14 = vand.u32 4294901760, %v7698_v48  ;;  %v7792_v5 = vand.u32 4294901760, %v1593_v25 }
 0x286   :  { %11988 = vst [vmem:[#allocation99_spill] sm:$0xff] %v7760_v45  ;;  %1812 = vmatpush.msra.mxu1 %v1811_v2  ;;  %v1823_v51 = vand.u32 4294901760, %v7738_v58  ;;  %v11993_v2 = vld [vmem:[#allocation70_spill] sm:$0xff]  ;;  %v869_v39 = vadd.f32 %v853_v44, %v821_v53 }
 0x287   :  { %v7764_v1 = vpop.permute.xlu1 %724  ;;  %1651 = vmatpush.msra.mxu0 %v7646_v11  ;;  %v7767_v43 = vpop.permute.xlu0 %617  ;;  %v7774_v22 = vsub.f32 %v7698_v48, %v11992_v14  ;;  %627 = vrot.lane.b32.xlu1 %v11937_v6, %s6388_s27  ;;  %v7790_v14 = vsub.f32 %v7711_v27, %v11994_v50  ;;  %11995 = vst [vmem:[#allocation70_spill] sm:$0xff] %v7792_v5 }
 0x288   :  { %11990 = vst [vmem:[#allocation100_spill] sm:$0xff] %v7764_v1  ;;  %v738_v24 = vsel %vm726_vm10, %v7337_v17, %v7764_v1  ;;  %1927 = vmatpush.msra.mxu2 %v7751_v32  ;;  %v642_v58 = vsel %vm637_vm8, %v11993_v2, %v7767_v43  ;;  %v11996_v17 = vand.u32 4294901760, %v7751_v32  ;;  %v7803_v2 = vand.u32 4294901760, %v7754_v28  ;;  %2038 = vmatpush.msra.mxu3 %v7646_v11 }
 0x289   :  { %11991 = vst [vmem:[#allocation101_spill] sm:$0xff] %v7767_v43  ;;  %v781_v29 = vsel %vm7599_vm2, %v738_v24, 0.0  ;;  %v684_v6 = vsel %vm7577_vm1, %v642_v58, 0.0  ;;  %1653 = vmatpush.msra.mxu0 %v7662_v30  ;;  %v11998_v24 = vand.u32 4294901760, %v7725_v34 }
 0x28a   :  { %v1816_v1 = vsub.f32 %v7751_v32, %v11996_v17  ;;  %11997 = vst [vmem:[#allocation102_spill] sm:$0xff] %v7803_v2  ;;  %v901_v50 = vmul.f32 %v6991_v4, %v781_v29  ;;  %v1029_v43 = vmul.f32 %v7217_v54, %v781_v29  ;;  %1930 = vmatpush.msra.mxu2 %v7668_v26 }
 0x28b   :  { %v7811_v58 = vsub.f32 %v7725_v34, %v11998_v24  ;;  %v729_v17 = vsel %vm726_vm10, %v7467_v46, %v7776_v9  ;;  %v1157_v55 = vmul.f32 %v7011_v52, %v781_v29  ;;  %v941_v11 = vmul.f32 %v11999_v40, %v684_v6  ;;  %1655 = vmatpush.msra.mxu0 %v7677_v18  ;;  %v1476_v46 = vld [vmem:[%s11464_s5 + $0x18] sm:$0xff] }
 0x28c   :  { %v1125_v4 = vadd.f32 %v1109_v13, %v1077_v21  ;;  %v7820_v54 = vadd.f32 %v1029_v43, %v997_v36  ;;  %v1817_v53 = vand.u32 4294901760, %v1816_v1  ;;  %v917_v44 = vadd.f32 %v901_v50, %v869_v39  ;;  %1933 = vmatpush.msra.mxu2 %v7698_v48  ;;  %2040 = vmatpush.msra.mxu3 %v7662_v30 }
 0x28d   :  { %v7824_v24 = vsub.f32 %v1593_v25, %v7792_v5  ;;  %v989_v29 = vadd.f32 %v973_v59, %v941_v11  ;;  %1657 = vmatpush.msra.mxu0 %v7686_v42  ;;  %v1669_v21 = vsub.f32 %v7754_v28, %v7803_v2  ;;  %v1101_v39 = vmul.f32 %v7071_v41, %v11935_v57 }
 0x28e   :  { %12000 = vst [vmem:[#allocation103_spill] sm:$0xff] %v7820_v54  ;;  %v1173_v40 = vadd.f32 %v1157_v55, %v1125_v4  ;;  %v969_v13 = vmul.f32 %v7356_v60, %v11940_v12  ;;  %v7839_v1 = vsel %vm7599_vm2, %v729_v17, 0.0  ;;  %1818 = vmatpush.msra.mxu1 %v1817_v53  ;;  %1663 = vmatmul.f32.vlgmr.msra.gmra.mxu0 %v7760_v45  ;;  %v1829_v11 = vand.u32 4294901760, %v7774_v22 }
 0x28f   :  { %12001 = vst [vmem:[#allocation104_spill] sm:$0xff] %v7824_v24  ;;  %v845_v4 = vmul.f32 %v6987_v7, %v11935_v57  ;;  %v813_v36 = vmul.f32 %v7014_v56, %v684_v6  ;;  %v1069_v55 = vmul.f32 %v7149_v23, %v684_v6  ;;  %v12002_v25 = vand.u32 4294901760, %v7546_v63  ;;  %v7850_v59 = vpop.permute.xlu1 %609  ;;  %v7852_v43 = vpop.permute.xlu0 %708  ;;  %1259 = vrot.lane.b32.xlu1 %v917_v44, %s6389_s14  ;;  %v12003_v57 = vld [vmem:[#allocation72_spill] sm:$0xff] }
 0x290   :  { %1380 = vrot.lane.b32.xlu0 %v1173_v40, %s6390_s4  ;;  %v1835_v50 = vand.u32 4294901760, %v7790_v14  ;;  %v1596_v22 = vsel %vm1585_vm3, %v1476_v46, 0  ;;  %v639_v17 = vsel %vm637_vm8, %v12003_v57, %v7850_v59  ;;  %1824 = vmatpush.msra.mxu1 %v1823_v51  ;;  %v732_v6 = vsel %vm726_vm10, %v7444_v19, %v7852_v43  ;;  %v12007_v19 = vld [vmem:[#allocation51_spill] sm:$0xff]  ;;  %v1477_v23 = vld [vmem:[%s11464_s5 + $0x20] sm:$0xff] }
 0x291   :  { %2153 = vmatpush.msrb.mxu0 %v12002_v25  ;;  %v1841_v63 = vand.u32 4294901760, %v7811_v58  ;;  %v7865_v40 = vand.u32 4294901760, %v7824_v24  ;;  %v889_v14 = vmul.f32 %v7090_v61, %v7839_v1  ;;  %v680_v53 = vsel %vm7577_vm1, %v639_v17, 0.0  ;;  %1936 = vmatpush.msra.mxu2 %v7711_v27 }
 0x292   :  { %v773_v44 = vsel %vm7599_vm2, %v732_v6, 0.0  ;;  %v12005_v51 = vand.u32 4294901760, %v7593_v37  ;;  %v7875_v46 = vand.u32 4294901760, %v1669_v21  ;;  %v809_v58 = vmul.f32 %v12007_v19, %v680_v53  ;;  %1830 = vmatpush.msra.mxu1 %v1829_v11  ;;  %2042 = vmatpush.msra.mxu3 %v7677_v18 }
 0x293   :  { %12004 = vst [vmem:[#allocation72_spill] sm:$0xff] %v7865_v40  ;;  %v937_v25 = vmul.f32 %v7289_v49, %v680_v53  ;;  %v893_v57 = vmul.f32 %v7102_v15, %v773_v44  ;;  %v7881_v54 = vand.u32 4294901760, %v1596_v22  ;;  %v1021_v33 = vmul.f32 %v7390_v16, %v773_v44  ;;  %1939 = vmatpush.msra.mxu2 %v7725_v34  ;;  %v12115_v16 = vld [vmem:[#allocation67_spill] sm:$0xff] }
 0x294   :  { %2157 = vmatpush.msrb.mxu0 %v12005_v51  ;;  %12006 = vst [vmem:[#allocation105_spill] sm:$0xff] %v7875_v46  ;;  %v1149_v10 = vmul.f32 %v7134_v35, %v773_v44  ;;  %v12009_v37 = vand.u32 4294901760, %v7684_v3  ;;  %v1117_v21 = vadd.f32 %v1101_v39, %v1069_v55  ;;  %v861_v17 = vadd.f32 %v845_v4, %v813_v36 }
 0x295   :  { %12008 = vst [vmem:[#allocation51_spill] sm:$0xff] %v7881_v54  ;;  %v1017_v6 = vmul.f32 %v7496_v62, %v7839_v1  ;;  %v985_v51 = vadd.f32 %v969_v13, %v937_v25  ;;  %v1065_v45 = vmul.f32 %v7171_v20, %v680_v53  ;;  %1836 = vmatpush.msra.mxu1 %v1835_v50  ;;  %v12010_v3 = vand.u32 4294901760, %v7751_v32 }
 0x296   :  { %2161 = vmatpush.msrb.mxu0 %v12009_v37  ;;  %v1677_v11 = vsub.f32 %v7824_v24, %v7865_v40  ;;  %v7895_v44 = vadd.f32 %v1021_v33, %v989_v29  ;;  %v1165_v39 = vadd.f32 %v1149_v10, %v1117_v21  ;;  %v909_v4 = vadd.f32 %v893_v57, %v861_v17  ;;  %v12021_v57 = vld [vmem:[#allocation94_spill] sm:$0xff]  ;;  %v12023_v10 = vld [vmem:[#allocation97_spill] sm:$0xff]  ;;  %v12025_v37 = vld [vmem:[#allocation64_spill] sm:$0xff] }
 0x297   :  { %1842 = vmatpush.msra.mxu1 %v1841_v63  ;;  %1671 = vmatmul.f32.gmra.mxu0 %v7875_v46  ;;  %v7902_v13 = vsub.f32 %v1596_v22, %v7881_v54  ;;  %v857_v36 = vadd.f32 %v7746_v8, %v809_v58  ;;  %v7905_v55 = vadd.f32 %v1017_v6, %v985_v51  ;;  %v1599_v32 = vsel %vm1585_vm3, %v1477_v23, 0  ;;  %v12013_v22 = vld [vmem:[#allocation92_spill] sm:$0xff]  ;;  %v1478_v58 = vld [vmem:[%s11464_s5 + $0x28] sm:$0xff]  ;;  %v12104_v46 = vld [vmem:[#allocation47_spill] sm:$0xff] }
 0x298   :  { %2165 = vmatpush.msrb.mxu0 %v12010_v3  ;;  %v1097_v29 = vmul.f32 %v7107_v47, %v11940_v12  ;;  %1844 = vmatmul.f32.vlgmr.msra.gmra.mxu1 %v7642_v0  ;;  %v12014_v63 = vld [vmem:[#allocation68_spill] sm:$0xff]  ;;  %v7920_v12 = vand.u32 4294901760, %v1677_v11  ;;  %v7926_v23 = vand.u32 4294901760, %v1599_v32  ;;  %v12019_v53 = vand.u32 4294901760, %v7668_v26  ;;  %v12026_v17 = vld [vmem:[#allocation45_spill] sm:$0xff] }
 0x299   :  { %12011 = vst [vmem:[#allocation106_spill] sm:$0xff] %v7902_v13  ;;  %1241 = vrot.lane.b32.xlu0 %v7458_v38, %s6389_s14  ;;  %2256 = vmatpush.msrb.mxu1 %v7541_v31  ;;  %v7915_v50 = vadd.f32 %v889_v14, %v857_v36  ;;  %v7924_v38 = vand.u32 4294901760, %v7902_v13  ;;  %v12018_v31 = vld [vmem:[#allocation11_spill] sm:$0xff]  ;;  %v12022_v33 = vand.u32 4294901760, %v7698_v48  ;;  %v1602_v21 = vsel %vm1585_vm3, %v1478_v58, 0  ;;  %v12041_v58 = vld [vmem:[#allocation36_spill] sm:$0xff] }
 0x29a   :  { %12012 = vst [vmem:[#allocation107_spill] sm:$0xff] %v7905_v55  ;;  %1364 = vrot.lane.b32.xlu2 %v1165_v39, %s6390_s4  ;;  %1243 = vrot.lane.b32.xlu1 %v909_v4, %s6389_s14  ;;  %v1113_v8 = vadd.f32 %v1097_v29, %v1065_v45  ;;  %v1145_v14 = vmul.f32 %v12018_v31, %v7839_v1  ;;  %v12020_v45 = vld [vmem:[#allocation93_spill] sm:$0xff]  ;;  %v12027_v48 = vld [vmem:[#allocation91_spill] sm:$0xff]  ;;  %v12028_v6 = vand.u32 4294901760, %v7711_v27  ;;  %v7961_v3 = vand.u32 4294901760, %v1602_v21  ;;  %v1479_v4 = vld [vmem:[%s11464_s5 + $0x30] sm:$0xff] }
 0x29b   :  { %1942 = vmatmul.f32.vlgmr.msra.gmra.mxu2 %v12013_v22  ;;  %2258 = vmatpush.msrb.mxu1 %v12014_v63  ;;  %12015 = vst [vmem:[#allocation68_spill] sm:$0xff] %v7920_v12  ;;  %v1685_v26 = vsub.f32 %v7902_v13, %v7924_v38  ;;  %v7945_v1 = vsub.f32 %v1599_v32, %v7926_v23  ;;  %v12032_v39 = vand.u32 4294901760, %v7725_v34  ;;  %v12035_v34 = vld [vmem:[#allocation43_spill] sm:$0xff]  ;;  %v12036_v32 = vld [vmem:[#allocation50_spill] sm:$0xff] }
 0x29c   :  { %12016 = vst [vmem:[#allocation108_spill] sm:$0xff] %v7924_v38  ;;  %2169 = vmatpush.msrb.mxu0 %v12019_v53  ;;  %2044 = vmatpush.msra.mxu3 %v7686_v42  ;;  %v1161_v25 = vadd.f32 %v1145_v14, %v1113_v8  ;;  %v7975_v36 = vsub.f32 %v1602_v21, %v7961_v3  ;;  %v12037_v8 = vld [vmem:[#allocation49_spill] sm:$0xff]  ;;  %v12038_v63 = vld [vmem:[#allocation87_spill] sm:$0xff]  ;;  %v12039_v14 = vld [vmem:[#allocation42_spill] sm:$0xff] }
 0x29d   :  { %12017 = vst [vmem:[#allocation109_spill] sm:$0xff] %v7926_v23  ;;  %2260 = vmatpush.msrb.mxu1 %v12020_v45  ;;  %2048 = vmatmul.f32.vlgmr.msra.gmra.mxu3 %v12021_v57  ;;  %v7956_v51 = vand.u32 4294901760, %v1685_v26  ;;  %v7959_v11 = vand.u32 4294901760, %v7945_v1  ;;  %v897_v53 = vmul.f32 %v12039_v14, %v12038_v63  ;;  %v12040_v45 = vld [vmem:[#allocation61_spill] sm:$0xff]  ;;  %v1480_v21 = vld [vmem:[%s11464_s5 + $0x38] sm:$0xff] }
 0x29e   :  { %2173 = vmatpush.msrb.mxu0 %v12022_v33  ;;  %12024 = vst [vmem:[#allocation11_spill] sm:$0xff] %v7945_v1  ;;  %v7994_v33 = vand.u32 4294901760, %v7975_v36 }
 0x29f   :  { %2262 = vmatpush.msrb.mxu1 %v12023_v10  ;;  %1679 = vmatmul.f32.gmra.mxu0 %v7920_v12  ;;  %12029 = vst [vmem:[#allocation93_spill] sm:$0xff] %v7956_v51  ;;  %v1693_v27 = vsub.f32 %v7945_v1, %v7959_v11 }
 0x2a0   :  { %1848 = vmatmul.f32.gmra.mxu1 %v12025_v37  ;;  %2177 = vmatpush.msrb.mxu0 %v12028_v6  ;;  %12030 = vst [vmem:[#allocation97_spill] sm:$0xff] %v7959_v11  ;;  %v1701_v6 = vsub.f32 %v7975_v36, %v7994_v33 }
 0x2a1   :  { %1356 = vrot.lane.b32.xlu0 %v1161_v25, %s6390_s4  ;;  %2264 = vmatpush.msrb.mxu1 %v12027_v48  ;;  %12031 = vst [vmem:[#allocation45_spill] sm:$0xff] %v7961_v3  ;;  %v849_v25 = vmul.f32 %v12041_v58, %v12040_v45 }
 0x2a2   :  { %635 = vrot.lane.b32.xlu2 %v12026_v17, %s6388_s27  ;;  %2181 = vmatpush.msrb.mxu0 %v12032_v39  ;;  %12033 = vst [vmem:[#allocation91_spill] sm:$0xff] %v7975_v36 }
 0x2a3   :  { %1947 = vmatmul.f32.gmra.mxu2 %v7754_v28  ;;  %2266 = vmatpush.msrb.mxu1 %v7662_v30  ;;  %v12034_v30 = vld [vmem:[#allocation84_spill] sm:$0xff]  ;;  %12043 = vst [vmem:[#allocation50_spill] sm:$0xff] %v7994_v33  ;;  %v1486_v28 = vld [vmem:[%s11464_s5 + $0x68] sm:$0xff] }
 0x2a4   :  { %v817_v29 = vmul.f32 %v12035_v34, %v12034_v30  ;;  %v12113_v34 = vld [vmem:[#allocation8_spill] sm:$0xff] }
 0x2a5   :  { %2268 = vmatpush.msrb.mxu1 %v7677_v18  ;;  %2054 = vmatmul.f32.gmra.mxu3 %v7803_v2  ;;  %v1605_v18 = vsel %vm1585_vm3, %v1479_v4, 0  ;;  %v1608_v4 = vsel %vm1585_vm3, %v1480_v21, 0 }
 0x2a6   :  { %v7996_v10 = vand.u32 4294901760, %v1605_v18  ;;  %v865_v26 = vadd.f32 %v849_v25, %v817_v29  ;;  %v8017_v29 = vand.u32 4294901760, %v1608_v4 }
 0x2a7   :  { %1687 = vmatmul.f32.gmra.mxu0 %v7956_v51  ;;  %2270 = vmatpush.msrb.mxu1 %v7686_v42  ;;  %v7991_v42 = vand.u32 4294901760, %v1693_v27  ;;  %v8012_v27 = vand.u32 4294901760, %v1701_v6 }
 0x2a8   :  { %1852 = vmatmul.f32.gmra.mxu1 %v7792_v5  ;;  %12044 = vst [vmem:[#allocation49_spill] sm:$0xff] %v7996_v10  ;;  %v913_v48 = vadd.f32 %v897_v53, %v865_v26  ;;  %v8006_v39 = vsub.f32 %v1605_v18, %v7996_v10  ;;  %v1481_v18 = vld [vmem:[%s11464_s5 + $0x40] sm:$0xff]  ;;  %v8027_v53 = vsub.f32 %v1608_v4, %v8017_v29 }
 0x2a9   :  { %619 = vrot.lane.b32.xlu0 %v12036_v32, %s6388_s27  ;;  %12042 = vst [vmem:[#allocation84_spill] sm:$0xff] %v7991_v42  ;;  %v1611_v45 = vsel %vm1585_vm3, %v1481_v18, 0  ;;  %v12114_v5 = vld [vmem:[#allocation48_spill] sm:$0xff] }
 0x2aa   :  { %611 = vrot.lane.b32.xlu2 %v12037_v8, %s6388_s27  ;;  %12045 = vst [vmem:[#allocation87_spill] sm:$0xff] %v8006_v39  ;;  %v8015_v30 = vand.u32 4294901760, %v8006_v39  ;;  %v8035_v26 = vand.u32 4294901760, %v8027_v53  ;;  %v8037_v21 = vand.u32 4294901760, %v1611_v45 }
 0x2ab   :  { %1952 = vmatmul.f32.gmra.mxu2 %v7824_v24  ;;  %12046 = vst [vmem:[#allocation61_spill] sm:$0xff] %v8012_v27  ;;  %v1485_v24 = vld [vmem:[%s11464_s5 + $0x60] sm:$0xff] }
 0x2ac   :  { %12047 = vst [vmem:[#allocation110_spill] sm:$0xff] %v8015_v30  ;;  %v1709_v63 = vsub.f32 %v8006_v39, %v8015_v30  ;;  %v1717_v6 = vsub.f32 %v8027_v53, %v8035_v26  ;;  %v8047_v4 = vsub.f32 %v1611_v45, %v8037_v21 }
 0x2ad   :  { %2060 = vmatmul.f32.gmra.mxu3 %v7865_v40  ;;  %12048 = vst [vmem:[#allocation111_spill] sm:$0xff] %v8017_v29 }
 0x2ae   :  { %12049 = vst [vmem:[#allocation112_spill] sm:$0xff] %v8027_v53  ;;  %v8032_v25 = vand.u32 4294901760, %v1709_v63  ;;  %v8052_v63 = vand.u32 4294901760, %v1717_v6 }
 0x2af   :  { %1695 = vmatmul.f32.gmra.mxu0 %v7991_v42  ;;  %12051 = vst [vmem:[#allocation114_spill] sm:$0xff] %v8035_v26 }
 0x2b0   :  { %1856 = vmatmul.f32.gmra.mxu1 %v7881_v54  ;;  %12050 = vst [vmem:[#allocation113_spill] sm:$0xff] %v8032_v25 }
 0x2b1   :  { %1251 = vrot.lane.b32.xlu0 %v913_v48, %s6389_s14  ;;  %12052 = vst [vmem:[#allocation115_spill] sm:$0xff] %v8037_v21  ;;  %v1482_v48 = vld [vmem:[%s11464_s5 + $0x48] sm:$0xff] }
 0x2b2   :  { %12053 = vst [vmem:[#allocation116_spill] sm:$0xff] %v8047_v4  ;;  %v1614_v18 = vsel %vm1585_vm3, %v1482_v48, 0 }
 0x2b3   :  { %1957 = vmatmul.f32.gmra.mxu2 %v7902_v13  ;;  %12054 = vst [vmem:[#allocation117_spill] sm:$0xff] %v8052_v63  ;;  %v1484_v13 = vld [vmem:[%s11464_s5 + $0x58] sm:$0xff] }
 0x2b5   :  { %2066 = vmatmul.f32.gmra.mxu3 %v7924_v38  ;;  %v8055_v38 = vand.u32 4294901760, %v8047_v4 }
 0x2b7   :  { %1703 = vmatmul.f32.gmra.mxu0 %v8012_v27  ;;  %12055 = vst [vmem:[#allocation118_spill] sm:$0xff] %v8055_v38  ;;  %v1725_v45 = vsub.f32 %v8047_v4, %v8055_v38 }
 0x2b8   :  { %1860 = vmatmul.f32.gmra.mxu1 %v7926_v23 }
 0x2bb   :  { %1962 = vmatmul.f32.gmra.mxu2 %v7945_v1  ;;  %v1483_v1 = vld [vmem:[%s11464_s5 + $0x50] sm:$0xff] }
 0x2bc   :  { %v1617_v6 = vsel %vm1585_vm3, %v1483_v1, 0 }
 0x2bd   :  { %2072 = vmatmul.f32.gmra.mxu3 %v7959_v11  ;;  %v8057_v11 = vand.u32 4294901760, %v1614_v18 }
 0x2bf   :  { %1711 = vmatmul.f32.gmra.mxu0 %v8032_v25  ;;  %12056 = vst [vmem:[#allocation119_spill] sm:$0xff] %v8057_v11  ;;  %v8067_v48 = vsub.f32 %v1614_v18, %v8057_v11 }
 0x2c0   :  { %1864 = vmatmul.f32.gmra.mxu1 %v7961_v3 }
 0x2c1   :  { %12057 = vst [vmem:[#allocation120_spill] sm:$0xff] %v8067_v48  ;;  %v8075_v40 = vand.u32 4294901760, %v8067_v48 }
 0x2c3   :  { %1967 = vmatmul.f32.gmra.mxu2 %v7975_v36  ;;  %v8072_v36 = vand.u32 4294901760, %v1725_v45  ;;  %12059 = vst [vmem:[#allocation122_spill] sm:$0xff] %v8075_v40  ;;  %v1733_v1 = vsub.f32 %v8067_v48, %v8075_v40  ;;  %v1620_v45 = vsel %vm1585_vm3, %v1484_v13, 0 }
 0x2c5   :  { %2078 = vmatmul.f32.gmra.mxu3 %v7994_v33  ;;  %12058 = vst [vmem:[#allocation121_spill] sm:$0xff] %v8072_v36  ;;  %v8077_v33 = vand.u32 4294901760, %v1617_v6 }
 0x2c7   :  { %1719 = vmatmul.f32.gmra.mxu0 %v8052_v63  ;;  %12060 = vst [vmem:[#allocation123_spill] sm:$0xff] %v8077_v33  ;;  %v8087_v18 = vsub.f32 %v1617_v6, %v8077_v33 }
 0x2c8   :  { %1868 = vmatmul.f32.gmra.mxu1 %v7996_v10  ;;  %v12093_v10 = vld [vmem:[#allocation37_spill] sm:$0xff] }
 0x2c9   :  { %12061 = vst [vmem:[#allocation124_spill] sm:$0xff] %v8087_v18  ;;  %v8095_v2 = vand.u32 4294901760, %v8087_v18 }
 0x2cb   :  { %1972 = vmatmul.f32.gmra.mxu2 %v8006_v39  ;;  %v8092_v39 = vand.u32 4294901760, %v1733_v1  ;;  %12063 = vst [vmem:[#allocation126_spill] sm:$0xff] %v8095_v2  ;;  %v1741_v13 = vsub.f32 %v8087_v18, %v8095_v2  ;;  %v1623_v1 = vsel %vm1585_vm3, %v1485_v24, 0 }
 0x2cd   :  { %2084 = vmatmul.f32.gmra.mxu3 %v8015_v30  ;;  %12062 = vst [vmem:[#allocation125_spill] sm:$0xff] %v8092_v39  ;;  %v8097_v30 = vand.u32 4294901760, %v1620_v45 }
 0x2cf   :  { %1727 = vmatmul.f32.gmra.mxu0 %v8072_v36  ;;  %12064 = vst [vmem:[#allocation127_spill] sm:$0xff] %v8097_v30  ;;  %v8107_v6 = vsub.f32 %v1620_v45, %v8097_v30 }
 0x2d0   :  { %1872 = vmatmul.f32.gmra.mxu1 %v8017_v29  ;;  %v12092_v29 = vld [vmem:[#allocation79_spill] sm:$0xff] }
 0x2d1   :  { %12065 = vst [vmem:[#allocation128_spill] sm:$0xff] %v8107_v6  ;;  %v8115_v57 = vand.u32 4294901760, %v8107_v6 }
 0x2d3   :  { %1977 = vmatmul.f32.gmra.mxu2 %v8027_v53  ;;  %v8112_v53 = vand.u32 4294901760, %v1741_v13  ;;  %12067 = vst [vmem:[#allocation130_spill] sm:$0xff] %v8115_v57  ;;  %v1749_v24 = vsub.f32 %v8107_v6, %v8115_v57  ;;  %v1626_v13 = vsel %vm1585_vm3, %v1486_v28, 0 }
 0x2d4   :  { %v8139_v55 = vand.u32 4294901760, %v1626_v13 }
 0x2d5   :  { %2090 = vmatmul.f32.gmra.mxu3 %v8035_v26  ;;  %12066 = vst [vmem:[#allocation129_spill] sm:$0xff] %v8112_v53  ;;  %v8117_v26 = vand.u32 4294901760, %v1623_v1  ;;  %v8134_v22 = vand.u32 4294901760, %v1749_v24 }
 0x2d6   :  { %12072 = vst [vmem:[#allocation135_spill] sm:$0xff] %v8139_v55 }
 0x2d7   :  { %1735 = vmatmul.f32.gmra.mxu0 %v8092_v39  ;;  %12068 = vst [vmem:[#allocation131_spill] sm:$0xff] %v8117_v26  ;;  %v8127_v45 = vsub.f32 %v1623_v1, %v8117_v26  ;;  %v1487_v1 = vld [vmem:[%s11464_s5 + $0x70] sm:$0xff] }
 0x2d8   :  { %1876 = vmatmul.f32.gmra.mxu1 %v8037_v21  ;;  %12070 = vst [vmem:[#allocation133_spill] sm:$0xff] %v8134_v22  ;;  %v1629_v24 = vsel %vm1585_vm3, %v1487_v1, 0 }
 0x2d9   :  { %12069 = vst [vmem:[#allocation132_spill] sm:$0xff] %v8127_v45 }
 0x2db   :  { %1982 = vmatmul.f32.gmra.mxu2 %v8047_v4  ;;  %v8132_v4 = vpop.permute.xlu1 %1257 }
 0x2dd   :  { %2096 = vmatmul.f32.gmra.mxu3 %v8055_v38  ;;  %v8137_v38 = vand.u32 4294901760, %v8127_v45 }
 0x2df   :  { %1743 = vmatmul.f32.gmra.mxu0 %v8112_v53  ;;  %12071 = vst [vmem:[#allocation134_spill] sm:$0xff] %v8137_v38  ;;  %v1757_v28 = vsub.f32 %v8127_v45, %v8137_v38  ;;  %v8154_v53 = vpop.permute.xlu2 %1249 }
 0x2e0   :  { %1880 = vmatmul.f32.gmra.mxu1 %v8057_v11  ;;  %12074 = vst [vmem:[#allocation137_spill] sm:$0xff] %v8154_v53  ;;  %v12082_v11 = vld [vmem:[#allocation62_spill] sm:$0xff] }
 0x2e1   :  { %v8158_v36 = vand.u32 4294901760, %v1757_v28  ;;  %v570_v25 = vand.u32 255, %v12082_v11  ;;  %v12088_v11 = vld [vmem:[#allocation82_spill] sm:$0xff] }
 0x2e3   :  { %1987 = vmatmul.f32.gmra.mxu2 %v8067_v48  ;;  %v8149_v48 = vsub.f32 %v1626_v13, %v8139_v55  ;;  %12076 = vst [vmem:[#allocation139_spill] sm:$0xff] %v8158_v36  ;;  %v1488_v13 = vld [vmem:[%s11464_s5 + $0x78] sm:$0xff]  ;;  %vm8195_vm4 = vcmp.lt.s32.totalorder %v570_v25, 240  ;;  %v12091_v25 = vld [vmem:[#allocation74_spill] sm:$0xff] }
 0x2e4   :  { %v1632_v28 = vsel %vm1585_vm3, %v1488_v13, 0  ;;  %v1208_v42 = vadd.f32 %v12092_v29, %v12091_v25  ;;  %v12099_v29 = vld [vmem:[#allocation100_spill] sm:$0xff] }
 0x2e5   :  { %2102 = vmatmul.f32.gmra.mxu3 %v8075_v40  ;;  %12073 = vst [vmem:[#allocation136_spill] sm:$0xff] %v8149_v48  ;;  %v8161_v40 = vand.u32 4294901760, %v8149_v48  ;;  %v8191_v27 = vand.u32 4294901760, %v1632_v28 }
 0x2e7   :  { %1751 = vmatmul.f32.gmra.mxu0 %v8134_v22  ;;  %12077 = vst [vmem:[#allocation140_spill] sm:$0xff] %v8161_v40  ;;  %v8163_v22 = vand.u32 4294901760, %v1629_v24  ;;  %v1765_v1 = vsub.f32 %v8149_v48, %v8161_v40 }
 0x2e8   :  { %1884 = vmatmul.f32.gmra.mxu1 %v8077_v33  ;;  %v12080_v33 = vld [vmem:[#allocation10_spill] sm:$0xff]  ;;  %12085 = vst [vmem:[#allocation144_spill] sm:$0xff] %v8191_v27 }
 0x2e9   :  { %v8156_v39 = vpop.permute.xlu1 %1372  ;;  %12078 = vst [vmem:[#allocation141_spill] sm:$0xff] %v8163_v22  ;;  %v8178_v63 = vadd.s32 384, %v12080_v33  ;;  %v8186_v21 = vand.u32 4294901760, %v1765_v1 }
 0x2ea   :  { %12075 = vst [vmem:[#allocation138_spill] sm:$0xff] %v8156_v39 }
 0x2eb   :  { %1992 = vmatmul.f32.gmra.mxu2 %v8087_v18  ;;  %v8173_v18 = vsub.f32 %v1629_v24, %v8163_v22  ;;  %12081 = vst [vmem:[#allocation10_spill] sm:$0xff] %v8178_v63  ;;  %v568_v13 = vand.u32 15, %v8178_v63  ;;  %v12090_v63 = vld [vmem:[#allocation77_spill] sm:$0xff] }
 0x2ec   :  { %12083 = vst [vmem:[#allocation62_spill] sm:$0xff] %v8186_v21 }
 0x2ed   :  { %2108 = vmatmul.f32.gmra.mxu3 %v8095_v2  ;;  %12079 = vst [vmem:[#allocation142_spill] sm:$0xff] %v8173_v18  ;;  %v8189_v24 = vand.u32 4294901760, %v8173_v18  ;;  %vm8216_vm5 = vcmp.lt.s32.totalorder %v568_v13, 15  ;;  %vm8224_vm6 = vcmp.gt.s32.totalorder %v568_v13, 0  ;;  %v12103_v13 = vld [vmem:[#allocation96_spill] sm:$0xff] }
 0x2ef   :  { %1759 = vmatmul.f32.gmra.mxu0 %v8158_v36  ;;  %12084 = vst [vmem:[#allocation143_spill] sm:$0xff] %v8189_v24  ;;  %v1773_v1 = vsub.f32 %v8173_v18, %v8189_v24 }
 0x2f0   :  { %1888 = vmatmul.f32.gmra.mxu1 %v8097_v30  ;;  %v8206_v30 = vsub.f32 %v1632_v28, %v8191_v27 }
 0x2f1   :  { %v8182_v2 = vpop.permute.xlu1 %1233  ;;  %v8231_v3 = vand.u32 4294901760, %v1773_v1 }
 0x2f2   :  { %12089 = vst [vmem:[#allocation82_spill] sm:$0xff] %v8206_v30  ;;  %v8234_v12 = vand.u32 4294901760, %v8206_v30 }
 0x2f3   :  { %1997 = vmatmul.f32.gmra.mxu2 %v8107_v6  ;;  %v1392_v6 = vsel %vm1384_vm0, %v12088_v11, %v8156_v39  ;;  %v1110_v11 = vmul.f32 %v12093_v10, %v12026_v17  ;;  %v12096_v39 = vld [vmem:[#allocation86_spill] sm:$0xff]  ;;  %v758_v10 = vsel %vm726_vm10, %v12099_v29, 0.0  ;;  %12100 = vst [vmem:[#allocation77_spill] sm:$0xff] %v8231_v3 }
 0x2f4   :  { %v8184_v36 = vpop.permute.xlu2 %1364  ;;  %v757_v28 = vsel %vm726_vm10, %v12096_v39, 0.0  ;;  %v1434_v51 = vsel %vm8195_vm4, %v1392_v6, 0.0  ;;  %12101 = vst [vmem:[#allocation74_spill] sm:$0xff] %v8234_v12  ;;  %v12102_v39 = vld [vmem:[#allocation83_spill] sm:$0xff] }
 0x2f5   :  { %2114 = vmatmul.f32.gmra.mxu3 %v8115_v57  ;;  %v1270_v57 = vsel %vm1263_vm14, %v12090_v63, %v8154_v53  ;;  %v8246_v29 = vsel %vm8216_vm5, %v757_v28, 0.0 }
 0x2f6   :  { %v1329_v25 = vadd.f32 %v1270_v57, %v1208_v42  ;;  %v12105_v57 = vld [vmem:[#allocation46_spill] sm:$0xff]  ;;  %v12106_v42 = vld [vmem:[#allocation41_spill] sm:$0xff] }
 0x2f7   :  { %1767 = vmatmul.f32.gmra.mxu0 %v8186_v21  ;;  %v1106_v54 = vmul.f32 %v12106_v42, %v12105_v57  ;;  %v1102_v21 = vmul.f32 %v7071_v41, %v12036_v32 }
 0x2f8   :  { %1892 = vmatmul.f32.gmra.mxu1 %v8117_v26  ;;  %v1450_v1 = vadd.f32 %v1434_v51, %v1329_v25  ;;  %v12108_v51 = vld [vmem:[#allocation9_spill] sm:$0xff]  ;;  %v755_v25 = vsel %vm726_vm10, %v7776_v9, 0.0  ;;  %v1273_v9 = vsel %vm1263_vm14, %v12114_v5, %v8132_v4 }
 0x2f9   :  { %v628_v53 = vpop.permute.xlu1 %627 }
 0x2fa   :  { %v646_v6 = vsel %vm637_vm8, %v12102_v39, %v628_v53 }
 0x2fb   :  { %2002 = vmatmul.f32.gmra.mxu2 %v8127_v45  ;;  %v842_v45 = vmul.f32 %v12104_v46, %v12037_v8  ;;  %v8250_v14 = vsel %vm8224_vm6, %v646_v6, 0.0  ;;  %v12107_v46 = vld [vmem:[#allocation58_spill] sm:$0xff] }
 0x2fc   :  { %v636_v26 = vpop.permute.xlu2 %635  ;;  %v982_v39 = vmul.f32 %v12107_v46, %v12026_v17  ;;  %v1074_v28 = vmul.f32 %v12108_v51, %v8250_v14  ;;  %v12111_v46 = vld [vmem:[#allocation53_spill] sm:$0xff]  ;;  %v12112_v51 = vld [vmem:[#allocation71_spill] sm:$0xff] }
 0x2fd   :  { %v649_v23 = vsel %vm637_vm8, %v12103_v13, %v636_v26  ;;  %v1098_v26 = vmul.f32 %v7107_v47, %v12037_v8  ;;  %v8262_v13 = vsel %vm8216_vm5, %v758_v10, 0.0  ;;  %2120 = vmatmul.f32.gmra.mxu3 %v8137_v38  ;;  %v12110_v47 = vld [vmem:[#allocation52_spill] sm:$0xff]  ;;  %v1781_v10 = vsub.f32 %v8206_v30, %v8234_v12 }
 0x2fe   :  { %v8254_v53 = vsel %vm8224_vm6, %v649_v23, 0.0  ;;  %v12109_v23 = vld [vmem:[#allocation54_spill] sm:$0xff]  ;;  %v1154_v58 = vmul.f32 %v12111_v46, %v8246_v29  ;;  %v1212_v38 = vadd.f32 %v12113_v34, %v12112_v51  ;;  %v978_v46 = vmul.f32 %v12115_v16, %v12105_v57 }
 0x2ff   :  { %v950_v6 = vmul.f32 %v12109_v23, %v8254_v53  ;;  %v1078_v42 = vmul.f32 %v12110_v47, %v8254_v53  ;;  %1775 = vmatmul.f32.gmra.mxu0 %v8231_v3  ;;  %v1122_v23 = vadd.f32 %v1106_v54, %v1074_v28  ;;  %v1158_v47 = vmul.f32 %v7011_v52, %v8262_v13 }
 0x300   :  { %1896 = vmatmul.f32.gmra.mxu1 %v8139_v55  ;;  %v8286_v3 = vand.u32 4294901760, %v1450_v1  ;;  %v970_v51 = vmul.f32 %v7356_v60, %v12037_v8  ;;  %v770_v34 = vsel %vm8216_vm5, %v755_v25, 0.0  ;;  %v1333_v54 = vadd.f32 %v1273_v9, %v1212_v38  ;;  %v12118_v60 = vld [vmem:[#allocation56_spill] sm:$0xff]  ;;  %v12119_v38 = vld [vmem:[#allocation75_spill] sm:$0xff] }
 0x301   :  { %v998_v35 = vadd.f32 %v982_v39, %v950_v6  ;;  %v1126_v56 = vadd.f32 %v1110_v11, %v1078_v42  ;;  %v1170_v55 = vadd.f32 %v1154_v58, %v1122_v23  ;;  %v8297_v52 = vpop.permute.xlu1 %1259  ;;  %v12116_v11 = vld [vmem:[#allocation66_spill] sm:$0xff]  ;;  %v8302_v6 = vand.u32 4294901760, %v1781_v10  ;;  %v12120_v42 = vld [vmem:[#allocation76_spill] sm:$0xff] }
 0x302   :  { %v8294_v5 = vpop.permute.xlu0 %1380  ;;  %v946_v8 = vmul.f32 %v12118_v60, %v8250_v14  ;;  %v1204_v9 = vadd.f32 %v12120_v42, %v12119_v38  ;;  %v890_v23 = vmul.f32 %v7090_v61, %v770_v34  ;;  %v1146_v61 = vmul.f32 %v12018_v31, %v770_v34  ;;  %v12122_v60 = vld [vmem:[#allocation80_spill] sm:$0xff] }
 0x303   :  { %2007 = vmatmul.f32.gmra.mxu2 %v8149_v48  ;;  %v1395_v39 = vsel %vm1384_vm0, %v12116_v11, %v8294_v5  ;;  %v1174_v16 = vadd.f32 %v1158_v47, %v1126_v56  ;;  %12117 = vst [vmem:[#allocation37_spill] sm:$0xff] %v8302_v6  ;;  %1374 = vrot.lane.b32.xlu0 %v1170_v55, %s6390_s4 }
 0x304   :  { %v612_v28 = vpop.permute.xlu2 %611  ;;  %v1438_v58 = vsel %vm8195_vm4, %v1395_v39, 0.0  ;;  %v8318_v47 = vsub.f32 %v1450_v1, %v8286_v3  ;;  %v12121_v39 = vld [vmem:[#allocation63_spill] sm:$0xff] }
 0x305   :  { %v640_v25 = vsel %vm637_vm8, %v7850_v59, %v612_v28  ;;  %v1454_v10 = vadd.f32 %v1438_v58, %v1333_v54  ;;  %1382 = vrot.lane.b32.xlu2 %v1174_v16, %s6390_s4  ;;  %v1018_v59 = vmul.f32 %v7496_v62, %v770_v34  ;;  %2126 = vmatmul.f32.gmra.mxu3 %v8161_v40  ;;  %v571_v16 = vand.u32 255, %v12122_v60  ;;  %v12143_v40 = vld [vmem:[#allocation57_spill] sm:$0xff] }
 0x306   :  { %v681_v56 = vsel %vm8224_vm6, %v640_v25, 0.0  ;;  %v1030_v54 = vmul.f32 %v12121_v39, %v8262_v13  ;;  %v994_v62 = vadd.f32 %v978_v46, %v946_v8  ;;  %v11714_v34 = vand.u32 4294901760, %v8318_v47 }
 0x307   :  { %v810_v28 = vmul.f32 %v12007_v19, %v681_v56  ;;  %v938_v55 = vmul.f32 %v7289_v49, %v681_v56  ;;  %v1066_v11 = vmul.f32 %v7171_v20, %v681_v56  ;;  %v8329_v25 = vand.u32 4294901760, %v1454_v10  ;;  %1783 = vmatmul.f32.gmra.mxu0 %v8302_v6  ;;  %v12123_v20 = vld [vmem:[#allocation60_spill] sm:$0xff] }
 0x308   :  { %1900 = vmatmul.f32.gmra.mxu1 %v8163_v22  ;;  %v1026_v58 = vmul.f32 %v12123_v20, %v8246_v29  ;;  %v8341_v38 = vadd.f32 %v1030_v54, %v998_v35  ;;  %vm8360_vm7 = vcmp.ge.s32.totalorder %v571_v16, 16 }
 0x309   :  { %v858_v1 = vadd.f32 %v842_v45, %v810_v28  ;;  %v986_v19 = vadd.f32 %v970_v51, %v938_v55  ;;  %v1114_v49 = vadd.f32 %v1098_v26, %v1066_v11  ;;  %v8336_v31 = vsub.f32 %v1454_v10, %v8329_v25  ;;  %2345 = vmatpush.msrb.mxu2 %v8329_v25  ;;  %v12124_v45 = vld [vmem:[#allocation90_spill] sm:$0xff]  ;;  %v12126_v55 = vld [vmem:[#allocation85_spill] sm:$0xff] }
 0x30a   :  { %2732 = vmatpush.msra.mxu1 %v8329_v25  ;;  %v1389_v46 = vsel %vm1384_vm0, %v12124_v45, %v8184_v36  ;;  %v12125_v10 = vld [vmem:[#allocation38_spill] sm:$0xff]  ;;  %v1466_v45 = vld [vmem:[%s11460_s1 + $0x48] sm:$0xff] }
 0x30b   :  { %v1242_v51 = vpop.permute.xlu0 %1241  ;;  %v1162_v26 = vadd.f32 %v1146_v61, %v1114_v49  ;;  %2012 = vmatmul.f32.gmra.mxu2 %v8173_v18  ;;  %v8347_v8 = vadd.f32 %v890_v23, %v858_v1  ;;  %v8349_v56 = vadd.f32 %v1018_v59, %v986_v19  ;;  %v822_v28 = vmul.f32 %v12125_v10, %v8254_v53  ;;  %v12127_v61 = vld [vmem:[#allocation40_spill] sm:$0xff]  ;;  %v8370_v60 = vpop.f32.mrf.mxu0 }
 0x30c   :  { %v1267_v11 = vsel %vm1263_vm14, %v12126_v55, %v1242_v51  ;;  %2347 = vmatpush.msrb.mxu2 %v8286_v3  ;;  %2620 = vmatpush.msra.mxu0 %v8336_v31  ;;  %v11715_v35 = vand.u32 4294901760, %v8336_v31  ;;  %v854_v39 = vmul.f32 %v12127_v61, %v12026_v17  ;;  %v8364_v59 = vpop.permute.xlu1 %1243  ;;  %v1205_v53 = vadd.f32 %v12120_v42, %v7895_v44  ;;  %v12131_v55 = vld [vmem:[#allocation39_spill] sm:$0xff]  ;;  %v12132_v61 = vld [vmem:[#allocation65_spill] sm:$0xff] }
 0x30d   :  { %v1325_v54 = vadd.f32 %v1267_v11, %v1204_v9  ;;  %1358 = vrot.lane.b32.xlu0 %v1162_v26, %s6390_s4  ;;  %2734 = vmatpush.msra.mxu1 %v8286_v3  ;;  %v8372_v1 = vadd.f32 %v1026_v58, %v994_v62  ;;  %v1430_v17 = vsel %vm8195_vm4, %v1389_v46, 0.0  ;;  %v1268_v16 = vsel %vm1263_vm14, %v1242_v51, %v8364_v59  ;;  %v1470_v62 = vld [vmem:[%s11460_s1 + $0x68] sm:$0xff]  ;;  %v12130_v46 = vld [vmem:[#allocation78_spill] sm:$0xff] }
 0x30e   :  { %1235 = vrot.lane.b32.xlu2 %v7915_v50, %s6389_s14  ;;  %2623 = vmatpush.msra.mxu0 %v8318_v47  ;;  %v2500_v44 = vsub.f32 %v8336_v31, %v11715_v35  ;;  %v2506_v9 = vsub.f32 %v8318_v47, %v11714_v34  ;;  %v1310_v19 = vsel %vm8360_vm7, %v1268_v16, 0.0  ;;  %v870_v58 = vadd.f32 %v854_v39, %v822_v28  ;;  %v12136_v34 = vld [vmem:[#allocation69_spill] sm:$0xff] }
 0x30f   :  { %v1446_v49 = vadd.f32 %v1430_v17, %v1325_v54  ;;  %2132 = vmatmul.f32.gmra.mxu3 %v8189_v24  ;;  %v8393_v50 = vadd.f32 %v1310_v19, %v1205_v53  ;;  %2183 = vmatmul.f32.vlgmr.msrb.gmra.mxu0 %v7642_v0  ;;  %v1264_v51 = vsel %vm1263_vm14, %v12130_v46, %v8182_v2  ;;  %v8405_v10 = vand.u32 4294901760, %v1470_v62  ;;  %v12133_v53 = vld [vmem:[#allocation81_spill] sm:$0xff]  ;;  %v12134_v19 = vld [vmem:[#allocation95_spill] sm:$0xff] }
 0x310   :  { %v2501_v20 = vand.u32 4294901760, %v2500_v44  ;;  %1904 = vmatmul.f32.gmra.mxu1 %v8191_v27  ;;  %v902_v11 = vmul.f32 %v12131_v55, %v8262_v13  ;;  %v1200_v28 = vadd.f32 %v12133_v53, %v12132_v61  ;;  %v2507_v39 = vand.u32 4294901760, %v2506_v9  ;;  %v1462_v54 = vld [vmem:[%s11460_s1 + $0x28] sm:$0xff]  ;;  %v12142_v24 = vld [vmem:[#allocation59_spill] sm:$0xff] }
 0x311   :  { %v8402_v26 = vand.u32 4294901760, %v1446_v49  ;;  %v8421_v44 = vand.u32 4294901760, %v1466_v45  ;;  %v1458_v46 = vld [vmem:[%s11460_s1 + $0x8] sm:$0xff]  ;;  %v8436_v61 = vand.u32 4294901760, %v1462_v54  ;;  %v974_v35 = vmul.f32 %v12136_v34, %v12036_v32 }
 0x312   :  { %2502 = vmatpush.msrb.mxu3 %v2501_v20  ;;  %v1321_v13 = vadd.f32 %v1264_v51, %v1200_v28  ;;  %v918_v20 = vadd.f32 %v902_v11, %v870_v58  ;;  %v8439_v58 = vsub.f32 %v1470_v62, %v8405_v10  ;;  %v756_v11 = vsel %vm726_vm10, %v7852_v43, 0.0 }
 0x313   :  { %2349 = vmatpush.msrb.mxu2 %v8402_v26  ;;  %2736 = vmatpush.msra.mxu1 %v8402_v26  ;;  %v8416_v17 = vpop.permute.xlu0 %1356  ;;  %v8419_v16 = vsub.f32 %v1446_v49, %v8402_v26  ;;  %v774_v43 = vsel %vm8216_vm5, %v756_v11, 0.0  ;;  %v846_v11 = vmul.f32 %v6987_v7, %v12036_v32  ;;  %v12138_v7 = vld [vmem:[#allocation73_spill] sm:$0xff] }
 0x314   :  { %v1386_v9 = vsel %vm1384_vm0, %v12134_v19, %v8416_v17  ;;  %2508 = vmatpush.msrb.mxu3 %v2507_v39  ;;  %2017 = vmatmul.f32.gmra.mxu2 %v8206_v30  ;;  %v8433_v49 = vpop.f32.mrf.mxu0  ;;  %v8449_v19 = vand.u32 4294901760, %v1458_v46  ;;  %v12140_v32 = vand.u32 4294901760, %v8439_v58 }
 0x315   :  { %v1426_v55 = vsel %vm8195_vm4, %v1386_v9, 0.0  ;;  %2626 = vmatpush.msra.mxu0 %v8419_v16  ;;  %v11713_v51 = vand.u32 4294901760, %v8419_v16  ;;  %v8444_v39 = vpop.f32.mrf.mxu1  ;;  %v8453_v9 = vsub.f32 %v1466_v45, %v8421_v44 }
 0x316   :  { %v1442_v28 = vadd.f32 %v1426_v55, %v1321_v13  ;;  %1261 = vrot.lane.b32.xlu2 %v918_v20, %s6389_s14  ;;  %12135 = vst [vmem:[#allocation86_spill] sm:$0xff] %v8444_v39  ;;  %v8463_v55 = vsub.f32 %v1462_v54, %v8436_v61  ;;  %v8476_v54 = vsub.f32 %v1458_v46, %v8449_v19 }
 0x317   :  { %v2512_v33 = vsub.f32 %v8419_v16, %v11713_v51  ;;  %2138 = vmatmul.f32.gmra.mxu3 %v8234_v12  ;;  %2187 = vmatmul.f32.gmra.mxu0 %v12025_v37  ;;  %v894_v20 = vmul.f32 %v7102_v15, %v774_v43  ;;  %v1022_v12 = vmul.f32 %v12138_v7, %v774_v43  ;;  %v12145_v7 = vld [vmem:[#allocation55_spill] sm:$0xff]  ;;  %v12146_v48 = vand.u32 4294901760, %v8453_v9 }
 0x318   :  { %v8455_v62 = vand.u32 4294901760, %v1442_v28  ;;  %2272 = vmatmul.f32.vlgmr.msrb.gmra.mxu1 %v7642_v0  ;;  %v2524_v15 = vsub.f32 %v8439_v58, %v12140_v32  ;;  %v1150_v32 = vmul.f32 %v12145_v7, %v774_v43  ;;  %v12148_v43 = vld [vmem:[#allocation43_spill] sm:$0xff] }
 0x319   :  { %v2513_v13 = vand.u32 4294901760, %v2512_v33 }
 0x31a   :  { %2351 = vmatpush.msrb.mxu2 %v8455_v62  ;;  %2738 = vmatpush.msra.mxu1 %v8455_v62  ;;  %v8468_v45 = vsub.f32 %v1442_v28, %v8455_v62  ;;  %v12137_v28 = vld [vmem:[#allocation101_spill] sm:$0xff] }
 0x31b   :  { %2514 = vmatpush.msrb.mxu3 %v2513_v13  ;;  %v620_v51 = vpop.permute.xlu0 %619 }
 0x31c   :  { %v643_v13 = vsel %vm637_vm8, %v12137_v28, %v620_v51  ;;  %2353 = vmatpush.msrb.mxu2 %v8405_v10  ;;  %2629 = vmatpush.msra.mxu0 %v8468_v45  ;;  %v2517_v41 = vand.u32 4294901760, %v8468_v45  ;;  %v8489_v33 = vpop.f32.mrf.mxu0  ;;  %v12141_v51 = vld [vmem:[#allocation44_spill] sm:$0xff] }
 0x31d   :  { %v685_v46 = vsel %vm8224_vm6, %v643_v13, 0.0  ;;  %12139 = vst [vmem:[#allocation100_spill] sm:$0xff] %v8489_v33  ;;  %2740 = vmatpush.msra.mxu1 %v8405_v10  ;;  %v8501_v63 = vpop.f32.mrf.mxu1 }
 0x31e   :  { %v814_v28 = vmul.f32 %v12141_v51, %v685_v46  ;;  %v942_v30 = vmul.f32 %v12142_v24, %v685_v46  ;;  %v1070_v18 = vmul.f32 %v12143_v40, %v685_v46  ;;  %1237 = vrot.lane.b32.xlu2 %v8347_v8, %s6389_s14  ;;  %2355 = vmatpush.msrb.mxu2 %v8421_v44  ;;  %v8504_v13 = vpop.f32.mrf.mxu2  ;;  %v12147_v8 = vld [vmem:[#allocation70_spill] sm:$0xff]  ;;  %v12149_v24 = vand.u32 4294901760, %v8463_v55 }
 0x31f   :  { %12144 = vst [vmem:[#allocation83_spill] sm:$0xff] %v8504_v13  ;;  %v2518_v34 = vsub.f32 %v8468_v45, %v2517_v41  ;;  %v2530_v51 = vsub.f32 %v8453_v9, %v12146_v48  ;;  %2632 = vmatpush.msra.mxu0 %v8439_v58  ;;  %2742 = vmatpush.msra.mxu1 %v8421_v44  ;;  %v2525_v48 = vand.u32 4294901760, %v2524_v15 }
 0x320   :  { %v990_v40 = vadd.f32 %v974_v35, %v942_v30  ;;  %2357 = vmatpush.msrb.mxu2 %v8436_v61  ;;  %2191 = vmatmul.f32.gmra.mxu0 %v12147_v8  ;;  %v1118_v46 = vadd.f32 %v1102_v21, %v1070_v18  ;;  %v862_v33 = vadd.f32 %v846_v11, %v814_v28  ;;  %v8524_v39 = vpop.f32.mrf.mxu3  ;;  %v12151_v11 = vand.u32 4294901760, %v8476_v54 }
 0x321   :  { %v818_v45 = vmul.f32 %v12148_v43, %v8250_v14  ;;  %2276 = vmatmul.f32.gmra.mxu1 %v12025_v37  ;;  %v2519_v7 = vand.u32 4294901760, %v2518_v34  ;;  %v2536_v13 = vsub.f32 %v8463_v55, %v12149_v24  ;;  %2635 = vmatpush.msra.mxu0 %v8453_v9  ;;  %v12150_v14 = vld [vmem:[#allocation99_spill] sm:$0xff]  ;;  %v2531_v21 = vand.u32 4294901760, %v2530_v51 }
 0x322   :  { %2359 = vmatpush.msrb.mxu2 %v8449_v19  ;;  %v1166_v30 = vadd.f32 %v1150_v32, %v1118_v46  ;;  %v910_v35 = vadd.f32 %v894_v20, %v862_v33  ;;  %2744 = vmatpush.msra.mxu1 %v8436_v61  ;;  %v8527_v18 = vadd.f32 %v1022_v12, %v990_v40  ;;  %v12152_v34 = vand.u32 4294901760, %v8336_v31  ;;  %v12153_v20 = vld [vmem:[#allocation36_spill] sm:$0xff]  ;;  %v12154_v32 = vld [vmem:[#allocation21_spill] sm:$0xff] }
 0x323   :  { %2520 = vmatpush.msrb.mxu3 %v2519_v7  ;;  %2365 = vmatmul.f32.vlgmr.msrb.gmra.mxu2 %v12150_v14  ;;  %v2542_v15 = vsub.f32 %v8476_v54, %v12151_v11  ;;  %v850_v33 = vmul.f32 %v12153_v20, %v12105_v57  ;;  %v2537_v28 = vand.u32 4294901760, %v2536_v13  ;;  %v12155_v51 = vand.u32 4294901760, %v8318_v47  ;;  %v12157_v57 = vld [vmem:[#allocation42_spill] sm:$0xff]  ;;  %v12159_v13 = vld [vmem:[#allocation51_spill] sm:$0xff] }
 0x324   :  { %2855 = vmatpush.msra.mxu2 %v12152_v34  ;;  %1366 = vrot.lane.b32.xlu1 %v1166_v30, %s6390_s4  ;;  %v8539_v12 = vpop.f32.mrf.mxu0  ;;  %v898_v43 = vmul.f32 %v12157_v57, %v8246_v29  ;;  %v12158_v7 = vand.u32 4294901760, %v8419_v16  ;;  %v12161_v29 = vld [vmem:[#allocation24_spill] sm:$0xff]  ;;  %v12162_v30 = vld [vmem:[#allocation14_spill] sm:$0xff]  ;;  %v12168_v34 = vand.u32 4294901760, %v8453_v9 }
 0x325   :  { %2526 = vmatpush.msrb.mxu3 %v2525_v48  ;;  %1245 = vrot.lane.b32.xlu0 %v910_v35, %s6389_s14  ;;  %v8544_v24 = vpop.f32.mrf.mxu1  ;;  %v866_v31 = vadd.f32 %v850_v33, %v818_v45  ;;  %v2543_v46 = vand.u32 4294901760, %v2542_v15  ;;  %v12160_v48 = vld [vmem:[#allocation105_spill] sm:$0xff]  ;;  %v12166_v15 = vand.u32 4294901760, %v8439_v58  ;;  %v12170_v33 = vand.u32 4294901760, %v8463_v55  ;;  %v12171_v58 = vld [vmem:[#allocation68_spill] sm:$0xff] }
 0x326   :  { %296 = vperm.xlu2 %6012, %v12154_v32   ;;  %2859 = vmatpush.msra.mxu2 %v12155_v51  ;;  %12156 = vst [vmem:[#allocation96_spill] sm:$0xff] %v8544_v24  ;;  %v8546_v40 = vpop.f32.mrf.mxu2  ;;  %v12174_v9 = vld [vmem:[#allocation28_spill] sm:$0xff]  ;;  %v12177_v51 = vld [vmem:[#allocation34_spill] sm:$0xff] }
 0x327   :  { %2532 = vmatpush.msrb.mxu3 %v2531_v21  ;;  %2638 = vmatpush.msra.mxu0 %v8463_v55  ;;  %v914_v47 = vadd.f32 %v898_v43, %v866_v31  ;;  %v12183_v43 = vld [vmem:[#allocation20_spill] sm:$0xff] }
 0x328   :  { %2863 = vmatpush.msra.mxu2 %v12158_v7  ;;  %2195 = vmatmul.f32.gmra.mxu0 %v12159_v13  ;;  %v8555_v45 = vpop.f32.mrf.mxu3  ;;  %v12185_v7 = vld [vmem:[#allocation22_spill] sm:$0xff] }
 0x329   :  { %2538 = vmatpush.msrb.mxu3 %v2537_v28  ;;  %2280 = vmatmul.f32.gmra.mxu1 %v12147_v8  ;;  %v12173_v28 = vld [vmem:[#allocation16_spill] sm:$0xff] }
 0x32a   :  { %2867 = vmatpush.msra.mxu2 %v2517_v41  ;;  %2641 = vmatpush.msra.mxu0 %v8476_v54  ;;  %v12163_v41 = vld [vmem:[#allocation25_spill] sm:$0xff]  ;;  %v12175_v32 = vsub.f32 %v12173_v28, %v12174_v9 }
 0x32b   :  { %2544 = vmatpush.msrb.mxu3 %v2543_v46  ;;  %2373 = vmatmul.f32.gmra.mxu2 %v12160_v48  ;;  %v12164_v35 = vsub.f32 %v12162_v30, %v12163_v41  ;;  %v12180_v46 = vld [vmem:[#allocation45_spill] sm:$0xff] }
 0x32c   :  { %2546 = vmatmul.f32.vlgmr.msrb.gmra.mxu3 %v7642_v0  ;;  %1253 = vrot.lane.b32.xlu1 %v914_v47, %s6389_s14  ;;  %v8563_v16 = vpop.f32.mrf.mxu0  ;;  %v12190_v41 = vld [vmem:[#allocation49_spill] sm:$0xff]  ;;  %s5867_s14 = sshll.u32 %s6391_s7, 4  ;;  %s5868_s14 = int_to_ptr.vmem [resolvable:$true] %s5867_s14 }
 0x32d   :  { %2958 = vmatpush.msra.mxu3 %v8329_v25  ;;  %291 = vperm.xlu0 %6010, %v12161_v29   ;;  %v8568_v21 = vpop.f32.mrf.mxu1  ;;  %v12167_v25 = vld [vmem:[#allocation109_spill] sm:$0xff]  ;;  %v12188_v29 = vld [vmem:[#allocation26_spill] sm:$0xff] }
 0x32e   :  { %311 = vperm.xlu2 %6012, %v12164_v35   ;;  %v8570_v11 = vpop.f32.mrf.mxu2  ;;  %2871 = vmatpush.msra.mxu2 %v12166_v15  ;;  %v12191_v35 = vld [vmem:[#allocation84_spill] sm:$0xff]  ;;  %v12192_v15 = vld [vmem:[#allocation13_spill] sm:$0xff] }
 0x32f   :  { %12165 = vst [vmem:[#allocation47_spill] sm:$0xff] %v8570_v11  ;;  %2960 = vmatpush.msra.mxu3 %v8286_v3  ;;  %2746 = vmatpush.msra.mxu1 %v8449_v19  ;;  %v12172_v3 = vld [vmem:[#allocation27_spill] sm:$0xff]  ;;  %v12196_v9 = vld [vmem:[#allocation17_spill] sm:$0xff] }
 0x330   :  { %2199 = vmatmul.f32.gmra.mxu0 %v12167_v25  ;;  %2875 = vmatpush.msra.mxu2 %v12168_v34  ;;  %v8581_v20 = vpop.f32.mrf.mxu3  ;;  %v12193_v34 = vld [vmem:[#allocation23_spill] sm:$0xff] }
 0x331   :  { %2962 = vmatpush.msra.mxu3 %v8402_v26  ;;  %2284 = vmatmul.f32.gmra.mxu1 %v12159_v13  ;;  %12169 = vst [vmem:[#allocation46_spill] sm:$0xff] %v8581_v20  ;;  %v12228_v11 = vld [vmem:[#allocation123_spill] sm:$0xff] }
 0x332   :  { %2879 = vmatpush.msra.mxu2 %v12170_v33  ;;  %v12194_v33 = vsub.f32 %v12192_v15, %v12193_v34  ;;  %v12204_v15 = vld [vmem:[#allocation32_spill] sm:$0xff]  ;;  %v12205_v34 = vld [vmem:[#allocation18_spill] sm:$0xff] }
 0x333   :  { %2964 = vmatpush.msra.mxu3 %v8455_v62  ;;  %2381 = vmatmul.f32.gmra.mxu2 %v12171_v58  ;;  %v12179_v62 = vand.u32 4294901760, %v8476_v54  ;;  %v12184_v54 = vld [vmem:[#allocation12_spill] sm:$0xff] }
 0x334   :  { %2550 = vmatmul.f32.gmra.mxu3 %v12025_v37  ;;  %286 = vperm.xlu1 %6011, %v12172_v3   ;;  %v8592_v26 = vpop.f32.mrf.mxu0  ;;  %v12186_v47 = vsub.f32 %v12184_v54, %v12185_v7  ;;  %v12195_v3 = vld [vmem:[#allocation30_spill] sm:$0xff]  ;;  %v12201_v54 = vld [vmem:[#allocation111_spill] sm:$0xff] }
 0x335   :  { %306 = vperm.xlu0 %6010, %v12175_v32   ;;  %12176 = vst [vmem:[#allocation41_spill] sm:$0xff] %v8592_v26  ;;  %2966 = vmatpush.msra.mxu3 %v8405_v10  ;;  %v8596_v55 = vpop.f32.mrf.mxu1  ;;  %v12182_v10 = vld [vmem:[#allocation93_spill] sm:$0xff]  ;;  %v12197_v32 = vld [vmem:[#allocation31_spill] sm:$0xff] }
 0x336   :  { %490 = vperm.xlu2 %6012, %v12177_v51   ;;  %v8598_v31 = vpop.f32.mrf.mxu2  ;;  %2883 = vmatpush.msra.mxu2 %v12179_v62  ;;  %v12198_v51 = vsub.f32 %v12196_v9, %v12197_v32 }
 0x337   :  { %12178 = vst [vmem:[#allocation58_spill] sm:$0xff] %v8598_v31  ;;  %2968 = vmatpush.msra.mxu3 %v8421_v44  ;;  %v12276_v31 = vld [vmem:[#allocation94_spill] sm:$0xff] }
 0x338   :  { %2203 = vmatmul.f32.gmra.mxu0 %v12180_v46  ;;  %v8606_v57 = vpop.f32.mrf.mxu3 }
 0x339   :  { %2288 = vmatmul.f32.gmra.mxu1 %v12167_v25  ;;  %2970 = vmatpush.msra.mxu3 %v8436_v61  ;;  %12181 = vst [vmem:[#allocation9_spill] sm:$0xff] %v8606_v57 }
 0x33b   :  { %2389 = vmatmul.f32.gmra.mxu2 %v12182_v10  ;;  %2972 = vmatpush.msra.mxu3 %v8449_v19  ;;  %v12212_v10 = vld [vmem:[#allocation113_spill] sm:$0xff] }
 0x33c   :  { %2554 = vmatmul.f32.gmra.mxu3 %v12147_v8  ;;  %301 = vperm.xlu1 %6011, %v12183_v43   ;;  %v8615_v44 = vpop.f32.mrf.mxu0 }
 0x33d   :  { %321 = vperm.xlu0 %6010, %v12186_v47   ;;  %12187 = vst [vmem:[#allocation54_spill] sm:$0xff] %v8615_v44  ;;  %v8618_v30 = vpop.f32.mrf.mxu1  ;;  %v12203_v47 = vld [vmem:[#allocation61_spill] sm:$0xff] }
 0x33e   :  { %505 = vperm.xlu2 %6012, %v12188_v29   ;;  %12189 = vst [vmem:[#allocation52_spill] sm:$0xff] %v8618_v30  ;;  %v8620_v61 = vpop.f32.mrf.mxu2  ;;  %v1490_v29 = vld [vmem:[%s11465_s6 + $0x8] sm:$0xff]  ;;  %v12224_v30 = vld [vmem:[#allocation103_spill] sm:$0xff] }
 0x340   :  { %2207 = vmatmul.f32.gmra.mxu0 %v12190_v41  ;;  %v8624_v19 = vpop.f32.mrf.mxu3 }
 0x341   :  { %2292 = vmatmul.f32.gmra.mxu1 %v12180_v46 }
 0x343   :  { %2397 = vmatmul.f32.gmra.mxu2 %v12191_v35  ;;  %v1489_v35 = vld [vmem:[%s11465_s6] sm:$0xff] }
 0x344   :  { %2558 = vmatmul.f32.gmra.mxu3 %v12159_v13  ;;  %316 = vperm.xlu1 %6011, %v12194_v33   ;;  %v8632_v28 = vpop.f32.mrf.mxu0  ;;  %v12206_v33 = vld [vmem:[#allocation33_spill] sm:$0xff] }
 0x345   :  { %500 = vperm.xlu0 %6010, %v12195_v3   ;;  %v8637_v62 = vpop.f32.mrf.mxu1  ;;  %v12207_v3 = vsub.f32 %v12205_v34, %v12206_v33  ;;  %v12213_v34 = vld [vmem:[#allocation19_spill] sm:$0xff] }
 0x346   :  { %520 = vperm.xlu2 %6012, %v12198_v51   ;;  %12199 = vst [vmem:[#allocation53_spill] sm:$0xff] %v8637_v62  ;;  %v8639_v43 = vpop.f32.mrf.mxu2  ;;  %v12214_v33 = vld [vmem:[#allocation35_spill] sm:$0xff]  ;;  %v8762_v62 = vpop.permute.xlu0 %1251 }
 0x347   :  { %12200 = vst [vmem:[#allocation71_spill] sm:$0xff] %v8639_v43 }
 0x348   :  { %2211 = vmatmul.f32.gmra.mxu0 %v12201_v54  ;;  %v8643_v7 = vpop.f32.mrf.mxu3 }
 0x349   :  { %2296 = vmatmul.f32.gmra.mxu1 %v12190_v41  ;;  %12202 = vst [vmem:[#allocation48_spill] sm:$0xff] %v8643_v7 }
 0x34b   :  { %2405 = vmatmul.f32.gmra.mxu2 %v12203_v47  ;;  %v12210_v47 = vld [vmem:[#allocation115_spill] sm:$0xff] }
 0x34c   :  { %2562 = vmatmul.f32.gmra.mxu3 %v12167_v25  ;;  %495 = vperm.xlu1 %6011, %v12204_v15   ;;  %v8654_v9 = vpop.f32.mrf.mxu0 }
 0x34d   :  { %515 = vperm.xlu0 %6010, %v12207_v3   ;;  %12208 = vst [vmem:[#allocation67_spill] sm:$0xff] %v8654_v9  ;;  %v8656_v32 = vpop.f32.mrf.mxu1  ;;  %v12215_v3 = vsub.f32 %v12213_v34, %v12214_v33  ;;  %v12218_v9 = vld [vmem:[#allocation119_spill] sm:$0xff]  ;;  %v12219_v33 = vld [vmem:[#allocation117_spill] sm:$0xff] }
 0x34e   :  { %1512 = vperm.xlu2 %6012, %v1490_v29   ;;  %v8658_v51 = vpop.f32.mrf.mxu2  ;;  %v1493_v29 = vld [vmem:[%s11465_s6 + $0x20] sm:$0xff]  ;;  %v1492_v34 = vld [vmem:[%s11465_s6 + $0x18] sm:$0xff] }
 0x34f   :  { %12209 = vst [vmem:[#allocation66_spill] sm:$0xff] %v8658_v51 }
 0x350   :  { %2215 = vmatmul.f32.gmra.mxu0 %v12210_v47  ;;  %v8665_v15 = vpop.f32.mrf.mxu3 }
 0x351   :  { %2300 = vmatmul.f32.gmra.mxu1 %v12201_v54  ;;  %12211 = vst [vmem:[#allocation56_spill] sm:$0xff] %v8665_v15 }
 0x353   :  { %2413 = vmatmul.f32.gmra.mxu2 %v12212_v10  ;;  %v1274_v10 = vsel %vm1263_vm14, %v8132_v4, %v8297_v52 }
 0x354   :  { %2566 = vmatmul.f32.gmra.mxu3 %v12180_v46  ;;  %510 = vperm.xlu1 %6011, %v12215_v3   ;;  %v8675_v58 = vpop.f32.mrf.mxu0  ;;  %v12220_v3 = vld [vmem:[#allocation15_spill] sm:$0xff]  ;;  %v1318_v4 = vsel %vm8360_vm7, %v1274_v10, 0.0  ;;  %v1491_v10 = vld [vmem:[%s11465_s6 + $0x10] sm:$0xff] }
 0x355   :  { %1507 = vperm.xlu0 %6010, %v1489_v35   ;;  %12216 = vst [vmem:[#allocation75_spill] sm:$0xff] %v8675_v58  ;;  %v8677_v48 = vpop.f32.mrf.mxu1  ;;  %v12225_v58 = vld [vmem:[#allocation8_spill] sm:$0xff] }
 0x356   :  { %1527 = vperm.xlu2 %6012, %v1493_v29   ;;  %12217 = vst [vmem:[#allocation76_spill] sm:$0xff] %v8677_v48  ;;  %v8679_v14 = vpop.f32.mrf.mxu2  ;;  %v1496_v29 = vld [vmem:[%s11465_s6 + $0x38] sm:$0xff]  ;;  %v12221_v48 = vld [vmem:[#allocation29_spill] sm:$0xff]  ;;  %v1213_v26 = vadd.f32 %v12225_v58, %v12224_v30  ;;  %v1495_v30 = vld [vmem:[%s11465_s6 + $0x30] sm:$0xff] }
 0x357   :  { %v12222_v7 = vsub.f32 %v12220_v3, %v12221_v48 }
 0x358   :  { %2219 = vmatmul.f32.gmra.mxu0 %v12218_v9  ;;  %v8689_v35 = vpop.f32.mrf.mxu3  ;;  %v1334_v51 = vadd.f32 %v1318_v4, %v1213_v26  ;;  %v12230_v26 = vld [vmem:[#allocation121_spill] sm:$0xff] }
 0x359   :  { %2304 = vmatmul.f32.gmra.mxu1 %v12210_v47 }
 0x35b   :  { %2421 = vmatmul.f32.gmra.mxu2 %v12219_v33 }
 0x35c   :  { %2570 = vmatmul.f32.gmra.mxu3 %v12190_v41  ;;  %525 = vperm.xlu1 %6011, %v12222_v7   ;;  %v8701_v43 = vpop.f32.mrf.mxu0  ;;  %v12275_v41 = vld [vmem:[#allocation98_spill] sm:$0xff] }
 0x35d   :  { %1522 = vperm.xlu0 %6010, %v1492_v34   ;;  %12223 = vst [vmem:[#allocation63_spill] sm:$0xff] %v8701_v43  ;;  %v8705_v33 = vpop.f32.mrf.mxu1 }
 0x35e   :  { %12226 = vst [vmem:[#allocation80_spill] sm:$0xff] %v8705_v33  ;;  %v8707_v15 = vpop.f32.mrf.mxu2  ;;  %1542 = vperm.xlu2 %6012, %v1496_v29  }
 0x35f   :  { %12227 = vst [vmem:[#allocation60_spill] sm:$0xff] %v8707_v15  ;;  %v1383_v20 = vpop.permute.xlu2 %1382  ;;  %v12236_v15 = vld [vmem:[#allocation125_spill] sm:$0xff] }
 0x360   :  { %2223 = vmatmul.f32.gmra.mxu0 %v12228_v11  ;;  %v1396_v48 = vsel %vm1384_vm0, %v8294_v5, %v1383_v20  ;;  %v8719_v34 = vpop.f32.mrf.mxu3  ;;  %v1499_v5 = vld [vmem:[%s11465_s6 + $0x50] sm:$0xff] }
 0x361   :  { %2308 = vmatmul.f32.gmra.mxu1 %v12218_v9  ;;  %v1455_v7 = vadd.f32 %v1396_v48, %v1334_v51  ;;  %12229 = vst [vmem:[#allocation90_spill] sm:$0xff] %v8719_v34 }
 0x363   :  { %2429 = vmatmul.f32.gmra.mxu2 %v12230_v26  ;;  %v8722_v29 = vand.u32 4294901760, %v1455_v7 }
 0x364   :  { %2574 = vmatmul.f32.gmra.mxu3 %v12201_v54  ;;  %1517 = vperm.xlu1 %6011, %v1491_v10   ;;  %v8728_v3 = vpop.f32.mrf.mxu0 }
 0x365   :  { %1537 = vperm.xlu0 %6010, %v1495_v30   ;;  %12231 = vst [vmem:[#allocation38_spill] sm:$0xff] %v8728_v3  ;;  %v8731_v51 = vsub.f32 %v1455_v7, %v8722_v29  ;;  %3047 = vmatpush.msrb.mxu0 %v8722_v29  ;;  %v8735_v4 = vpop.f32.mrf.mxu1  ;;  %v12234_v30 = vld [vmem:[#allocation127_spill] sm:$0xff]  ;;  %v1494_v7 = vld [vmem:[%s11465_s6 + $0x28] sm:$0xff] }
 0x366   :  { %3434 = vmatpush.msrb.mxu3 %v8722_v29  ;;  %12232 = vst [vmem:[#allocation85_spill] sm:$0xff] %v8735_v4  ;;  %v8737_v48 = vpop.f32.mrf.mxu2  ;;  %1557 = vperm.xlu2 %6012, %v1499_v5   ;;  %v1498_v5 = vld [vmem:[%s11465_s6 + $0x48] sm:$0xff] }
 0x367   :  { %12233 = vst [vmem:[#allocation40_spill] sm:$0xff] %v8737_v48  ;;  %v11729_v10 = vand.u32 4294901760, %v8731_v51  ;;  %3322 = vmatpush.msrb.mxu2 %v8731_v51  ;;  %v12237_v48 = vld [vmem:[#allocation10_spill] sm:$0xff]  ;;  %v1502_v4 = vld [vmem:[%s11465_s6 + $0x68] sm:$0xff] }
 0x368   :  { %v8740_v26 = vpop.permute.xlu2 %1235  ;;  %2227 = vmatmul.f32.gmra.mxu0 %v12234_v30  ;;  %v8754_v34 = vpop.f32.mrf.mxu3  ;;  %v572_v33 = vand.u32 255, %v12237_v48 }
 0x369   :  { %2312 = vmatmul.f32.gmra.mxu1 %v12228_v11  ;;  %v3202_v3 = vsub.f32 %v8731_v51, %v11729_v10  ;;  %12235 = vst [vmem:[#allocation78_spill] sm:$0xff] %v8754_v34 }
 0x36a   :  { %vm8770_vm8 = vcmp.lt.s32.totalorder %v572_v33, 240  ;;  %v1497_v33 = vld [vmem:[%s11465_s6 + $0x40] sm:$0xff] }
 0x36b   :  { %2437 = vmatmul.f32.gmra.mxu2 %v12236_v15  ;;  %v3203_v54 = vand.u32 4294901760, %v3202_v3  ;;  %v1416_v3 = vsel %vm1384_vm0, %v1383_v20, 0.0 }
 0x36c   :  { %2578 = vmatmul.f32.gmra.mxu3 %v12210_v47  ;;  %1532 = vperm.xlu1 %6011, %v1494_v7   ;;  %v8764_v10 = vpop.f32.mrf.mxu0  ;;  %v1214_v7 = vadd.f32 %v12225_v58, %v8341_v38  ;;  %v12243_v47 = vld [vmem:[#allocation131_spill] sm:$0xff]  ;;  %v1501_v38 = vld [vmem:[%s11465_s6 + $0x60] sm:$0xff]  ;;  %v1440_v58 = vsel %vm8770_vm8, %v1416_v3, 0.0 }
 0x36d   :  { %1552 = vperm.xlu0 %6010, %v1498_v5   ;;  %12238 = vst [vmem:[#allocation39_spill] sm:$0xff] %v8764_v10  ;;  %3204 = vmatpush.msrb.mxu1 %v3203_v54  ;;  %v8766_v24 = vpop.f32.mrf.mxu1  ;;  %v12244_v5 = vld [vmem:[#allocation137_spill] sm:$0xff] }
 0x36e   :  { %12239 = vst [vmem:[#allocation65_spill] sm:$0xff] %v8766_v24  ;;  %v8768_v34 = vpop.f32.mrf.mxu2  ;;  %1572 = vperm.xlu2 %6012, %v1502_v4   ;;  %v1271_v54 = vsel %vm1263_vm14, %v12244_v5, %v8762_v62  ;;  %v12245_v4 = vld [vmem:[#allocation129_spill] sm:$0xff] }
 0x36f   :  { %12240 = vst [vmem:[#allocation81_spill] sm:$0xff] %v8768_v34 }
 0x370   :  { %v1262_v15 = vpop.permute.xlu2 %1261  ;;  %2231 = vmatmul.f32.gmra.mxu0 %v12243_v47  ;;  %v8793_v5 = vpop.f32.mrf.mxu3 }
 0x371   :  { %v1275_v24 = vsel %vm1263_vm14, %v8297_v52, %v1262_v15  ;;  %2316 = vmatmul.f32.gmra.mxu1 %v12234_v30  ;;  %12246 = vst [vmem:[#allocation95_spill] sm:$0xff] %v8793_v5  ;;  %v1314_v52 = vsel %vm8360_vm7, %v1271_v54, 0.0  ;;  %v12252_v54 = vld [vmem:[#allocation138_spill] sm:$0xff] }
 0x372   :  { %v1335_v20 = vadd.f32 %v1275_v24, %v1214_v7  ;;  %v12247_v24 = vld [vmem:[#allocation88_spill] sm:$0xff]  ;;  %v12248_v7 = vld [vmem:[#allocation79_spill] sm:$0xff] }
 0x373   :  { %2445 = vmatmul.f32.gmra.mxu2 %v12245_v4  ;;  %v1209_v10 = vadd.f32 %v12248_v7, %v12247_v24  ;;  %v12254_v24 = vld [vmem:[#allocation133_spill] sm:$0xff] }
 0x374   :  { %v8797_v15 = vadd.f32 %v1440_v58, %v1335_v20  ;;  %2582 = vmatmul.f32.gmra.mxu3 %v12218_v9  ;;  %1547 = vperm.xlu1 %6011, %v1497_v33   ;;  %v8802_v34 = vpop.f32.mrf.mxu0  ;;  %v12253_v33 = vld [vmem:[#allocation135_spill] sm:$0xff] }
 0x375   :  { %1567 = vperm.xlu0 %6010, %v1501_v38   ;;  %12249 = vst [vmem:[#allocation69_spill] sm:$0xff] %v8802_v34  ;;  %v8804_v44 = vpop.f32.mrf.mxu1  ;;  %v1330_v4 = vadd.f32 %v1314_v52, %v1209_v10  ;;  %v8808_v5 = vpop.permute.xlu0 %1374  ;;  %v1500_v38 = vld [vmem:[%s11465_s6 + $0x58] sm:$0xff] }
 0x376   :  { %12250 = vst [vmem:[#allocation101_spill] sm:$0xff] %v8804_v44  ;;  %v8806_v3 = vpop.f32.mrf.mxu2  ;;  %v1393_v20 = vsel %vm1384_vm0, %v12252_v54, %v8808_v5  ;;  %v1504_v10 = vld [vmem:[%s11465_s6 + $0x78] sm:$0xff] }
 0x377   :  { %12251 = vst [vmem:[#allocation73_spill] sm:$0xff] %v8806_v3  ;;  %v1451_v58 = vadd.f32 %v1393_v20, %v1330_v4 }
 0x378   :  { %v8810_v43 = vpop.permute.xlu2 %1237  ;;  %2235 = vmatmul.f32.gmra.mxu0 %v12253_v33  ;;  %v8833_v20 = vpop.f32.mrf.mxu3 }
 0x379   :  { %2320 = vmatmul.f32.gmra.mxu1 %v12243_v47  ;;  %v8823_v52 = vand.u32 4294901760, %v1451_v58  ;;  %12256 = vst [vmem:[#allocation59_spill] sm:$0xff] %v8833_v20 }
 0x37b   :  { %2453 = vmatmul.f32.gmra.mxu2 %v12254_v24  ;;  %3049 = vmatpush.msrb.mxu0 %v8823_v52  ;;  %v8831_v54 = vsub.f32 %v1451_v58, %v8823_v52  ;;  %v1503_v58 = vld [vmem:[%s11465_s6 + $0x70] sm:$0xff] }
 0x37c   :  { %2586 = vmatmul.f32.gmra.mxu3 %v12228_v11  ;;  %1562 = vperm.xlu1 %6011, %v1500_v38   ;;  %v8828_v4 = vpop.f32.mrf.mxu0 }
 0x37d   :  { %1582 = vperm.xlu0 %6010, %v1504_v10   ;;  %12255 = vst [vmem:[#allocation44_spill] sm:$0xff] %v8828_v4  ;;  %3436 = vmatpush.msrb.mxu3 %v8823_v52  ;;  %v8836_v3 = vpop.f32.mrf.mxu1  ;;  %v11734_v38 = vand.u32 4294901760, %v8831_v54  ;;  %v12260_v4 = vld [vmem:[#allocation139_spill] sm:$0xff] }
 0x37e   :  { %12257 = vst [vmem:[#allocation57_spill] sm:$0xff] %v8836_v3  ;;  %v8838_v44 = vpop.f32.mrf.mxu2  ;;  %3325 = vmatpush.msrb.mxu2 %v8831_v54 }
 0x37f   :  { %12258 = vst [vmem:[#allocation55_spill] sm:$0xff] %v8838_v44  ;;  %v3208_v24 = vsub.f32 %v8831_v54, %v11734_v38 }
 0x380   :  { %v8842_v10 = vpop.permute.xlu2 %296  ;;  %2239 = vmatmul.f32.gmra.mxu0 %v8163_v22  ;;  %v8858_v11 = vpop.f32.mrf.mxu3 }
 0x381   :  { %12259 = vst [vmem:[#allocation43_spill] sm:$0xff] %v8842_v10  ;;  %2324 = vmatmul.f32.gmra.mxu1 %v12253_v33  ;;  %v3209_v20 = vand.u32 4294901760, %v3208_v24  ;;  %v1265_v24 = vsel %vm1263_vm14, %v8182_v2, %v8740_v26 }
 0x382   :  { %12263 = vst [vmem:[#allocation42_spill] sm:$0xff] %v8858_v11  ;;  %v1306_v38 = vsel %vm8360_vm7, %v1265_v24, 0.0 }
 0x383   :  { %2461 = vmatmul.f32.gmra.mxu2 %v12260_v4  ;;  %3210 = vmatpush.msrb.mxu1 %v3209_v20  ;;  %v12266_v20 = vld [vmem:[#allocation62_spill] sm:$0xff]  ;;  %v12267_v4 = vld [vmem:[#allocation107_spill] sm:$0xff] }
 0x384   :  { %2590 = vmatmul.f32.gmra.mxu3 %v12234_v30  ;;  %1577 = vperm.xlu1 %6011, %v1503_v58   ;;  %v8854_v10 = vpop.f32.mrf.mxu0  ;;  %v1359_v58 = vpop.permute.xlu0 %1358 }
 0x385   :  { %12261 = vst [vmem:[#allocation36_spill] sm:$0xff] %v8854_v10  ;;  %v8856_v44 = vpop.f32.mrf.mxu1  ;;  %v1387_v10 = vsel %vm1384_vm0, %v8416_v17, %v1359_v58 }
 0x386   :  { %12262 = vst [vmem:[#allocation21_spill] sm:$0xff] %v8856_v44  ;;  %v8863_v3 = vpop.f32.mrf.mxu2 }
 0x387   :  { %12265 = vst [vmem:[#allocation14_spill] sm:$0xff] %v8863_v3  ;;  %v12270_v3 = vld [vmem:[#allocation92_spill] sm:$0xff] }
 0x388   :  { %v8860_v9 = vpop.permute.xlu2 %311  ;;  %2243 = vmatmul.f32.gmra.mxu0 %v8191_v27  ;;  %v8885_v23 = vpop.f32.mrf.mxu3 }
 0x389   :  { %12264 = vst [vmem:[#allocation24_spill] sm:$0xff] %v8860_v9  ;;  %2328 = vmatmul.f32.gmra.mxu1 %v8163_v22  ;;  %v1201_v9 = vadd.f32 %v12133_v53, %v12267_v4  ;;  %v1471_v4 = vld [vmem:[%s11460_s1 + $0x70] sm:$0xff] }
 0x38a   :  { %12271 = vst [vmem:[#allocation16_spill] sm:$0xff] %v8885_v23 }
 0x38b   :  { %2469 = vmatmul.f32.gmra.mxu2 %v12266_v20  ;;  %v1322_v2 = vadd.f32 %v1306_v38, %v1201_v9  ;;  %v8898_v38 = vand.u32 4294901760, %v1471_v4 }
 0x38c   :  { %2594 = vmatmul.f32.gmra.mxu3 %v12243_v47  ;;  %v8875_v44 = vpop.f32.mrf.mxu0  ;;  %v12273_v47 = vld [vmem:[#allocation77_spill] sm:$0xff] }
 0x38d   :  { %v8879_v11 = vpop.f32.mrf.mxu1  ;;  %v1443_v20 = vadd.f32 %v1387_v10, %v1322_v2  ;;  %v1467_v10 = vld [vmem:[%s11460_s1 + $0x50] sm:$0xff] }
 0x38e   :  { %12268 = vst [vmem:[#allocation25_spill] sm:$0xff] %v8879_v11  ;;  %v8887_v24 = vpop.f32.mrf.mxu2  ;;  %v1266_v11 = vsel %vm1263_vm14, %v8740_v26, %v8810_v43 }
 0x38f   :  { %12272 = vst [vmem:[#allocation28_spill] sm:$0xff] %v8887_v24  ;;  %v8894_v17 = vand.u32 4294901760, %v1443_v20  ;;  %v1206_v24 = vadd.f32 %v12120_v42, %v8527_v18  ;;  %v1463_v42 = vld [vmem:[%s11460_s1 + $0x30] sm:$0xff]  ;;  %v1413_v18 = vsel %vm1384_vm0, %v1359_v58, 0.0  ;;  %v1415_v58 = vsel %vm1384_vm0, %v8808_v5, 0.0 }
 0x390   :  { %v8881_v30 = vpop.permute.xlu2 %490  ;;  %2644 = vmatmul.f32.vlgmr.msra.gmra.mxu0 %v12270_v3 }
 0x391   :  { %12269 = vst [vmem:[#allocation27_spill] sm:$0xff] %v8881_v30  ;;  %2332 = vmatmul.f32.gmra.mxu1 %v8191_v27  ;;  %v8927_v43 = vsub.f32 %v1443_v20, %v8894_v17 }
 0x392   :  { %v8947_v20 = vpop.f32.mrf.mxu3 }
 0x393   :  { %2477 = vmatmul.f32.gmra.mxu2 %v12273_v47  ;;  %12278 = vst [vmem:[#allocation12_spill] sm:$0xff] %v8947_v20  ;;  %v12288_v48 = vand.u32 4294901760, %v8927_v43 }
 0x394   :  { %2598 = vmatmul.f32.gmra.mxu3 %v12253_v33  ;;  %v8896_v9 = vpop.f32.mrf.mxu0 }
 0x395   :  { %v8903_v2 = vpop.f32.mrf.mxu1 }
 0x396   :  { %v1367_v30 = vpop.permute.xlu1 %1366 }
 0x397   :  { %v1390_v3 = vsel %vm1384_vm0, %v8184_v36, %v1367_v30  ;;  %v1414_v47 = vsel %vm1384_vm0, %v1367_v30, 0.0  ;;  %v1246_v33 = vpop.permute.xlu0 %1245  ;;  %v8919_v36 = vand.u32 4294901760, %v1467_v10 }
 0x398   :  { %v8913_v23 = vpop.permute.xlu2 %505  ;;  %v1447_v34 = vadd.f32 %v1390_v3, %v8393_v50  ;;  %v1269_v57 = vsel %vm1263_vm14, %v8364_v59, %v1246_v33  ;;  %2649 = vmatmul.f32.gmra.mxu0 %v12275_v41  ;;  %v8930_v50 = vsub.f32 %v1471_v4, %v8898_v38  ;;  %v1202_v59 = vadd.f32 %v12133_v53, %v8349_v56 }
 0x399   :  { %12274 = vst [vmem:[#allocation34_spill] sm:$0xff] %v8913_v23  ;;  %v1327_v30 = vadd.f32 %v1269_v57, %v1206_v24  ;;  %2750 = vmatmul.f32.vlgmr.msra.gmra.mxu1 %v12276_v31  ;;  %v1432_v26 = vsel %vm8770_vm8, %v1414_v47, 0.0  ;;  %v1459_v57 = vld [vmem:[%s11460_s1 + $0x10] sm:$0xff]  ;;  %v8942_v33 = vand.u32 4294901760, %v8797_v15  ;;  %v8949_v56 = vand.u32 4294901760, %v1463_v42  ;;  %v8955_v24 = vpop.f32.mrf.mxu2 }
 0x39a   :  { %v8936_v3 = vand.u32 4294901760, %v1447_v34  ;;  %v1323_v53 = vadd.f32 %v1266_v11, %v1202_v59  ;;  %v1428_v47 = vsel %vm8770_vm8, %v1413_v18, 0.0  ;;  %12279 = vst [vmem:[#allocation22_spill] sm:$0xff] %v8955_v24  ;;  %v8961_v5 = vsub.f32 %v1467_v10, %v8919_v36 }
 0x39b   :  { %12277 = vst [vmem:[#allocation20_spill] sm:$0xff] %v8942_v33  ;;  %2485 = vmatmul.f32.gmra.mxu2 %v8302_v6  ;;  %v1448_v23 = vadd.f32 %v1432_v26, %v1327_v30  ;;  %v8966_v11 = vand.u32 4294901760, %v1459_v57  ;;  %v8979_v30 = vsub.f32 %v8797_v15, %v8942_v33 }
 0x39c   :  { %2602 = vmatmul.f32.gmra.mxu3 %v8163_v22  ;;  %3051 = vmatpush.msrb.mxu0 %v8936_v3  ;;  %v8958_v4 = vsub.f32 %v1447_v34, %v8936_v3  ;;  %v1210_v34 = vadd.f32 %v12248_v7, %v8372_v1  ;;  %v1444_v26 = vadd.f32 %v1428_v47, %v1323_v53  ;;  %v1436_v7 = vsel %vm8770_vm8, %v1415_v58, 0.0  ;;  %v12287_v47 = vld [vmem:[#allocation102_spill] sm:$0xff] }
 0x39d   :  { %3438 = vmatpush.msrb.mxu3 %v8936_v3  ;;  %v8964_v6 = vpop.f32.mrf.mxu0  ;;  %12281 = vst [vmem:[#allocation13_spill] sm:$0xff] %v8979_v30  ;;  %v8987_v1 = vsub.f32 %v1463_v42, %v8949_v56  ;;  %v8999_v53 = vand.u32 4294901760, %v1448_v23  ;;  %v12286_v42 = vld [vmem:[#allocation104_spill] sm:$0xff]  ;;  %v3220_v58 = vsub.f32 %v8927_v43, %v12288_v48 }
 0x39e   :  { %12280 = vst [vmem:[#allocation26_spill] sm:$0xff] %v8964_v6  ;;  %v8970_v41 = vpop.f32.mrf.mxu1  ;;  %v1254_v31 = vpop.permute.xlu1 %1253  ;;  %3053 = vmatpush.msrb.mxu0 %v8894_v17  ;;  %3328 = vmatpush.msrb.mxu2 %v8958_v4  ;;  %v12284_v15 = vand.u32 4294901760, %v8958_v4  ;;  %v12305_v6 = vld [vmem:[#allocation106_spill] sm:$0xff] }
 0x39f   :  { %v1272_v59 = vsel %vm1263_vm14, %v8762_v62, %v1254_v31  ;;  %3440 = vmatpush.msrb.mxu3 %v8894_v17  ;;  %v8984_v18 = vpop.permute.xlu0 %291  ;;  %12285 = vst [vmem:[#allocation17_spill] sm:$0xff] %v8999_v53 }
 0x3a0   :  { %12282 = vst [vmem:[#allocation23_spill] sm:$0xff] %v8984_v18  ;;  %v8991_v22 = vpop.permute.xlu2 %520  ;;  %v1331_v10 = vadd.f32 %v1272_v59, %v1210_v34  ;;  %3055 = vmatpush.msrb.mxu0 %v8898_v38  ;;  %3331 = vmatpush.msrb.mxu2 %v8927_v43  ;;  %v3214_v31 = vsub.f32 %v8958_v4, %v12284_v15  ;;  %v12289_v59 = vand.u32 4294901760, %v8930_v50  ;;  %v3221_v18 = vand.u32 4294901760, %v3220_v58 }
 0x3a1   :  { %12283 = vst [vmem:[#allocation30_spill] sm:$0xff] %v8991_v22  ;;  %2654 = vmatmul.f32.gmra.mxu0 %v12286_v42  ;;  %2756 = vmatmul.f32.gmra.mxu1 %v12287_v47  ;;  %v9010_v22 = vsub.f32 %v1459_v57, %v8966_v11  ;;  %v9014_v42 = vand.u32 4294901760, %v1444_v26  ;;  %v12292_v57 = vand.u32 4294901760, %v8961_v5 }
 0x3a2   :  { %v3226_v34 = vsub.f32 %v8930_v50, %v12289_v59  ;;  %v1452_v15 = vadd.f32 %v1436_v7, %v1331_v10  ;;  %3057 = vmatpush.msrb.mxu0 %v8919_v36  ;;  %3334 = vmatpush.msrb.mxu2 %v8930_v50  ;;  %v3215_v62 = vand.u32 4294901760, %v3214_v31  ;;  %v9028_v31 = vsub.f32 %v1448_v23, %v8999_v53  ;;  %v9031_v59 = vpop.f32.mrf.mxu3 }
 0x3a3   :  { %12290 = vst [vmem:[#allocation31_spill] sm:$0xff] %v9014_v42  ;;  %2885 = vmatmul.f32.vlgmr.msra.gmra.mxu2 %v7642_v0  ;;  %3442 = vmatpush.msrb.mxu3 %v8898_v38  ;;  %v3232_v10 = vsub.f32 %v8961_v5, %v12292_v57  ;;  %v9046_v23 = vsub.f32 %v1444_v26, %v9014_v42 }
 0x3a4   :  { %v9019_v47 = vand.u32 4294901760, %v1452_v15  ;;  %2606 = vmatmul.f32.gmra.mxu3 %v8191_v27  ;;  %3059 = vmatpush.msrb.mxu0 %v8949_v56  ;;  %12293 = vst [vmem:[#allocation18_spill] sm:$0xff] %v9028_v31  ;;  %v3227_v27 = vand.u32 4294901760, %v3226_v34  ;;  %v12300_v34 = vand.u32 4294901760, %v8987_v1 }
 0x3a5   :  { %3216 = vmatpush.msrb.mxu1 %v3215_v62  ;;  %3337 = vmatpush.msrb.mxu2 %v8961_v5  ;;  %12294 = vst [vmem:[#allocation33_spill] sm:$0xff] %v9031_v59  ;;  %v9033_v48 = vpop.f32.mrf.mxu0  ;;  %v12302_v59 = vand.u32 4294901760, %v8731_v51  ;;  %v3233_v26 = vand.u32 4294901760, %v3232_v10  ;;  %v12306_v10 = vld [vmem:[#allocation72_spill] sm:$0xff] }
 0x3a6   :  { %12291 = vst [vmem:[#allocation32_spill] sm:$0xff] %v9019_v47  ;;  %v9037_v24 = vsub.f32 %v1452_v15, %v9019_v47  ;;  %v9039_v57 = vpop.f32.mrf.mxu1  ;;  %v9041_v7 = vpop.f32.mrf.mxu2  ;;  %3061 = vmatpush.msrb.mxu0 %v8966_v11  ;;  %3444 = vmatpush.msrb.mxu3 %v8919_v36  ;;  %v3238_v15 = vsub.f32 %v8987_v1, %v12300_v34  ;;  %v12304_v34 = vand.u32 4294901760, %v9010_v22 }
 0x3a7   :  { %12296 = vst [vmem:[#allocation35_spill] sm:$0xff] %v9039_v57  ;;  %v9048_v62 = vpop.permute.xlu1 %286  ;;  %3222 = vmatpush.msrb.mxu1 %v3221_v18  ;;  %3340 = vmatpush.msrb.mxu2 %v8987_v1  ;;  %v9051_v58 = vpop.permute.xlu0 %306  ;;  %v12303_v57 = vand.u32 4294901760, %v8979_v30 }
 0x3a8   :  { %12295 = vst [vmem:[#allocation19_spill] sm:$0xff] %v9037_v24  ;;  %v9056_v20 = vpop.permute.xlu2 %1512  ;;  %3557 = vmatpush.msra.mxu0 %v12302_v59  ;;  %3446 = vmatpush.msrb.mxu3 %v8949_v56  ;;  %v3244_v51 = vsub.f32 %v9010_v22, %v12304_v34  ;;  %v11755_v34 = vand.u32 4294901760, %v9046_v23 }
 0x3a9   :  { %12297 = vst [vmem:[#allocation15_spill] sm:$0xff] %v9046_v23  ;;  %v3904_v18 = vsub.f32 %v8979_v30, %v12303_v57  ;;  %3228 = vmatpush.msrb.mxu1 %v3227_v27  ;;  %3343 = vmatpush.msrb.mxu2 %v9010_v22  ;;  %v12307_v27 = vand.u32 4294901760, %v8831_v54  ;;  %v12308_v54 = vand.u32 4294901760, %v9028_v31 }
 0x3aa   :  { %12298 = vst [vmem:[#allocation29_spill] sm:$0xff] %v9048_v62  ;;  %v11754_v62 = vand.u32 4294901760, %v9037_v24  ;;  %2659 = vmatmul.f32.gmra.mxu0 %v12305_v6  ;;  %2762 = vmatmul.f32.gmra.mxu1 %v12306_v10 }
 0x3ab   :  { %12299 = vst [vmem:[#allocation103_spill] sm:$0xff] %v9051_v58  ;;  %v1673_v58 = vadd.f32 %v8433_v49, %v9056_v20  ;;  %3561 = vmatpush.msra.mxu0 %v12307_v27  ;;  %3749 = vmatpush.msra.mxu2 %v8942_v33  ;;  %v3239_v49 = vand.u32 4294901760, %v3238_v15  ;;  %v3905_v59 = vand.u32 4294901760, %v3904_v18  ;;  %v3916_v27 = vsub.f32 %v9028_v31, %v12308_v54 }
 0x3ac   :  { %12301 = vst [vmem:[#allocation8_spill] sm:$0xff] %v9056_v20  ;;  %v3910_v57 = vsub.f32 %v9037_v24, %v11754_v62  ;;  %3234 = vmatpush.msrb.mxu1 %v3233_v26  ;;  %3448 = vmatpush.msrb.mxu3 %v8966_v11  ;;  %v12309_v15 = vand.u32 4294901760, %v8958_v4  ;;  %v12311_v4 = vand.u32 4294901760, %v8927_v43 }
 0x3ad   :  { %v1850_v30 = vadd.f32 %v8501_v63, %v1673_v58  ;;  %2889 = vmatmul.f32.gmra.mxu2 %v12025_v37  ;;  %2974 = vmatmul.f32.vlgmr.msra.gmra.mxu3 %v7642_v0  ;;  %v2200_v62 = vpop.f32.mrf.mxu0  ;;  %v3245_v63 = vand.u32 4294901760, %v3244_v51 }
 0x3ae   :  { %v3911_v58 = vand.u32 4294901760, %v3910_v57  ;;  %3565 = vmatpush.msra.mxu0 %v12309_v15  ;;  %3751 = vmatpush.msra.mxu2 %v9019_v47  ;;  %v9092_v26 = vpop.f32.mrf.mxu1  ;;  %v2374_v18 = vpop.f32.mrf.mxu2  ;;  %v3922_v57 = vsub.f32 %v9046_v23, %v11755_v34  ;;  %v12376_v10 = vld [vmem:[#allocation35_spill] sm:$0xff] }
 0x3af   :  { %v1949_v6 = vadd.f32 %v8546_v40, %v1850_v30  ;;  %3906 = vmatpush.msra.mxu3 %v3905_v59  ;;  %3240 = vmatpush.msrb.mxu1 %v3239_v49  ;;  %v9095_v30 = vpop.f32.mrf.mxu3  ;;  %v9097_v51 = vpop.permute.xlu1 %301  ;;  %v3917_v59 = vand.u32 4294901760, %v3916_v27 }
 0x3b0   :  { %12310 = vst [vmem:[#allocation10_spill] sm:$0xff] %v9097_v51  ;;  %3569 = vmatpush.msra.mxu0 %v12311_v4  ;;  %3753 = vmatpush.msra.mxu2 %v8999_v53  ;;  %v9105_v54 = vpop.permute.xlu2 %1527  ;;  %v9107_v15 = vpop.permute.xlu0 %321  ;;  %v12314_v4 = vld [vmem:[#allocation11_spill] sm:$0xff]  ;;  %v3923_v34 = vand.u32 4294901760, %v3922_v57 }
 0x3b1   :  { %v2056_v40 = vadd.f32 %v8555_v45, %v1949_v6  ;;  %12312 = vst [vmem:[#allocation137_spill] sm:$0xff] %v9105_v54  ;;  %v1697_v45 = vadd.f32 %v8563_v16, %v9105_v54  ;;  %3246 = vmatpush.msrb.mxu1 %v3245_v63  ;;  %3912 = vmatpush.msra.mxu3 %v3911_v58  ;;  %v12316_v16 = vand.u32 4294901760, %v8930_v50 }
 0x3b2   :  { %12313 = vst [vmem:[#allocation88_spill] sm:$0xff] %v9107_v15  ;;  %3755 = vmatpush.msra.mxu2 %v9014_v42  ;;  %2664 = vmatmul.f32.gmra.mxu0 %v12314_v4 }
 0x3b3   :  { %v2189_v6 = vadd.f32 %v8896_v9, %v2056_v40  ;;  %3660 = vmatpush.msra.mxu1 %v8722_v29  ;;  %v1862_v49 = vadd.f32 %v8596_v55, %v1697_v45  ;;  %3918 = vmatpush.msra.mxu3 %v3917_v59  ;;  %v2375_v9 = vadd.f32 %v2374_v18, %v9056_v20  ;;  %v12315_v40 = vld [vmem:[#allocation108_spill] sm:$0xff]  ;;  %v12322_v45 = vld [vmem:[#allocation91_spill] sm:$0xff] }
 0x3b4   :  { %2768 = vmatmul.f32.gmra.mxu1 %v12315_v40  ;;  %3573 = vmatpush.msra.mxu0 %v12316_v16  ;;  %v12340_v20 = vld [vmem:[#allocation116_spill] sm:$0xff] }
 0x3b5   :  { %v2278_v43 = vadd.f32 %v8970_v41, %v2189_v6  ;;  %3662 = vmatpush.msra.mxu1 %v8823_v52  ;;  %3924 = vmatpush.msra.mxu3 %v3923_v34  ;;  %v9122_v29 = vpop.f32.mrf.mxu0  ;;  %v1964_v41 = vadd.f32 %v8620_v61, %v1862_v49  ;;  %v12318_v52 = vand.u32 4294901760, %v8961_v5  ;;  %v12321_v6 = vand.u32 4294901760, %v8987_v1 }
 0x3b6   :  { %2893 = vmatmul.f32.gmra.mxu2 %v12147_v8  ;;  %2978 = vmatmul.f32.gmra.mxu3 %v12025_v37  ;;  %v2289_v55 = vpop.f32.mrf.mxu1  ;;  %v9127_v58 = vpop.f32.mrf.mxu2  ;;  %v12324_v5 = vand.u32 4294901760, %v9010_v22  ;;  %v12414_v37 = vld [vmem:[#allocation90_spill] sm:$0xff] }
 0x3b7   :  { %v5890_v63 = vmul.f32 -1.442695, %v2278_v43  ;;  %3664 = vmatpush.msra.mxu1 %v8936_v3  ;;  %v2074_v50 = vadd.f32 %v8624_v19, %v1964_v41  ;;  %v2551_v27 = vpop.f32.mrf.mxu3  ;;  %v9131_v18 = vpop.permute.xlu1 %316  ;;  %3577 = vmatpush.msra.mxu0 %v12318_v52  ;;  %v12323_v19 = vld [vmem:[#allocation97_spill] sm:$0xff]  ;;  %v12328_v41 = vld [vmem:[#allocation87_spill] sm:$0xff] }
 0x3b8   :  { %12317 = vst [vmem:[#allocation79_spill] sm:$0xff] %v9131_v18  ;;  %v9135_v34 = vadd.f32 %v2551_v27, %v2375_v9  ;;  %v9137_v61 = vpop.permute.xlu0 %500  ;;  %v9149_v43 = vpop.permute.xlu2 %1542 }
 0x3b9   :  { %12320 = vst [vmem:[#allocation107_spill] sm:$0xff] %v9137_v61  ;;  %3666 = vmatpush.msra.mxu1 %v8894_v17  ;;  %v2201_v57 = vadd.f32 %v2200_v62, %v2074_v50  ;;  %3581 = vmatpush.msra.mxu0 %v12321_v6  ;;  %6037 = vpow2.f32 %v5890_v63  ;;  %v12329_v63 = vld [vmem:[#allocation50_spill] sm:$0xff] }
 0x3ba   :  { %12319 = vst [vmem:[#allocation138_spill] sm:$0xff] %v9135_v34  ;;  %2669 = vmatmul.f32.gmra.mxu0 %v12322_v45 }
 0x3bb   :  { %v2290_v3 = vadd.f32 %v2289_v55, %v2201_v57  ;;  %3668 = vmatpush.msra.mxu1 %v8898_v38  ;;  %3585 = vmatpush.msra.mxu0 %v12324_v5  ;;  %12325 = vst [vmem:[#allocation145_spill] sm:$0xff] %v9149_v43  ;;  %v12332_v5 = vld [vmem:[#allocation86_spill] sm:$0xff] }
 0x3bc   :  { %2774 = vmatmul.f32.gmra.mxu1 %v12323_v19  ;;  %v12357_v19 = vld [vmem:[#allocation47_spill] sm:$0xff] }
 0x3bd   :  { %v9147_v59 = vpop.f32.mrf.mxu0  ;;  %3670 = vmatpush.msra.mxu1 %v8919_v36  ;;  %v5902_v62 = vmul.f32 -1.442695, %v2290_v3  ;;  %v1721_v36 = vadd.f32 %v8632_v28, %v9149_v43 }
 0x3be   :  { %2897 = vmatmul.f32.gmra.mxu2 %v12159_v13  ;;  %2982 = vmatmul.f32.gmra.mxu3 %v12147_v8  ;;  %v9154_v17 = vpop.f32.mrf.mxu1  ;;  %v2390_v1 = vpop.f32.mrf.mxu2 }
 0x3bf   :  { %v9156_v38 = vpop.f32.mrf.mxu3  ;;  %v9158_v49 = vpop.permute.xlu1 %495  ;;  %3672 = vmatpush.msra.mxu1 %v8949_v56  ;;  %6039 = vpow2.f32 %v5902_v62  ;;  %v1874_v55 = vadd.f32 %v8656_v32, %v1721_v36 }
 0x3c0   :  { %12326 = vst [vmem:[#allocation146_spill] sm:$0xff] %v9158_v49  ;;  %v6038_v22 = vpop.eup %6037  ;;  %v9161_v9 = vpop.permute.xlu0 %515 }
 0x3c1   :  { %12327 = vst [vmem:[#allocation147_spill] sm:$0xff] %v9161_v9  ;;  %3674 = vmatpush.msra.mxu1 %v8966_v11  ;;  %v9166_v16 = vadd.f32 1.0, %v6038_v22  ;;  %v1979_v52 = vadd.f32 %v8679_v14, %v1874_v55  ;;  %v12333_v22 = vld [vmem:[#allocation112_spill] sm:$0xff]  ;;  %v12334_v9 = vld [vmem:[#allocation110_spill] sm:$0xff] }
 0x3c2   :  { %2674 = vmatmul.f32.gmra.mxu0 %v12328_v41 }
 0x3c3   :  { %6041 = vrcp.f32 %v9166_v16  ;;  %v2092_v14 = vadd.f32 %v8689_v35, %v1979_v52  ;;  %vm4763_vm10 = vweird.f32 %v9166_v16 }
 0x3c4   :  { %2780 = vmatmul.f32.gmra.mxu1 %v12329_v63 }
 0x3c5   :  { %v2212_v50 = vpop.f32.mrf.mxu0  ;;  %v6040_v6 = vpop.eup %6039 }
 0x3c6   :  { %2901 = vmatmul.f32.gmra.mxu2 %v12167_v25  ;;  %2986 = vmatmul.f32.gmra.mxu3 %v12159_v13  ;;  %v9173_v56 = vpop.f32.mrf.mxu1  ;;  %v2398_v27 = vpop.f32.mrf.mxu2  ;;  %v9190_v61 = vadd.f32 1.0, %v6040_v6  ;;  %v12426_v13 = vld [vmem:[#allocation142_spill] sm:$0xff] }
 0x3c7   :  { %v2559_v28 = vpop.f32.mrf.mxu3  ;;  %v9176_v11 = vpop.permute.xlu1 %510  ;;  %v2399_v55 = vadd.f32 %v2398_v27, %v9105_v54 }
 0x3c8   :  { %12330 = vst [vmem:[#allocation148_spill] sm:$0xff] %v9176_v11  ;;  %v9179_v57 = vpop.permute.xlu0 %1507  ;;  %6043 = vrcp.f32 %v9190_v61  ;;  %vm4943_vm14 = vweird.f32 %v9190_v61 }
 0x3c9   :  { %12331 = vst [vmem:[#allocation149_spill] sm:$0xff] %v9179_v57  ;;  %v1665_v32 = vadd.f32 %v8370_v60, %v9179_v57  ;;  %v2367_v3 = vadd.f32 %v9041_v7, %v9179_v57  ;;  %v9195_v49 = vpop.eup %6041  ;;  %v12335_v60 = vld [vmem:[#allocation83_spill] sm:$0xff] }
 0x3ca   :  { %2679 = vmatmul.f32.gmra.mxu0 %v12333_v22  ;;  %vm4764_vm9 = vweird.f32 %v9195_v49 }
 0x3cb   :  { %v1846_v62 = vadd.f32 %v12332_v5, %v1665_v32  ;;  %v9188_v36 = vadd.f32 %v9095_v30, %v2367_v3  ;;  %v9200_v32 = vpop.permute.xlu2 %1557  ;;  %v2213_v5 = vadd.f32 %v2212_v50, %v2092_v14  ;;  %v4759_v3 = vmul.f32 %v9195_v49, %v9166_v16  ;;  %vm9289_vm12 = vmor %vm4763_vm10, %vm4764_vm9 }
 0x3cc   :  { %2786 = vmatmul.f32.gmra.mxu1 %v12334_v9  ;;  %12336 = vst [vmem:[#allocation86_spill] sm:$0xff] %v9200_v32  ;;  %v12352_v9 = vld [vmem:[#allocation96_spill] sm:$0xff] }
 0x3cd   :  { %v1944_v11 = vadd.f32 %v12335_v60, %v1846_v62  ;;  %v9198_v7 = vpop.f32.mrf.mxu0  ;;  %v4760_v22 = vsub.f32 1.0, %v4759_v3 }
 0x3ce   :  { %2905 = vmatmul.f32.gmra.mxu2 %v12180_v46  ;;  %2990 = vmatmul.f32.gmra.mxu3 %v12167_v25  ;;  %v2301_v30 = vpop.f32.mrf.mxu1  ;;  %v9204_v6 = vpop.f32.mrf.mxu2 }
 0x3cf   :  { %v2050_v35 = vadd.f32 %v8524_v39, %v1944_v11  ;;  %v2563_v27 = vpop.f32.mrf.mxu3  ;;  %v9207_v52 = vpop.permute.xlu1 %525  ;;  %v2302_v62 = vadd.f32 %v2301_v30, %v2213_v5 }
 0x3d0   :  { %12337 = vst [vmem:[#allocation83_spill] sm:$0xff] %v9207_v52  ;;  %v9212_v60 = vadd.f32 %v2563_v27, %v2399_v55  ;;  %v9214_v50 = vpop.permute.xlu0 %1522  ;;  %v12341_v55 = vld [vmem:[#allocation114_spill] sm:$0xff] }
 0x3d1   :  { %12339 = vst [vmem:[#allocation151_spill] sm:$0xff] %v9214_v50  ;;  %v2185_v14 = vadd.f32 %v8875_v44, %v2050_v35  ;;  %v1689_v54 = vadd.f32 %v8539_v12, %v9214_v50  ;;  %v5914_v57 = vmul.f32 -1.442695, %v2302_v62  ;;  %v2391_v39 = vadd.f32 %v2390_v1, %v9214_v50  ;;  %v12343_v44 = vld [vmem:[#allocation58_spill] sm:$0xff]  ;;  %v9229_v12 = vpop.eup %6043  ;;  %v12344_v1 = vld [vmem:[#allocation49_spill] sm:$0xff] }
 0x3d2   :  { %12338 = vst [vmem:[#allocation150_spill] sm:$0xff] %v9212_v60  ;;  %2684 = vmatmul.f32.gmra.mxu0 %v12340_v20  ;;  %v12350_v20 = vld [vmem:[#allocation54_spill] sm:$0xff]  ;;  %v12354_v60 = vld [vmem:[#allocation53_spill] sm:$0xff]  ;;  %vm4944_vm13 = vweird.f32 %v9229_v12 }
 0x3d3   :  { %v2274_v11 = vadd.f32 %v8903_v2, %v2185_v14  ;;  %v1858_v52 = vadd.f32 %v8568_v21, %v1689_v54  ;;  %6045 = vpow2.f32 %v5914_v57  ;;  %v9224_v5 = vadd.f32 %v2559_v28, %v2391_v39  ;;  %v12345_v54 = vld [vmem:[#allocation9_spill] sm:$0xff]  ;;  %v12348_v39 = vld [vmem:[#allocation100_spill] sm:$0xff]  ;;  %vm9363_vm15 = vmor %vm4943_vm14, %vm4944_vm13 }
 0x3d4   :  { %2792 = vmatmul.f32.gmra.mxu1 %v12341_v55  ;;  %v4761_v14 = vmul.f32 %v9195_v49, %v4760_v22  ;;  %v9255_v55 = vpop.permute.xlu2 %1572 }
 0x3d5   :  { %12342 = vst [vmem:[#allocation152_spill] sm:$0xff] %v9224_v5  ;;  %v5886_v30 = vmul.f32 -1.442695, %v2274_v11  ;;  %v1959_v35 = vadd.f32 %v12343_v44, %v1858_v52  ;;  %v9227_v27 = vpop.f32.mrf.mxu0  ;;  %v12347_v52 = vld [vmem:[#allocation63_spill] sm:$0xff] }
 0x3d6   :  { %2909 = vmatmul.f32.gmra.mxu2 %v12344_v1  ;;  %2994 = vmatmul.f32.gmra.mxu3 %v12180_v46  ;;  %v9233_v21 = vpop.f32.mrf.mxu1  ;;  %v2414_v2 = vpop.f32.mrf.mxu2  ;;  %v1745_v62 = vadd.f32 %v12347_v52, %v9200_v32  ;;  %12351 = vst [vmem:[#allocation63_spill] sm:$0xff] %v9255_v55  ;;  %v4762_v45 = vadd.f32 %v9195_v49, %v4761_v14  ;;  %v12375_v46 = vld [vmem:[#allocation75_spill] sm:$0xff] }
 0x3d7   :  { %6047 = vpow2.f32 %v5886_v30  ;;  %v2068_v57 = vadd.f32 %v12345_v54, %v1959_v35  ;;  %v9236_v3 = vpop.f32.mrf.mxu3  ;;  %v9238_v28 = vpop.permute.xlu1 %1517  ;;  %v4767_v30 = vand.u32 2147483647, %v9166_v16  ;;  %v4939_v35 = vmul.f32 %v9229_v12, %v9190_v61 }
 0x3d8   :  { %12346 = vst [vmem:[#allocation58_spill] sm:$0xff] %v9238_v28  ;;  %v1681_v11 = vadd.f32 %v12348_v39, %v9238_v28  ;;  %v9245_v44 = vpop.permute.xlu0 %1537  ;;  %v2383_v50 = vadd.f32 %v9127_v58, %v9238_v28  ;;  %v4769_v39 = vand.u32 2147483648, %v9166_v16 }
 0x3d9   :  { %12349 = vst [vmem:[#allocation9_spill] sm:$0xff] %v9245_v44  ;;  %v2197_v54 = vadd.f32 %v9033_v48, %v2068_v57  ;;  %v1713_v52 = vadd.f32 %v12350_v20, %v9245_v44  ;;  %v6046_v22 = vpop.eup %6045  ;;  %v12355_v48 = vld [vmem:[#allocation120_spill] sm:$0xff]  ;;  %v12356_v57 = vld [vmem:[#allocation85_spill] sm:$0xff]  ;;  %vm9275_vm11 = vcmp.eq.f32.partialorder %v4767_v30, 8.507059e+37  ;;  %v4949_v30 = vand.u32 2147483648, %v9190_v61 }
 0x3da   :  { %v1854_v41 = vadd.f32 %v12352_v9, %v1681_v11  ;;  %v9260_v63 = vadd.f32 %v9156_v38, %v2383_v50  ;;  %v9262_v58 = vadd.f32 1.0, %v6046_v22  ;;  %2689 = vmatmul.f32.gmra.mxu0 %v12355_v48  ;;  %v1886_v20 = vadd.f32 %v12356_v57, %v1745_v62  ;;  %v12358_v9 = vld [vmem:[#allocation118_spill] sm:$0xff]  ;;  %v12359_v38 = vld [vmem:[#allocation69_spill] sm:$0xff]  ;;  %v12364_v57 = vld [vmem:[#allocation111_spill] sm:$0xff] }
 0x3db   :  { %v2286_v28 = vadd.f32 %v9092_v26, %v2197_v54  ;;  %v1870_v5 = vadd.f32 %v12354_v60, %v1713_v52  ;;  %v1769_v50 = vadd.f32 %v12359_v38, %v9255_v55  ;;  %v4940_v60 = vsub.f32 1.0, %v4939_v35  ;;  %v12362_v52 = vld [vmem:[#allocation46_spill] sm:$0xff] }
 0x3dc   :  { %12353 = vst [vmem:[#allocation100_spill] sm:$0xff] %v9260_v63  ;;  %v1954_v4 = vadd.f32 %v12357_v19, %v1854_v41  ;;  %2798 = vmatmul.f32.gmra.mxu1 %v12358_v9  ;;  %v12363_v19 = vld [vmem:[#allocation66_spill] sm:$0xff]  ;;  %v4770_v35 = vor.u32 1.1754944e-38, %v4769_v39  ;;  %6049 = vrcp.f32 %v9262_v58  ;;  %v4947_v48 = vand.u32 2147483647, %v9190_v61  ;;  %v12370_v39 = vld [vmem:[#allocation57_spill] sm:$0xff] }
 0x3dd   :  { %v6048_v11 = vpop.eup %6047  ;;  %v2224_v62 = vpop.f32.mrf.mxu0  ;;  %v5898_v14 = vmul.f32 -1.442695, %v2286_v28  ;;  %v1974_v41 = vadd.f32 %v12363_v19, %v1870_v5  ;;  %v12367_v28 = vld [vmem:[#allocation81_spill] sm:$0xff]  ;;  %v2415_v5 = vadd.f32 %v2414_v2, %v9245_v44  ;;  %v4766_v19 = vsel %vm9289_vm12, %v9195_v49, %v4762_v45  ;;  %v12371_v63 = vld [vmem:[#allocation26_spill] sm:$0xff]  ;;  %v12395_v61 = vld [vmem:[#allocation128_spill] sm:$0xff] }
 0x3de   :  { %v9279_v54 = vadd.f32 1.0, %v6048_v11  ;;  %v2062_v22 = vadd.f32 %v12362_v52, %v1954_v4  ;;  %2913 = vmatmul.f32.gmra.mxu2 %v12364_v57  ;;  %2998 = vmatmul.f32.gmra.mxu3 %v12344_v1  ;;  %v9285_v38 = vpop.f32.mrf.mxu1  ;;  %v2422_v16 = vpop.f32.mrf.mxu2  ;;  %v1994_v4 = vadd.f32 %v12367_v28, %v1886_v20  ;;  %v1898_v1 = vadd.f32 %v12370_v39, %v1769_v50  ;;  %v12372_v28 = vld [vmem:[#allocation56_spill] sm:$0xff]  ;;  %v12374_v45 = vld [vmem:[#allocation41_spill] sm:$0xff] }
 0x3df   :  { %v2571_v11 = vpop.f32.mrf.mxu3  ;;  %v9296_v52 = vpop.permute.xlu1 %1532  ;;  %v2086_v2 = vadd.f32 %v12372_v28, %v1974_v41  ;;  %v4941_v40 = vmul.f32 %v9229_v12, %v4940_v60  ;;  %v4771_v60 = vsel %vm9275_vm11, %v4770_v35, %v4766_v19  ;;  %v12380_v39 = vld [vmem:[#allocation80_spill] sm:$0xff]  ;;  %v12384_v35 = vld [vmem:[#allocation71_spill] sm:$0xff]  ;;  %vm9367_vm0 = vcmp.eq.f32.partialorder %v4947_v48, 8.507059e+37 }
 0x3e0   :  { %12368 = vst [vmem:[#allocation54_spill] sm:$0xff] %v9296_v52  ;;  %6051 = vrcp.f32 %v9279_v54  ;;  %v9303_v9 = vpop.permute.xlu0 %1552  ;;  %v2193_v20 = vadd.f32 %v12371_v63, %v2062_v22  ;;  %v9308_v44 = vadd.f32 %v2571_v11, %v2415_v5  ;;  %v1705_v49 = vadd.f32 %v12374_v45, %v9296_v52  ;;  %v12378_v22 = vld [vmem:[#allocation124_spill] sm:$0xff]  ;;  %v12381_v45 = vld [vmem:[#allocation122_spill] sm:$0xff] }
 0x3e1   :  { %12369 = vst [vmem:[#allocation96_spill] sm:$0xff] %v9303_v9  ;;  %6053 = vpow2.f32 %v5898_v14  ;;  %v1737_v34 = vadd.f32 %v12375_v46, %v9303_v9  ;;  %v2209_v50 = vadd.f32 %v9147_v59, %v2086_v2  ;;  %v12377_v14 = vld [vmem:[#allocation95_spill] sm:$0xff]  ;;  %v2407_v41 = vadd.f32 %v9204_v6, %v9296_v52  ;;  %v12379_v5 = vld [vmem:[#allocation52_spill] sm:$0xff]  ;;  %v12382_v46 = vld [vmem:[#allocation14_spill] sm:$0xff] }
 0x3e2   :  { %12373 = vst [vmem:[#allocation53_spill] sm:$0xff] %v9308_v44  ;;  %v2282_v25 = vadd.f32 %v12376_v10, %v2193_v20  ;;  %v2110_v63 = vadd.f32 %v12377_v14, %v1994_v4  ;;  %2694 = vmatmul.f32.gmra.mxu0 %v12378_v22  ;;  %v1866_v11 = vadd.f32 %v12379_v5, %v1705_v49  ;;  %v9328_v20 = vpop.eup %6049  ;;  %v12385_v19 = vld [vmem:[#allocation40_spill] sm:$0xff]  ;;  %vm4703_vm2 = vweird.f32 %v9279_v54 }
 0x3e3   :  { %v1882_v28 = vadd.f32 %v12380_v39, %v1737_v34  ;;  %v2009_v10 = vadd.f32 %v12382_v46, %v1898_v1  ;;  %v2298_v4 = vadd.f32 %v9173_v56, %v2209_v50  ;;  %v2423_v2 = vadd.f32 %v2422_v16, %v9149_v43 }
 0x3e4   :  { %2804 = vmatmul.f32.gmra.mxu1 %v12381_v45  ;;  %v5894_v59 = vmul.f32 -1.442695, %v2282_v25  ;;  %v9335_v6 = vadd.f32 %v9236_v3, %v2407_v41  ;;  %v4942_v34 = vadd.f32 %v9229_v12, %v4941_v40  ;;  %v1969_v1 = vadd.f32 %v12384_v35, %v1866_v11  ;;  %v12386_v25 = vld [vmem:[#allocation115_spill] sm:$0xff]  ;;  %v12388_v35 = vld [vmem:[#allocation78_spill] sm:$0xff] }
 0x3e5   :  { %v9332_v14 = vpop.f32.mrf.mxu0  ;;  %v1989_v49 = vadd.f32 %v12385_v19, %v1882_v28  ;;  %v5910_v41 = vmul.f32 -1.442695, %v2298_v4  ;;  %v2225_v40 = vadd.f32 %v2224_v62, %v2110_v63  ;;  %v5119_v11 = vmul.f32 %v9328_v20, %v9262_v58  ;;  %v12387_v28 = vld [vmem:[#allocation48_spill] sm:$0xff] }
 0x3e6   :  { %12383 = vst [vmem:[#allocation85_spill] sm:$0xff] %v9335_v6  ;;  %v9337_v26 = vpop.eup %6051  ;;  %2917 = vmatmul.f32.gmra.mxu2 %v12386_v25  ;;  %3002 = vmatmul.f32.gmra.mxu3 %v12364_v57  ;;  %v2313_v56 = vpop.f32.mrf.mxu1  ;;  %6055 = vpow2.f32 %v5894_v59  ;;  %v2080_v46 = vadd.f32 %v12387_v28, %v1969_v1  ;;  %v5662_v43 = vmul.f32 2.0, %v4771_v60  ;;  %v4946_v1 = vsel %vm9363_vm15, %v9229_v12, %v4942_v34  ;;  %v12399_v34 = vld [vmem:[#allocation119_spill] sm:$0xff] }
 0x3e7   :  { %v9345_v16 = vpop.f32.mrf.mxu2  ;;  %v6054_v50 = vpop.eup %6053  ;;  %v4699_v3 = vmul.f32 %v9337_v26, %v9279_v54  ;;  %v2104_v19 = vadd.f32 %v12388_v35, %v1989_v49  ;;  %6057 = vpow2.f32 %v5910_v41  ;;  %v2314_v52 = vadd.f32 %v2313_v56, %v2225_v40  ;;  %v12397_v40 = vld [vmem:[#allocation67_spill] sm:$0xff] }
 0x3e8   :  { %v2575_v5 = vpop.f32.mrf.mxu3  ;;  %v9351_v39 = vadd.f32 1.0, %v6054_v50  ;;  %v9359_v62 = vpop.permute.xlu1 %1547  ;;  %v2205_v60 = vadd.f32 %v9122_v29, %v2080_v46  ;;  %v4950_v49 = vor.u32 1.1754944e-38, %v4949_v30  ;;  %v5120_v56 = vsub.f32 1.0, %v5119_v11 }
 0x3e9   :  { %v9355_v22 = vadd.f32 %v2575_v5, %v2423_v2  ;;  %v4700_v59 = vsub.f32 1.0, %v4699_v3  ;;  %12390 = vst [vmem:[#allocation69_spill] sm:$0xff] %v9359_v62  ;;  %v2221_v2 = vadd.f32 %v9227_v27, %v2104_v19  ;;  %v5926_v50 = vmul.f32 -1.442695, %v2314_v52  ;;  %v12396_v3 = vld [vmem:[#allocation126_spill] sm:$0xff]  ;;  %v12398_v27 = vld [vmem:[#allocation16_spill] sm:$0xff] }
 0x3ea   :  { %6059 = vrcp.f32 %v9351_v39  ;;  %2699 = vmatmul.f32.gmra.mxu0 %v12395_v61  ;;  %v2294_v48 = vadd.f32 %v9154_v17, %v2205_v60  ;;  %v1729_v5 = vadd.f32 %v12397_v40, %v9359_v62  ;;  %v9384_v28 = vadd.f32 %v12398_v27, %v2009_v10  ;;  %v12404_v61 = vld [vmem:[#allocation130_spill] sm:$0xff] }
 0x3eb   :  { %12389 = vst [vmem:[#allocation47_spill] sm:$0xff] %v9355_v22  ;;  %v9386_v46 = vadd.f32 -1.0, %v5662_v43  ;;  %v4701_v12 = vmul.f32 %v9337_v26, %v4700_v59  ;;  %v2310_v52 = vadd.f32 %v9285_v38, %v2221_v2  ;;  %6061 = vpow2.f32 %v5926_v50  ;;  %v9404_v38 = vpop.permute.xlu0 %1567  ;;  %v12408_v22 = vld [vmem:[#allocation101_spill] sm:$0xff] }
 0x3ec   :  { %2810 = vmatmul.f32.gmra.mxu1 %v12396_v3  ;;  %v6056_v41 = vpop.eup %6055  ;;  %v9400_v43 = vsel %vm9367_vm0, %v4950_v49, %v4946_v1  ;;  %v4709_v10 = vand.u32 2147483648, %v9279_v54  ;;  %v5906_v59 = vmul.f32 -1.442695, %v2294_v48  ;;  %12400 = vst [vmem:[#allocation46_spill] sm:$0xff] %v9404_v38  ;;  %v5121_v2 = vmul.f32 %v9328_v20, %v5120_v56  ;;  %v12402_v56 = vld [vmem:[#allocation39_spill] sm:$0xff] }
 0x3ed   :  { %v9381_v29 = vpop.f32.mrf.mxu0  ;;  %v9389_v30 = vadd.f32 1.0, %v6056_v41  ;;  %v6058_v35 = vpop.eup %6057  ;;  %v5922_v4 = vmul.f32 -1.442695, %v2310_v52  ;;  %v12401_v41 = vld [vmem:[#allocation76_spill] sm:$0xff]  ;;  %v9419_v40 = vadd.f32 %v9337_v26, %v4701_v12  ;;  %vm4704_vm1 = vweird.f32 %v9337_v26 }
 0x3ee   :  { %2921 = vmatmul.f32.gmra.mxu2 %v12399_v34  ;;  %3006 = vmatmul.f32.gmra.mxu3 %v12386_v25  ;;  %v9394_v17 = vpop.f32.mrf.mxu1  ;;  %v9412_v50 = vadd.f32 1.0, %v6058_v35  ;;  %v1878_v48 = vadd.f32 %v12401_v41, %v1729_v5  ;;  %v1761_v27 = vadd.f32 %v12402_v56, %v9404_v38  ;;  %v9427_v35 = vor.u32 1.1754944e-38, %v4709_v10  ;;  %vm9436_vm3 = vmor %vm4703_vm2, %vm4704_vm1  ;;  %v12409_v25 = vld [vmem:[#allocation123_spill] sm:$0xff]  ;;  %v5690_v56 = vld [vmem:[%s11461_s2] sm:$0xff] }
 0x3ef   :  { %v9396_v11 = vpop.f32.mrf.mxu2  ;;  %6063 = vrcp.f32 %v9389_v30  ;;  %v9431_v12 = vadd.f32 %v9328_v20, %v5121_v2  ;;  %v4827_v1 = vand.u32 2147483647, %v9389_v30  ;;  %v4829_v19 = vand.u32 2147483648, %v9389_v30 }
 0x3f0   :  { %v9406_v63 = vpop.f32.mrf.mxu3  ;;  %v9408_v60 = vpop.eup %6059  ;;  %6065 = vpow2.f32 %v5906_v59  ;;  %v12403_v59 = vld [vmem:[#allocation132_spill] sm:$0xff]  ;;  %v5069_v52 = vand.u32 2147483648, %v9412_v50  ;;  %v1894_v44 = vadd.f32 %v12408_v22, %v1761_v27  ;;  %vm5063_vm4 = vweird.f32 %v9412_v50 }
 0x3f1   :  { %v4879_v49 = vmul.f32 %v9408_v60, %v9351_v39  ;;  %6067 = vrcp.f32 %v9412_v50  ;;  %v6062_v5 = vpop.eup %6061  ;;  %vm4823_vm5 = vweird.f32 %v9389_v30  ;;  %vm9472_vm6 = vcmp.eq.f32.partialorder %v4827_v1, 8.507059e+37 }
 0x3f2   :  { %6069 = vpow2.f32 %v5922_v4  ;;  %2704 = vmatmul.f32.gmra.mxu0 %v12403_v59  ;;  %v9440_v10 = vadd.f32 1.0, %v6062_v5  ;;  %v5067_v4 = vand.u32 2147483647, %v9412_v50  ;;  %v12407_v59 = vld [vmem:[#allocation60_spill] sm:$0xff]  ;;  %v5070_v8 = vor.u32 1.1754944e-38, %v5069_v52 }
 0x3f3   :  { %v4880_v41 = vsub.f32 1.0, %v4879_v49  ;;  %v1984_v2 = vadd.f32 %v12407_v59, %v1878_v48  ;;  %v12416_v52 = vld [vmem:[#allocation136_spill] sm:$0xff]  ;;  %vm5124_vm2 = vweird.f32 %v9328_v20 }
 0x3f4   :  { %2816 = vmatmul.f32.gmra.mxu1 %v12404_v61  ;;  %6071 = vrcp.f32 %v9440_v10  ;;  %vm9477_vm7 = vcmp.eq.f32.partialorder %v5067_v4, 8.507059e+37  ;;  %v5309_v1 = vand.u32 2147483648, %v9440_v10  ;;  %v9491_v4 = vadd.f32 %v9396_v11, %v9303_v9  ;;  %v9505_v11 = vpop.permute.xlu1 %1562 }
 0x3f5   :  { %v9445_v3 = vpop.f32.mrf.mxu0  ;;  %v9447_v49 = vpop.eup %6063  ;;  %v4881_v27 = vmul.f32 %v9408_v60, %v4880_v41  ;;  %v2098_v42 = vadd.f32 %v12414_v37, %v1984_v2  ;;  %v12415_v41 = vld [vmem:[#allocation55_spill] sm:$0xff]  ;;  %vm5303_vm9 = vweird.f32 %v9440_v10  ;;  %12418 = vst [vmem:[#allocation66_spill] sm:$0xff] %v9505_v11 }
 0x3f6   :  { %2925 = vmatmul.f32.gmra.mxu2 %v12409_v25  ;;  %3010 = vmatmul.f32.gmra.mxu3 %v12399_v34  ;;  %v9458_v48 = vpop.f32.mrf.mxu1  ;;  %v6066_v6 = vpop.eup %6065  ;;  %v4819_v57 = vmul.f32 %v9447_v49, %v9389_v30  ;;  %v4830_v34 = vor.u32 1.1754944e-38, %v4829_v19  ;;  %v2004_v53 = vadd.f32 %v12415_v41, %v1894_v44  ;;  %vm4824_vm8 = vweird.f32 %v9447_v49  ;;  %v5698_v30 = vld [vmem:[%s11461_s2 + $0x40] sm:$0xff] }
 0x3f7   :  { %v9460_v59 = vpop.f32.mrf.mxu2  ;;  %v6068_v22 = vpop.eup %6067  ;;  %v9470_v5 = vadd.f32 1.0, %v6066_v6  ;;  %v5307_v6 = vand.u32 2147483647, %v9440_v10  ;;  %v9495_v37 = vadd.f32 %v9408_v60, %v4881_v27  ;;  %vm4825_vm13 = vmor %vm4823_vm5, %vm4824_vm8  ;;  %vm4884_vm5 = vweird.f32 %v9408_v60 }
 0x3f8   :  { %v9467_v45 = vpop.f32.mrf.mxu3  ;;  %v6070_v15 = vpop.eup %6069  ;;  %v4820_v51 = vsub.f32 1.0, %v4819_v57  ;;  %v5059_v18 = vmul.f32 %v6068_v22, %v9412_v50  ;;  %vm5064_vm10 = vweird.f32 %v6068_v22 }
 0x3f9   :  { %6073 = vrcp.f32 %v9470_v5  ;;  %v5009_v57 = vand.u32 2147483648, %v9470_v5  ;;  %v9487_v47 = vadd.f32 1.0, %v6070_v15  ;;  %v5007_v41 = vand.u32 2147483647, %v9470_v5  ;;  %vm5065_vm14 = vmor %vm5063_vm4, %vm5064_vm10 }
 0x3fa   :  { %v5060_v19 = vsub.f32 1.0, %v5059_v18  ;;  %2709 = vmatmul.f32.gmra.mxu0 %v12416_v52  ;;  %v4821_v2 = vmul.f32 %v9447_v49, %v4820_v51  ;;  %v12417_v18 = vld [vmem:[#allocation134_spill] sm:$0xff]  ;;  %v9501_v44 = vpop.eup %6071  ;;  %vm9512_vm11 = vcmp.eq.f32.partialorder %v5307_v6, 8.507059e+37  ;;  %vm5003_vm12 = vweird.f32 %v9470_v5 }
 0x3fb   :  { %6075 = vrcp.f32 %v9487_v47  ;;  %v5299_v9 = vmul.f32 %v9501_v44, %v9440_v10  ;;  %v9523_v23 = vor.u32 1.1754944e-38, %v5009_v57  ;;  %vm5304_vm15 = vweird.f32 %v9501_v44 }
 0x3fc   :  { %2822 = vmatmul.f32.gmra.mxu1 %v12417_v18  ;;  %v5061_v15 = vmul.f32 %v6068_v22, %v5060_v19  ;;  %v4822_v51 = vadd.f32 %v9447_v49, %v4821_v2  ;;  %v5310_v18 = vor.u32 1.1754944e-38, %v5309_v1  ;;  %v12421_v19 = vld [vmem:[#allocation127_spill] sm:$0xff]  ;;  %v2217_v1 = vadd.f32 %v9198_v7, %v2098_v42  ;;  %vm9580_vm8 = vmor %vm5303_vm9, %vm5304_vm15 }
 0x3fd   :  { %v9507_v27 = vpop.f32.mrf.mxu0  ;;  %v5300_v57 = vsub.f32 1.0, %v5299_v9  ;;  %vm9549_vm0 = vcmp.eq.f32.partialorder %v5007_v41, 8.507059e+37  ;;  %vm5243_vm1 = vweird.f32 %v9487_v47  ;;  %v12427_v41 = vld [vmem:[#allocation140_spill] sm:$0xff]  ;;  %vm4883_vm10 = vweird.f32 %v9351_v39 }
 0x3fe   :  { %2929 = vmatmul.f32.gmra.mxu2 %v12421_v19  ;;  %3014 = vmatmul.f32.gmra.mxu3 %v12409_v25  ;;  %v9518_v33 = vpop.f32.mrf.mxu1  ;;  %v5062_v6 = vadd.f32 %v6068_v22, %v5061_v15  ;;  %v4826_v55 = vsel %vm4825_vm13, %v9447_v49, %v4822_v51  ;;  %v12422_v15 = vld [vmem:[#allocation42_spill] sm:$0xff]  ;;  %v2306_v51 = vadd.f32 %v9233_v21, %v2217_v1 }
 0x3ff   :  { %v9520_v0 = vpop.f32.mrf.mxu2  ;;  %v9533_v25 = vpop.eup %6073  ;;  %v2122_v2 = vadd.f32 %v12422_v15, %v2004_v53  ;;  %v4831_v7 = vsel %vm9472_vm6, %v4830_v34, %v4826_v55  ;;  %v5301_v53 = vmul.f32 %v9501_v44, %v5300_v57  ;;  %v2431_v34 = vadd.f32 %v9345_v16, %v9359_v62 }
 0x400   :  { %v9531_v31 = vpop.f32.mrf.mxu3  ;;  %v4999_v42 = vmul.f32 %v9533_v25, %v9470_v5  ;;  %v5066_v24 = vsel %vm5065_vm14, %v6068_v22, %v5062_v6  ;;  %v5666_v50 = vmul.f32 2.0, %v4831_v7  ;;  %vm5004_vm4 = vweird.f32 %v9533_v25  ;;  %v9564_v22 = vpop.permute.xlu0 %1582  ;;  %v12433_v6 = vld [vmem:[#allocation65_spill] sm:$0xff] }
 0x401   :  { %v5071_v9 = vsel %vm9477_vm7, %v5070_v8, %v5066_v24  ;;  %v9558_v15 = vpop.eup %6075  ;;  %12425 = vst [vmem:[#allocation81_spill] sm:$0xff] %v9564_v22  ;;  %v5302_v24 = vadd.f32 %v9501_v44, %v5301_v53  ;;  %v2233_v21 = vadd.f32 %v9381_v29, %v2122_v2  ;;  %vm5123_vm7 = vweird.f32 %v9262_v58  ;;  %v12430_v29 = vld [vmem:[#allocation38_spill] sm:$0xff]  ;;  %vm9611_vm9 = vmor %vm5003_vm12, %vm5004_vm4 }
 0x402   :  { %v5000_v55 = vsub.f32 1.0, %v4999_v42  ;;  %v5714_v61 = vmul.f32 %v5698_v30, %v5071_v9  ;;  %2714 = vmatmul.f32.gmra.mxu0 %v12426_v13  ;;  %v5239_v8 = vmul.f32 %v9558_v15, %v9487_v47  ;;  %vm5244_vm6 = vweird.f32 %v9558_v15  ;;  %v12431_v9 = vld [vmem:[#allocation36_spill] sm:$0xff]  ;;  %vm9681_vm15 = vmor %vm5123_vm7, %vm5124_vm2 }
 0x403   :  { %v5918_v1 = vmul.f32 -1.442695, %v2306_v51  ;;  %v9585_v57 = vadd.f32 %v9406_v63, %v2431_v34  ;;  %v1753_v2 = vadd.f32 %v12430_v29, %v9505_v11  ;;  %v5306_v10 = vsel %vm9580_vm8, %v9501_v44, %v5302_v24  ;;  %v12432_v51 = vld [vmem:[#allocation131_spill] sm:$0xff]  ;;  %vm9648_vm12 = vmor %vm5243_vm1, %vm5244_vm6 }
 0x404   :  { %2828 = vmatmul.f32.gmra.mxu1 %v12427_v41  ;;  %v5001_v16 = vmul.f32 %v9533_v25, %v5000_v55  ;;  %v5240_v42 = vsub.f32 1.0, %v5239_v8  ;;  %v5958_v7 = vadd.f32 -1.0, %v5666_v50  ;;  %v1785_v53 = vadd.f32 %v12431_v9, %v9564_v22 }
 0x405   :  { %v9589_v30 = vpop.f32.mrf.mxu0  ;;  %v5311_v8 = vsel %vm9512_vm11, %v5310_v18, %v5306_v10  ;;  %6077 = vpow2.f32 %v5918_v1  ;;  %v1890_v44 = vadd.f32 %v12433_v6, %v1753_v2  ;;  %v2322_v52 = vadd.f32 %v9458_v48, %v2233_v21  ;;  %v9619_v18 = vpop.permute.xlu1 %1577  ;;  %v12440_v10 = vld [vmem:[#allocation73_spill] sm:$0xff] }
 0x406   :  { %2933 = vmatmul.f32.gmra.mxu2 %v12432_v51  ;;  %3018 = vmatmul.f32.gmra.mxu3 %v12421_v19  ;;  %v9599_v63 = vpop.f32.mrf.mxu1  ;;  %v5002_v34 = vadd.f32 %v9533_v25, %v5001_v16  ;;  %v5241_v29 = vmul.f32 %v9558_v15, %v5240_v42  ;;  %v5730_v9 = vmul.f32 %v5958_v7, %v5311_v8  ;;  %v12437_v1 = vand.u32 2147483647, %v9279_v54  ;;  %v12441_v7 = vld [vmem:[#allocation25_spill] sm:$0xff] }
 0x407   :  { %v9601_v55 = vpop.f32.mrf.mxu2  ;;  %v2237_v16 = vadd.f32 %v9445_v3, %v9384_v28  ;;  %12436 = vst [vmem:[#allocation57_spill] sm:$0xff] %v9619_v18  ;;  %v1999_v42 = vadd.f32 %v12440_v10, %v1890_v44  ;;  %v1906_v8 = vadd.f32 %v12441_v7, %v1785_v53  ;;  %v2447_v3 = vadd.f32 %v9460_v59, %v9200_v32  ;;  %v5694_v28 = vld [vmem:[%s11461_s2 + $0x20] sm:$0xff]  ;;  %v12444_v59 = vld [vmem:[#allocation59_spill] sm:$0xff]  ;;  %v12503_v32 = vld [vmem:[#allocation93_spill] sm:$0xff] }
 0x408   :  { %v2591_v50 = vpop.f32.mrf.mxu3  ;;  %vm9623_vm11 = vcmp.eq.f32.partialorder %v12437_v1, 8.507059e+37  ;;  %v5006_v5 = vsel %vm9611_vm9, %v9533_v25, %v5002_v34  ;;  %v5242_v54 = vadd.f32 %v9558_v15, %v5241_v29  ;;  %v9638_v48 = vadd.f32 %v5730_v9, %v5714_v61  ;;  %v12445_v34 = vld [vmem:[#allocation44_spill] sm:$0xff] }
 0x409   :  { %v5934_v21 = vmul.f32 -1.442695, %v2322_v52  ;;  %v9642_v6 = vadd.f32 %v9467_v45, %v9491_v4  ;;  %v2116_v53 = vadd.f32 %v12444_v59, %v1999_v42  ;;  %v1777_v44 = vadd.f32 %v12445_v34, %v9619_v18  ;;  %v12446_v4 = vld [vmem:[#allocation82_spill] sm:$0xff]  ;;  %v12457_v59 = vld [vmem:[#allocation135_spill] sm:$0xff] }
 0x40a   :  { %v2326_v61 = vadd.f32 %v9518_v33, %v2237_v16  ;;  %v5011_v45 = vsel %vm9549_vm0, %v9523_v23, %v5006_v5  ;;  %2719 = vmatmul.f32.gmra.mxu0 %v12446_v4  ;;  %v5246_v24 = vsel %vm9648_vm12, %v9558_v15, %v5242_v54  ;;  %v12447_v29 = vand.u32 2147483647, %v9487_v47  ;;  %5842 = vst [vmem:[#allocation4 + $0x40] sm:$0xff] %v9638_v48  ;;  %v12449_v33 = vld [vmem:[#allocation143_spill] sm:$0xff]  ;;  %v12453_v5 = vld [vmem:[#allocation21_spill] sm:$0xff]  ;;  %vm9697_vm0 = vmor %vm4883_vm10, %vm4884_vm5 }
 0x40b   :  { %v12448_v9 = vand.u32 2147483648, %v9487_v47  ;;  %v5710_v1 = vmul.f32 %v5694_v28, %v5011_v45  ;;  %v6078_v16 = vpop.eup %6077  ;;  %v12450_v23 = vand.u32 2147483647, %v9262_v58  ;;  %v2229_v15 = vadd.f32 %v9332_v14, %v2116_v53  ;;  %v12456_v14 = vld [vmem:[#allocation22_spill] sm:$0xff] }
 0x40c   :  { %vm5248_vm13 = vcmp.eq.f32.partialorder %v12447_v29, 8.507059e+37  ;;  %2834 = vmatmul.f32.gmra.mxu1 %v12449_v33  ;;  %6079 = vpow2.f32 %v5934_v21  ;;  %v1902_v10 = vadd.f32 %v12453_v5, %v1777_v44  ;;  %v5938_v42 = vmul.f32 -1.442695, %v2326_v61 }
 0x40d   :  { %v5250_v52 = vor.u32 1.1754944e-38, %v12448_v9  ;;  %vm9671_vm14 = vcmp.eq.f32.partialorder %v12450_v23, 8.507059e+37  ;;  %v2645_v47 = vpop.f32.mrf.mxu0  ;;  %v9685_v28 = vadd.f32 1.0, %v6078_v16  ;;  %v9688_v25 = vadd.f32 %v9531_v31, %v2447_v3  ;;  %v12460_v31 = vld [vmem:[#allocation28_spill] sm:$0xff]  ;;  %v12462_v23 = vld [vmem:[#allocation33_spill] sm:$0xff] }
 0x40e   :  { %v2019_v21 = vadd.f32 %v12456_v14, %v1906_v8  ;;  %2937 = vmatmul.f32.gmra.mxu2 %v12457_v59  ;;  %3022 = vmatmul.f32.gmra.mxu3 %v12432_v51  ;;  %v2333_v53 = vpop.f32.mrf.mxu1  ;;  %v2318_v61 = vadd.f32 %v9394_v17, %v2229_v15  ;;  %v2014_v3 = vadd.f32 %v12460_v31, %v1902_v10  ;;  %6081 = vpow2.f32 %v5938_v42 }
 0x40f   :  { %v5251_v54 = vsel %vm5248_vm13, %v5250_v52, %v5246_v24  ;;  %v2470_v34 = vpop.f32.mrf.mxu2  ;;  %v5126_v24 = vsel %vm9681_vm15, %v9328_v20, %v9431_v12  ;;  %v4886_v29 = vsel %vm9697_vm0, %v9408_v60, %v9495_v37  ;;  %6083 = vrcp.f32 %v9685_v28  ;;  %v12461_v52 = vld [vmem:[#allocation12_spill] sm:$0xff] }
 0x410   :  { %v5726_v8 = vmul.f32 %v9386_v46, %v5251_v54  ;;  %v2595_v45 = vpop.f32.mrf.mxu3  ;;  %v2455_v17 = vadd.f32 %v9520_v0, %v9505_v11  ;;  %v5930_v9 = vmul.f32 -1.442695, %v2318_v61  ;;  %v2134_v16 = vadd.f32 %v12461_v52, %v2014_v3  ;;  %v12468_v54 = vld [vmem:[#allocation74_spill] sm:$0xff] }
 0x411   :  { %v2140_v15 = vadd.f32 %v12462_v23, %v2019_v21  ;;  %v12463_v20 = vsel %vm9436_vm3, %v9337_v26, %v9419_v40  ;;  %v12464_v12 = vand.u32 2147483648, %v9351_v39  ;;  %v2463_v0 = vadd.f32 %v9601_v55, %v9404_v38 }
 0x412   :  { %v9716_v46 = vadd.f32 %v5726_v8, %v5710_v1  ;;  %v4711_v60 = vsel %vm9623_vm11, %v9427_v35, %v12463_v20  ;;  %v9731_v5 = vadd.f32 %v2591_v50, %v2455_v17  ;;  %v6080_v1 = vpop.eup %6079  ;;  %v12465_v10 = vand.u32 2147483647, %v9351_v39  ;;  %v12466_v35 = vld [vmem:[#allocation99_spill] sm:$0xff]  ;;  %v12469_v39 = vld [vmem:[#allocation13_spill] sm:$0xff]  ;;  %v5702_v8 = vld [vmem:[%s11461_s2 + $0x60] sm:$0xff] }
 0x413   :  { %v4890_v37 = vor.u32 1.1754944e-38, %v12464_v12  ;;  %6085 = vpow2.f32 %v5930_v9  ;;  %v2241_v26 = vadd.f32 %v9507_v27, %v2134_v16  ;;  %v2245_v40 = vadd.f32 %v9589_v30, %v2140_v15  ;;  %3067 = vmatmul.f32.vlgmr.msrb.gmra.mxu0 %v12466_v35  ;;  %v12472_v17 = vld [vmem:[#allocation19_spill] sm:$0xff]  ;;  %v12473_v12 = vld [vmem:[#allocation18_spill] sm:$0xff] }
 0x414   :  { %vm4888_vm3 = vcmp.eq.f32.partialorder %v12465_v10, 8.507059e+37  ;;  %5838 = vst [vmem:[#allocation4 + $0x20] sm:$0xff] %v9716_v46  ;;  %v12467_v55 = vand.u32 2147483648, %v9262_v58  ;;  %v9744_v42 = vadd.f32 1.0, %v6080_v1  ;;  %v9746_v7 = vadd.f32 %v2595_v45, %v2463_v0  ;;  %2840 = vmatmul.f32.gmra.mxu1 %v12468_v54  ;;  %4024 = vmatpush.msrb.mxu0 %v12469_v39  ;;  %v6082_v14 = vpop.eup %6081  ;;  %v12471_v45 = vld [vmem:[#allocation141_spill] sm:$0xff]  ;;  %v9792_v10 = vld [vmem:[%s11460_s1 + $0x78] sm:$0xff] }
 0x415   :  { %v4891_v2 = vsel %vm4888_vm3, %v4890_v37, %v4886_v29  ;;  %v5658_v27 = vmul.f32 2.0, %v4711_v60  ;;  %v2330_v21 = vadd.f32 %v9599_v63, %v2241_v26  ;;  %v2334_v44 = vadd.f32 %v2333_v53, %v2245_v40  ;;  %v9752_v61 = vpop.f32.mrf.mxu0  ;;  %v9754_v58 = vpop.eup %6083  ;;  %v12470_v63 = vld [vmem:[#allocation63_spill] sm:$0xff]  ;;  %v12489_v54 = vld [vmem:[#allocation68_spill] sm:$0xff] }
 0x416   :  { %v5130_v50 = vor.u32 1.1754944e-38, %v12467_v55  ;;  %v2646_v30 = vadd.f32 %v2645_v47, %v9188_v36  ;;  %v9757_v31 = vmul.f32 %v5690_v56, %v9400_v43  ;;  %6087 = vrcp.f32 %v9744_v42  ;;  %2941 = vmatmul.f32.gmra.mxu2 %v12471_v45  ;;  %3026 = vmatmul.f32.gmra.mxu3 %v12457_v59  ;;  %v2751_v47 = vpop.f32.mrf.mxu1  ;;  %v12474_v56 = vld [vmem:[#allocation15_spill] sm:$0xff] }
 0x417   :  { %v2471_v53 = vadd.f32 %v2470_v34, %v12470_v63  ;;  %v2478_v36 = vpop.f32.mrf.mxu2  ;;  %v5670_v29 = vmul.f32 2.0, %v4891_v2  ;;  %v5179_v43 = vmul.f32 %v9754_v58, %v9685_v28  ;;  %v9770_v49 = vadd.f32 1.0, %v6082_v14  ;;  %4027 = vmatpush.msrb.mxu0 %v12472_v17  ;;  %v12477_v2 = vld [vmem:[#allocation105_spill] sm:$0xff] }
 0x418   :  { %v5131_v3 = vsel %vm9671_vm14, %v5130_v50, %v5126_v24  ;;  %v5942_v24 = vmul.f32 -1.442695, %v2330_v21  ;;  %v2599_v9 = vpop.f32.mrf.mxu3  ;;  %6089 = vtanh.f32 %v9638_v48  ;;  %v5187_v34 = vand.u32 2147483647, %v9685_v28  ;;  %v12478_v14 = vld [vmem:[#allocation89_spill] sm:$0xff] }
 0x419   :  { %v5189_v52 = vand.u32 2147483648, %v9685_v28  ;;  %v5946_v16 = vmul.f32 -1.442695, %v2334_v44  ;;  %v6086_v23 = vpop.eup %6085  ;;  %v9776_v15 = vmul.f32 %v5702_v8, %v5131_v3  ;;  %v5180_v20 = vsub.f32 1.0, %v5179_v43  ;;  %4030 = vmatpush.msrb.mxu0 %v12473_v12  ;;  %v12479_v3 = vld [vmem:[#allocation20_spill] sm:$0xff] }
 0x41a   :  { %v5950_v60 = vadd.f32 -1.0, %v5658_v27  ;;  %6091 = vrcp.f32 %v9770_v49  ;;  %vm5183_vm1 = vweird.f32 %v9685_v28  ;;  %v9781_v37 = vadd.f32 1.0, %v6086_v23 }
 0x41b   :  { %6093 = vpow2.f32 %v5942_v24  ;;  %v9783_v48 = vadd.f32 %v2599_v9, %v2471_v53  ;;  %v5181_v0 = vmul.f32 %v9754_v58, %v5180_v20  ;;  %vm5184_vm2 = vweird.f32 %v9754_v58  ;;  %4033 = vmatpush.msrb.mxu0 %v12474_v56  ;;  %v12482_v24 = vld [vmem:[#allocation144_spill] sm:$0xff]  ;;  %v9853_v53 = vld [vmem:[%s11460_s1 + $0x38] sm:$0xff] }
 0x41c   :  { %v5429_v1 = vand.u32 2147483648, %v9744_v42  ;;  %6095 = vpow2.f32 %v5946_v16  ;;  %v9794_v26 = vpop.eup %6087  ;;  %vm9796_vm4 = vcmp.eq.f32.partialorder %v5187_v34, 8.507059e+37  ;;  %v5190_v55 = vor.u32 1.1754944e-38, %v5189_v52  ;;  %3075 = vmatmul.f32.gmra.mxu0 %v12477_v2  ;;  %3248 = vmatmul.f32.vlgmr.msrb.gmra.mxu1 %v12478_v14  ;;  %vm9817_vm5 = vmor %vm5183_vm1, %vm5184_vm2  ;;  %v12483_v16 = vld [vmem:[#allocation32_spill] sm:$0xff] }
 0x41d   :  { %6097 = vrcp.f32 %v9781_v37  ;;  %v9801_v50 = vadd.f32 -1.0, %v5670_v29  ;;  %v5182_v27 = vadd.f32 %v9754_v58, %v5181_v0  ;;  %v5419_v21 = vmul.f32 %v9794_v26, %v9744_v42  ;;  %4136 = vmatpush.msrb.mxu1 %v12479_v3  ;;  %v9848_v0 = vld [vmem:[%s11460_s1 + $0x58] sm:$0xff] }
 0x41e   :  { %v5427_v44 = vand.u32 2147483647, %v9744_v42  ;;  %6099 = vtanh.f32 %v9716_v46  ;;  %v9811_v8 = vpop.eup %6089  ;;  %vm5423_vm6 = vweird.f32 %v9744_v42  ;;  %v2479_v29 = vadd.f32 %v2478_v36, %v9619_v18  ;;  %2945 = vmatmul.f32.gmra.mxu2 %v12482_v24  ;;  %3030 = vmatmul.f32.gmra.mxu3 %v12471_v45  ;;  %v9832_v28 = vpop.f32.mrf.mxu0  ;;  %v12506_v42 = vld [vmem:[#allocation29_spill] sm:$0xff] }
 0x41f   :  { %v9823_v43 = vadd.f32 %v2751_v47, %v2646_v30  ;;  %v9828_v46 = vand.u32 4294901760, %v9792_v10  ;;  %v9830_v9 = vpop.f32.mrf.mxu2  ;;  %v5186_v52 = vsel %vm9817_vm5, %v9754_v58, %v5182_v27  ;;  %v5420_v36 = vsub.f32 1.0, %v5419_v21  ;;  %4138 = vmatpush.msrb.mxu1 %v12483_v16  ;;  %v9843_v20 = vpop.f32.mrf.mxu1 }
 0x420   :  { %v9834_v34 = vpop.eup %6091  ;;  %v9839_v30 = vor.u32 1.1754944e-38, %v5429_v1  ;;  %v5487_v47 = vand.u32 2147483647, %v9770_v49  ;;  %v2603_v23 = vpop.f32.mrf.mxu3  ;;  %v5191_v1 = vsel %vm9796_vm4, %v5190_v55, %v5186_v52  ;;  %v5489_v21 = vand.u32 2147483648, %v9770_v49  ;;  %v12487_v52 = vld [vmem:[#allocation17_spill] sm:$0xff] }
 0x421   :  { %v6094_v58 = vpop.eup %6093  ;;  %v5479_v27 = vmul.f32 %v9834_v34, %v9770_v49  ;;  %3757 = vmatpush.msra.mxu2 %v9828_v46  ;;  %v9861_v18 = vadd.f32 %v2603_v23, %v2479_v29  ;;  %v5367_v38 = vand.u32 2147483647, %v9781_v37  ;;  %v5421_v11 = vmul.f32 %v9794_v26, %v5420_v36  ;;  %4140 = vmatpush.msrb.mxu1 %v12487_v52 }
 0x422   :  { %v6096_v63 = vpop.eup %6095  ;;  %vm9865_vm7 = vcmp.eq.f32.partialorder %v5427_v44, 8.507059e+37  ;;  %v5722_v40 = vmul.f32 %v5950_v60, %v5191_v1  ;;  %v9869_v55 = vadd.f32 1.0, %v6094_v58  ;;  %v9877_v29 = vand.u32 4294901760, %v9848_v0  ;;  %v12488_v1 = vld [vmem:[#allocation31_spill] sm:$0xff] }
 0x423   :  { %12484 = vst [vmem:[#allocation26_spill] sm:$0xff] %v9861_v18  ;;  %v9872_v62 = vpop.eup %6097  ;;  %v5480_v2 = vsub.f32 1.0, %v5479_v27  ;;  %v9874_v35 = vadd.f32 1.0, %v6096_v63  ;;  %v9880_v23 = vand.u32 4294901760, %v9853_v53  ;;  %v5422_v60 = vadd.f32 %v9794_v26, %v5421_v11  ;;  %4142 = vmatpush.msrb.mxu1 %v12488_v1 }
 0x424   :  { %v6100_v44 = vpop.eup %6099  ;;  %v5359_v36 = vmul.f32 %v9872_v62, %v9781_v37  ;;  %vm5424_vm8 = vweird.f32 %v9794_v26  ;;  %v5738_v58 = vadd.f32 %v5722_v40, %v9757_v31  ;;  %v5369_v63 = vand.u32 2147483648, %v9781_v37  ;;  %3759 = vmatpush.msra.mxu2 %v9877_v29  ;;  %3083 = vmatmul.f32.gmra.mxu0 %v12489_v54  ;;  %v12492_v31 = vld [vmem:[#allocation64_spill] sm:$0xff] }
 0x425   :  { %v5481_v27 = vmul.f32 %v9834_v34, %v5480_v2  ;;  %vm5484_vm10 = vweird.f32 %v9834_v34  ;;  %6101 = vrcp.f32 %v9869_v55  ;;  %vm5483_vm9 = vweird.f32 %v9770_v49  ;;  %3252 = vmatmul.f32.gmra.mxu1 %v12492_v31  ;;  %v9903_v2 = vld [vmem:[%s11460_s1 + $0x18] sm:$0xff]  ;;  %vm9910_vm13 = vmor %vm5423_vm6, %vm5424_vm8  ;;  %s5869_s1 = sshll.u32 %s11469_s10, 4  ;;  %s6393_s10 = smov 32   ;;  %s5870_s1 = int_to_ptr.hbm [resolvable:$true] %s5869_s1 }
 0x426   :  { %v5360_v4 = vsub.f32 1.0, %v5359_v36  ;;  %6103 = vtanh.f32 %v5738_v58  ;;  %5834 = vst [vmem:[#allocation4] sm:$0xff] %v5738_v58  ;;  %vm9895_vm11 = vcmp.eq.f32.partialorder %v5487_v47, 8.507059e+37  ;;  %vm5363_vm12 = vweird.f32 %v9781_v37  ;;  %3761 = vmatpush.msra.mxu2 %v9880_v23  ;;  %3034 = vmatmul.f32.gmra.mxu3 %v12482_v24  ;;  %vm5485_vm0 = vmor %vm5483_vm9, %vm5484_vm10 }
 0x427   :  { %v5482_v47 = vadd.f32 %v9834_v34, %v5481_v27  ;;  %v5490_v36 = vor.u32 1.1754944e-38, %v5489_v21  ;;  %6105 = vrcp.f32 %v9874_v35  ;;  %v9918_v58 = vpop.f32.mrf.mxu2  ;;  %vm5364_vm14 = vweird.f32 %v9872_v62  ;;  %v12497_v27 = vld [vmem:[#allocation92_spill] sm:$0xff]  ;;  %4144 = vmatpush.msrb.mxu1 %v9828_v46  ;;  %v9947_v49 = vpop.f32.mrf.mxu1 }
 0x428   :  { %v5361_v54 = vmul.f32 %v9872_v62, %v5360_v4  ;;  %vm9922_vm15 = vcmp.eq.f32.partialorder %v5367_v38, 8.507059e+37  ;;  %v5426_v21 = vsel %vm9910_vm13, %v9794_v26, %v5422_v60  ;;  %3346 = vmatmul.f32.vlgmr.msrb.gmra.mxu2 %v12497_v27  ;;  %v9934_v33 = vpop.f32.mrf.mxu3  ;;  %v9936_v4 = vpop.f32.mrf.mxu0  ;;  %v5370_v38 = vor.u32 1.1754944e-38, %v5369_v63  ;;  %vm9961_vm1 = vmor %vm5363_vm12, %vm5364_vm14 }
 0x429   :  { %v5486_v31 = vsel %vm5485_vm0, %v9834_v34, %v5482_v47  ;;  %v9941_v18 = vand.u32 4294901760, %v9903_v2  ;;  %v9945_v26 = vsub.f32 %v9792_v10, %v9828_v46  ;;  %vm5543_vm3 = vweird.f32 %v9869_v55  ;;  %4146 = vmatpush.msrb.mxu1 %v9877_v29  ;;  %v12501_v47 = vld [vmem:[#allocation23_spill] sm:$0xff] }
 0x42a   :  { %v5362_v60 = vadd.f32 %v9872_v62, %v5361_v54  ;;  %v5491_v40 = vsel %vm9895_vm11, %v5490_v36, %v5486_v31  ;;  %v5547_v63 = vand.u32 2147483647, %v9869_v55  ;;  %v5431_v54 = vsel %vm9865_vm7, %v9839_v30, %v5426_v21 }
 0x42b   :  { %v9955_v34 = vpop.eup %6101  ;;  %v5774_v11 = vmul.f32 %v6100_v44, %v5491_v40  ;;  %v5549_v31 = vand.u32 2147483648, %v9869_v55  ;;  %3763 = vmatpush.msra.mxu2 %v9941_v18  ;;  %4036 = vmatpush.msrb.mxu0 %v9945_v26  ;;  %v5609_v30 = vand.u32 2147483648, %v9874_v35  ;;  %v12500_v44 = vand.u32 4294901760, %v12469_v39 }
 0x42c   :  { %v6104_v36 = vpop.eup %6103  ;;  %v5366_v37 = vsel %vm9961_vm1, %v9872_v62, %v5362_v60  ;;  %v5539_v27 = vmul.f32 %v9955_v34, %v9869_v55  ;;  %4148 = vmatpush.msrb.mxu1 %v9880_v23  ;;  %v12502_v60 = vand.u32 4294901760, %v9945_v26  ;;  %3091 = vmatmul.f32.gmra.mxu0 %v12503_v32  ;;  %vm5544_vm2 = vweird.f32 %v9955_v34 }
 0x42d   :  { %4259 = vmatpush.msrb.mxu2 %v12500_v44  ;;  %v9982_v21 = vpop.eup %6105  ;;  %v5770_v40 = vmul.f32 %v6104_v36, %v5431_v54  ;;  %v5790_v13 = vmul.f32 %v5774_v11, %v12501_v47  ;;  %v5371_v62 = vsel %vm9922_vm15, %v5370_v38, %v5366_v37  ;;  %v12504_v54 = vand.u32 4294901760, %v12472_v17  ;;  %v12505_v11 = vld [vmem:[#allocation70_spill] sm:$0xff]  ;;  %v12507_v36 = vld [vmem:[#allocation24_spill] sm:$0xff]  ;;  %vm5545_vm5 = vmor %vm5543_vm3, %vm5544_vm2 }
 0x42e   :  { %v3928_v10 = vsub.f32 %v9945_v26, %v12502_v60  ;;  %v5540_v41 = vsub.f32 1.0, %v5539_v27  ;;  %v5599_v39 = vmul.f32 %v9982_v21, %v9874_v35  ;;  %v5734_v44 = vmul.f32 %v9801_v50, %v5371_v62  ;;  %3256 = vmatmul.f32.gmra.mxu1 %v12505_v11  ;;  %v12508_v27 = vld [vmem:[#allocation94_spill] sm:$0xff] }
 0x42f   :  { %4263 = vmatpush.msrb.mxu2 %v12504_v54  ;;  %v5786_v38 = vmul.f32 %v5770_v40, %v12506_v42  ;;  %v5806_v37 = vadd.f32 %v5790_v13, %v12507_v36  ;;  %vm5604_vm4 = vweird.f32 %v9982_v21  ;;  %3452 = vmatmul.f32.vlgmr.msrb.gmra.mxu3 %v12508_v27  ;;  %v3932_v17 = vsub.f32 %v9848_v0, %v9877_v29  ;;  %v12510_v40 = vld [vmem:[#allocation103_spill] sm:$0xff]  ;;  %v12513_v27 = vld [vmem:[#allocation84_spill] sm:$0xff] }
 0x430   :  { %v3929_v60 = vand.u32 4294901760, %v3928_v10  ;;  %4150 = vmatpush.msrb.mxu1 %v9941_v18  ;;  %v5541_v32 = vmul.f32 %v9955_v34, %v5540_v41  ;;  %v5600_v47 = vsub.f32 1.0, %v5599_v39  ;;  %v5750_v50 = vadd.f32 %v5734_v44, %v9776_v15  ;;  %v12511_v41 = vld [vmem:[#allocation98_spill] sm:$0xff]  ;;  %v10015_v39 = vpop.f32.mrf.mxu0  ;;  %v10017_v15 = vpop.f32.mrf.mxu2 }
 0x431   :  { %v12509_v62 = vand.u32 4294901760, %v12473_v12  ;;  %v5802_v13 = vadd.f32 %v5786_v38, %v12510_v40  ;;  %5822 = vst [vmem:[#allocation2 + $0x20] sm:$0xff] %v5806_v37  ;;  %v3938_v10 = vsub.f32 %v9853_v53, %v9880_v23  ;;  %v3944_v54 = vsub.f32 %v9903_v2, %v9941_v18  ;;  %3351 = vmatmul.f32.gmra.mxu2 %v12511_v41  ;;  %v10023_v53 = vpop.f32.mrf.mxu1  ;;  %v10025_v37 = vpop.f32.mrf.mxu3  ;;  %v12518_v41 = vld [vmem:[#allocation43_spill] sm:$0xff] }
 0x432   :  { %3930 = vmatpush.msra.mxu3 %v3929_v60  ;;  %v5542_v0 = vadd.f32 %v9955_v34, %v5541_v32  ;;  %v5601_v12 = vmul.f32 %v9982_v21, %v5600_v47  ;;  %6107 = vtanh.f32 %v5750_v50  ;;  %5846 = vst [vmem:[#allocation4 + $0x60] sm:$0xff] %v5750_v50  ;;  %v3933_v44 = vand.u32 4294901760, %v3932_v17  ;;  %4039 = vmatpush.msrb.mxu0 %v3932_v17 }
 0x433   :  { %4267 = vmatpush.msrb.mxu2 %v12509_v62  ;;  %v12512_v38 = vand.u32 4294901760, %v12474_v56  ;;  %5818 = vst [vmem:[#allocation2] sm:$0xff] %v5802_v13  ;;  %vm5548_vm6 = vcmp.eq.f32.partialorder %v5547_v63, 8.507059e+37  ;;  %v5550_v2 = vor.u32 1.1754944e-38, %v5549_v31  ;;  %v3939_v47 = vand.u32 4294901760, %v3938_v10 }
 0x434   :  { %v3945_v32 = vand.u32 4294901760, %v3944_v54  ;;  %v5546_v60 = vsel %vm5545_vm5, %v9955_v34, %v5542_v0  ;;  %v5602_v56 = vadd.f32 %v9982_v21, %v5601_v12  ;;  %vm5603_vm7 = vweird.f32 %v9874_v35  ;;  %4042 = vmatpush.msrb.mxu0 %v3938_v10  ;;  %v12515_v12 = vld [vmem:[#allocation51_spill] sm:$0xff] }
 0x435   :  { %4271 = vmatpush.msrb.mxu2 %v12512_v38  ;;  %v3934_v50 = vsub.f32 %v3932_v17, %v3933_v44  ;;  %v5551_v62 = vsel %vm5548_vm6, %v5550_v2, %v5546_v60  ;;  %vm5605_vm8 = vmor %vm5603_vm7, %vm5604_vm4  ;;  %v5610_v13 = vor.u32 1.1754944e-38, %v5609_v30  ;;  %v3940_v38 = vsub.f32 %v3938_v10, %v3939_v47  ;;  %3099 = vmatmul.f32.gmra.mxu0 %v12513_v27  ;;  %v12516_v60 = vld [vmem:[#allocation102_spill] sm:$0xff] }
 0x436   :  { %v3946_v55 = vsub.f32 %v3944_v54, %v3945_v32  ;;  %v5778_v63 = vmul.f32 %v9811_v8, %v5551_v62  ;;  %v5606_v31 = vsel %vm5605_vm8, %v9982_v21, %v5602_v56  ;;  %v12514_v34 = vand.u32 2147483647, %v9874_v35  ;;  %3260 = vmatmul.f32.gmra.mxu1 %v12515_v12  ;;  %4045 = vmatpush.msrb.mxu0 %v3944_v54  ;;  %v12519_v56 = vld [vmem:[#allocation104_spill] sm:$0xff] }
 0x437   :  { %v3935_v0 = vand.u32 4294901760, %v3934_v50  ;;  %v3941_v2 = vand.u32 4294901760, %v3940_v38  ;;  %3458 = vmatmul.f32.gmra.mxu3 %v12516_v60  ;;  %v12517_v30 = vand.u32 4294901760, %v9945_v26  ;;  %v12520_v50 = vld [vmem:[#allocation79_spill] sm:$0xff]  ;;  %v12521_v38 = vld [vmem:[#allocation10_spill] sm:$0xff] }
 0x438   :  { %vm5608_vm10 = vcmp.eq.f32.partialorder %v12514_v34, 8.507059e+37  ;;  %v6108_v10 = vpop.eup %6107  ;;  %v5794_v27 = vmul.f32 %v5778_v63, %v12518_v41  ;;  %v3947_v8 = vand.u32 4294901760, %v3946_v55  ;;  %v10047_v35 = vpop.f32.mrf.mxu0  ;;  %v12522_v63 = vld [vmem:[#allocation88_spill] sm:$0xff]  ;;  %v12523_v55 = vld [vmem:[#allocation61_spill] sm:$0xff]  ;;  %v12551_v60 = vld [vmem:[#allocation114_spill] sm:$0xff] }
 0x439   :  { %v5611_v17 = vsel %vm5608_vm10, %v5610_v13, %v5606_v31  ;;  %4275 = vmatpush.msrb.mxu2 %v12517_v30  ;;  %3936 = vmatpush.msra.mxu3 %v3935_v0  ;;  %v2775_v54 = vpop.f32.mrf.mxu1  ;;  %v2894_v13 = vpop.f32.mrf.mxu2  ;;  %v12524_v0 = vld [vmem:[#allocation109_spill] sm:$0xff]  ;;  %v12527_v30 = vld [vmem:[#allocation138_spill] sm:$0xff] }
 0x43a   :  { %v5782_v21 = vmul.f32 %v6108_v10, %v5611_v17  ;;  %3356 = vmatmul.f32.gmra.mxu2 %v12519_v56  ;;  %v5810_v62 = vadd.f32 %v5794_v27, %v12520_v50  ;;  %v2979_v26 = vpop.f32.mrf.mxu3  ;;  %v12525_v27 = vld [vmem:[#allocation72_spill] sm:$0xff]  ;;  %v12528_v10 = vld [vmem:[#allocation113_spill] sm:$0xff] }
 0x43b   :  { %3942 = vmatpush.msra.mxu3 %v3941_v2  ;;  %4279 = vmatpush.msrb.mxu2 %v3933_v44  ;;  %v12526_v44 = vld [vmem:[#allocation106_spill] sm:$0xff] }
 0x43c   :  { %v5798_v31 = vmul.f32 %v5782_v21, %v12521_v38  ;;  %5826 = vst [vmem:[#allocation2 + $0x40] sm:$0xff] %v5810_v62  ;;  %v12530_v21 = vld [vmem:[#allocation108_spill] sm:$0xff] }
 0x43d   :  { %3948 = vmatpush.msra.mxu3 %v3947_v8  ;;  %4283 = vmatpush.msrb.mxu2 %v3939_v47  ;;  %v2887_v8 = vadd.f32 %v9918_v58, %v9823_v43  ;;  %v12532_v43 = vld [vmem:[#allocation100_spill] sm:$0xff] }
 0x43e   :  { %v5814_v34 = vadd.f32 %v5798_v31, %v12522_v63  ;;  %3107 = vmatmul.f32.gmra.mxu0 %v12523_v55  ;;  %3264 = vmatmul.f32.gmra.mxu1 %v12524_v0 }
 0x43f   :  { %4362 = vmatpush.msrb.mxu3 %v12479_v3  ;;  %4287 = vmatpush.msrb.mxu2 %v3945_v32  ;;  %v2651_v32 = vadd.f32 %v9752_v61, %v12527_v30  ;;  %v2976_v62 = vadd.f32 %v10025_v37, %v2887_v8  ;;  %v12531_v61 = vld [vmem:[#allocation11_spill] sm:$0xff] }
 0x440   :  { %5830 = vst [vmem:[#allocation2 + $0x60] sm:$0xff] %v5814_v34  ;;  %3464 = vmatmul.f32.gmra.mxu3 %v12525_v27  ;;  %v10059_v17 = vpop.f32.mrf.mxu0  ;;  %v12541_v27 = vld [vmem:[#allocation50_spill] sm:$0xff] }
 0x441   :  { %4364 = vmatpush.msrb.mxu3 %v12483_v16  ;;  %v10061_v47 = vpop.f32.mrf.mxu1  ;;  %v2898_v2 = vpop.f32.mrf.mxu2  ;;  %v12529_v16 = vld [vmem:[#allocation45_spill] sm:$0xff]  ;;  %v5887_v58 = vmul.f32 -1.442695, %v2976_v62  ;;  %v12537_v62 = vld [vmem:[#allocation152_spill] sm:$0xff] }
 0x442   :  { %3361 = vmatmul.f32.gmra.mxu2 %v12526_v44  ;;  %v2983_v3 = vpop.f32.mrf.mxu3 }
 0x443   :  { %4366 = vmatpush.msrb.mxu3 %v12487_v52  ;;  %v2758_v52 = vadd.f32 %v9843_v20, %v2651_v32  ;;  %v12534_v32 = vld [vmem:[#allocation49_spill] sm:$0xff]  ;;  %6109 = vpow2.f32 %v5887_v58 }
 0x445   :  { %4368 = vmatpush.msrb.mxu3 %v12488_v1  ;;  %v2891_v1 = vadd.f32 %v10017_v15, %v2758_v52  ;;  %v12533_v15 = vld [vmem:[#allocation117_spill] sm:$0xff] }
 0x446   :  { %3115 = vmatmul.f32.gmra.mxu0 %v12528_v10  ;;  %3268 = vmatmul.f32.gmra.mxu1 %v12529_v16 }
 0x447   :  { %4370 = vmatpush.msrb.mxu3 %v9828_v46  ;;  %v2980_v34 = vadd.f32 %v2979_v26, %v2891_v1 }
 0x448   :  { %3470 = vmatmul.f32.gmra.mxu3 %v12530_v21  ;;  %v10077_v31 = vpop.f32.mrf.mxu0  ;;  %v12536_v21 = vld [vmem:[#allocation91_spill] sm:$0xff] }
 0x449   :  { %4372 = vmatpush.msrb.mxu3 %v9877_v29  ;;  %v10080_v46 = vpop.f32.mrf.mxu1  ;;  %v2902_v20 = vpop.f32.mrf.mxu2  ;;  %v2656_v29 = vadd.f32 %v9832_v28, %v12532_v43  ;;  %v5891_v52 = vmul.f32 -1.442695, %v2980_v34  ;;  %v2661_v43 = vadd.f32 %v9936_v4, %v12537_v62 }
 0x44a   :  { %3366 = vmatmul.f32.gmra.mxu2 %v12531_v61  ;;  %v2987_v30 = vpop.f32.mrf.mxu3 }
 0x44b   :  { %4374 = vmatpush.msrb.mxu3 %v9880_v23  ;;  %v2764_v37 = vadd.f32 %v9947_v49, %v2656_v29  ;;  %v12535_v23 = vld [vmem:[#allocation97_spill] sm:$0xff]  ;;  %6111 = vpow2.f32 %v5891_v52  ;;  %v12538_v29 = vld [vmem:[#allocation150_spill] sm:$0xff]  ;;  %v12542_v52 = vld [vmem:[#allocation87_spill] sm:$0xff] }
 0x44c   :  { %v2666_v34 = vadd.f32 %v10015_v39, %v12538_v29  ;;  %v12543_v29 = vld [vmem:[#allocation85_spill] sm:$0xff] }
 0x44d   :  { %4376 = vmatpush.msrb.mxu3 %v9941_v18  ;;  %v2895_v8 = vadd.f32 %v2894_v13, %v2764_v37  ;;  %v2770_v13 = vadd.f32 %v10023_v53, %v2661_v43  ;;  %v12539_v37 = vld [vmem:[#allocation121_spill] sm:$0xff] }
 0x44e   :  { %3123 = vmatmul.f32.gmra.mxu0 %v12533_v15  ;;  %3272 = vmatmul.f32.gmra.mxu1 %v12534_v32  ;;  %v2776_v58 = vadd.f32 %v2775_v54, %v2666_v34  ;;  %v2671_v34 = vadd.f32 %v10047_v35, %v12543_v29  ;;  %v12547_v35 = vld [vmem:[#allocation112_spill] sm:$0xff] }
 0x44f   :  { %v2984_v18 = vadd.f32 %v2983_v3, %v2895_v8  ;;  %v6110_v3 = vpop.eup %6109  ;;  %v2899_v8 = vadd.f32 %v2898_v2, %v2770_v13  ;;  %v12544_v13 = vld [vmem:[#allocation125_spill] sm:$0xff] }
 0x450   :  { %3476 = vmatmul.f32.gmra.mxu3 %v12535_v23  ;;  %v10090_v26 = vpop.f32.mrf.mxu0  ;;  %v2903_v61 = vadd.f32 %v2902_v20, %v2776_v58  ;;  %v10105_v39 = vadd.f32 1.0, %v6110_v3  ;;  %v12545_v3 = vld [vmem:[#allocation115_spill] sm:$0xff] }
 0x451   :  { %v10092_v1 = vpop.f32.mrf.mxu1  ;;  %v2906_v28 = vpop.f32.mrf.mxu2  ;;  %v5895_v23 = vmul.f32 -1.442695, %v2984_v18  ;;  %v2988_v4 = vadd.f32 %v2987_v30, %v2899_v8  ;;  %v2782_v30 = vadd.f32 %v10061_v47, %v2671_v34 }
 0x452   :  { %3371 = vmatmul.f32.gmra.mxu2 %v12536_v21  ;;  %v2991_v49 = vpop.f32.mrf.mxu3  ;;  %v12540_v21 = vld [vmem:[#allocation111_spill] sm:$0xff]  ;;  %v6112_v44 = vpop.eup %6111  ;;  %v4724_v10 = vand.u32 2147483648, %v10105_v39  ;;  %vm4718_vm11 = vweird.f32 %v10105_v39 }
 0x453   :  { %6113 = vpow2.f32 %v5895_v23  ;;  %v2992_v53 = vadd.f32 %v2991_v49, %v2903_v61  ;;  %v10109_v2 = vadd.f32 1.0, %v6112_v44  ;;  %v5899_v20 = vmul.f32 -1.442695, %v2988_v4  ;;  %v12546_v49 = vld [vmem:[#allocation110_spill] sm:$0xff] }
 0x454   :  { %6115 = vrcp.f32 %v10105_v39  ;;  %v2907_v61 = vadd.f32 %v2906_v28, %v2782_v30  ;;  %v12549_v30 = vld [vmem:[#allocation129_spill] sm:$0xff] }
 0x455   :  { %v5903_v58 = vmul.f32 -1.442695, %v2992_v53  ;;  %6117 = vrcp.f32 %v10109_v2  ;;  %vm4778_vm14 = vweird.f32 %v10109_v2 }
 0x456   :  { %3131 = vmatmul.f32.gmra.mxu0 %v12539_v37  ;;  %3276 = vmatmul.f32.gmra.mxu1 %v12540_v21  ;;  %6119 = vpow2.f32 %v5899_v20 }
 0x457   :  { %6121 = vpow2.f32 %v5903_v58  ;;  %v12550_v58 = vld [vmem:[#allocation119_spill] sm:$0xff] }
 0x458   :  { %3482 = vmatmul.f32.gmra.mxu3 %v12541_v27  ;;  %v10103_v62 = vpop.f32.mrf.mxu0  ;;  %v12548_v27 = vld [vmem:[#allocation53_spill] sm:$0xff] }
 0x459   :  { %v2799_v43 = vpop.f32.mrf.mxu1  ;;  %v2910_v54 = vpop.f32.mrf.mxu2  ;;  %v2676_v28 = vadd.f32 %v10059_v17, %v12548_v27  ;;  %v12552_v17 = vld [vmem:[#allocation116_spill] sm:$0xff] }
 0x45a   :  { %3376 = vmatmul.f32.gmra.mxu2 %v12542_v52  ;;  %v2995_v18 = vpop.f32.mrf.mxu3  ;;  %v6114_v23 = vpop.eup %6113 }
 0x45b   :  { %v2996_v8 = vadd.f32 %v2995_v18, %v2907_v61  ;;  %v10122_v47 = vadd.f32 1.0, %v6114_v23  ;;  %v10124_v34 = vpop.eup %6115 }
 0x45c   :  { %v10129_v20 = vpop.eup %6117  ;;  %v4714_v23 = vmul.f32 %v10124_v34, %v10105_v39  ;;  %vm4719_vm9 = vweird.f32 %v10124_v34 }
 0x45d   :  { %v6120_v18 = vpop.eup %6119  ;;  %6123 = vrcp.f32 %v10122_v47  ;;  %v4774_v27 = vmul.f32 %v10129_v20, %v10109_v2  ;;  %vm4779_vm12 = vweird.f32 %v10129_v20  ;;  %vm10186_vm13 = vmor %vm4718_vm11, %vm4719_vm9  ;;  %vm4838_vm2 = vweird.f32 %v10122_v47 }
 0x45e   :  { %3139 = vmatmul.f32.gmra.mxu0 %v12544_v13  ;;  %3280 = vmatmul.f32.gmra.mxu1 %v12545_v3  ;;  %v6122_v61 = vpop.eup %6121  ;;  %v4715_v13 = vsub.f32 1.0, %v4714_v23  ;;  %vm10201_vm15 = vmor %vm4778_vm14, %vm4779_vm12 }
 0x45f   :  { %v10146_v37 = vadd.f32 1.0, %v6122_v61 }
 0x460   :  { %3488 = vmatmul.f32.gmra.mxu3 %v12546_v49  ;;  %v10118_v44 = vpop.f32.mrf.mxu0  ;;  %v2788_v49 = vadd.f32 %v10080_v46, %v2676_v28  ;;  %v10142_v46 = vadd.f32 1.0, %v6120_v18  ;;  %v12555_v18 = vld [vmem:[#allocation123_spill] sm:$0xff]  ;;  %v4716_v23 = vmul.f32 %v10124_v34, %v4715_v13 }
 0x461   :  { %v10120_v4 = vpop.f32.mrf.mxu1  ;;  %v2914_v29 = vpop.f32.mrf.mxu2  ;;  %vm4958_vm9 = vweird.f32 %v10146_v37 }
 0x462   :  { %3381 = vmatmul.f32.gmra.mxu2 %v12547_v35  ;;  %v2999_v53 = vpop.f32.mrf.mxu3  ;;  %v5907_v35 = vmul.f32 -1.442695, %v2996_v8  ;;  %v2911_v52 = vadd.f32 %v2910_v54, %v2788_v49  ;;  %v12553_v49 = vld [vmem:[#allocation47_spill] sm:$0xff]  ;;  %vm4898_vm6 = vweird.f32 %v10142_v46 }
 0x463   :  { %v10150_v15 = vpop.eup %6123 }
 0x464   :  { %6125 = vpow2.f32 %v5907_v35  ;;  %v3000_v8 = vadd.f32 %v2999_v53, %v2911_v52  ;;  %v2686_v52 = vadd.f32 %v10090_v26, %v9585_v57  ;;  %v4834_v61 = vmul.f32 %v10150_v15, %v10122_v47 }
 0x465   :  { %6127 = vrcp.f32 %v10142_v46  ;;  %vm4839_vm1 = vweird.f32 %v10150_v15 }
 0x466   :  { %3147 = vmatmul.f32.gmra.mxu0 %v12549_v30  ;;  %3284 = vmatmul.f32.gmra.mxu1 %v12550_v58  ;;  %v4775_v58 = vsub.f32 1.0, %v4774_v27  ;;  %v5911_v53 = vmul.f32 -1.442695, %v3000_v8  ;;  %6129 = vrcp.f32 %v10146_v37  ;;  %v2800_v27 = vadd.f32 %v2799_v43, %v2686_v52  ;;  %vm10241_vm5 = vmor %vm4838_vm2, %vm4839_vm1 }
 0x467   :  { %v2487_v43 = vadd.f32 %v9830_v9, %v9564_v22 }
 0x468   :  { %3494 = vmatmul.f32.gmra.mxu3 %v12551_v60  ;;  %v10140_v56 = vpop.f32.mrf.mxu0  ;;  %v2681_v60 = vadd.f32 %v10077_v31, %v12553_v49  ;;  %v4776_v57 = vmul.f32 %v10129_v20, %v4775_v58  ;;  %6131 = vpow2.f32 %v5911_v53 }
 0x469   :  { %v10144_v28 = vpop.f32.mrf.mxu1  ;;  %v2918_v30 = vpop.f32.mrf.mxu2 }
 0x46a   :  { %3386 = vmatmul.f32.gmra.mxu2 %v12552_v17  ;;  %v3003_v54 = vpop.f32.mrf.mxu3  ;;  %v12554_v17 = vld [vmem:[#allocation133_spill] sm:$0xff]  ;;  %v2794_v35 = vadd.f32 %v10092_v1, %v2681_v60  ;;  %v6126_v31 = vpop.eup %6125  ;;  %v12557_v60 = vld [vmem:[#allocation120_spill] sm:$0xff]  ;;  %v2919_v1 = vadd.f32 %v2918_v30, %v2800_v27  ;;  %v4722_v30 = vand.u32 2147483647, %v10105_v39  ;;  %v4777_v9 = vadd.f32 %v10129_v20, %v4776_v57 }
 0x46b   :  { %v10174_v52 = vadd.f32 1.0, %v6126_v31  ;;  %v12558_v31 = vld [vmem:[#allocation139_spill] sm:$0xff]  ;;  %v2691_v39 = vadd.f32 %v10103_v62, %v9642_v6  ;;  %v4782_v57 = vand.u32 2147483647, %v10109_v2 }
 0x46c   :  { %v2915_v49 = vadd.f32 %v2914_v29, %v2794_v35  ;;  %v4717_v29 = vadd.f32 %v10124_v34, %v4716_v23  ;;  %v10176_v35 = vpop.eup %6127  ;;  %v4784_v23 = vand.u32 2147483648, %v10109_v2  ;;  %vm4723_vm0 = vcmp.eq.f32.partialorder %v4722_v30, 8.507059e+37 }
 0x46d   :  { %v10180_v27 = vpop.eup %6129  ;;  %6133 = vrcp.f32 %v10174_v52  ;;  %v4781_v2 = vsel %vm10201_vm15, %v10129_v20, %v4777_v9  ;;  %vm4783_vm3 = vcmp.eq.f32.partialorder %v4782_v57, 8.507059e+37  ;;  %vm4899_vm8 = vweird.f32 %v10176_v35 }
 0x46e   :  { %3155 = vmatmul.f32.gmra.mxu0 %v12554_v17  ;;  %3288 = vmatmul.f32.gmra.mxu1 %v12555_v18  ;;  %v12556_v17 = vld [vmem:[#allocation118_spill] sm:$0xff]  ;;  %v3004_v13 = vadd.f32 %v3003_v54, %v2915_v49  ;;  %v4835_v54 = vsub.f32 1.0, %v4834_v61  ;;  %v4725_v49 = vor.u32 1.1754944e-38, %v4724_v10  ;;  %v4721_v10 = vsel %vm10186_vm13, %v10124_v34, %v4717_v29  ;;  %vm10291_vm11 = vmor %vm4898_vm6, %vm4899_vm8 }
 0x46f   :  { %v4954_v62 = vmul.f32 %v10180_v27, %v10146_v37  ;;  %v12563_v34 = vld [vmem:[#allocation122_spill] sm:$0xff]  ;;  %v4842_v29 = vand.u32 2147483647, %v10122_v47  ;;  %vm4959_vm10 = vweird.f32 %v10180_v27  ;;  %vm5018_vm14 = vweird.f32 %v10174_v52 }
 0x470   :  { %3500 = vmatmul.f32.gmra.mxu3 %v12556_v17  ;;  %v10166_v26 = vpop.f32.mrf.mxu0  ;;  %v5915_v61 = vmul.f32 -1.442695, %v3004_v13  ;;  %v4836_v6 = vmul.f32 %v10150_v15, %v4835_v54  ;;  %v2806_v17 = vadd.f32 %v10120_v4, %v2691_v39  ;;  %v4785_v13 = vor.u32 1.1754944e-38, %v4784_v23  ;;  %vm10309_vm13 = vmor %vm4958_vm9, %vm4959_vm10 }
 0x471   :  { %v10168_v8 = vpop.f32.mrf.mxu1  ;;  %v2922_v18 = vpop.f32.mrf.mxu2  ;;  %v4726_v54 = vsel %vm4723_vm0, %v4725_v49, %v4721_v10  ;;  %vm10230_vm4 = vcmp.eq.f32.partialorder %v4842_v29, 8.507059e+37  ;;  %v12570_v29 = vld [vmem:[#allocation126_spill] sm:$0xff]  ;;  %v4964_v10 = vand.u32 2147483648, %v10146_v37 }
 0x472   :  { %3391 = vmatmul.f32.gmra.mxu2 %v12557_v60  ;;  %v3007_v58 = vpop.f32.mrf.mxu3  ;;  %v6132_v60 = vpop.eup %6131  ;;  %v2923_v4 = vadd.f32 %v2922_v18, %v2806_v17  ;;  %v4786_v9 = vsel %vm4783_vm3, %v4785_v13, %v4781_v2  ;;  %v4837_v23 = vadd.f32 %v10150_v15, %v4836_v6  ;;  %v5659_v18 = vmul.f32 2.0, %v4726_v54 }
 0x473   :  { %v3008_v53 = vadd.f32 %v3007_v58, %v2919_v1  ;;  %v4894_v58 = vmul.f32 %v10176_v35, %v10142_v46  ;;  %v10221_v20 = vadd.f32 1.0, %v6132_v60  ;;  %v10224_v49 = vpop.eup %6133  ;;  %v12567_v60 = vld [vmem:[#allocation62_spill] sm:$0xff]  ;;  %v4902_v6 = vand.u32 2147483647, %v10142_v46 }
 0x474   :  { %v4904_v54 = vand.u32 2147483648, %v10142_v46  ;;  %vm5019_vm3 = vweird.f32 %v10224_v49 }
 0x475   :  { %v5919_v1 = vmul.f32 -1.442695, %v3008_v53  ;;  %v12564_v53 = vld [vmem:[#allocation124_spill] sm:$0xff]  ;;  %v4895_v22 = vsub.f32 1.0, %v4894_v58  ;;  %vm10265_vm7 = vcmp.eq.f32.partialorder %v4902_v6, 8.507059e+37  ;;  %vm5078_vm2 = vweird.f32 %v10221_v20 }
 0x476   :  { %3163 = vmatmul.f32.gmra.mxu0 %v12558_v31  ;;  %3292 = vmatmul.f32.gmra.mxu1 %v12421_v19  ;;  %v4844_v19 = vand.u32 2147483648, %v10122_v47 }
 0x477   :  { %6135 = vpow2.f32 %v5919_v1 }
 0x478   :  { %3506 = vmatmul.f32.gmra.mxu3 %v12563_v34  ;;  %v10215_v31 = vpop.f32.mrf.mxu0  ;;  %6137 = vpow2.f32 %v5915_v61  ;;  %v4955_v34 = vsub.f32 1.0, %v4954_v62  ;;  %v10227_v61 = vadd.f32 %v9934_v33, %v2487_v43  ;;  %v4845_v58 = vor.u32 1.1754944e-38, %v4844_v19 }
 0x479   :  { %v10218_v39 = vpop.f32.mrf.mxu1  ;;  %v2926_v1 = vpop.f32.mrf.mxu2  ;;  %v2696_v62 = vadd.f32 %v10118_v44, %v9688_v25  ;;  %v5663_v33 = vmul.f32 2.0, %v4786_v9  ;;  %v4896_v43 = vmul.f32 %v10176_v35, %v4895_v22  ;;  %6139 = vrcp.f32 %v10221_v20  ;;  %v12571_v22 = vld [vmem:[#allocation128_spill] sm:$0xff] }
 0x47a   :  { %3396 = vmatmul.f32.gmra.mxu2 %v12564_v53  ;;  %v3011_v30 = vpop.f32.mrf.mxu3  ;;  %v4841_v25 = vsel %vm10241_vm5, %v10150_v15, %v4837_v23  ;;  %v4956_v44 = vmul.f32 %v10180_v27, %v4955_v34  ;;  %vm10376_vm5 = vmor %vm5018_vm14, %vm5019_vm3 }
 0x47b   :  { %v3012_v53 = vadd.f32 %v3011_v30, %v2923_v4  ;;  %v2812_v13 = vadd.f32 %v10144_v28, %v2696_v62  ;;  %v5014_v4 = vmul.f32 %v10224_v49, %v10174_v52  ;;  %v4962_v28 = vand.u32 2147483647, %v10146_v37 }
 0x47c   :  { %v10278_v6 = vadd.f32 -1.0, %v5663_v33  ;;  %v4957_v47 = vadd.f32 %v10180_v27, %v4956_v44  ;;  %v2701_v37 = vadd.f32 %v10140_v56, %v9731_v5 }
 0x47d   :  { %v6136_v57 = vpop.eup %6135  ;;  %v5923_v17 = vmul.f32 -1.442695, %v3012_v53  ;;  %v10255_v53 = vadd.f32 -1.0, %v5659_v18  ;;  %v2927_v34 = vadd.f32 %v2926_v1, %v2812_v13  ;;  %v4846_v18 = vsel %vm10230_vm4, %v4845_v58, %v4841_v25 }
 0x47e   :  { %3171 = vmatmul.f32.gmra.mxu0 %v12567_v60  ;;  %3296 = vmatmul.f32.gmra.mxu1 %v12432_v51  ;;  %v10247_v19 = vadd.f32 1.0, %v6136_v57  ;;  %v6138_v2 = vpop.eup %6137  ;;  %v4897_v57 = vadd.f32 %v10176_v35, %v4896_v43  ;;  %v5015_v58 = vsub.f32 1.0, %v5014_v4  ;;  %v12574_v43 = vld [vmem:[#allocation77_spill] sm:$0xff]  ;;  %v5667_v25 = vmul.f32 2.0, %v4846_v18 }
 0x47f   :  { %6141 = vpow2.f32 %v5923_v17  ;;  %v10276_v62 = vadd.f32 1.0, %v6138_v2  ;;  %v10282_v13 = vpop.eup %6139  ;;  %vm10295_vm12 = vcmp.eq.f32.partialorder %v4962_v28, 8.507059e+37  ;;  %v5022_v28 = vand.u32 2147483647, %v10174_v52 }
 0x480   :  { %3512 = vmatmul.f32.gmra.mxu3 %v12570_v29  ;;  %6143 = vrcp.f32 %v10247_v19  ;;  %v10262_v30 = vpop.f32.mrf.mxu0  ;;  %v4905_v29 = vor.u32 1.1754944e-38, %v4904_v54  ;;  %v4901_v46 = vsel %vm10291_vm11, %v10176_v35, %v4897_v57  ;;  %v4961_v56 = vsel %vm10309_vm13, %v10180_v27, %v4957_v47  ;;  %v12581_v57 = vld [vmem:[#allocation130_spill] sm:$0xff] }
 0x481   :  { %v10270_v9 = vpop.f32.mrf.mxu1  ;;  %v2930_v23 = vpop.f32.mrf.mxu2  ;;  %6145 = vrcp.f32 %v10276_v62  ;;  %v2818_v18 = vadd.f32 %v10168_v8, %v2701_v37  ;;  %v5074_v33 = vmul.f32 %v10282_v13, %v10221_v20  ;;  %v10331_v27 = vadd.f32 -1.0, %v5667_v25 }
 0x482   :  { %3401 = vmatmul.f32.gmra.mxu2 %v12571_v22  ;;  %v3015_v17 = vpop.f32.mrf.mxu3  ;;  %v5024_v8 = vand.u32 2147483648, %v10174_v52  ;;  %vm10347_vm15 = vcmp.eq.f32.partialorder %v5022_v28, 8.507059e+37  ;;  %v2706_v28 = vadd.f32 %v10166_v26, %v9746_v7  ;;  %vm5198_vm1 = vweird.f32 %v10247_v19 }
 0x483   :  { %v3016_v1 = vadd.f32 %v3015_v17, %v2927_v34  ;;  %v4965_v17 = vor.u32 1.1754944e-38, %v4964_v10  ;;  %v2931_v37 = vadd.f32 %v2930_v23, %v2818_v18  ;;  %v5075_v18 = vsub.f32 1.0, %v5074_v33 }
 0x484   :  { %v2824_v26 = vadd.f32 %v10218_v39, %v2706_v28  ;;  %vm5079_vm8 = vweird.f32 %v10282_v13  ;;  %vm5138_vm14 = vweird.f32 %v10276_v62 }
 0x485   :  { %v6142_v2 = vpop.eup %6141  ;;  %v5927_v54 = vmul.f32 -1.442695, %v3016_v1  ;;  %v5016_v1 = vmul.f32 %v10224_v49, %v5015_v58  ;;  %v10338_v58 = vsel %vm10265_vm7, %v4905_v29, %v4901_v46  ;;  %v5202_v29 = vand.u32 2147483647, %v10247_v19 }
 0x486   :  { %3179 = vmatmul.f32.gmra.mxu0 %v12574_v43  ;;  %3300 = vmatmul.f32.gmra.mxu1 %v12457_v59  ;;  %v10302_v4 = vpop.eup %6143  ;;  %v10315_v5 = vadd.f32 1.0, %v6142_v2  ;;  %v12582_v2 = vld [vmem:[#allocation132_spill] sm:$0xff]  ;;  %v5025_v43 = vor.u32 1.1754944e-38, %v5024_v8 }
 0x487   :  { %v5194_v35 = vmul.f32 %v10302_v4, %v10247_v19  ;;  %6147 = vpow2.f32 %v5927_v54  ;;  %vm5199_vm0 = vweird.f32 %v10302_v4  ;;  %v10354_v46 = vpop.eup %6145  ;;  %vm5203_vm6 = vcmp.eq.f32.partialorder %v5202_v29, 8.507059e+37 }
 0x488   :  { %3518 = vmatmul.f32.gmra.mxu3 %v12581_v57  ;;  %6149 = vrcp.f32 %v10315_v5  ;;  %v10329_v34 = vpop.f32.mrf.mxu0  ;;  %v4966_v57 = vsel %vm10295_vm12, %v4965_v17, %v4961_v56  ;;  %v5017_v56 = vadd.f32 %v10224_v49, %v5016_v1  ;;  %v12585_v17 = vld [vmem:[#allocation37_spill] sm:$0xff]  ;;  %vm5200_vm4 = vmor %vm5198_vm1, %vm5199_vm0  ;;  %vm5258_vm10 = vweird.f32 %v10315_v5 }
 0x489   :  { %v5195_v47 = vsub.f32 1.0, %v5194_v35  ;;  %v10334_v54 = vpop.f32.mrf.mxu1  ;;  %v2934_v10 = vpop.f32.mrf.mxu2  ;;  %v5691_v35 = vld [vmem:[%s11461_s2 + $0x8] sm:$0xff]  ;;  %vm10432_vm12 = vmor %vm5078_vm2, %vm5079_vm8  ;;  %vm5139_vm0 = vweird.f32 %v10354_v46 }
 0x48a   :  { %3406 = vmatmul.f32.gmra.mxu2 %v12582_v2  ;;  %v5204_v2 = vand.u32 2147483648, %v10247_v19  ;;  %v3019_v25 = vpop.f32.mrf.mxu3  ;;  %v5707_v1 = vmul.f32 %v5691_v35, %v4966_v57  ;;  %v5021_v39 = vsel %vm10376_vm5, %v10224_v49, %v5017_v56  ;;  %v2935_v29 = vadd.f32 %v2934_v10, %v2824_v26 }
 0x48b   :  { %v5196_v15 = vmul.f32 %v10302_v4, %v5195_v47  ;;  %v3020_v44 = vadd.f32 %v3019_v25, %v2931_v37  ;;  %v12589_v25 = vld [vmem:[#allocation136_spill] sm:$0xff]  ;;  %v5082_v49 = vand.u32 2147483647, %v10221_v20  ;;  %v5084_v56 = vand.u32 2147483648, %v10221_v20  ;;  %v12595_v20 = vld [vmem:[#allocation142_spill] sm:$0xff] }
 0x48c   :  { %v5205_v7 = vor.u32 1.1754944e-38, %v5204_v2  ;;  %v12588_v2 = vld [vmem:[#allocation134_spill] sm:$0xff]  ;;  %v5026_v10 = vsel %vm10347_vm15, %v5025_v43, %v5021_v39 }
 0x48d   :  { %v6148_v22 = vpop.eup %6147  ;;  %v5197_v47 = vadd.f32 %v10302_v4, %v5196_v15  ;;  %v5931_v60 = vmul.f32 -1.442695, %v3020_v44  ;;  %vm10419_vm9 = vcmp.eq.f32.partialorder %v5082_v49, 8.507059e+37  ;;  %v12594_v49 = vld [vmem:[#allocation140_spill] sm:$0xff] }
 0x48e   :  { %3187 = vmatmul.f32.gmra.mxu0 %v12585_v17  ;;  %3304 = vmatmul.f32.gmra.mxu1 %v12471_v45  ;;  %v10364_v37 = vpop.eup %6149  ;;  %v10370_v33 = vadd.f32 1.0, %v6148_v22  ;;  %v5076_v22 = vmul.f32 %v10282_v13, %v5075_v18  ;;  %v5262_v18 = vand.u32 2147483647, %v10315_v5 }
 0x48f   :  { %v5201_v57 = vsel %vm5200_vm4, %v10302_v4, %v5197_v47  ;;  %v5254_v8 = vmul.f32 %v10364_v37, %v10315_v5  ;;  %6151 = vpow2.f32 %v5931_v60  ;;  %v5134_v4 = vmul.f32 %v10354_v46, %v10276_v62  ;;  %vm10481_vm4 = vmor %vm5138_vm14, %vm5139_vm0 }
 0x490   :  { %3524 = vmatmul.f32.gmra.mxu3 %v12588_v2  ;;  %v5206_v52 = vsel %vm5203_vm6, %v5205_v7, %v5201_v57  ;;  %6153 = vrcp.f32 %v10370_v33  ;;  %v10390_v35 = vpop.f32.mrf.mxu0  ;;  %v5264_v47 = vand.u32 2147483648, %v10315_v5  ;;  %vm5259_vm7 = vweird.f32 %v10364_v37  ;;  %v12597_v5 = vld [vmem:[#allocation64_spill] sm:$0xff] }
 0x491   :  { %v5723_v60 = vmul.f32 %v10255_v53, %v5206_v52  ;;  %v5255_v15 = vsub.f32 1.0, %v5254_v8  ;;  %v10395_v44 = vpop.f32.mrf.mxu1  ;;  %v2938_v28 = vpop.f32.mrf.mxu2  ;;  %v5077_v26 = vadd.f32 %v10282_v13, %v5076_v22  ;;  %v2711_v8 = vadd.f32 %v10215_v31, %v9783_v48  ;;  %vm5260_vm11 = vmor %vm5258_vm10, %vm5259_vm7 }
 0x492   :  { %3411 = vmatmul.f32.gmra.mxu2 %v12589_v25  ;;  %v3023_v7 = vpop.f32.mrf.mxu3  ;;  %v5265_v31 = vor.u32 1.1754944e-38, %v5264_v47  ;;  %vm5263_vm13 = vcmp.eq.f32.partialorder %v5262_v18, 8.507059e+37  ;;  %vm5318_vm3 = vweird.f32 %v10370_v33 }
 0x493   :  { %v10401_v19 = vadd.f32 %v5723_v60, %v5707_v1  ;;  %v5256_v57 = vmul.f32 %v10364_v37, %v5255_v15  ;;  %v3024_v53 = vadd.f32 %v3023_v7, %v2935_v29  ;;  %v5695_v1 = vld [vmem:[%s11461_s2 + $0x28] sm:$0xff]  ;;  %v5135_v60 = vsub.f32 1.0, %v5134_v4 }
 0x494   :  { %v2830_v22 = vadd.f32 %v10270_v9, %v2711_v8  ;;  %v5711_v47 = vmul.f32 %v5695_v1, %v5026_v10  ;;  %v5081_v9 = vsel %vm10432_vm12, %v10282_v13, %v5077_v26  ;;  %v5322_v10 = vand.u32 2147483647, %v10370_v33 }
 0x495   :  { %v6152_v52 = vpop.eup %6151  ;;  %5835 = vst [vmem:[#allocation4 + $0x8] sm:$0xff] %v10401_v19  ;;  %v5257_v23 = vadd.f32 %v10364_v37, %v5256_v57  ;;  %v5935_v43 = vmul.f32 -1.442695, %v3024_v53  ;;  %v5136_v57 = vmul.f32 %v10354_v46, %v5135_v60  ;;  %v5324_v13 = vand.u32 2147483648, %v10370_v33 }
 0x496   :  { %3587 = vmatmul.f32.vlgmr.msra.gmra.mxu0 %v12478_v14  ;;  %3308 = vmatmul.f32.gmra.mxu1 %v12482_v24  ;;  %v6154_v39 = vpop.eup %6153  ;;  %v10426_v4 = vadd.f32 1.0, %v6152_v52  ;;  %v2939_v53 = vadd.f32 %v2938_v28, %v2830_v22  ;;  %vm5323_vm2 = vcmp.eq.f32.partialorder %v5322_v10, 8.507059e+37 }
 0x497   :  { %v5261_v15 = vsel %vm5260_vm11, %v10364_v37, %v5257_v23  ;;  %v5314_v29 = vmul.f32 %v6154_v39, %v10370_v33  ;;  %6155 = vpow2.f32 %v5935_v43  ;;  %v5085_v23 = vor.u32 1.1754944e-38, %v5084_v56 }
 0x498   :  { %3530 = vmatmul.f32.gmra.mxu3 %v12594_v49  ;;  %v5266_v7 = vsel %vm5263_vm13, %v5265_v31, %v5261_v15  ;;  %6157 = vrcp.f32 %v10426_v4  ;;  %vm5319_vm15 = vweird.f32 %v6154_v39  ;;  %v5142_v56 = vand.u32 2147483647, %v10276_v62  ;;  %v12596_v31 = vld [vmem:[#allocation26_spill] sm:$0xff] }
 0x499   :  { %v5727_v37 = vmul.f32 %v10278_v6, %v5266_v7  ;;  %v5315_v18 = vsub.f32 1.0, %v5314_v29  ;;  %v2942_v8 = vpop.f32.mrf.mxu2  ;;  %v10446_v52 = vpop.f32.mrf.mxu0  ;;  %v5086_v28 = vsel %vm10419_vm9, %v5085_v23, %v5081_v9  ;;  %v2716_v22 = vadd.f32 %v10262_v30, %v12596_v31  ;;  %v5699_v29 = vld [vmem:[%s11461_s2 + $0x48] sm:$0xff]  ;;  %vm5320_vm1 = vmor %vm5318_vm3, %vm5319_vm15 }
 0x49a   :  { %3416 = vmatmul.f32.gmra.mxu2 %v12595_v20  ;;  %v3027_v26 = vpop.f32.mrf.mxu3  ;;  %v10451_v1 = vpop.f32.mrf.mxu1  ;;  %v5144_v30 = vand.u32 2147483648, %v10276_v62  ;;  %v5671_v33 = vmul.f32 2.0, %v10338_v58  ;;  %vm5143_vm5 = vcmp.eq.f32.partialorder %v5142_v56, 8.507059e+37  ;;  %v5703_v56 = vld [vmem:[%s11461_s2 + $0x68] sm:$0xff]  ;;  %vm5378_vm7 = vweird.f32 %v10426_v4  ;;  %v12634_v20 = vld [vmem:[#allocation92_spill] sm:$0xff] }
 0x49b   :  { %v10453_v43 = vadd.f32 %v5727_v37, %v5711_v47  ;;  %v5316_v60 = vmul.f32 %v6154_v39, %v5315_v18  ;;  %v3028_v6 = vadd.f32 %v3027_v26, %v2939_v53  ;;  %v5137_v47 = vadd.f32 %v10354_v46, %v5136_v57  ;;  %v12598_v26 = vld [vmem:[#allocation143_spill] sm:$0xff] }
 0x49c   :  { %v5325_v37 = vor.u32 1.1754944e-38, %v5324_v13  ;;  %v2836_v18 = vadd.f32 %v10334_v54, %v2716_v22  ;;  %v5145_v62 = vor.u32 1.1754944e-38, %v5144_v30 }
 0x49d   :  { %v6156_v15 = vpop.eup %6155  ;;  %5839 = vst [vmem:[#allocation4 + $0x28] sm:$0xff] %v10453_v43  ;;  %v5317_v48 = vadd.f32 %v6154_v39, %v5316_v60  ;;  %v5939_v9 = vmul.f32 -1.442695, %v3028_v6  ;;  %v5715_v60 = vmul.f32 %v5699_v29, %v5086_v28  ;;  %v5141_v10 = vsel %vm10481_vm4, %v10354_v46, %v5137_v47 }
 0x49e   :  { %3591 = vmatmul.f32.gmra.mxu0 %v12597_v5  ;;  %3676 = vmatmul.f32.vlgmr.msra.gmra.mxu1 %v12478_v14  ;;  %v6158_v7 = vpop.eup %6157  ;;  %v10472_v53 = vadd.f32 1.0, %v6156_v15  ;;  %v2943_v28 = vadd.f32 %v2942_v8, %v2836_v18  ;;  %v5382_v15 = vand.u32 2147483647, %v10426_v4  ;;  %v5384_v29 = vand.u32 2147483648, %v10426_v4  ;;  %v12602_v18 = vld [vmem:[#allocation8_spill] sm:$0xff] }
 0x49f   :  { %v5321_v23 = vsel %vm5320_vm1, %v6154_v39, %v5317_v48  ;;  %v5374_v57 = vmul.f32 %v6158_v7, %v10426_v4  ;;  %6159 = vpow2.f32 %v5939_v9  ;;  %v12601_v39 = vld [vmem:[#allocation82_spill] sm:$0xff]  ;;  %vm5379_vm6 = vweird.f32 %v6158_v7 }
 0x4a0   :  { %3536 = vmatmul.f32.gmra.mxu3 %v12598_v26  ;;  %v5326_v54 = vsel %vm5323_vm2, %v5325_v37, %v5321_v23  ;;  %6161 = vrcp.f32 %v10472_v53  ;;  %v5146_v47 = vsel %vm5143_vm5, %v5145_v62, %v5141_v10  ;;  %vm5380_vm8 = vmor %vm5378_vm7, %vm5379_vm6  ;;  %vm5383_vm10 = vcmp.eq.f32.partialorder %v5382_v15, 8.507059e+37  ;;  %v12603_v4 = vld [vmem:[#allocation74_spill] sm:$0xff]  ;;  %v12604_v62 = vld [vmem:[#allocation99_spill] sm:$0xff] }
 0x4a1   :  { %v5731_v58 = vmul.f32 %v10331_v27, %v5326_v54  ;;  %v5375_v6 = vsub.f32 1.0, %v5374_v57  ;;  %v2946_v31 = vpop.f32.mrf.mxu2  ;;  %v10491_v22 = vpop.f32.mrf.mxu0  ;;  %v2721_v27 = vadd.f32 %v10329_v34, %v10227_v61  ;;  %v3077_v57 = vadd.f32 %v10446_v52, %v12602_v18 }
 0x4a2   :  { %3421 = vmatmul.f32.gmra.mxu2 %v12601_v39  ;;  %v3031_v48 = vpop.f32.mrf.mxu3  ;;  %v3253_v9 = vpop.f32.mrf.mxu1  ;;  %v5963_v61 = vadd.f32 -1.0, %v5671_v33  ;;  %v5385_v34 = vor.u32 1.1754944e-38, %v5384_v29  ;;  %v5719_v52 = vmul.f32 %v5703_v56, %v5146_v47  ;;  %v5444_v15 = vand.u32 2147483648, %v10472_v53 }
 0x4a3   :  { %v10495_v37 = vadd.f32 %v5731_v58, %v5715_v60  ;;  %v5376_v23 = vmul.f32 %v6158_v7, %v5375_v6  ;;  %v3032_v46 = vadd.f32 %v3031_v48, %v2943_v28  ;;  %v2842_v54 = vadd.f32 %v10395_v44, %v2721_v27 }
 0x4a4   :  { %vm5438_vm11 = vweird.f32 %v10472_v53 }
 0x4a5   :  { %v6160_v8 = vpop.eup %6159  ;;  %5843 = vst [vmem:[#allocation4 + $0x48] sm:$0xff] %v10495_v37  ;;  %v5377_v30 = vadd.f32 %v6158_v7, %v5376_v23  ;;  %v5943_v60 = vmul.f32 -1.442695, %v3032_v46  ;;  %v2947_v29 = vadd.f32 %v2946_v31, %v2842_v54  ;;  %v3254_v23 = vadd.f32 %v3253_v9, %v3077_v57 }
 0x4a6   :  { %3595 = vmatmul.f32.gmra.mxu0 %v12505_v11  ;;  %3680 = vmatmul.f32.gmra.mxu1 %v12597_v5  ;;  %v6162_v13 = vpop.eup %6161  ;;  %v10510_v10 = vadd.f32 1.0, %v6160_v8 }
 0x4a7   :  { %v5381_v58 = vsel %vm5380_vm8, %v6158_v7, %v5377_v30  ;;  %v5434_v6 = vmul.f32 %v6162_v13, %v10472_v53  ;;  %6163 = vpow2.f32 %v5943_v60  ;;  %v5442_v7 = vand.u32 2147483647, %v10472_v53 }
 0x4a8   :  { %3542 = vmatmul.f32.gmra.mxu3 %v12603_v4  ;;  %v5386_v28 = vsel %vm5383_vm10, %v5385_v34, %v5381_v58  ;;  %6165 = vrcp.f32 %v10510_v10  ;;  %vm5439_vm9 = vweird.f32 %v6162_v13  ;;  %v5445_v60 = vor.u32 1.1754944e-38, %v5444_v15 }
 0x4a9   :  { %v5735_v33 = vmul.f32 %v5963_v61, %v5386_v28  ;;  %v5435_v48 = vsub.f32 1.0, %v5434_v6  ;;  %v10516_v44 = vpop.f32.mrf.mxu0  ;;  %6167 = vtanh.f32 %v10401_v19  ;;  %vm5440_vm12 = vmor %vm5438_vm11, %vm5439_vm9  ;;  %v12605_v61 = vld [vmem:[#allocation149_spill] sm:$0xff]  ;;  %vm5443_vm13 = vcmp.eq.f32.partialorder %v5442_v7, 8.507059e+37 }
 0x4aa   :  { %3769 = vmatmul.f32.vlgmr.msra.gmra.mxu2 %v12604_v62  ;;  %v3035_v46 = vpop.f32.mrf.mxu3  ;;  %v3069_v34 = vadd.f32 %v10390_v35, %v12605_v61  ;;  %v12606_v62 = vld [vmem:[#allocation105_spill] sm:$0xff]  ;;  %vm5498_vm15 = vweird.f32 %v10510_v10 }
 0x4ab   :  { %v10521_v27 = vpop.f32.mrf.mxu1  ;;  %v10523_v47 = vadd.f32 %v5735_v33, %v5719_v52  ;;  %v5436_v8 = vmul.f32 %v6162_v13, %v5435_v48  ;;  %v3036_v56 = vadd.f32 %v3035_v46, %v2947_v29  ;;  %v3347_v30 = vpop.f32.mrf.mxu2 }
 0x4ac   :  { %v3250_v28 = vadd.f32 %v10451_v1, %v3069_v34  ;;  %v5502_v1 = vand.u32 2147483647, %v10510_v10 }
 0x4ad   :  { %v6164_v31 = vpop.eup %6163  ;;  %5847 = vst [vmem:[#allocation4 + $0x68] sm:$0xff] %v10523_v47  ;;  %v5437_v9 = vadd.f32 %v6162_v13, %v5436_v8  ;;  %v5947_v19 = vmul.f32 -1.442695, %v3036_v56 }
 0x4ae   :  { %3599 = vmatmul.f32.gmra.mxu0 %v12515_v12  ;;  %3684 = vmatmul.f32.gmra.mxu1 %v12505_v11  ;;  %v6166_v57 = vpop.eup %6165  ;;  %v10531_v54 = vadd.f32 1.0, %v6164_v31  ;;  %v3348_v29 = vadd.f32 %v3347_v30, %v3250_v28  ;;  %vm5503_vm3 = vcmp.eq.f32.partialorder %v5502_v1, 8.507059e+37 }
 0x4af   :  { %v5441_v58 = vsel %vm5440_vm12, %v6162_v13, %v5437_v9  ;;  %v5494_v6 = vmul.f32 %v6166_v57, %v10510_v10  ;;  %6169 = vpow2.f32 %v5947_v19  ;;  %v6168_v52 = vpop.eup %6167  ;;  %v5504_v13 = vand.u32 2147483648, %v10510_v10 }
 0x4b0   :  { %3950 = vmatmul.f32.vlgmr.msra.gmra.mxu3 %v12478_v14  ;;  %v5446_v53 = vsel %vm5443_vm13, %v5445_v60, %v5441_v58  ;;  %6171 = vrcp.f32 %v10531_v54  ;;  %vm5499_vm14 = vweird.f32 %v6166_v57  ;;  %vm5558_vm2 = vweird.f32 %v10531_v54 }
 0x4b1   :  { %v5771_v33 = vmul.f32 %v6168_v52, %v5446_v53  ;;  %v5495_v48 = vsub.f32 1.0, %v5494_v6  ;;  %6173 = vtanh.f32 %v10453_v43  ;;  %vm5500_vm0 = vmor %vm5498_vm15, %vm5499_vm14 }
 0x4b2   :  { %3777 = vmatmul.f32.gmra.mxu2 %v12606_v62  ;;  %v10538_v35 = vpop.f32.mrf.mxu0  ;;  %v3453_v15 = vpop.f32.mrf.mxu3  ;;  %v5564_v62 = vand.u32 2147483648, %v10531_v54 }
 0x4b3   :  { %v10542_v7 = vpop.f32.mrf.mxu1  ;;  %v5787_v46 = vmul.f32 %v5771_v33, %v12506_v42  ;;  %v5496_v8 = vmul.f32 %v6166_v57, %v5495_v48  ;;  %v10546_v9 = vadd.f32 %v3453_v15, %v3348_v29  ;;  %v5505_v42 = vor.u32 1.1754944e-38, %v5504_v13  ;;  %v12608_v48 = vld [vmem:[#allocation23_spill] sm:$0xff] }
 0x4b4   :  { %v3352_v56 = vpop.f32.mrf.mxu2  ;;  %v5562_v15 = vand.u32 2147483647, %v10531_v54 }
 0x4b5   :  { %v3353_v31 = vadd.f32 %v3352_v56, %v3254_v23  ;;  %v6170_v19 = vpop.eup %6169  ;;  %v5803_v43 = vadd.f32 %v5787_v46, %v12510_v40  ;;  %v5497_v60 = vadd.f32 %v6166_v57, %v5496_v8  ;;  %v12607_v40 = vld [vmem:[#allocation68_spill] sm:$0xff] }
 0x4b6   :  { %3603 = vmatmul.f32.gmra.mxu0 %v12524_v0  ;;  %3688 = vmatmul.f32.gmra.mxu1 %v12515_v12  ;;  %v6172_v30 = vpop.eup %6171  ;;  %v10552_v34 = vadd.f32 1.0, %v6170_v19  ;;  %vm5563_vm5 = vcmp.eq.f32.partialorder %v5562_v15, 8.507059e+37 }
 0x4b7   :  { %5819 = vst [vmem:[#allocation2 + $0x8] sm:$0xff] %v5803_v43  ;;  %v5501_v58 = vsel %vm5500_vm0, %v6166_v57, %v5497_v60  ;;  %v5554_v23 = vmul.f32 %v6172_v30, %v10531_v54  ;;  %v6174_v6 = vpop.eup %6173  ;;  %vm5559_vm1 = vweird.f32 %v6172_v30  ;;  %v5565_v60 = vor.u32 1.1754944e-38, %v5564_v62  ;;  %v12610_v54 = vld [vmem:[#allocation93_spill] sm:$0xff] }
 0x4b8   :  { %3954 = vmatmul.f32.gmra.mxu3 %v12597_v5  ;;  %v5506_v52 = vsel %vm5503_vm3, %v5505_v42, %v5501_v58  ;;  %6175 = vrcp.f32 %v10552_v34  ;;  %vm5560_vm4 = vmor %vm5558_vm2, %vm5559_vm1  ;;  %vm5618_vm7 = vweird.f32 %v10552_v34 }
 0x4b9   :  { %v5775_v10 = vmul.f32 %v6174_v6, %v5506_v52  ;;  %v5555_v53 = vsub.f32 1.0, %v5554_v23  ;;  %6177 = vtanh.f32 %v10495_v37  ;;  %v12609_v37 = vld [vmem:[#allocation58_spill] sm:$0xff] }
 0x4ba   :  { %3785 = vmatmul.f32.gmra.mxu2 %v12607_v40  ;;  %v3459_v33 = vpop.f32.mrf.mxu3  ;;  %v3085_v19 = vadd.f32 %v10491_v22, %v12609_v37  ;;  %6179 = vtanh.f32 %v10523_v47  ;;  %v12611_v47 = vld [vmem:[#allocation151_spill] sm:$0xff] }
 0x4bb   :  { %v10558_v28 = vpop.f32.mrf.mxu0  ;;  %v10562_v57 = vpop.f32.mrf.mxu1  ;;  %v5791_v13 = vmul.f32 %v5775_v10, %v12608_v48  ;;  %v5556_v29 = vmul.f32 %v6172_v30, %v5555_v53  ;;  %v10566_v8 = vadd.f32 %v3459_v33, %v3353_v31  ;;  %v5622_v10 = vand.u32 2147483647, %v10552_v34 }
 0x4bc   :  { %v3258_v58 = vadd.f32 %v10521_v27, %v3085_v19 }
 0x4bd   :  { %v3357_v46 = vpop.f32.mrf.mxu2  ;;  %v5807_v1 = vadd.f32 %v5791_v13, %v12507_v36  ;;  %v5557_v56 = vadd.f32 %v6172_v30, %v5556_v29  ;;  %vm5623_vm10 = vcmp.eq.f32.partialorder %v5622_v10, 8.507059e+37 }
 0x4be   :  { %3607 = vmatmul.f32.gmra.mxu0 %v12529_v16  ;;  %3692 = vmatmul.f32.gmra.mxu1 %v12524_v0  ;;  %v6176_v43 = vpop.eup %6175  ;;  %v3358_v52 = vadd.f32 %v3357_v46, %v3258_v58  ;;  %v3093_v46 = vadd.f32 %v10516_v44, %v12611_v47 }
 0x4bf   :  { %5823 = vst [vmem:[#allocation2 + $0x28] sm:$0xff] %v5807_v1  ;;  %v5561_v42 = vsel %vm5560_vm4, %v6172_v30, %v5557_v56  ;;  %v5614_v31 = vmul.f32 %v6176_v43, %v10552_v34  ;;  %v6178_v36 = vpop.eup %6177  ;;  %v5624_v30 = vand.u32 2147483648, %v10552_v34  ;;  %vm5619_vm6 = vweird.f32 %v6176_v43  ;;  %v12612_v56 = vld [vmem:[#allocation137_spill] sm:$0xff]  ;;  %v12613_v34 = vld [vmem:[#allocation84_spill] sm:$0xff] }
 0x4c0   :  { %3958 = vmatmul.f32.gmra.mxu3 %v12505_v11  ;;  %v5566_v23 = vsel %vm5563_vm5, %v5565_v60, %v5561_v42  ;;  %vm5620_vm8 = vmor %vm5618_vm7, %vm5619_vm6  ;;  %v3101_v19 = vadd.f32 %v10538_v35, %v12612_v56  ;;  %v3262_v60 = vadd.f32 %v10542_v7, %v3093_v46 }
 0x4c1   :  { %v5779_v6 = vmul.f32 %v6178_v36, %v5566_v23  ;;  %v5615_v22 = vsub.f32 1.0, %v5614_v31  ;;  %v5625_v1 = vor.u32 1.1754944e-38, %v5624_v30 }
 0x4c2   :  { %3793 = vmatmul.f32.gmra.mxu2 %v12610_v54 }
 0x4c3   :  { %v3116_v40 = vpop.f32.mrf.mxu0  ;;  %v3269_v53 = vpop.f32.mrf.mxu1  ;;  %v5795_v27 = vmul.f32 %v5779_v6, %v12518_v41  ;;  %v5616_v33 = vmul.f32 %v6176_v43, %v5615_v22 }
 0x4c4   :  { %v3465_v62 = vpop.f32.mrf.mxu3 }
 0x4c5   :  { %v3362_v48 = vpop.f32.mrf.mxu2  ;;  %v10582_v13 = vadd.f32 %v3465_v62, %v3358_v52  ;;  %v5811_v29 = vadd.f32 %v5795_v27, %v12520_v50  ;;  %v5617_v15 = vadd.f32 %v6176_v43, %v5616_v33  ;;  %v6180_v50 = vpop.eup %6179  ;;  %v12614_v62 = vld [vmem:[#allocation54_spill] sm:$0xff]  ;;  %v12615_v33 = vld [vmem:[#allocation113_spill] sm:$0xff] }
 0x4c6   :  { %3611 = vmatmul.f32.gmra.mxu0 %v12534_v32  ;;  %3696 = vmatmul.f32.gmra.mxu1 %v12529_v16  ;;  %v3363_v44 = vadd.f32 %v3362_v48, %v3262_v60  ;;  %v3109_v27 = vadd.f32 %v10558_v28, %v12614_v62  ;;  %v12618_v28 = vld [vmem:[#allocation145_spill] sm:$0xff] }
 0x4c7   :  { %5827 = vst [vmem:[#allocation2 + $0x48] sm:$0xff] %v5811_v29  ;;  %v5621_v41 = vsel %vm5620_vm8, %v6176_v43, %v5617_v15  ;;  %v3266_v43 = vadd.f32 %v10562_v57, %v3101_v19  ;;  %v12617_v19 = vld [vmem:[#allocation9_spill] sm:$0xff] }
 0x4c8   :  { %3962 = vmatmul.f32.gmra.mxu3 %v12515_v12  ;;  %v5626_v42 = vsel %vm5623_vm10, %v5625_v1, %v5621_v41  ;;  %v12616_v41 = vld [vmem:[#allocation119_spill] sm:$0xff]  ;;  %v3117_v60 = vadd.f32 %v3116_v40, %v12617_v19 }
 0x4c9   :  { %v5783_v31 = vmul.f32 %v6180_v50, %v5626_v42  ;;  %v12619_v42 = vld [vmem:[#allocation117_spill] sm:$0xff] }
 0x4ca   :  { %3801 = vmatmul.f32.gmra.mxu2 %v12613_v34 }
 0x4cb   :  { %v3124_v58 = vpop.f32.mrf.mxu0  ;;  %v3273_v36 = vpop.f32.mrf.mxu1  ;;  %v5799_v54 = vmul.f32 %v5783_v31, %v12521_v38 }
 0x4cc   :  { %v3471_v23 = vpop.f32.mrf.mxu3  ;;  %v3125_v50 = vadd.f32 %v3124_v58, %v12618_v28  ;;  %v12621_v58 = vld [vmem:[#allocation121_spill] sm:$0xff] }
 0x4cd   :  { %v3367_v6 = vpop.f32.mrf.mxu2  ;;  %v10597_v22 = vadd.f32 %v3471_v23, %v3363_v44  ;;  %v5815_v35 = vadd.f32 %v5799_v54, %v12522_v63  ;;  %v3270_v63 = vadd.f32 %v3269_v53, %v3109_v27  ;;  %v3274_v53 = vadd.f32 %v3273_v36, %v3117_v60 }
 0x4ce   :  { %3615 = vmatmul.f32.gmra.mxu0 %v12540_v21  ;;  %3700 = vmatmul.f32.gmra.mxu1 %v12534_v32  ;;  %v3368_v7 = vadd.f32 %v3367_v6, %v3266_v43 }
 0x4cf   :  { %5831 = vst [vmem:[#allocation2 + $0x68] sm:$0xff] %v5815_v35  ;;  %v12620_v35 = vld [vmem:[#allocation123_spill] sm:$0xff] }
 0x4d0   :  { %3966 = vmatmul.f32.gmra.mxu3 %v12524_v0 }
 0x4d2   :  { %3809 = vmatmul.f32.gmra.mxu2 %v12523_v55 }
 0x4d3   :  { %v3132_v52 = vpop.f32.mrf.mxu0  ;;  %v3277_v10 = vpop.f32.mrf.mxu1 }
 0x4d4   :  { %v3477_v38 = vpop.f32.mrf.mxu3  ;;  %v3278_v54 = vadd.f32 %v3277_v10, %v3125_v50  ;;  %v12623_v10 = vld [vmem:[#allocation69_spill] sm:$0xff] }
 0x4d5   :  { %v3372_v30 = vpop.f32.mrf.mxu2  ;;  %v10604_v57 = vadd.f32 %v3477_v38, %v3368_v7 }
 0x4d6   :  { %3619 = vmatmul.f32.gmra.mxu0 %v12545_v3  ;;  %3704 = vmatmul.f32.gmra.mxu1 %v12540_v21  ;;  %v3373_v48 = vadd.f32 %v3372_v30, %v3270_v63  ;;  %v12622_v63 = vld [vmem:[#allocation127_spill] sm:$0xff] }
 0x4d8   :  { %3970 = vmatmul.f32.gmra.mxu3 %v12529_v16 }
 0x4da   :  { %3817 = vmatmul.f32.gmra.mxu2 %v12615_v33  ;;  %v3133_v33 = vadd.f32 %v3132_v52, %v12623_v10  ;;  %v12626_v52 = vld [vmem:[#allocation86_spill] sm:$0xff] }
 0x4db   :  { %v3140_v55 = vpop.f32.mrf.mxu0  ;;  %v3281_v29 = vpop.f32.mrf.mxu1 }
 0x4dc   :  { %v3483_v15 = vpop.f32.mrf.mxu3 }
 0x4dd   :  { %v3377_v46 = vpop.f32.mrf.mxu2  ;;  %v10612_v1 = vadd.f32 %v3483_v15, %v3373_v48  ;;  %v3282_v48 = vadd.f32 %v3281_v29, %v3133_v33  ;;  %v12624_v15 = vld [vmem:[#allocation125_spill] sm:$0xff] }
 0x4de   :  { %3623 = vmatmul.f32.gmra.mxu0 %v12616_v41  ;;  %3708 = vmatmul.f32.gmra.mxu1 %v12545_v3  ;;  %v3378_v34 = vadd.f32 %v3377_v46, %v3274_v53 }
 0x4e0   :  { %3974 = vmatmul.f32.gmra.mxu3 %v12534_v32 }
 0x4e2   :  { %3825 = vmatmul.f32.gmra.mxu2 %v12619_v42 }
 0x4e3   :  { %v3148_v31 = vpop.f32.mrf.mxu0  ;;  %v3285_v44 = vpop.f32.mrf.mxu1 }
 0x4e4   :  { %v3489_v23 = vpop.f32.mrf.mxu3 }
 0x4e5   :  { %v3382_v43 = vpop.f32.mrf.mxu2  ;;  %v10620_v6 = vadd.f32 %v3489_v23, %v3378_v34  ;;  %v12625_v23 = vld [vmem:[#allocation96_spill] sm:$0xff] }
 0x4e6   :  { %3627 = vmatmul.f32.gmra.mxu0 %v12620_v35  ;;  %3712 = vmatmul.f32.gmra.mxu1 %v12616_v41  ;;  %v3383_v40 = vadd.f32 %v3382_v43, %v3278_v54  ;;  %v3141_v54 = vadd.f32 %v3140_v55, %v12625_v23  ;;  %v3149_v43 = vadd.f32 %v3148_v31, %v12626_v52  ;;  %v12628_v31 = vld [vmem:[#allocation133_spill] sm:$0xff] }
 0x4e8   :  { %3978 = vmatmul.f32.gmra.mxu3 %v12540_v21  ;;  %v3286_v29 = vadd.f32 %v3285_v44, %v3141_v54 }
 0x4ea   :  { %3833 = vmatmul.f32.gmra.mxu2 %v12621_v58 }
 0x4eb   :  { %v3156_v36 = vpop.f32.mrf.mxu0  ;;  %v3289_v7 = vpop.f32.mrf.mxu1 }
 0x4ec   :  { %v3495_v38 = vpop.f32.mrf.mxu3 }
 0x4ed   :  { %v3387_v30 = vpop.f32.mrf.mxu2  ;;  %v10626_v27 = vadd.f32 %v3495_v38, %v3383_v40  ;;  %v12627_v40 = vld [vmem:[#allocation129_spill] sm:$0xff] }
 0x4ee   :  { %3631 = vmatmul.f32.gmra.mxu0 %v12622_v63  ;;  %3716 = vmatmul.f32.gmra.mxu1 %v12620_v35  ;;  %v3388_v46 = vadd.f32 %v3387_v30, %v3282_v48  ;;  %v3290_v48 = vadd.f32 %v3289_v7, %v3149_v43  ;;  %v12629_v7 = vld [vmem:[#allocation66_spill] sm:$0xff] }
 0x4ef   :  { %v3157_v43 = vadd.f32 %v3156_v36, %v12629_v7  ;;  %v12632_v36 = vld [vmem:[#allocation63_spill] sm:$0xff] }
 0x4f0   :  { %3982 = vmatmul.f32.gmra.mxu3 %v12545_v3 }
 0x4f2   :  { %3841 = vmatmul.f32.gmra.mxu2 %v12624_v15 }
 0x4f3   :  { %v3164_v60 = vpop.f32.mrf.mxu0  ;;  %v3293_v50 = vpop.f32.mrf.mxu1 }
 0x4f4   :  { %v3501_v53 = vpop.f32.mrf.mxu3 }
 0x4f5   :  { %v3392_v42 = vpop.f32.mrf.mxu2  ;;  %v10633_v34 = vadd.f32 %v3501_v53, %v3388_v46 }
 0x4f6   :  { %3635 = vmatmul.f32.gmra.mxu0 %v12432_v51  ;;  %3720 = vmatmul.f32.gmra.mxu1 %v12622_v63  ;;  %v3393_v58 = vadd.f32 %v3392_v42, %v3286_v29 }
 0x4f8   :  { %3986 = vmatmul.f32.gmra.mxu3 %v12616_v41 }
 0x4fa   :  { %3849 = vmatmul.f32.gmra.mxu2 %v12627_v40  ;;  %v3294_v40 = vadd.f32 %v3293_v50, %v3157_v43  ;;  %v12633_v43 = vld [vmem:[#allocation62_spill] sm:$0xff] }
 0x4fb   :  { %v3172_v38 = vpop.f32.mrf.mxu0  ;;  %v3297_v30 = vpop.f32.mrf.mxu1 }
 0x4fc   :  { %v3507_v33 = vpop.f32.mrf.mxu3  ;;  %v3173_v39 = vadd.f32 %v3172_v38, %v12632_v36  ;;  %v12635_v38 = vld [vmem:[#allocation77_spill] sm:$0xff]  ;;  %v12636_v36 = vld [vmem:[#allocation98_spill] sm:$0xff] }
 0x4fd   :  { %v3397_v15 = vpop.f32.mrf.mxu2  ;;  %v10641_v46 = vadd.f32 %v3507_v33, %v3393_v58  ;;  %v12630_v58 = vld [vmem:[#allocation139_spill] sm:$0xff] }
 0x4fe   :  { %3639 = vmatmul.f32.gmra.mxu0 %v12457_v59  ;;  %3724 = vmatmul.f32.gmra.mxu1 %v12432_v51  ;;  %v3398_v55 = vadd.f32 %v3397_v15, %v3290_v48 }
 0x500   :  { %3990 = vmatmul.f32.gmra.mxu3 %v12620_v35 }
 0x502   :  { %3857 = vmatmul.f32.gmra.mxu2 %v12628_v31 }
 0x503   :  { %v3180_v44 = vpop.f32.mrf.mxu0  ;;  %v3301_v53 = vpop.f32.mrf.mxu1 }
 0x504   :  { %v3513_v54 = vpop.f32.mrf.mxu3  ;;  %v3302_v49 = vadd.f32 %v3301_v53, %v3173_v39  ;;  %v12637_v39 = vld [vmem:[#allocation57_spill] sm:$0xff] }
 0x505   :  { %v3402_v42 = vpop.f32.mrf.mxu2  ;;  %v10647_v29 = vadd.f32 %v3513_v54, %v3398_v55  ;;  %v12631_v55 = vld [vmem:[#allocation46_spill] sm:$0xff]  ;;  %v3181_v53 = vadd.f32 %v3180_v44, %v12637_v39 }
 0x506   :  { %3643 = vmatmul.f32.gmra.mxu0 %v12471_v45  ;;  %3728 = vmatmul.f32.gmra.mxu1 %v12457_v59  ;;  %v3403_v33 = vadd.f32 %v3402_v42, %v3294_v40  ;;  %v3165_v54 = vadd.f32 %v3164_v60, %v12631_v55 }
 0x508   :  { %3994 = vmatmul.f32.gmra.mxu3 %v12622_v63  ;;  %v3298_v50 = vadd.f32 %v3297_v30, %v3165_v54 }
 0x50a   :  { %3865 = vmatmul.f32.gmra.mxu2 %v12630_v58 }
 0x50b   :  { %v3188_v48 = vpop.f32.mrf.mxu0  ;;  %v3305_v15 = vpop.f32.mrf.mxu1 }
 0x50c   :  { %v3519_v31 = vpop.f32.mrf.mxu3 }
 0x50d   :  { %v3407_v4 = vpop.f32.mrf.mxu2  ;;  %v10654_v26 = vadd.f32 %v3519_v31, %v3403_v33 }
 0x50e   :  { %3647 = vmatmul.f32.gmra.mxu0 %v12482_v24  ;;  %3732 = vmatmul.f32.gmra.mxu1 %v12471_v45  ;;  %v3408_v42 = vadd.f32 %v3407_v4, %v3298_v50 }
 0x510   :  { %3998 = vmatmul.f32.gmra.mxu3 %v12432_v51  ;;  %v12641_v51 = vld [vmem:[#allocation102_spill] sm:$0xff] }
 0x512   :  { %3873 = vmatmul.f32.gmra.mxu2 %v12633_v43 }
 0x513   :  { %v3588_v40 = vpop.f32.mrf.mxu0  ;;  %v3309_v58 = vpop.f32.mrf.mxu1 }
 0x514   :  { %v3525_v7 = vpop.f32.mrf.mxu3 }
 0x515   :  { %v3412_v33 = vpop.f32.mrf.mxu2  ;;  %v10662_v31 = vadd.f32 %v3525_v7, %v3408_v42  ;;  %v12638_v7 = vld [vmem:[#allocation94_spill] sm:$0xff] }
 0x516   :  { %4048 = vmatmul.f32.vlgmr.msrb.gmra.mxu0 %v12634_v20  ;;  %3736 = vmatmul.f32.gmra.mxu1 %v12482_v24  ;;  %v3413_v60 = vadd.f32 %v3412_v33, %v3302_v49  ;;  %v3306_v20 = vadd.f32 %v3305_v15, %v3181_v53 }
 0x518   :  { %4002 = vmatmul.f32.gmra.mxu3 %v12457_v59 }
 0x51a   :  { %3881 = vmatmul.f32.gmra.mxu2 %v12635_v38 }
 0x51b   :  { %v3592_v30 = vpop.f32.mrf.mxu0  ;;  %v3677_v43 = vpop.f32.mrf.mxu1 }
 0x51c   :  { %v3531_v54 = vpop.f32.mrf.mxu3 }
 0x51d   :  { %v3417_v4 = vpop.f32.mrf.mxu2  ;;  %v10668_v50 = vadd.f32 %v3531_v54, %v3413_v60  ;;  %v12639_v60 = vld [vmem:[#allocation104_spill] sm:$0xff]  ;;  %v12640_v54 = vld [vmem:[#allocation81_spill] sm:$0xff] }
 0x51e   :  { %4053 = vmatmul.f32.gmra.mxu0 %v12636_v36  ;;  %4154 = vmatmul.f32.vlgmr.msrb.gmra.mxu1 %v12638_v7  ;;  %v3418_v49 = vadd.f32 %v3417_v4, %v3306_v20  ;;  %v3189_v36 = vadd.f32 %v3188_v48, %v12640_v54 }
 0x520   :  { %4006 = vmatmul.f32.gmra.mxu3 %v12471_v45  ;;  %v3310_v44 = vadd.f32 %v3309_v58, %v3189_v36 }
 0x522   :  { %3889 = vmatmul.f32.gmra.mxu2 %v12585_v17 }
 0x523   :  { %v3596_v42 = vpop.f32.mrf.mxu0  ;;  %v3681_v38 = vpop.f32.mrf.mxu1 }
 0x524   :  { %v3537_v33 = vpop.f32.mrf.mxu3 }
 0x525   :  { %v3422_v55 = vpop.f32.mrf.mxu2  ;;  %v10675_v59 = vadd.f32 %v3537_v33, %v3418_v49  ;;  %v12642_v49 = vld [vmem:[#allocation106_spill] sm:$0xff]  ;;  %v3589_v33 = vadd.f32 %v3588_v40, %v10546_v9  ;;  %v3597_v9 = vadd.f32 %v3596_v42, %v10582_v13 }
 0x526   :  { %4058 = vmatmul.f32.gmra.mxu0 %v12639_v60  ;;  %4160 = vmatmul.f32.gmra.mxu1 %v12641_v51  ;;  %v3423_v15 = vadd.f32 %v3422_v55, %v3310_v44  ;;  %v12643_v60 = vld [vmem:[#allocation72_spill] sm:$0xff]  ;;  %v3593_v51 = vadd.f32 %v3592_v30, %v10566_v8 }
 0x527   :  { %v3678_v48 = vadd.f32 %v3677_v43, %v3589_v33  ;;  %v12645_v8 = vld [vmem:[#allocation108_spill] sm:$0xff] }
 0x528   :  { %4010 = vmatmul.f32.gmra.mxu3 %v12482_v24  ;;  %v3682_v58 = vadd.f32 %v3681_v38, %v3593_v51  ;;  %v12646_v51 = vld [vmem:[#allocation91_spill] sm:$0xff] }
 0x52a   :  { %4289 = vmatmul.f32.vlgmr.msrb.gmra.mxu2 %v12478_v14  ;;  %v5892_v40 = vmul.f32 -1.442695, %v3682_v58 }
 0x52b   :  { %v3600_v17 = vpop.f32.mrf.mxu0  ;;  %v3685_v53 = vpop.f32.mrf.mxu1 }
 0x52c   :  { %v3543_v4 = vpop.f32.mrf.mxu3  ;;  %v3601_v13 = vadd.f32 %v3600_v17, %v10597_v22 }
 0x52d   :  { %v10682_v7 = vadd.f32 %v3543_v4, %v3423_v15  ;;  %v3770_v20 = vpop.f32.mrf.mxu2  ;;  %v5888_v4 = vmul.f32 -1.442695, %v3678_v48  ;;  %v12647_v48 = vld [vmem:[#allocation97_spill] sm:$0xff] }
 0x52e   :  { %4063 = vmatmul.f32.gmra.mxu0 %v12642_v49  ;;  %4166 = vmatmul.f32.gmra.mxu1 %v12643_v60  ;;  %v3771_v55 = vadd.f32 %v3770_v20, %v12605_v61  ;;  %v12644_v60 = vld [vmem:[#allocation11_spill] sm:$0xff] }
 0x52f   :  { %6181 = vpow2.f32 %v5888_v4 }
 0x530   :  { %4378 = vmatmul.f32.vlgmr.msrb.gmra.mxu3 %v12478_v14  ;;  %v3686_v14 = vadd.f32 %v3685_v53, %v3597_v9  ;;  %6183 = vpow2.f32 %v5892_v40 }
 0x532   :  { %4293 = vmatmul.f32.gmra.mxu2 %v12597_v5  ;;  %v5896_v43 = vmul.f32 -1.442695, %v3686_v14 }
 0x533   :  { %v3604_v36 = vpop.f32.mrf.mxu0  ;;  %v3689_v44 = vpop.f32.mrf.mxu1 }
 0x534   :  { %v3951_v15 = vpop.f32.mrf.mxu3  ;;  %6185 = vpow2.f32 %v5896_v43  ;;  %v3690_v58 = vadd.f32 %v3689_v44, %v3601_v13  ;;  %v12648_v44 = vld [vmem:[#allocation87_spill] sm:$0xff] }
 0x535   :  { %v3778_v54 = vpop.f32.mrf.mxu2  ;;  %v10691_v49 = vadd.f32 %v3951_v15, %v3771_v55  ;;  %v6182_v53 = vpop.eup %6181 }
 0x536   :  { %4068 = vmatmul.f32.gmra.mxu0 %v12644_v60  ;;  %4172 = vmatmul.f32.gmra.mxu1 %v12645_v8  ;;  %v3779_v61 = vadd.f32 %v3778_v54, %v12602_v18  ;;  %v10705_v18 = vadd.f32 1.0, %v6182_v53  ;;  %v3605_v54 = vadd.f32 %v3604_v36, %v10604_v57  ;;  %v5900_v17 = vmul.f32 -1.442695, %v3690_v58  ;;  %v12649_v57 = vld [vmem:[#allocation50_spill] sm:$0xff] }
 0x538   :  { %4382 = vmatmul.f32.gmra.mxu3 %v12597_v5  ;;  %v6184_v5 = vpop.eup %6183  ;;  %6187 = vrcp.f32 %v10705_v18  ;;  %vm4733_vm12 = vweird.f32 %v10705_v18 }
 0x539   :  { %v10709_v55 = vadd.f32 1.0, %v6184_v5  ;;  %v12651_v5 = vld [vmem:[#allocation110_spill] sm:$0xff] }
 0x53a   :  { %4297 = vmatmul.f32.gmra.mxu2 %v12505_v11  ;;  %v6186_v8 = vpop.eup %6185 }
 0x53b   :  { %v3608_v30 = vpop.f32.mrf.mxu0  ;;  %v3693_v38 = vpop.f32.mrf.mxu1  ;;  %6189 = vrcp.f32 %v10709_v55  ;;  %v10718_v14 = vadd.f32 1.0, %v6186_v8  ;;  %vm4793_vm15 = vweird.f32 %v10709_v55 }
 0x53c   :  { %v3955_v20 = vpop.f32.mrf.mxu3  ;;  %v3694_v15 = vadd.f32 %v3693_v38, %v3605_v54  ;;  %6191 = vpow2.f32 %v5900_v17 }
 0x53d   :  { %v3786_v33 = vpop.f32.mrf.mxu2  ;;  %v10700_v42 = vadd.f32 %v3955_v20, %v3779_v61  ;;  %vm4853_vm2 = vweird.f32 %v10718_v14 }
 0x53e   :  { %4073 = vmatmul.f32.gmra.mxu0 %v12646_v51  ;;  %4178 = vmatmul.f32.gmra.mxu1 %v12647_v48  ;;  %v3787_v4 = vadd.f32 %v3786_v33, %v12609_v37  ;;  %v5904_v36 = vmul.f32 -1.442695, %v3694_v15  ;;  %v3609_v37 = vadd.f32 %v3608_v30, %v10612_v1  ;;  %v10723_v38 = vpop.eup %6187 }
 0x53f   :  { %v4729_v58 = vmul.f32 %v10723_v38, %v10705_v18  ;;  %vm4734_vm9 = vweird.f32 %v10723_v38 }
 0x540   :  { %4386 = vmatmul.f32.gmra.mxu3 %v12505_v11  ;;  %6193 = vpow2.f32 %v5904_v36  ;;  %vm10784_vm13 = vmor %vm4733_vm12, %vm4734_vm9 }
 0x541   :  { %v10726_v51 = vpop.eup %6189  ;;  %6195 = vrcp.f32 %v10718_v14  ;;  %v4730_v8 = vsub.f32 1.0, %v4729_v58 }
 0x542   :  { %4301 = vmatmul.f32.gmra.mxu2 %v12515_v12  ;;  %v6192_v48 = vpop.eup %6191  ;;  %vm4794_vm11 = vweird.f32 %v10726_v51 }
 0x543   :  { %v3612_v22 = vpop.f32.mrf.mxu0  ;;  %v3697_v9 = vpop.f32.mrf.mxu1  ;;  %v10737_v54 = vadd.f32 1.0, %v6192_v48  ;;  %v4737_v48 = vand.u32 2147483647, %v10705_v18  ;;  %vm10796_vm0 = vmor %vm4793_vm15, %vm4794_vm11 }
 0x544   :  { %v3959_v40 = vpop.f32.mrf.mxu3  ;;  %v3698_v61 = vadd.f32 %v3697_v9, %v3609_v37  ;;  %v3613_v17 = vadd.f32 %v3612_v22, %v10620_v6  ;;  %v12652_v22 = vld [vmem:[#allocation116_spill] sm:$0xff] }
 0x545   :  { %v3794_v60 = vpop.f32.mrf.mxu2  ;;  %v10713_v11 = vadd.f32 %v3959_v40, %v3787_v4  ;;  %vm10788_vm14 = vcmp.eq.f32.partialorder %v4737_v48, 8.507059e+37  ;;  %vm4913_vm7 = vweird.f32 %v10737_v54 }
 0x546   :  { %4078 = vmatmul.f32.gmra.mxu0 %v12648_v44  ;;  %4184 = vmatmul.f32.gmra.mxu1 %v12649_v57  ;;  %v3795_v20 = vadd.f32 %v3794_v60, %v12611_v47  ;;  %v5908_v30 = vmul.f32 -1.442695, %v3698_v61  ;;  %v4789_v47 = vmul.f32 %v10726_v51, %v10709_v55  ;;  %v6194_v15 = vpop.eup %6193 }
 0x547   :  { %v10743_v9 = vpop.eup %6195  ;;  %v10746_v37 = vadd.f32 1.0, %v6194_v15 }
 0x548   :  { %4390 = vmatmul.f32.gmra.mxu3 %v12515_v12  ;;  %v12650_v12 = vld [vmem:[#allocation112_spill] sm:$0xff]  ;;  %6197 = vpow2.f32 %v5908_v30  ;;  %v4790_v36 = vsub.f32 1.0, %v4789_v47  ;;  %vm4854_vm3 = vweird.f32 %v10743_v9 }
 0x549   :  { %6199 = vrcp.f32 %v10737_v54  ;;  %vm10825_vm4 = vmor %vm4853_vm2, %vm4854_vm3  ;;  %vm4973_vm11 = vweird.f32 %v10746_v37 }
 0x54a   :  { %4305 = vmatmul.f32.gmra.mxu2 %v12524_v0  ;;  %6201 = vrcp.f32 %v10746_v37 }
 0x54b   :  { %v3616_v43 = vpop.f32.mrf.mxu0  ;;  %v3701_v33 = vpop.f32.mrf.mxu1 }
 0x54c   :  { %v3963_v13 = vpop.f32.mrf.mxu3  ;;  %v3702_v40 = vadd.f32 %v3701_v33, %v3613_v17  ;;  %v4731_v33 = vmul.f32 %v10723_v38, %v4730_v8 }
 0x54d   :  { %v3802_v53 = vpop.f32.mrf.mxu2  ;;  %v10729_v1 = vadd.f32 %v3963_v13, %v3795_v20  ;;  %v12653_v20 = vld [vmem:[#allocation114_spill] sm:$0xff] }
 0x54e   :  { %4083 = vmatmul.f32.gmra.mxu0 %v12650_v12  ;;  %4190 = vmatmul.f32.gmra.mxu1 %v12651_v5  ;;  %v3803_v4 = vadd.f32 %v3802_v53, %v12612_v56  ;;  %v5912_v61 = vmul.f32 -1.442695, %v3702_v40  ;;  %v6198_v13 = vpop.eup %6197  ;;  %v4791_v53 = vmul.f32 %v10726_v51, %v4790_v36  ;;  %v4739_v12 = vand.u32 2147483648, %v10705_v18 }
 0x54f   :  { %v10761_v5 = vpop.eup %6199  ;;  %v4732_v15 = vadd.f32 %v10723_v38, %v4731_v33  ;;  %v3617_v40 = vadd.f32 %v3616_v43, %v10626_v27  ;;  %v12659_v33 = vld [vmem:[#allocation118_spill] sm:$0xff] }
 0x550   :  { %4394 = vmatmul.f32.gmra.mxu3 %v12524_v0  ;;  %v4849_v0 = vmul.f32 %v10743_v9, %v10718_v14  ;;  %6203 = vpow2.f32 %v5912_v61  ;;  %v4792_v36 = vadd.f32 %v10726_v51, %v4791_v53  ;;  %v12654_v61 = vld [vmem:[#allocation120_spill] sm:$0xff]  ;;  %v10780_v27 = vpop.eup %6201  ;;  %v4797_v53 = vand.u32 2147483647, %v10709_v55 }
 0x551   :  { %vm4914_vm6 = vweird.f32 %v10761_v5  ;;  %vm4974_vm9 = vweird.f32 %v10780_v27 }
 0x552   :  { %4309 = vmatmul.f32.gmra.mxu2 %v12529_v16  ;;  %v4850_v30 = vsub.f32 1.0, %v4849_v0  ;;  %vm4798_vm1 = vcmp.eq.f32.partialorder %v4797_v53, 8.507059e+37  ;;  %v12665_v53 = vld [vmem:[#allocation122_spill] sm:$0xff]  ;;  %vm10863_vm8 = vmor %vm4913_vm7, %vm4914_vm6 }
 0x553   :  { %v3620_v60 = vpop.f32.mrf.mxu0  ;;  %v3705_v44 = vpop.f32.mrf.mxu1 }
 0x554   :  { %v3967_v57 = vpop.f32.mrf.mxu3  ;;  %v3621_v58 = vadd.f32 %v3620_v60, %v10633_v34  ;;  %v4909_v60 = vmul.f32 %v10761_v5, %v10737_v54 }
 0x555   :  { %v3810_v6 = vpop.f32.mrf.mxu2  ;;  %v10750_v56 = vadd.f32 %v3967_v57, %v3803_v4  ;;  %v10768_v4 = vadd.f32 1.0, %v6198_v13 }
 0x556   :  { %4088 = vmatmul.f32.gmra.mxu0 %v12652_v22  ;;  %4196 = vmatmul.f32.gmra.mxu1 %v12653_v20  ;;  %v3811_v47 = vadd.f32 %v3810_v6, %v12614_v62  ;;  %v4851_v62 = vmul.f32 %v10743_v9, %v4850_v30  ;;  %v3706_v6 = vadd.f32 %v3705_v44, %v3617_v40  ;;  %v4740_v44 = vor.u32 1.1754944e-38, %v4739_v12  ;;  %v6204_v48 = vpop.eup %6203  ;;  %v12664_v20 = vld [vmem:[#allocation124_spill] sm:$0xff] }
 0x557   :  { %6205 = vrcp.f32 %v10768_v4  ;;  %v4796_v12 = vsel %vm10796_vm0, %v10726_v51, %v4792_v36  ;;  %v10821_v36 = vadd.f32 1.0, %v6204_v48  ;;  %v4917_v48 = vand.u32 2147483647, %v10737_v54 }
 0x558   :  { %4398 = vmatmul.f32.gmra.mxu3 %v12529_v16  ;;  %v4799_v16 = vand.u32 2147483648, %v10709_v55  ;;  %v4910_v55 = vsub.f32 1.0, %v4909_v60  ;;  %v5916_v40 = vmul.f32 -1.442695, %v3706_v6 }
 0x559   :  { %vm10867_vm10 = vcmp.eq.f32.partialorder %v4917_v48, 8.507059e+37  ;;  %vm5093_vm7 = vweird.f32 %v10821_v36 }
 0x55a   :  { %4313 = vmatmul.f32.gmra.mxu2 %v12534_v32  ;;  %v4800_v30 = vor.u32 1.1754944e-38, %v4799_v16  ;;  %v4969_v16 = vmul.f32 %v10780_v27, %v10746_v37 }
 0x55b   :  { %v3624_v17 = vpop.f32.mrf.mxu0  ;;  %v3709_v8 = vpop.f32.mrf.mxu1 }
 0x55c   :  { %v3971_v57 = vpop.f32.mrf.mxu3  ;;  %v3710_v0 = vadd.f32 %v3709_v8, %v3621_v58  ;;  %v4736_v58 = vsel %vm10784_vm13, %v10723_v38, %v4732_v15  ;;  %v4857_v38 = vand.u32 2147483647, %v10718_v14  ;;  %v4859_v15 = vand.u32 2147483648, %v10718_v14  ;;  %vm10897_vm13 = vmor %vm4973_vm11, %vm4974_vm9 }
 0x55d   :  { %v3818_v22 = vpop.f32.mrf.mxu2  ;;  %v10773_v34 = vadd.f32 %v3971_v57, %v3811_v47  ;;  %v4852_v47 = vadd.f32 %v10743_v9, %v4851_v62  ;;  %v3625_v51 = vadd.f32 %v3624_v17, %v10641_v46  ;;  %v4801_v60 = vsel %vm4798_vm1, %v4800_v30, %v4796_v12 }
 0x55e   :  { %4093 = vmatmul.f32.gmra.mxu0 %v12654_v61  ;;  %v5920_v18 = vmul.f32 -1.442695, %v3710_v0  ;;  %4202 = vmatmul.f32.gmra.mxu1 %v12659_v33  ;;  %v3819_v8 = vadd.f32 %v3818_v22, %v12617_v19  ;;  %v10831_v22 = vpop.eup %6205  ;;  %v4911_v61 = vmul.f32 %v10761_v5, %v4910_v55  ;;  %v4970_v43 = vsub.f32 1.0, %v4969_v16 }
 0x55f   :  { %v4856_v14 = vsel %vm10825_vm4, %v10743_v9, %v4852_v47  ;;  %vm4858_vm5 = vcmp.eq.f32.partialorder %v4857_v38, 8.507059e+37  ;;  %v5664_v30 = vmul.f32 2.0, %v4801_v60  ;;  %v5029_v16 = vmul.f32 %v10831_v22, %v10768_v4 }
 0x560   :  { %6207 = vpow2.f32 %v5920_v18  ;;  %4402 = vmatmul.f32.gmra.mxu3 %v12534_v32  ;;  %v4741_v32 = vsel %vm10788_vm14, %v4740_v44, %v4736_v58  ;;  %v4860_v44 = vor.u32 1.1754944e-38, %v4859_v15  ;;  %v4912_v47 = vadd.f32 %v10761_v5, %v4911_v61 }
 0x561   :  { %6209 = vpow2.f32 %v5916_v40  ;;  %v5660_v33 = vmul.f32 2.0, %v4741_v32  ;;  %v4971_v55 = vmul.f32 %v10780_v27, %v4970_v43  ;;  %v4919_v38 = vand.u32 2147483648, %v10737_v54 }
 0x562   :  { %4317 = vmatmul.f32.gmra.mxu2 %v12540_v21  ;;  %6211 = vrcp.f32 %v10821_v36  ;;  %v4861_v9 = vsel %vm4858_vm5, %v4860_v44, %v4856_v14  ;;  %v4979_v32 = vand.u32 2147483648, %v10746_v37  ;;  %v10859_v60 = vadd.f32 -1.0, %v5664_v30 }
 0x563   :  { %v3628_v57 = vpop.f32.mrf.mxu0  ;;  %v3713_v0 = vpop.f32.mrf.mxu1  ;;  %v10852_v40 = vadd.f32 -1.0, %v5660_v33  ;;  %v4916_v14 = vsel %vm10863_vm8, %v10761_v5, %v4912_v47  ;;  %v4972_v61 = vadd.f32 %v10780_v27, %v4971_v55  ;;  %v5030_v43 = vsub.f32 1.0, %v5029_v16 }
 0x564   :  { %v3975_v62 = vpop.f32.mrf.mxu3  ;;  %v3714_v46 = vadd.f32 %v3713_v0, %v3625_v51  ;;  %v3629_v15 = vadd.f32 %v3628_v57, %v10647_v29  ;;  %v4920_v33 = vor.u32 1.1754944e-38, %v4919_v38  ;;  %vm5033_vm14 = vweird.f32 %v10768_v4 }
 0x565   :  { %v3826_v19 = vpop.f32.mrf.mxu2  ;;  %v10829_v17 = vadd.f32 %v3975_v62, %v3819_v8  ;;  %v4977_v8 = vand.u32 2147483647, %v10746_v37  ;;  %v4976_v16 = vsel %vm10897_vm13, %v10780_v27, %v4972_v61  ;;  %v5031_v38 = vmul.f32 %v10831_v22, %v5030_v43 }
 0x566   :  { %4098 = vmatmul.f32.gmra.mxu0 %v12664_v20  ;;  %v6208_v18 = vpop.eup %6207  ;;  %v5924_v13 = vmul.f32 -1.442695, %v3714_v46  ;;  %4208 = vmatmul.f32.gmra.mxu1 %v12665_v53  ;;  %v3827_v12 = vadd.f32 %v3826_v19, %v12618_v28  ;;  %v12670_v20 = vld [vmem:[#allocation128_spill] sm:$0xff]  ;;  %v12671_v53 = vld [vmem:[#allocation126_spill] sm:$0xff]  ;;  %v4921_v47 = vsel %vm10867_vm10, %v4920_v33, %v4916_v14  ;;  %v5039_v27 = vand.u32 2147483648, %v10768_v4 }
 0x567   :  { %v10841_v58 = vadd.f32 1.0, %v6208_v18  ;;  %v6210_v51 = vpop.eup %6209  ;;  %vm10887_vm12 = vcmp.eq.f32.partialorder %v4977_v8, 8.507059e+37  ;;  %vm5034_vm0 = vweird.f32 %v10831_v22 }
 0x568   :  { %6213 = vpow2.f32 %v5924_v13  ;;  %4406 = vmatmul.f32.gmra.mxu3 %v12540_v21  ;;  %v5668_v21 = vmul.f32 2.0, %v4861_v9  ;;  %v10873_v19 = vpop.eup %6211  ;;  %v10882_v44 = vadd.f32 1.0, %v6210_v51  ;;  %v4980_v9 = vor.u32 1.1754944e-38, %v4979_v32  ;;  %vm10946_vm4 = vmor %vm5033_vm14, %vm5034_vm0 }
 0x569   :  { %6215 = vrcp.f32 %v10841_v58  ;;  %v5037_v32 = vand.u32 2147483647, %v10768_v4  ;;  %vm5213_vm3 = vweird.f32 %v10841_v58  ;;  %v5040_v37 = vor.u32 1.1754944e-38, %v5039_v27 }
 0x56a   :  { %4321 = vmatmul.f32.gmra.mxu2 %v12545_v3  ;;  %v10885_v48 = vadd.f32 -1.0, %v5668_v21  ;;  %vm5094_vm8 = vweird.f32 %v10873_v19 }
 0x56b   :  { %v3632_v28 = vpop.f32.mrf.mxu0  ;;  %v3717_v0 = vpop.f32.mrf.mxu1  ;;  %vm10933_vm1 = vcmp.eq.f32.partialorder %v5037_v32, 8.507059e+37 }
 0x56c   :  { %v3979_v62 = vpop.f32.mrf.mxu3  ;;  %v3718_v57 = vadd.f32 %v3717_v0, %v3629_v15  ;;  %v5089_v15 = vmul.f32 %v10873_v19, %v10821_v36  ;;  %v3633_v21 = vadd.f32 %v3632_v28, %v10654_v26  ;;  %v5217_v0 = vand.u32 2147483647, %v10841_v58 }
 0x56d   :  { %v3834_v54 = vpop.f32.mrf.mxu2  ;;  %v10871_v46 = vadd.f32 %v3979_v62, %v3827_v12  ;;  %v5219_v62 = vand.u32 2147483648, %v10841_v58  ;;  %v10921_v26 = vmul.f32 2.0, %v4921_v47  ;;  %v5032_v28 = vadd.f32 %v10831_v22, %v5031_v38  ;;  %v12677_v47 = vld [vmem:[#allocation130_spill] sm:$0xff] }
 0x56e   :  { %4103 = vmatmul.f32.gmra.mxu0 %v12670_v20  ;;  %v6214_v18 = vpop.eup %6213  ;;  %v5928_v13 = vmul.f32 -1.442695, %v3718_v57  ;;  %4214 = vmatmul.f32.gmra.mxu1 %v12671_v53  ;;  %v5090_v33 = vsub.f32 1.0, %v5089_v15  ;;  %vm5218_vm5 = vcmp.eq.f32.partialorder %v5217_v0, 8.507059e+37 }
 0x56f   :  { %v6216_v30 = vpop.eup %6215  ;;  %v10891_v12 = vadd.f32 1.0, %v6214_v18  ;;  %v5692_v18 = vld [vmem:[%s11461_s2 + $0x10] sm:$0xff] }
 0x570   :  { %v5209_v55 = vmul.f32 %v6216_v30, %v10841_v58  ;;  %6217 = vpow2.f32 %v5928_v13  ;;  %4410 = vmatmul.f32.gmra.mxu3 %v12545_v3  ;;  %v3835_v3 = vadd.f32 %v3834_v54, %v12623_v10  ;;  %vm5214_vm15 = vweird.f32 %v6216_v30  ;;  %v12676_v54 = vld [vmem:[#allocation132_spill] sm:$0xff] }
 0x571   :  { %6219 = vrcp.f32 %v10891_v12  ;;  %v4981_v10 = vsel %vm10887_vm12, %v4980_v9, %v4976_v16  ;;  %vm5215_vm2 = vmor %vm5213_vm3, %vm5214_vm15  ;;  %v5091_v4 = vmul.f32 %v10873_v19, %v5090_v33  ;;  %vm5273_vm10 = vweird.f32 %v10891_v12 }
 0x572   :  { %4325 = vmatmul.f32.gmra.mxu2 %v12616_v41  ;;  %6221 = vrcp.f32 %v10882_v44  ;;  %v5210_v51 = vsub.f32 1.0, %v5209_v55  ;;  %v5220_v55 = vor.u32 1.1754944e-38, %v5219_v62  ;;  %vm10995_vm12 = vmor %vm5093_vm7, %vm5094_vm8  ;;  %vm5153_vm15 = vweird.f32 %v10882_v44 }
 0x573   :  { %v3636_v8 = vpop.f32.mrf.mxu0  ;;  %v3721_v6 = vpop.f32.mrf.mxu1 }
 0x574   :  { %v3983_v29 = vpop.f32.mrf.mxu3  ;;  %v5211_v57 = vmul.f32 %v6216_v30, %v5210_v51  ;;  %v3722_v14 = vadd.f32 %v3721_v6, %v3633_v21  ;;  %v5708_v21 = vmul.f32 %v5692_v18, %v4981_v10  ;;  %v3637_v0 = vadd.f32 %v3636_v8, %v10662_v31 }
 0x575   :  { %v3842_v61 = vpop.f32.mrf.mxu2  ;;  %v10919_v43 = vadd.f32 %v3983_v29, %v3835_v3  ;;  %v5036_v3 = vsel %vm10946_vm4, %v10831_v22, %v5032_v28  ;;  %v5277_v6 = vand.u32 2147483647, %v10891_v12  ;;  %v5279_v22 = vand.u32 2147483648, %v10891_v12 }
 0x576   :  { %4108 = vmatmul.f32.gmra.mxu0 %v12676_v54  ;;  %v6218_v20 = vpop.eup %6217  ;;  %v5212_v13 = vadd.f32 %v6216_v30, %v5211_v57  ;;  %v5932_v53 = vmul.f32 -1.442695, %v3722_v14  ;;  %4220 = vmatmul.f32.gmra.mxu1 %v12677_v47  ;;  %v3843_v29 = vadd.f32 %v3842_v61, %v12625_v23  ;;  %v5097_v31 = vand.u32 2147483647, %v10821_v36 }
 0x577   :  { %v6220_v5 = vpop.eup %6219  ;;  %v10938_v16 = vadd.f32 1.0, %v6218_v20  ;;  %v5041_v23 = vsel %vm10933_vm1, %v5040_v37, %v5036_v3  ;;  %v5280_v47 = vor.u32 1.1754944e-38, %v5279_v22  ;;  %vm5278_vm11 = vcmp.eq.f32.partialorder %v5277_v6, 8.507059e+37 }
 0x578   :  { %v10940_v38 = vpop.eup %6221  ;;  %v5216_v15 = vsel %vm5215_vm2, %v6216_v30, %v5212_v13  ;;  %v5269_v51 = vmul.f32 %v6220_v5, %v10891_v12  ;;  %6223 = vpow2.f32 %v5932_v53  ;;  %4414 = vmatmul.f32.gmra.mxu3 %v12616_v41  ;;  %vm5274_vm6 = vweird.f32 %v6220_v5  ;;  %v5696_v13 = vld [vmem:[%s11461_s2 + $0x30] sm:$0xff] }
 0x579   :  { %v5221_v32 = vsel %vm5218_vm5, %v5220_v55, %v5216_v15  ;;  %6225 = vrcp.f32 %v10938_v16  ;;  %v5149_v41 = vmul.f32 %v10940_v38, %v10882_v44  ;;  %v5092_v53 = vadd.f32 %v10873_v19, %v5091_v4  ;;  %vm5275_vm9 = vmor %vm5273_vm10, %vm5274_vm6 }
 0x57a   :  { %4329 = vmatmul.f32.gmra.mxu2 %v12620_v35  ;;  %v5724_v30 = vmul.f32 %v10852_v40, %v5221_v32  ;;  %v5270_v27 = vsub.f32 1.0, %v5269_v51  ;;  %v5712_v15 = vmul.f32 %v5696_v13, %v5041_v23  ;;  %v5337_v4 = vand.u32 2147483647, %v10938_v16 }
 0x57b   :  { %v3640_v62 = vpop.f32.mrf.mxu0  ;;  %v3725_v57 = vpop.f32.mrf.mxu1  ;;  %vm5098_vm14 = vcmp.eq.f32.partialorder %v5097_v31, 8.507059e+37  ;;  %vm5154_vm0 = vweird.f32 %v10940_v38  ;;  %vm5333_vm3 = vweird.f32 %v10938_v16  ;;  %v5159_v13 = vand.u32 2147483648, %v10882_v44 }
 0x57c   :  { %v3987_v14 = vpop.f32.mrf.mxu3  ;;  %v10965_v10 = vadd.f32 %v5724_v30, %v5708_v21  ;;  %v5271_v28 = vmul.f32 %v6220_v5, %v5270_v27  ;;  %v3726_v40 = vadd.f32 %v3725_v57, %v3637_v0  ;;  %v3641_v21 = vadd.f32 %v3640_v62, %v10668_v50  ;;  %vm11034_vm4 = vmor %vm5153_vm15, %vm5154_vm0 }
 0x57d   :  { %v3850_v54 = vpop.f32.mrf.mxu2  ;;  %v10970_v8 = vadd.f32 %v3987_v14, %v3843_v29  ;;  %v12685_v14 = vld [vmem:[#allocation140_spill] sm:$0xff]  ;;  %vm5338_vm2 = vcmp.eq.f32.partialorder %v5337_v4, 8.507059e+37  ;;  %v12690_v4 = vld [vmem:[#allocation82_spill] sm:$0xff] }
 0x57e   :  { %4113 = vmatmul.f32.gmra.mxu0 %v12589_v25  ;;  %v6224_v20 = vpop.eup %6223  ;;  %5836 = vst [vmem:[#allocation4 + $0x10] sm:$0xff] %v10965_v10  ;;  %v5272_v61 = vadd.f32 %v6220_v5, %v5271_v28  ;;  %v5936_v18 = vmul.f32 -1.442695, %v3726_v40  ;;  %4226 = vmatmul.f32.gmra.mxu1 %v12588_v2  ;;  %v5150_v25 = vsub.f32 1.0, %v5149_v41  ;;  %v5099_v2 = vand.u32 2147483648, %v10821_v36 }
 0x57f   :  { %v6226_v33 = vpop.eup %6225  ;;  %v10983_v9 = vadd.f32 1.0, %v6224_v20  ;;  %v3851_v58 = vadd.f32 %v3850_v54, %v12626_v52  ;;  %v5096_v52 = vsel %vm10995_vm12, %v10873_v19, %v5092_v53  ;;  %v5339_v36 = vand.u32 2147483648, %v10938_v16  ;;  %v12684_v19 = vld [vmem:[#allocation142_spill] sm:$0xff] }
 0x580   :  { %v5276_v37 = vsel %vm5275_vm9, %v6220_v5, %v5272_v61  ;;  %v5329_v12 = vmul.f32 %v6226_v33, %v10938_v16  ;;  %6227 = vpow2.f32 %v5936_v18  ;;  %4418 = vmatmul.f32.gmra.mxu3 %v12620_v35  ;;  %v5151_v32 = vmul.f32 %v10940_v38, %v5150_v25  ;;  %v5700_v54 = vld [vmem:[%s11461_s2 + $0x50] sm:$0xff]  ;;  %v12686_v25 = vld [vmem:[#allocation131_spill] sm:$0xff] }
 0x581   :  { %v5281_v55 = vsel %vm5278_vm11, %v5280_v47, %v5276_v37  ;;  %6229 = vrcp.f32 %v10983_v9  ;;  %vm5334_vm13 = vweird.f32 %v6226_v33  ;;  %v5100_v50 = vor.u32 1.1754944e-38, %v5099_v2  ;;  %v12689_v5 = vld [vmem:[#allocation66_spill] sm:$0xff] }
 0x582   :  { %4333 = vmatmul.f32.gmra.mxu2 %v12622_v63  ;;  %v5728_v35 = vmul.f32 %v10859_v60, %v5281_v55  ;;  %v5330_v51 = vsub.f32 1.0, %v5329_v12  ;;  %v5152_v31 = vadd.f32 %v10940_v38, %v5151_v32  ;;  %vm5335_vm1 = vmor %vm5333_vm3, %vm5334_vm13  ;;  %v5340_v20 = vor.u32 1.1754944e-38, %v5339_v36 }
 0x583   :  { %v3644_v3 = vpop.f32.mrf.mxu0  ;;  %v3729_v30 = vpop.f32.mrf.mxu1  ;;  %v5101_v40 = vsel %vm5098_vm14, %v5100_v50, %v5096_v52  ;;  %v5157_v18 = vand.u32 2147483647, %v10882_v44  ;;  %vm5393_vm7 = vweird.f32 %v10983_v9  ;;  %v5704_v50 = vld [vmem:[%s11461_s2 + $0x70] sm:$0xff] }
 0x584   :  { %v3991_v27 = vpop.f32.mrf.mxu3  ;;  %v11007_v0 = vadd.f32 %v5728_v35, %v5712_v15  ;;  %v5331_v41 = vmul.f32 %v6226_v33, %v5330_v51  ;;  %v3730_v60 = vadd.f32 %v3729_v30, %v3641_v21  ;;  %v5716_v47 = vmul.f32 %v5700_v54, %v5101_v40 }
 0x585   :  { %v3858_v6 = vpop.f32.mrf.mxu2  ;;  %v11010_v62 = vadd.f32 %v3991_v27, %v3851_v58  ;;  %v3645_v12 = vadd.f32 %v3644_v3, %v10675_v59  ;;  %v5156_v55 = vsel %vm11034_vm4, %v10940_v38, %v5152_v31  ;;  %v5397_v58 = vand.u32 2147483647, %v10983_v9  ;;  %v12691_v27 = vld [vmem:[#allocation143_spill] sm:$0xff] }
 0x586   :  { %4118 = vmatmul.f32.gmra.mxu0 %v12684_v19  ;;  %v6228_v22 = vpop.eup %6227  ;;  %5840 = vst [vmem:[#allocation4 + $0x30] sm:$0xff] %v11007_v0  ;;  %v5332_v29 = vadd.f32 %v6226_v33, %v5331_v41  ;;  %v5940_v57 = vmul.f32 -1.442695, %v3730_v60  ;;  %4232 = vmatmul.f32.gmra.mxu1 %v12685_v14  ;;  %v5399_v15 = vand.u32 2147483648, %v10983_v9  ;;  %v3859_v44 = vadd.f32 %v3858_v6, %v12689_v5 }
 0x587   :  { %v6230_v28 = vpop.eup %6229  ;;  %v11022_v23 = vadd.f32 1.0, %v6228_v22  ;;  %v5160_v59 = vor.u32 1.1754944e-38, %v5159_v13  ;;  %vm5158_vm6 = vcmp.eq.f32.partialorder %v5157_v18, 8.507059e+37  ;;  %v5964_v60 = vadd.f32 -1.0, %v10921_v26  ;;  %v12692_v26 = vld [vmem:[#allocation135_spill] sm:$0xff] }
 0x588   :  { %v5336_v61 = vsel %vm5335_vm1, %v6226_v33, %v5332_v29  ;;  %v5389_v16 = vmul.f32 %v6230_v28, %v10983_v9  ;;  %6231 = vpow2.f32 %v5940_v57  ;;  %4422 = vmatmul.f32.gmra.mxu3 %v12622_v63  ;;  %vm5394_vm5 = vweird.f32 %v6230_v28 }
 0x589   :  { %v5341_v53 = vsel %vm5338_vm2, %v5340_v20, %v5336_v61  ;;  %6233 = vrcp.f32 %v11022_v23  ;;  %v5161_v6 = vsel %vm5158_vm6, %v5160_v59, %v5156_v55  ;;  %vm5395_vm8 = vmor %vm5393_vm7, %vm5394_vm5  ;;  %v5400_v19 = vor.u32 1.1754944e-38, %v5399_v15 }
 0x58a   :  { %4337 = vmatmul.f32.gmra.mxu2 %v12686_v25  ;;  %v5732_v63 = vmul.f32 %v10885_v48, %v5341_v53  ;;  %v5390_v37 = vsub.f32 1.0, %v5389_v16  ;;  %vm5398_vm10 = vcmp.eq.f32.partialorder %v5397_v58, 8.507059e+37  ;;  %v5720_v14 = vmul.f32 %v5704_v50, %v5161_v6  ;;  %v12693_v16 = vld [vmem:[#allocation46_spill] sm:$0xff] }
 0x58b   :  { %v3648_v2 = vpop.f32.mrf.mxu0  ;;  %v3733_v35 = vpop.f32.mrf.mxu1  ;;  %v5459_v61 = vand.u32 2147483648, %v11022_v23  ;;  %vm5453_vm11 = vweird.f32 %v11022_v23 }
 0x58c   :  { %v3995_v51 = vpop.f32.mrf.mxu3  ;;  %v11046_v21 = vadd.f32 %v5732_v63, %v5716_v47  ;;  %v5391_v52 = vmul.f32 %v6230_v28, %v5390_v37  ;;  %v3734_v48 = vadd.f32 %v3733_v35, %v3645_v12  ;;  %v3649_v31 = vadd.f32 %v3648_v2, %v10682_v7  ;;  %v12694_v2 = vld [vmem:[#allocation74_spill] sm:$0xff]  ;;  %v12695_v35 = vld [vmem:[#allocation63_spill] sm:$0xff] }
 0x58d   :  { %v3866_v32 = vpop.f32.mrf.mxu2  ;;  %v11048_v3 = vadd.f32 %v3995_v51, %v3859_v44  ;;  %v5460_v58 = vor.u32 1.1754944e-38, %v5459_v61 }
 0x58e   :  { %4123 = vmatmul.f32.gmra.mxu0 %v12690_v4  ;;  %v6232_v38 = vpop.eup %6231  ;;  %5844 = vst [vmem:[#allocation4 + $0x50] sm:$0xff] %v11046_v21  ;;  %v5392_v36 = vadd.f32 %v6230_v28, %v5391_v52  ;;  %v5944_v30 = vmul.f32 -1.442695, %v3734_v48  ;;  %4238 = vmatmul.f32.gmra.mxu1 %v12691_v27  ;;  %v3867_v18 = vadd.f32 %v3866_v32, %v12693_v16  ;;  %v12696_v27 = vld [vmem:[#allocation27_spill] sm:$0xff] }
 0x58f   :  { %v6234_v41 = vpop.eup %6233  ;;  %v11059_v22 = vadd.f32 1.0, %v6232_v38 }
 0x590   :  { %v5396_v29 = vsel %vm5395_vm8, %v6230_v28, %v5392_v36  ;;  %v5449_v9 = vmul.f32 %v6234_v41, %v11022_v23  ;;  %6235 = vpow2.f32 %v5944_v30  ;;  %4426 = vmatmul.f32.gmra.mxu3 %v12686_v25  ;;  %v5457_v28 = vand.u32 2147483647, %v11022_v23 }
 0x591   :  { %v5401_v57 = vsel %vm5398_vm10, %v5400_v19, %v5396_v29  ;;  %6237 = vrcp.f32 %v11059_v22  ;;  %vm5454_vm9 = vweird.f32 %v6234_v41  ;;  %v5517_v4 = vand.u32 2147483647, %v11059_v22  ;;  %v12697_v29 = vld [vmem:[#allocation148_spill] sm:$0xff] }
 0x592   :  { %4341 = vmatmul.f32.gmra.mxu2 %v12692_v26  ;;  %v5736_v40 = vmul.f32 %v5964_v60, %v5401_v57  ;;  %v5450_v54 = vsub.f32 1.0, %v5449_v9  ;;  %6239 = vtanh.f32 %v10965_v10  ;;  %vm5455_vm12 = vmor %vm5453_vm11, %vm5454_vm9  ;;  %vm5458_vm13 = vcmp.eq.f32.partialorder %v5457_v28, 8.507059e+37 }
 0x593   :  { %v11066_v20 = vpop.f32.mrf.mxu0  ;;  %v3737_v13 = vpop.f32.mrf.mxu1  ;;  %v5519_v38 = vand.u32 2147483648, %v11059_v22  ;;  %vm5513_vm15 = vweird.f32 %v11059_v22  ;;  %vm5518_vm3 = vcmp.eq.f32.partialorder %v5517_v4, 8.507059e+37 }
 0x594   :  { %v3999_v53 = vpop.f32.mrf.mxu3  ;;  %v11072_v25 = vadd.f32 %v5736_v40, %v5720_v14  ;;  %v5451_v47 = vmul.f32 %v6234_v41, %v5450_v54  ;;  %v3738_v33 = vadd.f32 %v3737_v13, %v3649_v31 }
 0x595   :  { %v3874_v63 = vpop.f32.mrf.mxu2  ;;  %v11074_v37 = vadd.f32 %v3999_v53, %v3867_v18 }
 0x596   :  { %v6236_v7 = vpop.eup %6235  ;;  %5848 = vst [vmem:[#allocation4 + $0x70] sm:$0xff] %v11072_v25  ;;  %v5452_v10 = vadd.f32 %v6234_v41, %v5451_v47  ;;  %v5948_v12 = vmul.f32 -1.442695, %v3738_v33  ;;  %4244 = vmatmul.f32.gmra.mxu1 %v12694_v2  ;;  %v3875_v51 = vadd.f32 %v3874_v63, %v12695_v35  ;;  %v12699_v2 = vld [vmem:[#allocation147_spill] sm:$0xff] }
 0x597   :  { %v6238_v55 = vpop.eup %6237  ;;  %v11079_v15 = vadd.f32 1.0, %v6236_v7 }
 0x598   :  { %v5456_v5 = vsel %vm5455_vm12, %v6234_v41, %v5452_v10  ;;  %v5509_v44 = vmul.f32 %v6238_v55, %v11059_v22  ;;  %6241 = vpow2.f32 %v5948_v12  ;;  %4430 = vmatmul.f32.gmra.mxu3 %v12692_v26  ;;  %v6240_v52 = vpop.eup %6239  ;;  %vm5514_vm14 = vweird.f32 %v6238_v55 }
 0x599   :  { %v5461_v48 = vsel %vm5458_vm13, %v5460_v58, %v5456_v5  ;;  %6243 = vrcp.f32 %v11079_v15  ;;  %vm5515_vm0 = vmor %vm5513_vm15, %vm5514_vm14  ;;  %v5520_v26 = vor.u32 1.1754944e-38, %v5519_v38  ;;  %v5577_v13 = vand.u32 2147483647, %v11079_v15 }
 0x59a   :  { %4345 = vmatmul.f32.gmra.mxu2 %v12471_v45  ;;  %v5772_v23 = vmul.f32 %v6240_v52, %v5461_v48  ;;  %v5510_v32 = vsub.f32 1.0, %v5509_v44  ;;  %6245 = vtanh.f32 %v11007_v0  ;;  %v5579_v53 = vand.u32 2147483648, %v11079_v15 }
 0x59b   :  { %v11086_v59 = vpop.f32.mrf.mxu0  ;;  %v11091_v30 = vpop.f32.mrf.mxu1  ;;  %vm5573_vm2 = vweird.f32 %v11079_v15  ;;  %vm5578_vm5 = vcmp.eq.f32.partialorder %v5577_v13, 8.507059e+37 }
 0x59c   :  { %v4003_v36 = vpop.f32.mrf.mxu3  ;;  %v5788_v41 = vmul.f32 %v5772_v23, %v12696_v27  ;;  %v5511_v60 = vmul.f32 %v6238_v55, %v5510_v32  ;;  %v12700_v23 = vld [vmem:[#allocation81_spill] sm:$0xff] }
 0x59d   :  { %v3882_v6 = vpop.f32.mrf.mxu2  ;;  %v11094_v50 = vadd.f32 %v4003_v36, %v3875_v51 }
 0x59e   :  { %v6242_v19 = vpop.eup %6241  ;;  %v5804_v9 = vadd.f32 %v5788_v41, %v12697_v29  ;;  %v5512_v57 = vadd.f32 %v6238_v55, %v5511_v60  ;;  %v3883_v22 = vadd.f32 %v3882_v6, %v12637_v39  ;;  %v12701_v60 = vld [vmem:[#allocation107_spill] sm:$0xff] }
 0x59f   :  { %v6244_v0 = vpop.eup %6243  ;;  %v4696_v14 = vadd.f32 1.0, %v6242_v19 }
 0x5a0   :  { %5820 = vst [vmem:[#allocation2 + $0x10] sm:$0xff] %v5804_v9  ;;  %v5516_v40 = vsel %vm5515_vm0, %v6238_v55, %v5512_v57  ;;  %v5569_v54 = vmul.f32 %v6244_v0, %v11079_v15  ;;  %4434 = vmatmul.f32.gmra.mxu3 %v12471_v45  ;;  %v6246_v31 = vpop.eup %6245  ;;  %v12698_v45 = vld [vmem:[#allocation146_spill] sm:$0xff]  ;;  %vm5574_vm1 = vweird.f32 %v6244_v0 }
 0x5a1   :  { %v5521_v28 = vsel %vm5518_vm3, %v5520_v26, %v5516_v40  ;;  %6247 = vrcp.f32 %v4696_v14  ;;  %vm5575_vm4 = vmor %vm5573_vm2, %vm5574_vm1  ;;  %v5637_v38 = vand.u32 2147483647, %v4696_v14  ;;  %v5639_v15 = vand.u32 2147483648, %v4696_v14  ;;  %v12702_v57 = vld [vmem:[#allocation30_spill] sm:$0xff] }
 0x5a2   :  { %4349 = vmatmul.f32.gmra.mxu2 %v12482_v24  ;;  %v5776_v61 = vmul.f32 %v6246_v31, %v5521_v28  ;;  %v5570_v16 = vsub.f32 1.0, %v5569_v54  ;;  %6249 = vtanh.f32 %v11046_v21  ;;  %v5580_v21 = vor.u32 1.1754944e-38, %v5579_v53 }
 0x5a3   :  { %v11102_v18 = vpop.f32.mrf.mxu0  ;;  %v4161_v33 = vpop.f32.mrf.mxu1  ;;  %6251 = vtanh.f32 %v11072_v25  ;;  %vm5633_vm7 = vweird.f32 %v4696_v14  ;;  %v5640_v40 = vor.u32 1.1754944e-38, %v5639_v15  ;;  %vm5638_vm10 = vcmp.eq.f32.partialorder %v5637_v38, 8.507059e+37 }
 0x5a4   :  { %v4007_v47 = vpop.f32.mrf.mxu3  ;;  %v5792_v63 = vmul.f32 %v5776_v61, %v12698_v45  ;;  %v5571_v7 = vmul.f32 %v6244_v0, %v5570_v16  ;;  %v4060_v38 = vadd.f32 %v11102_v18, %v10713_v11 }
 0x5a5   :  { %v3890_v10 = vpop.f32.mrf.mxu2  ;;  %v11108_v12 = vadd.f32 %v4007_v47, %v3883_v22  ;;  %v12703_v22 = vld [vmem:[#allocation34_spill] sm:$0xff] }
 0x5a6   :  { %v5808_v55 = vadd.f32 %v5792_v63, %v12699_v2  ;;  %v5572_v39 = vadd.f32 %v6244_v0, %v5571_v7  ;;  %v3891_v32 = vadd.f32 %v3890_v10, %v12700_v23  ;;  %v12704_v63 = vld [vmem:[#allocation83_spill] sm:$0xff] }
 0x5a7   :  { %v6248_v58 = vpop.eup %6247 }
 0x5a8   :  { %5824 = vst [vmem:[#allocation2 + $0x30] sm:$0xff] %v5808_v55  ;;  %v5576_v5 = vsel %vm5575_vm4, %v6244_v0, %v5572_v39  ;;  %v5629_v44 = vmul.f32 %v6248_v58, %v4696_v14  ;;  %4438 = vmatmul.f32.gmra.mxu3 %v12482_v24  ;;  %v6250_v35 = vpop.eup %6249  ;;  %vm5634_vm6 = vweird.f32 %v6248_v58 }
 0x5a9   :  { %v5581_v51 = vsel %vm5578_vm5, %v5580_v21, %v5576_v5  ;;  %vm5635_vm8 = vmor %vm5633_vm7, %vm5634_vm6  ;;  %v6252_v25 = vpop.eup %6251  ;;  %v4055_v5 = vadd.f32 %v11086_v59, %v10700_v42 }
 0x5aa   :  { %v5780_v52 = vmul.f32 %v6250_v35, %v5581_v51  ;;  %v5630_v48 = vsub.f32 1.0, %v5629_v44 }
 0x5ab   :  { %v4064_v4 = vpop.f32.mrf.mxu0  ;;  %v4167_v41 = vpop.f32.mrf.mxu1 }
 0x5ac   :  { %v4011_v36 = vpop.f32.mrf.mxu3  ;;  %v5796_v6 = vmul.f32 %v5780_v52, %v12701_v60  ;;  %v5631_v19 = vmul.f32 %v6248_v58, %v5630_v48  ;;  %v4162_v48 = vadd.f32 %v4161_v33, %v4055_v5  ;;  %v4065_v59 = vadd.f32 %v4064_v4, %v10729_v1 }
 0x5ad   :  { %v11116_v9 = vadd.f32 %v4011_v36, %v3891_v32  ;;  %v4290_v24 = vpop.f32.mrf.mxu2 }
 0x5ae   :  { %v5812_v0 = vadd.f32 %v5796_v6, %v12702_v57  ;;  %v5632_v26 = vadd.f32 %v6248_v58, %v5631_v19  ;;  %v4168_v19 = vadd.f32 %v4167_v41, %v4060_v38 }
 0x5b0   :  { %5828 = vst [vmem:[#allocation2 + $0x50] sm:$0xff] %v5812_v0  ;;  %v5636_v54 = vsel %vm5635_vm8, %v6248_v58, %v5632_v26  ;;  %v4050_v58 = vadd.f32 %v11066_v20, %v10691_v49 }
 0x5b1   :  { %v5641_v31 = vsel %vm5638_vm10, %v5640_v40, %v5636_v54 }
 0x5b2   :  { %v5784_v28 = vmul.f32 %v6252_v25, %v5641_v31  ;;  %v4156_v21 = vadd.f32 %v11091_v30, %v4050_v58 }
 0x5b3   :  { %v4173_v61 = vpop.f32.mrf.mxu1  ;;  %v4069_v47 = vpop.f32.mrf.mxu0 }
 0x5b4   :  { %v4379_v16 = vpop.f32.mrf.mxu3  ;;  %v5800_v13 = vmul.f32 %v5784_v28, %v12703_v22  ;;  %v4291_v51 = vadd.f32 %v4290_v24, %v4156_v21  ;;  %v4174_v33 = vadd.f32 %v4173_v61, %v4065_v59  ;;  %v4070_v18 = vadd.f32 %v4069_v47, %v10750_v56 }
 0x5b5   :  { %v4294_v53 = vpop.f32.mrf.mxu2 }
 0x5b6   :  { %v5816_v7 = vadd.f32 %v5800_v13, %v12704_v63  ;;  %v4380_v23 = vadd.f32 %v4379_v16, %v4291_v51  ;;  %v4295_v32 = vadd.f32 %v4294_v53, %v4162_v48 }
 0x5b8   :  { %5832 = vst [vmem:[#allocation2 + $0x70] sm:$0xff] %v5816_v7  ;;  %v5889_v6 = vmul.f32 -1.442695, %v4380_v23 }
 0x5ba   :  { %6253 = vpow2.f32 %v5889_v6 }
 0x5bb   :  { %v4179_v10 = vpop.f32.mrf.mxu1  ;;  %v4074_v39 = vpop.f32.mrf.mxu0 }
 0x5bc   :  { %v4383_v55 = vpop.f32.mrf.mxu3  ;;  %v4180_v13 = vadd.f32 %v4179_v10, %v4070_v18 }
 0x5bd   :  { %v4298_v14 = vpop.f32.mrf.mxu2  ;;  %v4384_v15 = vadd.f32 %v4383_v55, %v4295_v32 }
 0x5be   :  { %v4299_v0 = vadd.f32 %v4298_v14, %v4168_v19  ;;  %v4075_v14 = vadd.f32 %v4074_v39, %v10773_v34 }
 0x5bf   :  { %v5893_v26 = vmul.f32 -1.442695, %v4384_v15 }
 0x5c0   :  { %v6254_v25 = vpop.eup %6253 }
 0x5c1   :  { %6255 = vpow2.f32 %v5893_v26  ;;  %v11132_v16 = vadd.f32 1.0, %v6254_v25 }
 0x5c3   :  { %v4185_v44 = vpop.f32.mrf.mxu1  ;;  %v4079_v36 = vpop.f32.mrf.mxu0  ;;  %vm4748_vm11 = vweird.f32 %v11132_v16 }
 0x5c4   :  { %v4387_v35 = vpop.f32.mrf.mxu3  ;;  %v4186_v21 = vadd.f32 %v4185_v44, %v4075_v14  ;;  %v4080_v39 = vadd.f32 %v4079_v36, %v10829_v17 }
 0x5c5   :  { %v4302_v52 = vpop.f32.mrf.mxu2  ;;  %v4388_v42 = vadd.f32 %v4387_v35, %v4299_v0 }
 0x5c6   :  { %v4303_v31 = vadd.f32 %v4302_v52, %v4174_v33 }
 0x5c7   :  { %v5897_v24 = vmul.f32 -1.442695, %v4388_v42  ;;  %v6256_v28 = vpop.eup %6255 }
 0x5c8   :  { %v11134_v1 = vadd.f32 1.0, %v6256_v28  ;;  %v4752_v28 = vand.u32 2147483647, %v11132_v16 }
 0x5c9   :  { %6257 = vpow2.f32 %v5897_v24 }
 0x5ca   :  { %6259 = vrcp.f32 %v11132_v16  ;;  %vm11179_vm13 = vcmp.eq.f32.partialorder %v4752_v28, 8.507059e+37  ;;  %vm4808_vm15 = vweird.f32 %v11134_v1 }
 0x5cb   :  { %v4191_v49 = vpop.f32.mrf.mxu1  ;;  %v4084_v40 = vpop.f32.mrf.mxu0  ;;  %6261 = vrcp.f32 %v11134_v1 }
 0x5cc   :  { %v4391_v20 = vpop.f32.mrf.mxu3  ;;  %v4192_v15 = vadd.f32 %v4191_v49, %v4080_v39 }
 0x5cd   :  { %v4306_v30 = vpop.f32.mrf.mxu2  ;;  %v4392_v53 = vadd.f32 %v4391_v20, %v4303_v31 }
 0x5ce   :  { %v4307_v7 = vadd.f32 %v4306_v30, %v4180_v13  ;;  %v4085_v13 = vadd.f32 %v4084_v40, %v10871_v46 }
 0x5cf   :  { %v5901_v4 = vmul.f32 -1.442695, %v4392_v53  ;;  %v6258_v47 = vpop.eup %6257 }
 0x5d0   :  { %v11139_v35 = vadd.f32 1.0, %v6258_v47  ;;  %v11141_v52 = vpop.eup %6259 }
 0x5d1   :  { %6263 = vpow2.f32 %v5901_v4  ;;  %v11143_v32 = vpop.eup %6261  ;;  %v4744_v34 = vmul.f32 %v11141_v52, %v11132_v16  ;;  %vm4749_vm9 = vweird.f32 %v11141_v52 }
 0x5d2   :  { %v4804_v30 = vmul.f32 %v11143_v32, %v11134_v1  ;;  %vm11175_vm12 = vmor %vm4748_vm11, %vm4749_vm9  ;;  %vm4809_vm14 = vweird.f32 %v11143_v32  ;;  %vm4868_vm2 = vweird.f32 %v11139_v35 }
 0x5d3   :  { %v11130_v41 = vpop.f32.mrf.mxu1  ;;  %v4089_v58 = vpop.f32.mrf.mxu0  ;;  %v4745_v20 = vsub.f32 1.0, %v4744_v34  ;;  %vm11200_vm0 = vmor %vm4808_vm15, %vm4809_vm14 }
 0x5d4   :  { %v4395_v54 = vpop.f32.mrf.mxu3  ;;  %v4090_v18 = vadd.f32 %v4089_v58, %v10919_v43  ;;  %v4198_v43 = vadd.f32 %v11130_v41, %v4085_v13 }
 0x5d5   :  { %v4310_v11 = vpop.f32.mrf.mxu2  ;;  %v4396_v61 = vadd.f32 %v4395_v54, %v4307_v7  ;;  %v4746_v24 = vmul.f32 %v11141_v52, %v4745_v20  ;;  %v4805_v54 = vsub.f32 1.0, %v4804_v30 }
 0x5d6   :  { %v4311_v51 = vadd.f32 %v4310_v11, %v4186_v21 }
 0x5d7   :  { %v5905_v10 = vmul.f32 -1.442695, %v4396_v61  ;;  %v6264_v38 = vpop.eup %6263  ;;  %v4747_v7 = vadd.f32 %v11141_v52, %v4746_v24  ;;  %v4806_v4 = vmul.f32 %v11143_v32, %v4805_v54 }
 0x5d8   :  { %v11151_v0 = vadd.f32 1.0, %v6264_v38 }
 0x5d9   :  { %6265 = vpow2.f32 %v5905_v10 }
 0x5da   :  { %6267 = vrcp.f32 %v11139_v35  ;;  %vm4928_vm7 = vweird.f32 %v11151_v0 }
 0x5db   :  { %v4203_v5 = vpop.f32.mrf.mxu1  ;;  %v4094_v19 = vpop.f32.mrf.mxu0 }
 0x5dc   :  { %v4399_v55 = vpop.f32.mrf.mxu3  ;;  %v4204_v61 = vadd.f32 %v4203_v5, %v4090_v18  ;;  %v4874_v18 = vand.u32 2147483648, %v11139_v35 }
 0x5dd   :  { %v4314_v56 = vpop.f32.mrf.mxu2  ;;  %v4400_v48 = vadd.f32 %v4399_v55, %v4311_v51  ;;  %v4754_v55 = vand.u32 2147483648, %v11132_v16  ;;  %v4751_v16 = vsel %vm11175_vm12, %v11141_v52, %v4747_v7  ;;  %v4807_v51 = vadd.f32 %v11143_v32, %v4806_v4 }
 0x5de   :  { %v4315_v26 = vadd.f32 %v4314_v56, %v4192_v15  ;;  %v4095_v52 = vadd.f32 %v4094_v19, %v10970_v8 }
 0x5df   :  { %v5909_v6 = vmul.f32 -1.442695, %v4400_v48  ;;  %v6266_v42 = vpop.eup %6265  ;;  %v4755_v34 = vor.u32 1.1754944e-38, %v4754_v55  ;;  %v4811_v24 = vsel %vm11200_vm0, %v11143_v32, %v4807_v51 }
 0x5e0   :  { %v11153_v33 = vpop.eup %6267  ;;  %v11157_v49 = vadd.f32 1.0, %v6266_v42  ;;  %v4812_v42 = vand.u32 2147483647, %v11134_v1 }
 0x5e1   :  { %6269 = vpow2.f32 %v5909_v6  ;;  %v4864_v11 = vmul.f32 %v11153_v33, %v11139_v35  ;;  %v4814_v6 = vand.u32 2147483648, %v11134_v1  ;;  %v4756_v30 = vsel %vm11179_vm13, %v4755_v34, %v4751_v16 }
 0x5e2   :  { %6271 = vrcp.f32 %v11151_v0  ;;  %vm4869_vm3 = vweird.f32 %v11153_v33  ;;  %vm4813_vm1 = vcmp.eq.f32.partialorder %v4812_v42, 8.507059e+37  ;;  %vm4988_vm11 = vweird.f32 %v11157_v49 }
 0x5e3   :  { %v4209_v59 = vpop.f32.mrf.mxu1  ;;  %6273 = vrcp.f32 %v11157_v49  ;;  %v4865_v14 = vsub.f32 1.0, %v4864_v11  ;;  %v4099_v56 = vpop.f32.mrf.mxu0  ;;  %v4815_v11 = vor.u32 1.1754944e-38, %v4814_v6  ;;  %vm11220_vm4 = vmor %vm4868_vm2, %vm4869_vm3 }
 0x5e4   :  { %v4403_v23 = vpop.f32.mrf.mxu3  ;;  %v4210_v8 = vadd.f32 %v4209_v59, %v4095_v52  ;;  %v5661_v59 = vmul.f32 2.0, %v4756_v30  ;;  %v4100_v16 = vadd.f32 %v4099_v56, %v11010_v62  ;;  %v4992_v30 = vand.u32 2147483647, %v11157_v49 }
 0x5e5   :  { %v4318_v44 = vpop.f32.mrf.mxu2  ;;  %v4404_v17 = vadd.f32 %v4403_v23, %v4315_v26  ;;  %v4866_v39 = vmul.f32 %v11153_v33, %v4865_v14 }
 0x5e6   :  { %v4319_v41 = vadd.f32 %v4318_v44, %v4198_v43  ;;  %v11248_v56 = vadd.f32 -1.0, %v5661_v59  ;;  %vm11278_vm12 = vcmp.eq.f32.partialorder %v4992_v30, 8.507059e+37 }
 0x5e7   :  { %v5913_v31 = vmul.f32 -1.442695, %v4404_v17  ;;  %v6270_v53 = vpop.eup %6269  ;;  %v4872_v17 = vand.u32 2147483647, %v11139_v35  ;;  %v4867_v19 = vadd.f32 %v11153_v33, %v4866_v39 }
 0x5e8   :  { %v11170_v47 = vpop.eup %6271  ;;  %v11183_v21 = vadd.f32 1.0, %v6270_v53  ;;  %v4816_v53 = vsel %vm4813_vm1, %v4815_v11, %v4811_v24 }
 0x5e9   :  { %6275 = vpow2.f32 %v5913_v31  ;;  %v4924_v38 = vmul.f32 %v11170_v47, %v11151_v0  ;;  %v11193_v44 = vpop.eup %6273  ;;  %vm11224_vm5 = vcmp.eq.f32.partialorder %v4872_v17, 8.507059e+37  ;;  %v4871_v35 = vsel %vm11220_vm4, %v11153_v33, %v4867_v19 }
 0x5ea   :  { %6277 = vrcp.f32 %v11183_v21  ;;  %vm4929_vm6 = vweird.f32 %v11170_v47  ;;  %vm4989_vm9 = vweird.f32 %v11193_v44  ;;  %vm5048_vm14 = vweird.f32 %v11183_v21 }
 0x5eb   :  { %v4215_v10 = vpop.f32.mrf.mxu1  ;;  %v4925_v54 = vsub.f32 1.0, %v4924_v38  ;;  %v4104_v32 = vpop.f32.mrf.mxu0  ;;  %vm11257_vm8 = vmor %vm4928_vm7, %vm4929_vm6 }
 0x5ec   :  { %v4407_v36 = vpop.f32.mrf.mxu3  ;;  %v4216_v39 = vadd.f32 %v4215_v10, %v4100_v16  ;;  %v4994_v10 = vand.u32 2147483648, %v11157_v49  ;;  %vm11288_vm13 = vmor %vm4988_vm11, %vm4989_vm9 }
 0x5ed   :  { %v4322_v25 = vpop.f32.mrf.mxu2  ;;  %v4408_v15 = vadd.f32 %v4407_v36, %v4319_v41  ;;  %v4926_v43 = vmul.f32 %v11170_v47, %v4925_v54  ;;  %v4875_v41 = vor.u32 1.1754944e-38, %v4874_v18 }
 0x5ee   :  { %v4323_v46 = vadd.f32 %v4322_v25, %v4204_v61  ;;  %v4984_v25 = vmul.f32 %v11193_v44, %v11157_v49 }
 0x5ef   :  { %v6276_v36 = vpop.eup %6275  ;;  %v5917_v1 = vmul.f32 -1.442695, %v4408_v15  ;;  %v4876_v33 = vsel %vm11224_vm5, %v4875_v41, %v4871_v35  ;;  %v4927_v38 = vadd.f32 %v11170_v47, %v4926_v43 }
 0x5f0   :  { %v11216_v28 = vadd.f32 1.0, %v6276_v36  ;;  %v11228_v14 = vpop.eup %6277 }
 0x5f1   :  { %v5044_v62 = vmul.f32 %v11228_v14, %v11183_v21  ;;  %v4931_v54 = vsel %vm11257_vm8, %v11170_v47, %v4927_v38  ;;  %v4995_v47 = vor.u32 1.1754944e-38, %v4994_v10  ;;  %vm5049_vm0 = vweird.f32 %v11228_v14 }
 0x5f2   :  { %vm11331_vm5 = vmor %vm5048_vm14, %vm5049_vm0  ;;  %vm5108_vm6 = vweird.f32 %v11216_v28 }
 0x5f3   :  { %v4221_v40 = vpop.f32.mrf.mxu1  ;;  %v4109_v11 = vpop.f32.mrf.mxu0 }
 0x5f4   :  { %v4411_v5 = vpop.f32.mrf.mxu3 }
 0x5f5   :  { %v4326_v48 = vpop.f32.mrf.mxu2  ;;  %v4412_v23 = vadd.f32 %v4411_v5, %v4323_v46  ;;  %v4985_v46 = vsub.f32 1.0, %v4984_v25  ;;  %v4932_v5 = vand.u32 2147483647, %v11151_v0 }
 0x5f6   :  { %v4327_v31 = vadd.f32 %v4326_v48, %v4210_v8  ;;  %v5665_v48 = vmul.f32 2.0, %v4816_v53 }
 0x5f7   :  { %v5921_v20 = vmul.f32 -1.442695, %v4412_v23  ;;  %v4934_v23 = vand.u32 2147483648, %v11151_v0  ;;  %v4986_v15 = vmul.f32 %v11193_v44, %v4985_v46  ;;  %vm11261_vm10 = vcmp.eq.f32.partialorder %v4932_v5, 8.507059e+37 }
 0x5f8   :  { %v11253_v42 = vadd.f32 -1.0, %v5665_v48 }
 0x5f9   :  { %6279 = vpow2.f32 %v5921_v20  ;;  %v5669_v20 = vmul.f32 2.0, %v4876_v33  ;;  %v4935_v24 = vor.u32 1.1754944e-38, %v4934_v23  ;;  %v4987_v25 = vadd.f32 %v11193_v44, %v4986_v15 }
 0x5fa   :  { %6281 = vpow2.f32 %v5917_v1  ;;  %v5045_v1 = vsub.f32 1.0, %v5044_v62 }
 0x5fb   :  { %6283 = vrcp.f32 %v11216_v28  ;;  %v11276_v7 = vadd.f32 -1.0, %v5669_v20  ;;  %v4936_v35 = vsel %vm11261_vm10, %v4935_v24, %v4931_v54  ;;  %v4991_v43 = vsel %vm11288_vm13, %v11193_v44, %v4987_v25  ;;  %v5693_v20 = vld [vmem:[%s11461_s2 + $0x18] sm:$0xff] }
 0x5fc   :  { %v4415_v13 = vpop.f32.mrf.mxu3  ;;  %v5046_v46 = vmul.f32 %v11228_v14, %v5045_v1  ;;  %v11302_v16 = vmul.f32 2.0, %v4936_v35  ;;  %v4996_v15 = vsel %vm11278_vm12, %v4995_v47, %v4991_v43  ;;  %v4110_v24 = vadd.f32 %v4109_v11, %v11074_v37 }
 0x5fd   :  { %v4330_v61 = vpop.f32.mrf.mxu2  ;;  %v4416_v55 = vadd.f32 %v4415_v13, %v4327_v31  ;;  %v4105_v31 = vadd.f32 %v4104_v32, %v11048_v3 }
 0x5fe   :  { %v4331_v6 = vadd.f32 %v4330_v61, %v4216_v39  ;;  %v4227_v61 = vpop.f32.mrf.mxu1  ;;  %v5047_v62 = vadd.f32 %v11228_v14, %v5046_v46 }
 0x5ff   :  { %v6280_v58 = vpop.eup %6279  ;;  %v5925_v51 = vmul.f32 -1.442695, %v4416_v55  ;;  %v4222_v49 = vadd.f32 %v4221_v40, %v4105_v31  ;;  %v5709_v31 = vmul.f32 %v5693_v20, %v4996_v15  ;;  %v4228_v11 = vadd.f32 %v4227_v61, %v4110_v24 }
 0x600   :  { %v11238_v34 = vadd.f32 1.0, %v6280_v58  ;;  %v6282_v52 = vpop.eup %6281  ;;  %v5052_v58 = vand.u32 2147483647, %v11183_v21 }
 0x601   :  { %6285 = vpow2.f32 %v5925_v51  ;;  %v11265_v19 = vpop.eup %6283  ;;  %v11274_v13 = vadd.f32 1.0, %v6282_v52  ;;  %v5054_v51 = vand.u32 2147483648, %v11183_v21 }
 0x602   :  { %6287 = vrcp.f32 %v11238_v34  ;;  %v5104_v41 = vmul.f32 %v11265_v19, %v11216_v28  ;;  %v5234_v44 = vand.u32 2147483648, %v11238_v34  ;;  %v5232_v33 = vand.u32 2147483647, %v11238_v34 }
 0x603   :  { %vm11312_vm3 = vcmp.eq.f32.partialorder %v5052_v58, 8.507059e+37  ;;  %vm5228_vm1 = vweird.f32 %v11238_v34  ;;  %v5055_v36 = vor.u32 1.1754944e-38, %v5054_v51  ;;  %vm5109_vm8 = vweird.f32 %v11265_v19 }
 0x604   :  { %v4419_v26 = vpop.f32.mrf.mxu3  ;;  %v5105_v30 = vsub.f32 1.0, %v5104_v41  ;;  %vm5233_vm4 = vcmp.eq.f32.partialorder %v5232_v33, 8.507059e+37  ;;  %v5112_v58 = vand.u32 2147483647, %v11216_v28  ;;  %vm11369_vm12 = vmor %vm5108_vm6, %vm5109_vm8 }
 0x605   :  { %v4334_v8 = vpop.f32.mrf.mxu2  ;;  %v4420_v0 = vadd.f32 %v4419_v26, %v4331_v6 }
 0x606   :  { %v4335_v40 = vadd.f32 %v4334_v8, %v4222_v49  ;;  %v5235_v8 = vor.u32 1.1754944e-38, %v5234_v44  ;;  %v5106_v4 = vmul.f32 %v11265_v19, %v5105_v30  ;;  %v5114_v30 = vand.u32 2147483648, %v11216_v28 }
 0x607   :  { %v6286_v18 = vpop.eup %6285  ;;  %v5929_v59 = vmul.f32 -1.442695, %v4420_v0  ;;  %v4114_v0 = vpop.f32.mrf.mxu0  ;;  %vm5113_vm14 = vcmp.eq.f32.partialorder %v5112_v58, 8.507059e+37 }
 0x608   :  { %v6288_v53 = vpop.eup %6287  ;;  %v11282_v55 = vadd.f32 1.0, %v6286_v18  ;;  %v5107_v51 = vadd.f32 %v11265_v19, %v5106_v4  ;;  %v4115_v44 = vadd.f32 %v4114_v0, %v11094_v50 }
 0x609   :  { %v5224_v32 = vmul.f32 %v6288_v53, %v11238_v34  ;;  %6289 = vpow2.f32 %v5929_v59  ;;  %vm5229_vm15 = vweird.f32 %v6288_v53  ;;  %v4233_v59 = vpop.f32.mrf.mxu1 }
 0x60a   :  { %6291 = vrcp.f32 %v11282_v55  ;;  %vm5230_vm2 = vmor %vm5228_vm1, %vm5229_vm15  ;;  %v5294_v3 = vand.u32 2147483648, %v11282_v55  ;;  %vm5288_vm10 = vweird.f32 %v11282_v55  ;;  %v4234_v6 = vadd.f32 %v4233_v59, %v4115_v44 }
 0x60b   :  { %6293 = vrcp.f32 %v11274_v13  ;;  %v5225_v5 = vsub.f32 1.0, %v5224_v32  ;;  %v5111_v24 = vsel %vm11369_vm12, %v11265_v19, %v5107_v51  ;;  %vm5168_vm15 = vweird.f32 %v11274_v13 }
 0x60c   :  { %v4423_v48 = vpop.f32.mrf.mxu3 }
 0x60d   :  { %v5226_v23 = vmul.f32 %v6288_v53, %v5225_v5  ;;  %v4338_v39 = vpop.f32.mrf.mxu2  ;;  %v4424_v38 = vadd.f32 %v4423_v48, %v4335_v40  ;;  %v5697_v40 = vld [vmem:[%s11461_s2 + $0x38] sm:$0xff] }
 0x60e   :  { %v4339_v61 = vadd.f32 %v4338_v39, %v4228_v11  ;;  %v5295_v39 = vor.u32 1.1754944e-38, %v5294_v3 }
 0x60f   :  { %v6290_v52 = vpop.eup %6289  ;;  %v5227_v10 = vadd.f32 %v6288_v53, %v5226_v23  ;;  %v5933_v26 = vmul.f32 -1.442695, %v4424_v38 }
 0x610   :  { %v6292_v17 = vpop.eup %6291  ;;  %v11322_v54 = vadd.f32 1.0, %v6290_v52 }
 0x611   :  { %v11324_v25 = vpop.eup %6293  ;;  %v5231_v1 = vsel %vm5230_vm2, %v6288_v53, %v5227_v10  ;;  %v5284_v18 = vmul.f32 %v6292_v17, %v11282_v55  ;;  %6295 = vpow2.f32 %v5933_v26  ;;  %v5051_v53 = vsel %vm11331_vm5, %v11228_v14, %v5047_v62  ;;  %v4119_v10 = vpop.f32.mrf.mxu0 }
 0x612   :  { %v5236_v34 = vsel %vm5233_vm4, %v5235_v8, %v5231_v1  ;;  %6297 = vrcp.f32 %v11322_v54  ;;  %v5164_v21 = vmul.f32 %v11324_v25, %v11274_v13  ;;  %vm5289_vm7 = vweird.f32 %v6292_v17  ;;  %v4239_v28 = vpop.f32.mrf.mxu1 }
 0x613   :  { %v5725_v47 = vmul.f32 %v11248_v56, %v5236_v34  ;;  %v5285_v35 = vsub.f32 1.0, %v5284_v18  ;;  %v5292_v14 = vand.u32 2147483647, %v11282_v55  ;;  %v5056_v56 = vsel %vm11312_vm3, %v5055_v36, %v5051_v53  ;;  %vm5290_vm9 = vmor %vm5288_vm10, %vm5289_vm7  ;;  %v5705_v55 = vld [vmem:[%s11461_s2 + $0x78] sm:$0xff] }
 0x614   :  { %v4427_v49 = vpop.f32.mrf.mxu3  ;;  %v5165_v33 = vsub.f32 1.0, %v5164_v21  ;;  %v5713_v20 = vmul.f32 %v5697_v40, %v5056_v56  ;;  %v5352_v0 = vand.u32 2147483647, %v11322_v54  ;;  %v5354_v1 = vand.u32 2147483648, %v11322_v54 }
 0x615   :  { %v11345_v32 = vadd.f32 %v5725_v47, %v5709_v31  ;;  %v5286_v43 = vmul.f32 %v6292_v17, %v5285_v35  ;;  %v4342_v46 = vpop.f32.mrf.mxu2  ;;  %v4428_v41 = vadd.f32 %v4427_v49, %v4339_v61  ;;  %vm5293_vm11 = vcmp.eq.f32.partialorder %v5292_v14, 8.507059e+37  ;;  %v5701_v35 = vld [vmem:[%s11461_s2 + $0x58] sm:$0xff]  ;;  %s6392_s2 = smov 512  }
 0x616   :  { %v4343_v36 = vadd.f32 %v4342_v46, %v4234_v6  ;;  %v5166_v8 = vmul.f32 %v11324_v25, %v5165_v33  ;;  %v5115_v34 = vor.u32 1.1754944e-38, %v5114_v30  ;;  %v4120_v11 = vadd.f32 %v4119_v10, %v11108_v12 }
 0x617   :  { %v6296_v5 = vpop.eup %6295  ;;  %5837 = vst [vmem:[#allocation4 + $0x18] sm:$0xff] %v11345_v32  ;;  %v5287_v48 = vadd.f32 %v6292_v17, %v5286_v43  ;;  %v5937_v15 = vmul.f32 -1.442695, %v4428_v41  ;;  %vm5169_vm0 = vweird.f32 %v11324_v25  ;;  %vm5348_vm3 = vweird.f32 %v11322_v54 }
 0x618   :  { %v6298_v23 = vpop.eup %6297  ;;  %v11360_v38 = vadd.f32 1.0, %v6296_v5  ;;  %v5116_v47 = vsel %vm5113_vm14, %v5115_v34, %v5111_v24  ;;  %v5167_v21 = vadd.f32 %v11324_v25, %v5166_v8  ;;  %v5355_v12 = vor.u32 1.1754944e-38, %v5354_v1  ;;  %vm11401_vm4 = vmor %vm5168_vm15, %vm5169_vm0 }
 0x619   :  { %v5291_v62 = vsel %vm5290_vm9, %v6292_v17, %v5287_v48  ;;  %v5344_v52 = vmul.f32 %v6298_v23, %v11322_v54  ;;  %vm5349_vm13 = vweird.f32 %v6298_v23  ;;  %v4240_v3 = vadd.f32 %v4239_v28, %v4120_v11  ;;  %v4124_v48 = vpop.f32.mrf.mxu0 }
 0x61a   :  { %v5296_v50 = vsel %vm5293_vm11, %v5295_v39, %v5291_v62  ;;  %6299 = vrcp.f32 %v11360_v38  ;;  %vm5350_vm1 = vmor %vm5348_vm3, %vm5349_vm13  ;;  %vm5353_vm2 = vcmp.eq.f32.partialorder %v5352_v0, 8.507059e+37  ;;  %v5172_v54 = vand.u32 2147483647, %v11274_v13  ;;  %v4245_v6 = vpop.f32.mrf.mxu1 }
 0x61b   :  { %v5729_v26 = vmul.f32 %v11253_v42, %v5296_v50  ;;  %v5345_v17 = vsub.f32 1.0, %v5344_v52  ;;  %6301 = vpow2.f32 %v5937_v15  ;;  %v5174_v14 = vand.u32 2147483648, %v11274_v13 }
 0x61c   :  { %v4431_v18 = vpop.f32.mrf.mxu3  ;;  %v5717_v58 = vmul.f32 %v5701_v35, %v5116_v47  ;;  %v5171_v44 = vsel %vm11401_vm4, %v11324_v25, %v5167_v21  ;;  %v5414_v33 = vand.u32 2147483648, %v11360_v38  ;;  %vm5173_vm6 = vcmp.eq.f32.partialorder %v5172_v54, 8.507059e+37 }
 0x61d   :  { %v11380_v31 = vadd.f32 %v5729_v26, %v5713_v20  ;;  %v5346_v37 = vmul.f32 %v6298_v23, %v5345_v17  ;;  %v4432_v42 = vadd.f32 %v4431_v18, %v4343_v36  ;;  %v4346_v19 = vpop.f32.mrf.mxu2  ;;  %v4125_v25 = vadd.f32 %v4124_v48, %v11116_v9 }
 0x61e   :  { %v4347_v51 = vadd.f32 %v4346_v19, %v4240_v3  ;;  %vm5408_vm7 = vweird.f32 %v11360_v38  ;;  %v5965_v50 = vadd.f32 -1.0, %v11302_v16  ;;  %v5415_v26 = vor.u32 1.1754944e-38, %v5414_v33 }
 0x61f   :  { %5841 = vst [vmem:[#allocation4 + $0x38] sm:$0xff] %v11380_v31  ;;  %v5347_v59 = vadd.f32 %v6298_v23, %v5346_v37  ;;  %v5941_v53 = vmul.f32 -1.442695, %v4432_v42  ;;  %v4246_v8 = vadd.f32 %v4245_v6, %v4125_v25 }
 0x620   :  { %v6300_v4 = vpop.eup %6299 }
 0x621   :  { %v6302_v61 = vpop.eup %6301  ;;  %v5351_v49 = vsel %vm5350_vm1, %v6298_v23, %v5347_v59  ;;  %v5404_v43 = vmul.f32 %v6300_v4, %v11360_v38  ;;  %6303 = vpow2.f32 %v5941_v53  ;;  %v5412_v23 = vand.u32 2147483647, %v11360_v38 }
 0x622   :  { %v5356_v46 = vsel %vm5353_vm2, %v5355_v12, %v5351_v49  ;;  %v11395_v56 = vadd.f32 1.0, %v6302_v61  ;;  %vm5409_vm5 = vweird.f32 %v6300_v4 }
 0x623   :  { %v5733_v5 = vmul.f32 %v11276_v7, %v5356_v46  ;;  %v5405_v40 = vsub.f32 1.0, %v5404_v43  ;;  %v5175_v7 = vor.u32 1.1754944e-38, %v5174_v14  ;;  %vm5410_vm8 = vmor %vm5408_vm7, %vm5409_vm5  ;;  %vm5413_vm10 = vcmp.eq.f32.partialorder %v5412_v23, 8.507059e+37 }
 0x624   :  { %6305 = vrcp.f32 %v11395_v56  ;;  %v4435_v13 = vpop.f32.mrf.mxu3  ;;  %v5474_v11 = vand.u32 2147483648, %v11395_v56  ;;  %v5472_v53 = vand.u32 2147483647, %v11395_v56  ;;  %vm5468_vm11 = vweird.f32 %v11395_v56 }
 0x625   :  { %v11412_v39 = vadd.f32 %v5733_v5, %v5717_v58  ;;  %v5406_v15 = vmul.f32 %v6300_v4, %v5405_v40  ;;  %v4436_v62 = vadd.f32 %v4435_v13, %v4347_v51  ;;  %v5176_v10 = vsel %vm5173_vm6, %v5175_v7, %v5171_v44  ;;  %v4350_v36 = vpop.f32.mrf.mxu2 }
 0x626   :  { %v5721_v16 = vmul.f32 %v5705_v55, %v5176_v10  ;;  %v4351_v28 = vadd.f32 %v4350_v36, %v4246_v8  ;;  %v5475_v12 = vor.u32 1.1754944e-38, %v5474_v11  ;;  %vm5473_vm13 = vcmp.eq.f32.partialorder %v5472_v53, 8.507059e+37 }
 0x627   :  { %v6304_v52 = vpop.eup %6303  ;;  %5845 = vst [vmem:[#allocation4 + $0x58] sm:$0xff] %v11412_v39  ;;  %v5407_v20 = vadd.f32 %v6300_v4, %v5406_v15  ;;  %v5945_v30 = vmul.f32 -1.442695, %v4436_v62 }
 0x628   :  { %v11421_v17 = vadd.f32 1.0, %v6304_v52 }
 0x629   :  { %v5411_v24 = vsel %vm5410_vm8, %v6300_v4, %v5407_v20  ;;  %6307 = vpow2.f32 %v5945_v30 }
 0x62a   :  { %v6306_v9 = vpop.eup %6305  ;;  %v5416_v0 = vsel %vm5413_vm10, %v5415_v26, %v5411_v24  ;;  %6309 = vrcp.f32 %v11421_v17  ;;  %v5534_v54 = vand.u32 2147483648, %v11421_v17  ;;  %vm5528_vm15 = vweird.f32 %v11421_v17 }
 0x62b   :  { %v5737_v38 = vmul.f32 %v5965_v50, %v5416_v0  ;;  %v5464_v1 = vmul.f32 %v6306_v9, %v11395_v56  ;;  %6311 = vtanh.f32 %v11345_v32  ;;  %vm5469_vm9 = vweird.f32 %v6306_v9 }
 0x62c   :  { %v4439_v18 = vpop.f32.mrf.mxu3  ;;  %vm5470_vm12 = vmor %vm5468_vm11, %vm5469_vm9  ;;  %v5532_v56 = vand.u32 2147483647, %v11421_v17  ;;  %v5535_v51 = vor.u32 1.1754944e-38, %v5534_v54 }
 0x62d   :  { %v11428_v37 = vadd.f32 %v5737_v38, %v5721_v16  ;;  %v5465_v42 = vsub.f32 1.0, %v5464_v1  ;;  %v4440_v34 = vadd.f32 %v4439_v18, %v4351_v28 }
 0x62e   :  { %vm5533_vm3 = vcmp.eq.f32.partialorder %v5532_v56, 8.507059e+37 }
 0x62f   :  { %v6308_v19 = vpop.eup %6307  ;;  %5849 = vst [vmem:[#allocation4 + $0x78] sm:$0xff] %v11428_v37  ;;  %v5466_v59 = vmul.f32 %v6306_v9, %v5465_v42  ;;  %v5949_v4 = vmul.f32 -1.442695, %v4440_v34 }
 0x630   :  { %v6310_v47 = vpop.eup %6309  ;;  %v4693_v35 = vadd.f32 1.0, %v6308_v19  ;;  %5875 = dma.vmem_to_hbm [thread:$0]  %s5868_s14, 2048, %s5870_s1, [#allocation5], %s6392_s2, %s6392_s2, %s6393_s10  }
 0x631   :  { %v5467_v21 = vadd.f32 %v6306_v9, %v5466_v59  ;;  %v5524_v32 = vmul.f32 %v6310_v47, %v11421_v17  ;;  %6313 = vpow2.f32 %v5949_v4  ;;  %v6312_v49 = vpop.eup %6311  ;;  %vm5529_vm14 = vweird.f32 %v6310_v47 }
 0x632   :  { %6315 = vrcp.f32 %v4693_v35  ;;  %vm5530_vm0 = vmor %vm5528_vm15, %vm5529_vm14  ;;  %v5592_v52 = vand.u32 2147483647, %v4693_v35  ;;  %vm5588_vm2 = vweird.f32 %v4693_v35 }
 0x633   :  { %v5471_v3 = vsel %vm5470_vm12, %v6306_v9, %v5467_v21  ;;  %v5525_v61 = vsub.f32 1.0, %v5524_v32  ;;  %6317 = vtanh.f32 %v11380_v31 }
 0x634   :  { %v5476_v43 = vsel %vm5473_vm13, %v5475_v12, %v5471_v3  ;;  %vm5593_vm5 = vcmp.eq.f32.partialorder %v5592_v52, 8.507059e+37 }
 0x635   :  { %v5773_v14 = vmul.f32 %v6312_v49, %v5476_v43  ;;  %v5526_v46 = vmul.f32 %v6310_v47, %v5525_v61 }
 0x637   :  { %v6314_v58 = vpop.eup %6313  ;;  %v5789_v41 = vmul.f32 %v5773_v14, %v12696_v27  ;;  %v5527_v5 = vadd.f32 %v6310_v47, %v5526_v46  ;;  %v5594_v27 = vand.u32 2147483648, %v4693_v35 }
 0x638   :  { %v6316_v40 = vpop.eup %6315  ;;  %v4697_v44 = vadd.f32 1.0, %v6314_v58 }
 0x639   :  { %v5805_v31 = vadd.f32 %v5789_v41, %v12697_v29  ;;  %v5531_v48 = vsel %vm5530_vm0, %v6310_v47, %v5527_v5  ;;  %v5584_v23 = vmul.f32 %v6316_v40, %v4693_v35  ;;  %v6318_v33 = vpop.eup %6317  ;;  %vm5589_vm1 = vweird.f32 %v6316_v40 }
 0x63a   :  { %v5536_v13 = vsel %vm5533_vm3, %v5535_v51, %v5531_v48  ;;  %6319 = vrcp.f32 %v4697_v44  ;;  %vm5590_vm4 = vmor %vm5588_vm2, %vm5589_vm1  ;;  %v5595_v30 = vor.u32 1.1754944e-38, %v5594_v27  ;;  %vm5648_vm7 = vweird.f32 %v4697_v44 }
 0x63b   :  { %5821 = vst [vmem:[#allocation2 + $0x18] sm:$0xff] %v5805_v31  ;;  %v5777_v15 = vmul.f32 %v6318_v33, %v5536_v13  ;;  %v5585_v62 = vsub.f32 1.0, %v5584_v23  ;;  %6321 = vtanh.f32 %v11412_v39 }
 0x63c   :  { %6323 = vtanh.f32 %v11428_v37 }
 0x63d   :  { %v5793_v7 = vmul.f32 %v5777_v15, %v12698_v45  ;;  %v5586_v6 = vmul.f32 %v6316_v40, %v5585_v62  ;;  %v5654_v45 = vand.u32 2147483648, %v4697_v44 }
 0x63f   :  { %v5809_v25 = vadd.f32 %v5793_v7, %v12699_v2  ;;  %v5587_v29 = vadd.f32 %v6316_v40, %v5586_v6  ;;  %v5652_v2 = vand.u32 2147483647, %v4697_v44  ;;  %v5655_v0 = vor.u32 1.1754944e-38, %v5654_v45 }
 0x640   :  { %v6320_v20 = vpop.eup %6319 }
 0x641   :  { %5825 = vst [vmem:[#allocation2 + $0x38] sm:$0xff] %v5809_v25  ;;  %v5591_v50 = vsel %vm5590_vm4, %v6316_v40, %v5587_v29  ;;  %v5644_v10 = vmul.f32 %v6320_v20, %v4697_v44  ;;  %v6322_v55 = vpop.eup %6321  ;;  %vm5649_vm6 = vweird.f32 %v6320_v20  ;;  %vm5653_vm10 = vcmp.eq.f32.partialorder %v5652_v2, 8.507059e+37 }
 0x642   :  { %v5596_v26 = vsel %vm5593_vm5, %v5595_v30, %v5591_v50  ;;  %vm5650_vm8 = vmor %vm5648_vm7, %vm5649_vm6  ;;  %v6324_v38 = vpop.eup %6323 }
 0x643   :  { %v5781_v39 = vmul.f32 %v6322_v55, %v5596_v26  ;;  %v5645_v17 = vsub.f32 1.0, %v5644_v10 }
 0x645   :  { %v5797_v36 = vmul.f32 %v5781_v39, %v12701_v60  ;;  %v5646_v24 = vmul.f32 %v6320_v20, %v5645_v17 }
 0x647   :  { %v5813_v8 = vadd.f32 %v5797_v36, %v12702_v57  ;;  %v5647_v9 = vadd.f32 %v6320_v20, %v5646_v24 }
 0x649   :  { %5829 = vst [vmem:[#allocation2 + $0x58] sm:$0xff] %v5813_v8  ;;  %v5651_v16 = vsel %vm5650_vm8, %v6320_v20, %v5647_v9 }
 0x64a   :  { %v5656_v1 = vsel %vm5653_vm10, %v5655_v0, %v5651_v16 }
 0x64b   :  { %v5785_v28 = vmul.f32 %v6324_v38, %v5656_v1 }
 0x64d   :  { %v5801_v60 = vmul.f32 %v5785_v28, %v12703_v22 }
 0x64f   :  { %v5817_v57 = vadd.f32 %v5801_v60, %v12704_v63 }
 0x651   :  { %5833 = vst [vmem:[#allocation2 + $0x78] sm:$0xff] %v5817_v57 }
 0x652   :  { %5862 = dma.vmem_to_hbm [thread:$0]  %s5855_s20, 2048, %s5857_s22, [#allocation3], %s6392_s2, %s6392_s2, %s6393_s10  }
 0x653   :  { %6374 = dma.done.wait [#allocation3], 2048  }
 0x654   :  { %6375 = vsyncadd [#allocation3], 4294965248 }
 0x655   :  { %6376 = dma.done.wait [#allocation5], 2048  }
 0x656   :  { %6377 = vsyncadd [#allocation5], 4294965248 }
 0x657   :  { %5884 = vsyncpa [#allocation3], 1 }
 0x658   :  { %5885 = vsyncpa [#allocation5], 1 }

</bundles_post_ra>
